<compile_context>
chip_gen: v7x
topology: tpu7x:2x2x1
jax: 0.10.0
libtpu: 0.0.40
codegen_flags: <defaults>
</compile_context>

<pallas_src>
import functools

import jax
import jax.numpy as jnp
from jax.experimental import pallas as pl
from jax.experimental.pallas import tpu as pltpu

CP = 128  # padded channel width (all real channel counts in this module are <= 128)


def _round_up(x, m):
    return ((x + m - 1) // m) * m


def _pad_to(x, shape):
    pads = [(0, t - s) for s, t in zip(x.shape, shape)]
    return jnp.pad(x, pads)


def _pick_tile(m, cands=(1024, 512, 256, 128)):
    for t in cands:
        if m % t == 0:
            return t
    return m  # single block over all rows (small/odd cases)


# --------------------------- matmul (+bias) kernel ---------------------------

def _matmul_bias_kernel(a_ref, b_ref, bias_ref, o_ref):
    acc = jnp.dot(a_ref[...], b_ref[...], preferred_element_type=jnp.float32)
    o_ref[...] = (acc + bias_ref[...]).astype(o_ref.dtype)


def matmul_bias(a, b, bias):
    """(M, K) bf16 @ (K, N) bf16 + bias(N,) f32 -> (M, N) bf16. K, N multiples of 128."""
    M, K = a.shape
    K2, Nc = b.shape
    assert K == K2 and K % 128 == 0 and Nc % 128 == 0 and M % 128 == 0
    tm = _pick_tile(M)
    return pl.pallas_call(
        _matmul_bias_kernel,
        out_shape=jax.ShapeDtypeStruct((M, Nc), jnp.bfloat16),
        grid_spec=pltpu.PrefetchScalarGridSpec(
            num_scalar_prefetch=0,
            grid=(M // tm,),
            in_specs=[
                pl.BlockSpec((tm, K), lambda i: (i, 0)),
                pl.BlockSpec((K, Nc), lambda i: (0, 0)),
                pl.BlockSpec((1, Nc), lambda i: (0, 0)),
            ],
            out_specs=pl.BlockSpec((tm, Nc), lambda i: (i, 0)),
        ),
        compiler_params=pltpu.CompilerParams(dimension_semantics=("parallel",)),
    )(a, b, bias.reshape(1, Nc).astype(jnp.float32))


# ------ fused non-local attention (+Q proj, +W 1x1, +bias, +residual) kernel -----

def _attn_fused_kernel(x1_ref, kv_ref, qw_ref, qb_ref, wf_ref, wfb_ref, kbias_ref,
                       o_ref, q_sc, m_sc, l_sc, acc_sc, *, ckp):
    ki = pl.program_id(2)

    @pl.when(ki == 0)
    def _init():
        # fused Q 1x1 projection of the resident x1 tile (computed once per q-tile)
        q = jnp.dot(x1_ref[0], qw_ref[...], preferred_element_type=jnp.float32)
        q_sc[...] = (q + qb_ref[...]).astype(jnp.bfloat16)
        m_sc[...] = jnp.full(m_sc.shape, -1e30, jnp.float32)
        l_sc[...] = jnp.zeros(l_sc.shape, jnp.float32)
        acc_sc[...] = jnp.zeros(acc_sc.shape, jnp.float32)

    k = kv_ref[0, :, :ckp]                 # (tk, ckp) bf16
    v = kv_ref[0, :, ckp:]                 # (tk, cvp) bf16
    # q @ k^T without a wrapper-side transpose (MXU takes the transposed operand).
    s = jax.lax.dot_general(q_sc[...], k, (((1,), (1,)), ((), ())),
                            preferred_element_type=jnp.float32)       # (tq, tk)
    s = s + kbias_ref[0, 0:1, :]           # -1e30 on padded keys, only on last k-tile

    m_prev = m_sc[...]
    m_new = jnp.maximum(m_prev, jnp.max(s, axis=-1, keepdims=True))
    alpha = jnp.exp(m_prev - m_new)
    p = jnp.exp(s - m_new)
    l_sc[...] = alpha * l_sc[...] + jnp.sum(p, axis=-1, keepdims=True)
    acc_sc[...] = alpha * acc_sc[...] + jnp.dot(p.astype(jnp.bfloat16), v,
                                                preferred_element_type=jnp.float32)
    m_sc[...] = m_new

    @pl.when(ki == pl.num_programs(2) - 1)
    def _finish():
        ctx = acc_sc[...] * pl.reciprocal(l_sc[...], approx=True)
        out = jnp.dot(ctx.astype(jnp.bfloat16), wf_ref[...],
                      preferred_element_type=jnp.float32)
        o_ref[0] = (out + wfb_ref[...] + x1_ref[0].astype(jnp.float32)).astype(o_ref.dtype)


def nlfp_attention_fused(x1, kv, qw, qb, wf, wfb, l2_real, tq, tk):
    """x1:(B,L1p,Cp) bf16, kv:(B,L2p,2Cp) bf16 -> (B,L1p,Cp) bf16 =
       softmax((x1@qw+qb) K^T) V @ Wf + b + x1."""
    B, L1p, cp = x1.shape
    L2p = kv.shape[1]
    ckp = cp
    cvp = kv.shape[2] - ckp
    assert L1p % tq == 0 and L2p % tk == 0
    nk = L2p // tk
    # additive key-padding bias: only the last k-tile's row carries -1e30 on padded keys
    kbias = jnp.zeros((nk, 8, tk), jnp.float32)
    if L2p != l2_real:
        tail = l2_real - (nk - 1) * tk
        row = jnp.where(jnp.arange(tk) < tail, 0.0, -1e30).astype(jnp.float32)
        kbias = kbias.at[nk - 1, 0, :].set(row)
    kernel = functools.partial(_attn_fused_kernel, ckp=ckp)
    return pl.pallas_call(
        kernel,
        out_shape=jax.ShapeDtypeStruct((B, L1p, cp), jnp.bfloat16),
        grid_spec=pltpu.PrefetchScalarGridSpec(
            num_scalar_prefetch=0,
            grid=(B, L1p // tq, nk),
            in_specs=[
                pl.BlockSpec((1, tq, cp), lambda b, qi, ki: (b, qi, 0)),
                pl.BlockSpec((1, tk, ckp + cvp), lambda b, qi, ki: (b, ki, 0)),
                pl.BlockSpec((cp, cp), lambda b, qi, ki: (0, 0)),
                pl.BlockSpec((1, cp), lambda b, qi, ki: (0, 0)),
                pl.BlockSpec((cvp, cp), lambda b, qi, ki: (0, 0)),
                pl.BlockSpec((1, cp), lambda b, qi, ki: (0, 0)),
                pl.BlockSpec((1, 8, tk), lambda b, qi, ki: (ki, 0, 0)),
            ],
            out_specs=pl.BlockSpec((1, tq, cp), lambda b, qi, ki: (b, qi, 0)),
            scratch_shapes=[
                pltpu.VMEM((tq, cp), jnp.bfloat16),   # projected Q
                pltpu.VMEM((tq, 1), jnp.float32),     # running max
                pltpu.VMEM((tq, 1), jnp.float32),     # running sum
                pltpu.VMEM((tq, cvp), jnp.float32),   # running PV accumulator
            ],
        ),
        compiler_params=pltpu.CompilerParams(
            dimension_semantics=("parallel", "parallel", "arbitrary"),
            vmem_limit_bytes=48 * 1024 * 1024),
    )(x1, kv, qw, qb.reshape(1, cp).astype(jnp.float32),
      wf, wfb.reshape(1, cp).astype(jnp.float32), kbias)


# ------ 3x3 conv (row-band tiled, +bias, +BN stats, optional fused BN+ReLU input) ------

def _conv3x3_kernel(band_ref, top_ref, bot_ref, w_ref, b_ref, sc_ref, sh_ref,
                    y_ref, st_ref, xs, *, wc, rows, fuse_in_bn_relu):
    j = pl.program_id(1)
    nb = pl.num_programs(1)
    T = rows * wc
    cp = y_ref.shape[-1]

    def prep(v):  # bf16 (.., cp) -> f32, with optional fused BN1-apply + ReLU
        v = v.astype(jnp.float32)
        if fuse_in_bn_relu:
            v = jnp.maximum(v * sc_ref[...] + sh_ref[...], 0.0)
        return v

    # assemble the halo-padded flat band into scratch: [8 slack][top row][band][bottom row][8 slack]
    xs[pl.ds(0, 8), :] = jnp.zeros((8, cp), jnp.float32)
    xs[pl.ds(8 + (rows + 2) * wc, 8), :] = jnp.zeros((8, cp), jnp.float32)
    xs[pl.ds(8 + wc, T), :] = prep(band_ref[0])

    @pl.when(j == 0)
    def _():
        xs[pl.ds(8, wc), :] = jnp.zeros((wc, cp), jnp.float32)

    @pl.when(j > 0)
    def _():
        xs[pl.ds(8, wc), :] = prep(top_ref[0])

    @pl.when(j == nb - 1)
    def _():
        xs[pl.ds(8 + (rows + 1) * wc, wc), :] = jnp.zeros((wc, cp), jnp.float32)

    @pl.when(j < nb - 1)
    def _():
        xs[pl.ds(8 + (rows + 1) * wc, wc), :] = prep(bot_ref[0])

    # in-kernel left/right image-border masks (no lane-padded mask array from HBM)
    col = jax.lax.broadcasted_iota(jnp.int32, (T, 1), 0) % wc
    left_ok = (col != 0).astype(jnp.float32)
    right_ok = (col != wc - 1).astype(jnp.float32)

    acc = jnp.zeros((T, cp), jnp.float32)
    for dwi, dw in enumerate((-1, 0, 1)):
        part = jnp.zeros((T, cp), jnp.float32)
        for kh in range(3):
            start = 8 + kh * wc + dw              # static offset into the flat buffer
            xsrc = xs[pl.ds(start, T), :].astype(jnp.bfloat16)
            part = part + jnp.dot(xsrc, w_ref[kh * 3 + dwi],
                                  preferred_element_type=jnp.float32)
        if dw == -1:
            part = part * left_ok
        elif dw == 1:
            part = part * right_ok
        acc = acc + part
    y = acc + b_ref[...]
    y_ref[0] = y.astype(y_ref.dtype)
    # fused BatchNorm pass-1: per-band channel sum / sum-of-squares
    st_ref[0, 0, 0:1, :] = jnp.sum(y, axis=0, keepdims=True)
    st_ref[0, 0, 1:2, :] = jnp.sum(y * y, axis=0, keepdims=True)


def _pick_band_rows(h2, w2, target_tokens=4096):
    if h2 * w2 <= target_tokens:
        return h2
    start = max(1, min(h2, target_tokens // w2))
    for r in range(start, 0, -1):
        if h2 % r == 0 and (r * w2) % 8 == 0:
            return r
    return h2  # TODO(synk): whole-image fallback for awkward shapes; may be VMEM-heavy


def conv3x3_band(x_tok, w33, b, inscale, inshift, hc, wc, band_rows, fuse_in_bn_relu):
    """x_tok:(N,L,Cp) bf16 tokens of an (hc,wc) image -> (y:(N,L,Cp) bf16, stats:(N,nb,2,Cp) f32)."""
    N, L, cp = x_tok.shape
    assert L == hc * wc and hc % band_rows == 0
    assert wc % 8 == 0, "row width (2*W) must be a multiple of 8 for halo blocks"
    nb = hc // band_rows
    T = band_rows * wc
    wflat = w33.reshape(9, cp, cp)
    kernel = functools.partial(_conv3x3_kernel, wc=wc, rows=band_rows,
                               fuse_in_bn_relu=fuse_in_bn_relu)
    return pl.pallas_call(
        kernel,
        out_shape=(jax.ShapeDtypeStruct((N, L, cp), jnp.bfloat16),
                   jax.ShapeDtypeStruct((N, nb, 2, cp), jnp.float32)),
        grid_spec=pltpu.PrefetchScalarGridSpec(
            num_scalar_prefetch=0,
            grid=(N, nb),
            in_specs=[
                # band of image rows
                pl.BlockSpec((1, T, cp), lambda n, j: (n, j, 0)),
                # single-row halos above / below the band (clamped at the image border,
                # zeroed in-kernel when clamped)
                pl.BlockSpec((1, wc, cp),
                             lambda n, j: (n, jnp.maximum(j * band_rows - 1, 0), 0)),
                pl.BlockSpec((1, wc, cp),
                             lambda n, j: (n, jnp.minimum((j + 1) * band_rows, hc - 1), 0)),
                pl.BlockSpec((9, cp, cp), lambda n, j: (0, 0, 0)),
                pl.BlockSpec((1, cp), lambda n, j: (0, 0)),
                pl.BlockSpec((1, cp), lambda n, j: (0, 0)),
                pl.BlockSpec((1, cp), lambda n, j: (0, 0)),
            ],
            out_specs=[
                pl.BlockSpec((1, T, cp), lambda n, j: (n, j, 0)),
                pl.BlockSpec((1, 1, 2, cp), lambda n, j: (n, j, 0, 0)),
            ],
            scratch_shapes=[pltpu.VMEM((T + 2 * wc + 16, cp), jnp.float32)],
        ),
        compiler_params=pltpu.CompilerParams(
            dimension_semantics=("parallel", "parallel"),
            vmem_limit_bytes=48 * 1024 * 1024),
    )(x_tok, x_tok, x_tok, wflat, b.reshape(1, cp).astype(jnp.float32),
      inscale.reshape(1, cp).astype(jnp.float32),
      inshift.reshape(1, cp).astype(jnp.float32))


# --------------------- final BatchNorm(apply) + ReLU kernel -------------------

def _bn_relu_kernel(x_ref, scale_ref, shift_ref, o_ref):
    y = x_ref[...].astype(jnp.float32) * scale_ref[...] + shift_ref[...]
    o_ref[...] = jnp.maximum(y, 0.0)


def bn_relu_apply(x, scale, shift):
    M, C = x.shape
    tm = _pick_tile(M)
    return pl.pallas_call(
        _bn_relu_kernel,
        out_shape=jax.ShapeDtypeStruct((M, C), jnp.float32),
        grid_spec=pltpu.PrefetchScalarGridSpec(
            num_scalar_prefetch=0,
            grid=(M // tm,),
            in_specs=[
                pl.BlockSpec((tm, C), lambda i: (i, 0)),
                pl.BlockSpec((1, C), lambda i: (0, 0)),
                pl.BlockSpec((1, C), lambda i: (0, 0)),
            ],
            out_specs=pl.BlockSpec((tm, C), lambda i: (i, 0)),
        ),
        compiler_params=pltpu.CompilerParams(dimension_semantics=("parallel",)),
    )(x, scale.reshape(1, C).astype(jnp.float32), shift.reshape(1, C).astype(jnp.float32))


def _bn_scale_shift(stats, count, gamma, beta, eps=1e-5):
    s = jnp.sum(stats[:, :, 0, :], axis=(0, 1))
    ss = jnp.sum(stats[:, :, 1, :], axis=(0, 1))
    mean = s / count
    var = jnp.maximum(ss / count - mean * mean, 0.0)   # biased var (training-mode BN)
    inv = jax.lax.rsqrt(var + eps)
    scale = gamma * inv
    shift = beta - mean * scale
    return scale, shift


# ------------------------------ parameters -----------------------------------

def init_params(key, in_channels, out_channels):
    Cin, Cout = in_channels, out_channels
    Ck = Cv = in_channels // 2
    ks = jax.random.split(key, 12)

    def u(k, shape, fan_in):
        bound = float(fan_in) ** -0.5
        return jax.random.uniform(k, shape, jnp.float32, -bound, bound)

    return dict(
        # self.up = ConvTranspose2d(Cin, Cout, 2, 2): torch weight (Cin, Cout, 2, 2)
        up_w=u(ks[0], (Cin, Cout, 2, 2), Cin * 4),
        up_b=u(ks[1], (Cout,), Cin * 4),
        # NLFP 1x1 convs, stored as (Cin_conv, Cout_conv) matmul weights
        q_w=u(ks[2], (Cout, Ck), Cout), q_b=u(ks[3], (Ck,), Cout),
        k_w=u(ks[4], (Cout, Ck), Cout), k_b=u(ks[5], (Ck,), Cout),
        v_w=u(ks[6], (Cout, Cv), Cout), v_b=u(ks[7], (Cv,), Cout),
        # NLFP.W is zero-initialized in the module __init__
        Wf_w=jnp.zeros((Cv, Cout), jnp.float32),
        Wf_b=jnp.zeros((Cout,), jnp.float32),
        # double_conv: two 3x3 convs (w layout (kh, kw, Cin, Cout)) + BN affine defaults
        c1_w=u(ks[8], (3, 3, Cout, Cout), 9 * Cout), c1_b=u(ks[9], (Cout,), 9 * Cout),
        c2_w=u(ks[10], (3, 3, Cout, Cout), 9 * Cout), c2_b=u(ks[11], (Cout,), 9 * Cout),
        bn1_g=jnp.ones((Cout,), jnp.float32), bn1_b=jnp.zeros((Cout,), jnp.float32),
        bn2_g=jnp.ones((Cout,), jnp.float32), bn2_b=jnp.zeros((Cout,), jnp.float32),
    )


# ------------------------------ forward pass ----------------------------------

def nlff_up_forward(params, x_low, x_high):
    """x_low: (N, Cout, 2H, 2W) NCHW; x_high: (N, Cin, H, W) NCHW -> (N, Cout, 2H, 2W)."""
    N, Cin, H, W = x_high.shape
    Cout = params["up_b"].shape[0]
    Ck = params["q_b"].shape[0]
    Cv = params["v_b"].shape[0]
    assert Cin <= CP and Cout <= CP and Ck <= CP and Cv <= CP and 4 * Cout <= CP
    H2, W2 = 2 * H, 2 * W
    L1 = H2 * W2
    Hl, Wl = x_low.shape[2], x_low.shape[3]
    L2 = Hl * Wl
    bf16 = jnp.bfloat16
    f32 = jnp.float32

    # --- self.up : ConvTranspose2d(k=2, s=2) as a matmul + pixel shuffle ---
    M1 = N * H * W
    M1p = _round_up(M1, 128)
    xh_tok = jnp.transpose(x_high, (0, 2, 3, 1)).reshape(M1, Cin).astype(bf16)
    xh_tok = _pad_to(xh_tok, (M1p, CP))
    w_up = jnp.transpose(params["up_w"], (0, 2, 3, 1)).reshape(Cin, 4 * Cout)  # cols = (p,q,co)
    w_up = _pad_to(w_up, (CP, CP)).astype(bf16)
    b_up = _pad_to(jnp.tile(params["up_b"], 4), (CP,))
    y_up = matmul_bias(xh_tok, w_up, b_up)                                     # (M1p, CP) bf16
    y_up = y_up[:M1, :4 * Cout].reshape(N, H, W, 2, 2, Cout)
    # TODO(synk): fold this pixel-shuffle transpose into the up-matmul out_spec index_map.
    x1 = jnp.transpose(y_up, (0, 1, 3, 2, 4, 5)).reshape(N, L1, Cout)          # NHWC tokens, bf16

    # --- token layouts, 128-lane padded, bf16 ---
    tq = min(512, _round_up(L1, 128))
    tk = min(256, _round_up(L2, 128))
    L1p = _round_up(L1, tq)
    L2p = _round_up(L2, tk)
    x1_tok = _pad_to(x1, (N, L1p, CP))
    xl_tok = jnp.transpose(x_low, (0, 2, 3, 1)).reshape(N, L2, Cout).astype(bf16)
    xl_tok = _pad_to(xl_tok, (N, L2p, CP))

    # --- fused K+V 1x1 projections of x_low (single matmul pass) ---
    kv_w = jnp.concatenate([_pad_to(params["k_w"], (CP, CP)),
                            _pad_to(params["v_w"], (CP, CP))], axis=1).astype(bf16)
    kv_b = jnp.concatenate([_pad_to(params["k_b"], (CP,)), _pad_to(params["v_b"], (CP,))])
    kv_tok = matmul_bias(xl_tok.reshape(N * L2p, CP), kv_w, kv_b).reshape(N, L2p, 2 * CP)

    # --- flash-style attention with fused Q projection, W(1x1), bias and residual(x1) ---
    qw = _pad_to(params["q_w"], (CP, CP)).astype(bf16)
    qb = _pad_to(params["q_b"], (CP,))
    wf = _pad_to(params["Wf_w"], (CP, CP)).astype(bf16)
    wfb = _pad_to(params["Wf_b"], (CP,))
    x_fused = nlfp_attention_fused(x1_tok, kv_tok, qw, qb, wf, wfb, L2, tq, tk)
    x_fused = x_fused[:, :L1, :]                                               # (N, L1, CP) bf16

    # --- double_conv: (3x3 conv -> BN(train stats) -> ReLU) * 2, BN1+ReLU fused into conv2 ---
    band_rows = _pick_band_rows(H2, W2)
    c1_w = _pad_to(params["c1_w"], (3, 3, CP, CP)).astype(bf16)
    c1_b = _pad_to(params["c1_b"], (CP,))
    c2_w = _pad_to(params["c2_w"], (3, 3, CP, CP)).astype(bf16)
    c2_b = _pad_to(params["c2_b"], (CP,))
    bn1_g = _pad_to(params["bn1_g"], (CP,)); bn1_b = _pad_to(params["bn1_b"], (CP,))
    bn2_g = _pad_to(params["bn2_g"], (CP,)); bn2_b = _pad_to(params["bn2_b"], (CP,))
    ones = jnp.ones((CP,), f32)
    zeros = jnp.zeros((CP,), f32)

    y1, st1 = conv3x3_band(x_fused, c1_w, c1_b, ones, zeros, H2, W2, band_rows, False)
    sc1, sh1 = _bn_scale_shift(st1, N * L1, bn1_g, bn1_b)
    # BN1-apply + ReLU are applied to conv2's input stream inside the conv kernel.
    y2, st2 = conv3x3_band(y1, c2_w, c2_b, sc1, sh1, H2, W2, band_rows, True)
    sc2, sh2 = _bn_scale_shift(st2, N * L1, bn2_g, bn2_b)

    out = bn_relu_apply(y2.reshape(N * L1, CP), sc2, sh2)                      # (N*L1, CP) f32
    out = out.reshape(N, H2, W2, CP)[..., :Cout]
    return jnp.transpose(out, (0, 3, 1, 2))                                    # back to NCHW


if __name__ == "__main__":
    key = jax.random.PRNGKey(0)
    k1, k2, k3 = jax.random.split(key, 3)
    in_channels, out_channels = 8, 4
    N, H, W = 2, 8, 8
    # x_high feeds the transposed conv (in_channels); x_low is already at 2x resolution
    x_high = jax.random.normal(k1, (N, in_channels, H, W), jnp.float32)
    x_low = jax.random.normal(k2, (N, out_channels, 2 * H, 2 * W), jnp.float32)
    params = init_params(k3, in_channels, out_channels)

    out = jax.jit(nlff_up_forward)(params, x_low, x_high)
    out = jax.block_until_ready(out)
    assert out.shape == (N, out_channels, 2 * H, 2 * W)
    assert bool(jnp.all(jnp.isfinite(out)))
    print("KERNEL_OK")
</pallas_src>

<mosaic_0001>
module attributes {stable_mosaic.version = 11 : i64} {
  func.func @_matmul_bias_kernel(%arg0: i32, %arg1: memref<512x128xbf16, #tpu.memory_space<vmem>>, %arg2: memref<128x256xbf16, #tpu.memory_space<vmem>>, %arg3: memref<1x256xf32, #tpu.memory_space<vmem>>, %arg4: memref<512x256xbf16, #tpu.memory_space<vmem>>) attributes {dimension_semantics = [#tpu.dimension_semantics<parallel>], iteration_bounds = array<i64: 1>, scalar_prefetch = 0 : i64, scratch_operands = 0 : i64, tpu.core_type = #tpu.core_type<tc>, window_params = [{transform_indices = @transform_0, window_bounds = array<i64: 512, 128>}, {pipeline_mode = #tpu.pipeline_mode<synchronous>, transform_indices = @transform_1, window_bounds = array<i64: 128, 256>}, {pipeline_mode = #tpu.pipeline_mode<synchronous>, transform_indices = @transform_2, window_bounds = array<i64: 1, 256>}, {transform_indices = @transform_3, window_bounds = array<i64: 512, 256>}]} {
    %c0 = arith.constant 0 : index
    %c0_0 = arith.constant 0 : index
    %0 = vector.load %arg1[%c0, %c0_0] : memref<512x128xbf16, #tpu.memory_space<vmem>>, vector<512x128xbf16>
    %c0_1 = arith.constant 0 : index
    %c0_2 = arith.constant 0 : index
    %1 = vector.load %arg2[%c0_1, %c0_2] : memref<128x256xbf16, #tpu.memory_space<vmem>>, vector<128x256xbf16>
    %cst = arith.constant dense<0.000000e+00> : vector<512x256xf32>
    %2 = tpu.matmul %0, %1, %cst {dimension_numbers = #tpu.dot_dimension_numbers<[1], [0], [0], [1], [0, 0, 1, 1], [], []>} : vector<512x128xbf16>, vector<128x256xbf16>, vector<512x256xf32> -> vector<512x256xf32>
    %c0_3 = arith.constant 0 : index
    %c0_4 = arith.constant 0 : index
    %3 = vector.load %arg3[%c0_3, %c0_4] : memref<1x256xf32, #tpu.memory_space<vmem>>, vector<1x256xf32>
    %4 = vector.broadcast %3 : vector<1x256xf32> to vector<512x256xf32>
    %5 = arith.addf %2, %4 : vector<512x256xf32>
    %6 = arith.truncf %5 : vector<512x256xf32> to vector<512x256xbf16>
    %c0_5 = arith.constant 0 : index
    %c0_6 = arith.constant 0 : index
    %7 = vector.load %arg4[%c0_5, %c0_6] : memref<512x256xbf16, #tpu.memory_space<vmem>>, vector<512x256xbf16>
    tpu.vector_store %arg4[%c0_5, %c0_6], %6 {strides = array<i32>} : memref<512x256xbf16, #tpu.memory_space<vmem>>, vector<512x256xbf16>,
    return
  }
  func.func @transform_0(%arg0: i32) -> (i32, i32) {
    %c0_i32 = arith.constant 0 : i32
    %c0_i32_0 = arith.constant 0 : i32
    return %arg0, %c0_i32 : i32, i32
  }
  func.func @transform_1(%arg0: i32) -> (i32, i32) {
    %c0_i32 = arith.constant 0 : i32
    %c0_i32_0 = arith.constant 0 : i32
    %c0_i32_1 = arith.constant 0 : i32
    return %c0_i32, %c0_i32_0 : i32, i32
  }
  func.func @transform_2(%arg0: i32) -> (i32, i32) {
    %c0_i32 = arith.constant 0 : i32
    %c0_i32_0 = arith.constant 0 : i32
    %c0_i32_1 = arith.constant 0 : i32
    return %c0_i32, %c0_i32_0 : i32, i32
  }
  func.func @transform_3(%arg0: i32) -> (i32, i32) {
    %c0_i32 = arith.constant 0 : i32
    %c0_i32_0 = arith.constant 0 : i32
    return %arg0, %c0_i32 : i32, i32
  }
}

module attributes {stable_mosaic.version = 11 : i64} {
  func.func @_matmul_bias_kernel(%arg0: i32, %arg1: memref<128x128xbf16, #tpu.memory_space<vmem>>, %arg2: memref<128x128xbf16, #tpu.memory_space<vmem>>, %arg3: memref<1x128xf32, #tpu.memory_space<vmem>>, %arg4: memref<128x128xbf16, #tpu.memory_space<vmem>>) attributes {dimension_semantics = [#tpu.dimension_semantics<parallel>], iteration_bounds = array<i64: 1>, scalar_prefetch = 0 : i64, scratch_operands = 0 : i64, tpu.core_type = #tpu.core_type<tc>, window_params = [{transform_indices = @transform_0, window_bounds = array<i64: 128, 128>}, {pipeline_mode = #tpu.pipeline_mode<synchronous>, transform_indices = @transform_1, window_bounds = array<i64: 128, 128>}, {pipeline_mode = #tpu.pipeline_mode<synchronous>, transform_indices = @transform_2, window_bounds = array<i64: 1, 128>}, {transform_indices = @transform_3, window_bounds = array<i64: 128, 128>}]} {
    %c0 = arith.constant 0 : index
    %c0_0 = arith.constant 0 : index
    %0 = vector.load %arg1[%c0, %c0_0] : memref<128x128xbf16, #tpu.memory_space<vmem>>, vector<128x128xbf16>
    %c0_1 = arith.constant 0 : index
    %c0_2 = arith.constant 0 : index
    %1 = vector.load %arg2[%c0_1, %c0_2] : memref<128x128xbf16, #tpu.memory_space<vmem>>, vector<128x128xbf16>
    %cst = arith.constant dense<0.000000e+00> : vector<128x128xf32>
    %2 = tpu.matmul %0, %1, %cst {dimension_numbers = #tpu.dot_dimension_numbers<[1], [0], [0], [1], [0, 0, 1, 1], [], []>} : vector<128x128xbf16>, vector<128x128xbf16>, vector<128x128xf32> -> vector<128x128xf32>
    %c0_3 = arith.constant 0 : index
    %c0_4 = arith.constant 0 : index
    %3 = vector.load %arg3[%c0_3, %c0_4] : memref<1x128xf32, #tpu.memory_space<vmem>>, vector<1x128xf32>
    %4 = vector.broadcast %3 : vector<1x128xf32> to vector<128x128xf32>
    %5 = arith.addf %2, %4 : vector<128x128xf32>
    %6 = arith.truncf %5 : vector<128x128xf32> to vector<128x128xbf16>
    %c0_5 = arith.constant 0 : index
    %c0_6 = arith.constant 0 : index
    %7 = vector.load %arg4[%c0_5, %c0_6] : memref<128x128xbf16, #tpu.memory_space<vmem>>, vector<128x128xbf16>
    tpu.vector_store %arg4[%c0_5, %c0_6], %6 {strides = array<i32>} : memref<128x128xbf16, #tpu.memory_space<vmem>>, vector<128x128xbf16>,
    return
  }
  func.func @transform_0(%arg0: i32) -> (i32, i32) {
    %c0_i32 = arith.constant 0 : i32
    %c0_i32_0 = arith.constant 0 : i32
    return %arg0, %c0_i32 : i32, i32
  }
  func.func @transform_1(%arg0: i32) -> (i32, i32) {
    %c0_i32 = arith.constant 0 : i32
    %c0_i32_0 = arith.constant 0 : i32
    %c0_i32_1 = arith.constant 0 : i32
    return %c0_i32, %c0_i32_0 : i32, i32
  }
  func.func @transform_2(%arg0: i32) -> (i32, i32) {
    %c0_i32 = arith.constant 0 : i32
    %c0_i32_0 = arith.constant 0 : i32
    %c0_i32_1 = arith.constant 0 : i32
    return %c0_i32, %c0_i32_0 : i32, i32
  }
  func.func @transform_3(%arg0: i32) -> (i32, i32) {
    %c0_i32 = arith.constant 0 : i32
    %c0_i32_0 = arith.constant 0 : i32
    return %arg0, %c0_i32 : i32, i32
  }
}

module attributes {stable_mosaic.version = 11 : i64} {
  func.func @_attn_fused_kernel(%arg0: i32, %arg1: i32, %arg2: i32, %arg3: memref<1x256x128xbf16, #tpu.memory_space<vmem>>, %arg4: memref<1x256x256xbf16, #tpu.memory_space<vmem>>, %arg5: memref<128x128xbf16, #tpu.memory_space<vmem>>, %arg6: memref<1x128xf32, #tpu.memory_space<vmem>>, %arg7: memref<128x128xbf16, #tpu.memory_space<vmem>>, %arg8: memref<1x128xf32, #tpu.memory_space<vmem>>, %arg9: memref<1x8x256xf32, #tpu.memory_space<vmem>>, %arg10: memref<1x256x128xbf16, #tpu.memory_space<vmem>>, %arg11: memref<256x128xbf16, #tpu.memory_space<vmem>>, %arg12: memref<256x1xf32, #tpu.memory_space<vmem>>, %arg13: memref<256x1xf32, #tpu.memory_space<vmem>>, %arg14: memref<256x128xf32, #tpu.memory_space<vmem>>) attributes {dimension_semantics = [#tpu.dimension_semantics<parallel>, #tpu.dimension_semantics<parallel>, #tpu.dimension_semantics<arbitrary>], iteration_bounds = array<i64: 2, 1, 1>, scalar_prefetch = 0 : i64, scratch_operands = 4 : i64, tpu.core_type = #tpu.core_type<tc>, window_params = [{transform_indices = @transform_0, window_bounds = array<i64: 1, 256, 128>}, {transform_indices = @transform_1, window_bounds = array<i64: 1, 256, 256>}, {pipeline_mode = #tpu.pipeline_mode<synchronous>, transform_indices = @transform_2, window_bounds = array<i64: 128, 128>}, {pipeline_mode = #tpu.pipeline_mode<synchronous>, transform_indices = @transform_3, window_bounds = array<i64: 1, 128>}, {pipeline_mode = #tpu.pipeline_mode<synchronous>, transform_indices = @transform_4, window_bounds = array<i64: 128, 128>}, {pipeline_mode = #tpu.pipeline_mode<synchronous>, transform_indices = @transform_5, window_bounds = array<i64: 1, 128>}, {transform_indices = @transform_6, window_bounds = array<i64: 1, 8, 256>}, {transform_indices = @transform_7, window_bounds = array<i64: 1, 256, 128>}]} {
    %c0_i32 = arith.constant 0 : i32
    %0 = arith.cmpi eq, %arg2, %c0_i32 : i32
    %1 = arith.extui %0 : i1 to i32
    %c0_i32_0 = arith.constant 0 : i32
    %2 = arith.cmpi ne, %1, %c0_i32_0 : i32
    scf.if %2 {
      %c0_27 = arith.constant 0 : index
      %c0_28 = arith.constant 0 : index
      %c0_29 = arith.constant 0 : index
      %39 = vector.load %arg3[%c0_27, %c0_28, %c0_29] : memref<1x256x128xbf16, #tpu.memory_space<vmem>>, vector<1x256x128xbf16>
      %40 = vector.shape_cast %39 : vector<1x256x128xbf16> to vector<256x128xbf16>
      %c0_30 = arith.constant 0 : index
      %c0_31 = arith.constant 0 : index
      %41 = vector.load %arg5[%c0_30, %c0_31] : memref<128x128xbf16, #tpu.memory_space<vmem>>, vector<128x128xbf16>
      %cst_32 = arith.constant dense<0.000000e+00> : vector<256x128xf32>
      %42 = tpu.matmul %40, %41, %cst_32 {dimension_numbers = #tpu.dot_dimension_numbers<[1], [0], [0], [1], [0, 0, 1, 1], [], []>} : vector<256x128xbf16>, vector<128x128xbf16>, vector<256x128xf32> -> vector<256x128xf32>
      %c0_33 = arith.constant 0 : index
      %c0_34 = arith.constant 0 : index
      %43 = vector.load %arg6[%c0_33, %c0_34] : memref<1x128xf32, #tpu.memory_space<vmem>>, vector<1x128xf32>
      %44 = vector.broadcast %43 : vector<1x128xf32> to vector<256x128xf32>
      %45 = arith.addf %42, %44 : vector<256x128xf32>
      %46 = arith.truncf %45 : vector<256x128xf32> to vector<256x128xbf16>
      %c0_35 = arith.constant 0 : index
      %c0_36 = arith.constant 0 : index
      %47 = vector.load %arg11[%c0_35, %c0_36] : memref<256x128xbf16, #tpu.memory_space<vmem>>, vector<256x128xbf16>
      tpu.vector_store %arg11[%c0_35, %c0_36], %46 {strides = array<i32>} : memref<256x128xbf16, #tpu.memory_space<vmem>>, vector<256x128xbf16>,
      %cst_37 = arith.constant -1.000000e+30 : f32
      %48 = vector.broadcast %cst_37 : f32 to vector<256x1xf32>
      %c0_38 = arith.constant 0 : index
      %c0_39 = arith.constant 0 : index
      %49 = vector.load %arg12[%c0_38, %c0_39] : memref<256x1xf32, #tpu.memory_space<vmem>>, vector<256x1xf32>
      tpu.vector_store %arg12[%c0_38, %c0_39], %48 {strides = array<i32>} : memref<256x1xf32, #tpu.memory_space<vmem>>, vector<256x1xf32>,
      %cst_40 = arith.constant 0.000000e+00 : f32
      %50 = vector.broadcast %cst_40 : f32 to vector<256x1xf32>
      %c0_41 = arith.constant 0 : index
      %c0_42 = arith.constant 0 : index
      %51 = vector.load %arg13[%c0_41, %c0_42] : memref<256x1xf32, #tpu.memory_space<vmem>>, vector<256x1xf32>
      tpu.vector_store %arg13[%c0_41, %c0_42], %50 {strides = array<i32>} : memref<256x1xf32, #tpu.memory_space<vmem>>, vector<256x1xf32>,
      %cst_43 = arith.constant 0.000000e+00 : f32
      %52 = vector.broadcast %cst_43 : f32 to vector<256x128xf32>
      %c0_44 = arith.constant 0 : index
      %c0_45 = arith.constant 0 : index
      %53 = vector.load %arg14[%c0_44, %c0_45] : memref<256x128xf32, #tpu.memory_space<vmem>>, vector<256x128xf32>
      tpu.vector_store %arg14[%c0_44, %c0_45], %52 {strides = array<i32>} : memref<256x128xf32, #tpu.memory_space<vmem>>, vector<256x128xf32>,
    } else {
    }
    %c0 = arith.constant 0 : index
    %c0_1 = arith.constant 0 : index
    %c0_2 = arith.constant 0 : index
    %3 = vector.load %arg4[%c0, %c0_1, %c0_2] : memref<1x256x256xbf16, #tpu.memory_space<vmem>>, vector<1x256x128xbf16>
    %4 = vector.shape_cast %3 : vector<1x256x128xbf16> to vector<256x128xbf16>
    %c0_3 = arith.constant 0 : index
    %c0_4 = arith.constant 0 : index
    %c128 = arith.constant 128 : index
    %5 = vector.load %arg4[%c0_3, %c0_4, %c128] : memref<1x256x256xbf16, #tpu.memory_space<vmem>>, vector<1x256x128xbf16>
    %6 = vector.shape_cast %5 : vector<1x256x128xbf16> to vector<256x128xbf16>
    %c0_5 = arith.constant 0 : index
    %c0_6 = arith.constant 0 : index
    %7 = vector.load %arg11[%c0_5, %c0_6] : memref<256x128xbf16, #tpu.memory_space<vmem>>, vector<256x128xbf16>
    %cst = arith.constant dense<0.000000e+00> : vector<256x256xf32>
    %8 = tpu.matmul %7, %4, %cst {dimension_numbers = #tpu.dot_dimension_numbers<[1], [1], [0], [0], [0, 0, 1, 0], [], []>} : vector<256x128xbf16>, vector<256x128xbf16>, vector<256x256xf32> -> vector<256x256xf32>
    %c0_7 = arith.constant 0 : index
    %c0_8 = arith.constant 0 : index
    %c0_9 = arith.constant 0 : index
    %9 = vector.load %arg9[%c0_7, %c0_8, %c0_9] : memref<1x8x256xf32, #tpu.memory_space<vmem>>, vector<1x1x256xf32>
    %10 = vector.shape_cast %9 : vector<1x1x256xf32> to vector<1x256xf32>
    %11 = vector.broadcast %10 : vector<1x256xf32> to vector<256x256xf32>
    %12 = arith.addf %8, %11 : vector<256x256xf32>
    %c0_10 = arith.constant 0 : index
    %c0_11 = arith.constant 0 : index
    %13 = vector.load %arg12[%c0_10, %c0_11] : memref<256x1xf32, #tpu.memory_space<vmem>>, vector<256x1xf32>
    %cst_12 = arith.constant dense<0xFF800000> : vector<256xf32>
    %14 = vector.multi_reduction <maximumf>, %12, %cst_12 [1] : vector<256x256xf32> to vector<256xf32>
    %15 = vector.shape_cast %14 : vector<256xf32> to vector<256x1xf32>
    %16 = arith.maximumf %13, %15 : vector<256x1xf32>
    %17 = arith.subf %13, %16 : vector<256x1xf32>
    %18 = math.exp %17 : vector<256x1xf32>
    %19 = vector.broadcast %16 : vector<256x1xf32> to vector<256x256xf32>
    %20 = arith.subf %12, %19 : vector<256x256xf32>
    %21 = math.exp %20 : vector<256x256xf32>
    %c0_13 = arith.constant 0 : index
    %c0_14 = arith.constant 0 : index
    %22 = vector.load %arg13[%c0_13, %c0_14] : memref<256x1xf32, #tpu.memory_space<vmem>>, vector<256x1xf32>
    %23 = arith.mulf %18, %22 : vector<256x1xf32>
    %cst_15 = arith.constant dense<0.000000e+00> : vector<256xf32>
    %24 = vector.multi_reduction <add>, %21, %cst_15 [1] : vector<256x256xf32> to vector<256xf32>
    %25 = vector.shape_cast %24 : vector<256xf32> to vector<256x1xf32>
    %26 = arith.addf %23, %25 : vector<256x1xf32>
    %c0_16 = arith.constant 0 : index
    %c0_17 = arith.constant 0 : index
    %27 = vector.load %arg13[%c0_16, %c0_17] : memref<256x1xf32, #tpu.memory_space<vmem>>, vector<256x1xf32>
    tpu.vector_store %arg13[%c0_16, %c0_17], %26 {strides = array<i32>} : memref<256x1xf32, #tpu.memory_space<vmem>>, vector<256x1xf32>,
    %c0_18 = arith.constant 0 : index
    %c0_19 = arith.constant 0 : index
    %28 = vector.load %arg14[%c0_18, %c0_19] : memref<256x128xf32, #tpu.memory_space<vmem>>, vector<256x128xf32>
    %29 = vector.broadcast %18 : vector<256x1xf32> to vector<256x128xf32>
    %30 = arith.mulf %29, %28 : vector<256x128xf32>
    %31 = arith.truncf %21 : vector<256x256xf32> to vector<256x256xbf16>
    %cst_20 = arith.constant dense<0.000000e+00> : vector<256x128xf32>
    %32 = tpu.matmul %31, %6, %cst_20 {dimension_numbers = #tpu.dot_dimension_numbers<[1], [0], [0], [1], [0, 0, 1, 1], [], []>} : vector<256x256xbf16>, vector<256x128xbf16>, vector<256x128xf32> -> vector<256x128xf32>
    %33 = arith.addf %30, %32 : vector<256x128xf32>
    %c0_21 = arith.constant 0 : index
    %c0_22 = arith.constant 0 : index
    %34 = vector.load %arg14[%c0_21, %c0_22] : memref<256x128xf32, #tpu.memory_space<vmem>>, vector<256x128xf32>
    tpu.vector_store %arg14[%c0_21, %c0_22], %33 {strides = array<i32>} : memref<256x128xf32, #tpu.memory_space<vmem>>, vector<256x128xf32>,
    %c0_23 = arith.constant 0 : index
    %c0_24 = arith.constant 0 : index
    %35 = vector.load %arg12[%c0_23, %c0_24] : memref<256x1xf32, #tpu.memory_space<vmem>>, vector<256x1xf32>
    tpu.vector_store %arg12[%c0_23, %c0_24], %16 {strides = array<i32>} : memref<256x1xf32, #tpu.memory_space<vmem>>, vector<256x1xf32>,
    %c0_i32_25 = arith.constant 0 : i32
    %36 = arith.cmpi eq, %arg2, %c0_i32_25 : i32
    %37 = arith.extui %36 : i1 to i32
    %c0_i32_26 = arith.constant 0 : i32
    %38 = arith.cmpi ne, %37, %c0_i32_26 : i32
    scf.if %38 {
      %c0_27 = arith.constant 0 : index
      %c0_28 = arith.constant 0 : index
      %39 = vector.load %arg14[%c0_27, %c0_28] : memref<256x128xf32, #tpu.memory_space<vmem>>, vector<256x128xf32>
      %c0_29 = arith.constant 0 : index
      %c0_30 = arith.constant 0 : index
      %40 = vector.load %arg13[%c0_29, %c0_30] : memref<256x1xf32, #tpu.memory_space<vmem>>, vector<256x1xf32>
      %41 = tpu.reciprocal %40 {approx = true} : vector<256x1xf32> -> vector<256x1xf32>
      %42 = vector.broadcast %41 : vector<256x1xf32> to vector<256x128xf32>
      %43 = arith.mulf %39, %42 : vector<256x128xf32>
      %44 = arith.truncf %43 : vector<256x128xf32> to vector<256x128xbf16>
      %c0_31 = arith.constant 0 : index
      %c0_32 = arith.constant 0 : index
      %45 = vector.load %arg7[%c0_31, %c0_32] : memref<128x128xbf16, #tpu.memory_space<vmem>>, vector<128x128xbf16>
      %cst_33 = arith.constant dense<0.000000e+00> : vector<256x128xf32>
      %46 = tpu.matmul %44, %45, %cst_33 {dimension_numbers = #tpu.dot_dimension_numbers<[1], [0], [0], [1], [0, 0, 1, 1], [], []>} : vector<256x128xbf16>, vector<128x128xbf16>, vector<256x128xf32> -> vector<256x128xf32>
      %c0_34 = arith.constant 0 : index
      %c0_35 = arith.constant 0 : index
      %47 = vector.load %arg8[%c0_34, %c0_35] : memref<1x128xf32, #tpu.memory_space<vmem>>, vector<1x128xf32>
      %48 = vector.broadcast %47 : vector<1x128xf32> to vector<256x128xf32>
      %49 = arith.addf %46, %48 : vector<256x128xf32>
      %c0_36 = arith.constant 0 : index
      %c0_37 = arith.constant 0 : index
      %c0_38 = arith.constant 0 : index
      %50 = vector.load %arg3[%c0_36, %c0_37, %c0_38] : memref<1x256x128xbf16, #tpu.memory_space<vmem>>, vector<1x256x128xbf16>
      %51 = vector.shape_cast %50 : vector<1x256x128xbf16> to vector<256x128xbf16>
      %52 = arith.extf %51 : vector<256x128xbf16> to vector<256x128xf32>
      %53 = arith.addf %49, %52 : vector<256x128xf32>
      %54 = arith.truncf %53 : vector<256x128xf32> to vector<256x128xbf16>
      %c0_39 = arith.constant 0 : index
      %c0_40 = arith.constant 0 : index
      %c0_41 = arith.constant 0 : index
      %55 = vector.load %arg10[%c0_39, %c0_40, %c0_41] : memref<1x256x128xbf16, #tpu.memory_space<vmem>>, vector<1x256x128xbf16>
      %56 = vector.shape_cast %55 : vector<1x256x128xbf16> to vector<256x128xbf16>
      %57 = vector.shape_cast %54 : vector<256x128xbf16> to vector<1x256x128xbf16>
      tpu.vector_store %arg10[%c0_39, %c0_40, %c0_41], %57 {strides = array<i32>} : memref<1x256x128xbf16, #tpu.memory_space<vmem>>, vector<1x256x128xbf16>,
    } else {
    }
    return
  }
  func.func @transform_0(%arg0: i32, %arg1: i32, %arg2: i32) -> (i32, i32, i32) {
    %c0_i32 = arith.constant 0 : i32
    %c0_i32_0 = arith.constant 0 : i32
    return %arg0, %arg1, %c0_i32 : i32, i32, i32
  }
  func.func @transform_1(%arg0: i32, %arg1: i32, %arg2: i32) -> (i32, i32, i32) {
    %c0_i32 = arith.constant 0 : i32
    %c0_i32_0 = arith.constant 0 : i32
    return %arg0, %arg2, %c0_i32 : i32, i32, i32
  }
  func.func @transform_2(%arg0: i32, %arg1: i32, %arg2: i32) -> (i32, i32) {
    %c0_i32 = arith.constant 0 : i32
    %c0_i32_0 = arith.constant 0 : i32
    %c0_i32_1 = arith.constant 0 : i32
    return %c0_i32, %c0_i32_0 : i32, i32
  }
  func.func @transform_3(%arg0: i32, %arg1: i32, %arg2: i32) -> (i32, i32) {
    %c0_i32 = arith.constant 0 : i32
    %c0_i32_0 = arith.constant 0 : i32
    %c0_i32_1 = arith.constant 0 : i32
    return %c0_i32, %c0_i32_0 : i32, i32
  }
  func.func @transform_4(%arg0: i32, %arg1: i32, %arg2: i32) -> (i32, i32) {
    %c0_i32 = arith.constant 0 : i32
    %c0_i32_0 = arith.constant 0 : i32
    %c0_i32_1 = arith.constant 0 : i32
    return %c0_i32, %c0_i32_0 : i32, i32
  }
  func.func @transform_5(%arg0: i32, %arg1: i32, %arg2: i32) -> (i32, i32) {
    %c0_i32 = arith.constant 0 : i32
    %c0_i32_0 = arith.constant 0 : i32
    %c0_i32_1 = arith.constant 0 : i32
    return %c0_i32, %c0_i32_0 : i32, i32
  }
  func.func @transform_6(%arg0: i32, %arg1: i32, %arg2: i32) -> (i32, i32, i32) {
    %c0_i32 = arith.constant 0 : i32
    %c0_i32_0 = arith.constant 0 : i32
    %c0_i32_1 = arith.constant 0 : i32
    return %arg2, %c0_i32, %c0_i32_0 : i32, i32, i32
  }
  func.func @transform_7(%arg0: i32, %arg1: i32, %arg2: i32) -> (i32, i32, i32) {
    %c0_i32 = arith.constant 0 : i32
    %c0_i32_0 = arith.constant 0 : i32
    return %arg0, %arg1, %c0_i32 : i32, i32, i32
  }
}

module attributes {stable_mosaic.version = 11 : i64} {
  func.func @_conv3x3_kernel(%arg0: i32, %arg1: i32, %arg2: memref<1x256x128xbf16, #tpu.memory_space<vmem>>, %arg3: memref<1x16x128xbf16, #tpu.memory_space<vmem>>, %arg4: memref<1x16x128xbf16, #tpu.memory_space<vmem>>, %arg5: memref<9x128x128xbf16, #tpu.memory_space<vmem>>, %arg6: memref<1x128xf32, #tpu.memory_space<vmem>>, %arg7: memref<1x128xf32, #tpu.memory_space<vmem>>, %arg8: memref<1x128xf32, #tpu.memory_space<vmem>>, %arg9: memref<1x256x128xbf16, #tpu.memory_space<vmem>>, %arg10: memref<1x1x2x128xf32, #tpu.memory_space<vmem>>, %arg11: memref<304x128xf32, #tpu.memory_space<vmem>>) attributes {dimension_semantics = [#tpu.dimension_semantics<parallel>, #tpu.dimension_semantics<parallel>], iteration_bounds = array<i64: 2, 1>, scalar_prefetch = 0 : i64, scratch_operands = 1 : i64, tpu.core_type = #tpu.core_type<tc>, window_params = [{transform_indices = @transform_0, window_bounds = array<i64: 1, 256, 128>}, {transform_indices = @transform_1, window_bounds = array<i64: 1, 16, 128>}, {transform_indices = @transform_2, window_bounds = array<i64: 1, 16, 128>}, {pipeline_mode = #tpu.pipeline_mode<synchronous>, transform_indices = @transform_3, window_bounds = array<i64: 9, 128, 128>}, {pipeline_mode = #tpu.pipeline_mode<synchronous>, transform_indices = @transform_4, window_bounds = array<i64: 1, 128>}, {pipeline_mode = #tpu.pipeline_mode<synchronous>, transform_indices = @transform_5, window_bounds = array<i64: 1, 128>}, {pipeline_mode = #tpu.pipeline_mode<synchronous>, transform_indices = @transform_6, window_bounds = array<i64: 1, 128>}, {transform_indices = @transform_7, window_bounds = array<i64: 1, 256, 128>}, {transform_indices = @transform_8, window_bounds = array<i64: 1, 1, 2, 128>}]} {
    %cst = arith.constant 0.000000e+00 : f32
    %0 = vector.broadcast %cst : f32 to vector<8x128xf32>
    %c0 = arith.constant 0 : index
    %c0_0 = arith.constant 0 : index
    %1 = vector.load %arg11[%c0, %c0_0] : memref<304x128xf32, #tpu.memory_space<vmem>>, vector<8x128xf32>
    tpu.vector_store %arg11[%c0, %c0_0], %0 {strides = array<i32>} : memref<304x128xf32, #tpu.memory_space<vmem>>, vector<8x128xf32>,
    %cst_1 = arith.constant 0.000000e+00 : f32
    %2 = vector.broadcast %cst_1 : f32 to vector<8x128xf32>
    %c296 = arith.constant 296 : index
    %c0_2 = arith.constant 0 : index
    %3 = vector.load %arg11[%c296, %c0_2] : memref<304x128xf32, #tpu.memory_space<vmem>>, vector<8x128xf32>
    tpu.vector_store %arg11[%c296, %c0_2], %2 {strides = array<i32>} : memref<304x128xf32, #tpu.memory_space<vmem>>, vector<8x128xf32>,
    %c0_3 = arith.constant 0 : index
    %c0_4 = arith.constant 0 : index
    %c0_5 = arith.constant 0 : index
    %4 = vector.load %arg2[%c0_3, %c0_4, %c0_5] : memref<1x256x128xbf16, #tpu.memory_space<vmem>>, vector<1x256x128xbf16>
    %5 = vector.shape_cast %4 : vector<1x256x128xbf16> to vector<256x128xbf16>
    %6 = arith.extf %5 : vector<256x128xbf16> to vector<256x128xf32>
    %c24 = arith.constant 24 : index
    %c0_6 = arith.constant 0 : index
    %7 = vector.load %arg11[%c24, %c0_6] : memref<304x128xf32, #tpu.memory_space<vmem>>, vector<256x128xf32>
    tpu.vector_store %arg11[%c24, %c0_6], %6 {strides = array<i32>} : memref<304x128xf32, #tpu.memory_space<vmem>>, vector<256x128xf32>,
    %c0_i32 = arith.constant 0 : i32
    %8 = arith.cmpi eq, %arg1, %c0_i32 : i32
    %9 = arith.extui %8 : i1 to i32
    %c0_i32_7 = arith.constant 0 : i32
    %10 = arith.cmpi ne, %9, %c0_i32_7 : i32
    scf.if %10 {
      %cst_78 = arith.constant 0.000000e+00 : f32
      %128 = vector.broadcast %cst_78 : f32 to vector<16x128xf32>
      %c8_79 = arith.constant 8 : index
      %c0_80 = arith.constant 0 : index
      %129 = vector.load %arg11[%c8_79, %c0_80] : memref<304x128xf32, #tpu.memory_space<vmem>>, vector<16x128xf32>
      tpu.vector_store %arg11[%c8_79, %c0_80], %128 {strides = array<i32>} : memref<304x128xf32, #tpu.memory_space<vmem>>, vector<16x128xf32>,
    } else {
    }
    %c0_i32_8 = arith.constant 0 : i32
    %11 = arith.cmpi sgt, %arg1, %c0_i32_8 : i32
    %12 = arith.extui %11 : i1 to i32
    %c0_i32_9 = arith.constant 0 : i32
    %13 = arith.cmpi ne, %12, %c0_i32_9 : i32
    scf.if %13 {
      %c0_78 = arith.constant 0 : index
      %c0_79 = arith.constant 0 : index
      %c0_80 = arith.constant 0 : index
      %128 = vector.load %arg3[%c0_78, %c0_79, %c0_80] : memref<1x16x128xbf16, #tpu.memory_space<vmem>>, vector<1x16x128xbf16>
      %129 = vector.shape_cast %128 : vector<1x16x128xbf16> to vector<16x128xbf16>
      %130 = arith.extf %129 : vector<16x128xbf16> to vector<16x128xf32>
      %c8_81 = arith.constant 8 : index
      %c0_82 = arith.constant 0 : index
      %131 = vector.load %arg11[%c8_81, %c0_82] : memref<304x128xf32, #tpu.memory_space<vmem>>, vector<16x128xf32>
      tpu.vector_store %arg11[%c8_81, %c0_82], %130 {strides = array<i32>} : memref<304x128xf32, #tpu.memory_space<vmem>>, vector<16x128xf32>,
    } else {
    }
    %c0_i32_10 = arith.constant 0 : i32
    %14 = arith.cmpi eq, %arg1, %c0_i32_10 : i32
    %15 = arith.extui %14 : i1 to i32
    %c0_i32_11 = arith.constant 0 : i32
    %16 = arith.cmpi ne, %15, %c0_i32_11 : i32
    scf.if %16 {
      %cst_78 = arith.constant 0.000000e+00 : f32
      %128 = vector.broadcast %cst_78 : f32 to vector<16x128xf32>
      %c280 = arith.constant 280 : index
      %c0_79 = arith.constant 0 : index
      %129 = vector.load %arg11[%c280, %c0_79] : memref<304x128xf32, #tpu.memory_space<vmem>>, vector<16x128xf32>
      tpu.vector_store %arg11[%c280, %c0_79], %128 {strides = array<i32>} : memref<304x128xf32, #tpu.memory_space<vmem>>, vector<16x128xf32>,
    } else {
    }
    %c0_i32_12 = arith.constant 0 : i32
    %17 = arith.cmpi slt, %arg1, %c0_i32_12 : i32
    %18 = arith.extui %17 : i1 to i32
    %c0_i32_13 = arith.constant 0 : i32
    %19 = arith.cmpi ne, %18, %c0_i32_13 : i32
    scf.if %19 {
      %c0_78 = arith.constant 0 : index
      %c0_79 = arith.constant 0 : index
      %c0_80 = arith.constant 0 : index
      %128 = vector.load %arg4[%c0_78, %c0_79, %c0_80] : memref<1x16x128xbf16, #tpu.memory_space<vmem>>, vector<1x16x128xbf16>
      %129 = vector.shape_cast %128 : vector<1x16x128xbf16> to vector<16x128xbf16>
      %130 = arith.extf %129 : vector<16x128xbf16> to vector<16x128xf32>
      %c280 = arith.constant 280 : index
      %c0_81 = arith.constant 0 : index
      %131 = vector.load %arg11[%c280, %c0_81] : memref<304x128xf32, #tpu.memory_space<vmem>>, vector<16x128xf32>
      tpu.vector_store %arg11[%c280, %c0_81], %130 {strides = array<i32>} : memref<304x128xf32, #tpu.memory_space<vmem>>, vector<16x128xf32>,
    } else {
    }
    %20 = tpu.iota {dimensions = array<i32: 0>} : vector<256x1xi32>
    %c16_i32 = arith.constant 16 : i32
    %c0_i32_14 = arith.constant 0 : i32
    %21 = arith.cmpi eq, %c16_i32, %c0_i32_14 : i32
    %c1_i32 = arith.constant 1 : i32
    %22 = arith.select %21, %c1_i32, %c16_i32 : i32
    %23 = vector.broadcast %22 : i32 to vector<256x1xi32>
    %24 = arith.remsi %20, %23 : vector<256x1xi32>
    %c0_i32_15 = arith.constant 0 : i32
    %25 = vector.broadcast %c0_i32_15 : i32 to vector<256x1xi32>
    %26 = arith.cmpi ne, %24, %25 : vector<256x1xi32>
    %c0_i32_16 = arith.constant 0 : i32
    %27 = vector.broadcast %c0_i32_16 : i32 to vector<256x1xi32>
    %28 = arith.cmpi slt, %24, %27 : vector<256x1xi32>
    %c0_i32_17 = arith.constant 0 : i32
    %29 = arith.cmpi slt, %22, %c0_i32_17 : i32
    %30 = vector.broadcast %29 : i1 to vector<256x1xi1>
    %31 = vector.broadcast %30 : vector<256x1xi1> to vector<256x1xi1>
    %32 = arith.xori %28, %31 : vector<256x1xi1>
    %33 = arith.andi %32, %26 : vector<256x1xi1>
    %34 = vector.broadcast %22 : i32 to vector<256x1xi32>
    %35 = arith.addi %24, %34 : vector<256x1xi32>
    %36 = arith.select %33, %35, %24 : vector<256x1xi1>, vector<256x1xi32>
    %c0_i32_18 = arith.constant 0 : i32
    %37 = vector.broadcast %c0_i32_18 : i32 to vector<256x1xi32>
    %38 = arith.cmpi ne, %36, %37 : vector<256x1xi32>
    %39 = arith.extui %38 : vector<256x1xi1> to vector<256x1xi32>
    %40 = arith.sitofp %39 : vector<256x1xi32> to vector<256x1xf32>
    %c15_i32 = arith.constant 15 : i32
    %41 = vector.broadcast %c15_i32 : i32 to vector<256x1xi32>
    %42 = arith.cmpi ne, %36, %41 : vector<256x1xi32>
    %43 = arith.extui %42 : vector<256x1xi1> to vector<256x1xi32>
    %44 = arith.sitofp %43 : vector<256x1xi32> to vector<256x1xf32>
    %cst_19 = arith.constant 0.000000e+00 : f32
    %45 = vector.broadcast %cst_19 : f32 to vector<256x128xf32>
    %cst_20 = arith.constant 0.000000e+00 : f32
    %46 = vector.broadcast %cst_20 : f32 to vector<256x128xf32>
    %c7 = arith.constant 7 : index
    %c0_21 = arith.constant 0 : index
    %47 = vector.load %arg11[%c7, %c0_21] : memref<304x128xf32, #tpu.memory_space<vmem>>, vector<256x128xf32>
    %48 = arith.truncf %47 : vector<256x128xf32> to vector<256x128xbf16>
    %c0_22 = arith.constant 0 : index
    %c0_23 = arith.constant 0 : index
    %c0_24 = arith.constant 0 : index
    %49 = vector.load %arg5[%c0_22, %c0_23, %c0_24] : memref<9x128x128xbf16, #tpu.memory_space<vmem>>, vector<1x128x128xbf16>
    %50 = vector.shape_cast %49 : vector<1x128x128xbf16> to vector<128x128xbf16>
    %cst_25 = arith.constant dense<0.000000e+00> : vector<256x128xf32>
    %51 = tpu.matmul %48, %50, %cst_25 {dimension_numbers = #tpu.dot_dimension_numbers<[1], [0], [0], [1], [0, 0, 1, 1], [], []>} : vector<256x128xbf16>, vector<128x128xbf16>, vector<256x128xf32> -> vector<256x128xf32>
    %52 = arith.addf %46, %51 : vector<256x128xf32>
    %c23 = arith.constant 23 : index
    %c0_26 = arith.constant 0 : index
    %53 = vector.load %arg11[%c23, %c0_26] : memref<304x128xf32, #tpu.memory_space<vmem>>, vector<256x128xf32>
    %54 = arith.truncf %53 : vector<256x128xf32> to vector<256x128xbf16>
    %c3 = arith.constant 3 : index
    %c0_27 = arith.constant 0 : index
    %c0_28 = arith.constant 0 : index
    %55 = vector.load %arg5[%c3, %c0_27, %c0_28] : memref<9x128x128xbf16, #tpu.memory_space<vmem>>, vector<1x128x128xbf16>
    %56 = vector.shape_cast %55 : vector<1x128x128xbf16> to vector<128x128xbf16>
    %cst_29 = arith.constant dense<0.000000e+00> : vector<256x128xf32>
    %57 = tpu.matmul %54, %56, %cst_29 {dimension_numbers = #tpu.dot_dimension_numbers<[1], [0], [0], [1], [0, 0, 1, 1], [], []>} : vector<256x128xbf16>, vector<128x128xbf16>, vector<256x128xf32> -> vector<256x128xf32>
    %58 = arith.addf %52, %57 : vector<256x128xf32>
    %c39 = arith.constant 39 : index
    %c0_30 = arith.constant 0 : index
    %59 = vector.load %arg11[%c39, %c0_30] : memref<304x128xf32, #tpu.memory_space<vmem>>, vector<256x128xf32>
    %60 = arith.truncf %59 : vector<256x128xf32> to vector<256x128xbf16>
    %c6 = arith.constant 6 : index
    %c0_31 = arith.constant 0 : index
    %c0_32 = arith.constant 0 : index
    %61 = vector.load %arg5[%c6, %c0_31, %c0_32] : memref<9x128x128xbf16, #tpu.memory_space<vmem>>, vector<1x128x128xbf16>
    %62 = vector.shape_cast %61 : vector<1x128x128xbf16> to vector<128x128xbf16>
    %cst_33 = arith.constant dense<0.000000e+00> : vector<256x128xf32>
    %63 = tpu.matmul %60, %62, %cst_33 {dimension_numbers = #tpu.dot_dimension_numbers<[1], [0], [0], [1], [0, 0, 1, 1], [], []>} : vector<256x128xbf16>, vector<128x128xbf16>, vector<256x128xf32> -> vector<256x128xf32>
    %64 = arith.addf %58, %63 : vector<256x128xf32>
    %65 = vector.broadcast %40 : vector<256x1xf32> to vector<256x128xf32>
    %66 = arith.mulf %64, %65 : vector<256x128xf32>
    %67 = arith.addf %45, %66 : vector<256x128xf32>
    %cst_34 = arith.constant 0.000000e+00 : f32
    %68 = vector.broadcast %cst_34 : f32 to vector<256x128xf32>
    %c8 = arith.constant 8 : index
    %c0_35 = arith.constant 0 : index
    %69 = vector.load %arg11[%c8, %c0_35] : memref<304x128xf32, #tpu.memory_space<vmem>>, vector<256x128xf32>
    %70 = arith.truncf %69 : vector<256x128xf32> to vector<256x128xbf16>
    %c1 = arith.constant 1 : index
    %c0_36 = arith.constant 0 : index
    %c0_37 = arith.constant 0 : index
    %71 = vector.load %arg5[%c1, %c0_36, %c0_37] : memref<9x128x128xbf16, #tpu.memory_space<vmem>>, vector<1x128x128xbf16>
    %72 = vector.shape_cast %71 : vector<1x128x128xbf16> to vector<128x128xbf16>
    %cst_38 = arith.constant dense<0.000000e+00> : vector<256x128xf32>
    %73 = tpu.matmul %70, %72, %cst_38 {dimension_numbers = #tpu.dot_dimension_numbers<[1], [0], [0], [1], [0, 0, 1, 1], [], []>} : vector<256x128xbf16>, vector<128x128xbf16>, vector<256x128xf32> -> vector<256x128xf32>
    %74 = arith.addf %68, %73 : vector<256x128xf32>
    %c24_39 = arith.constant 24 : index
    %c0_40 = arith.constant 0 : index
    %75 = vector.load %arg11[%c24_39, %c0_40] : memref<304x128xf32, #tpu.memory_space<vmem>>, vector<256x128xf32>
    %76 = arith.truncf %75 : vector<256x128xf32> to vector<256x128xbf16>
    %c4 = arith.constant 4 : index
    %c0_41 = arith.constant 0 : index
    %c0_42 = arith.constant 0 : index
    %77 = vector.load %arg5[%c4, %c0_41, %c0_42] : memref<9x128x128xbf16, #tpu.memory_space<vmem>>, vector<1x128x128xbf16>
    %78 = vector.shape_cast %77 : vector<1x128x128xbf16> to vector<128x128xbf16>
    %cst_43 = arith.constant dense<0.000000e+00> : vector<256x128xf32>
    %79 = tpu.matmul %76, %78, %cst_43 {dimension_numbers = #tpu.dot_dimension_numbers<[1], [0], [0], [1], [0, 0, 1, 1], [], []>} : vector<256x128xbf16>, vector<128x128xbf16>, vector<256x128xf32> -> vector<256x128xf32>
    %80 = arith.addf %74, %79 : vector<256x128xf32>
    %c40 = arith.constant 40 : index
    %c0_44 = arith.constant 0 : index
    %81 = vector.load %arg11[%c40, %c0_44] : memref<304x128xf32, #tpu.memory_space<vmem>>, vector<256x128xf32>
    %82 = arith.truncf %81 : vector<256x128xf32> to vector<256x128xbf16>
    %c7_45 = arith.constant 7 : index
    %c0_46 = arith.constant 0 : index
    %c0_47 = arith.constant 0 : index
    %83 = vector.load %arg5[%c7_45, %c0_46, %c0_47] : memref<9x128x128xbf16, #tpu.memory_space<vmem>>, vector<1x128x128xbf16>
    %84 = vector.shape_cast %83 : vector<1x128x128xbf16> to vector<128x128xbf16>
    %cst_48 = arith.constant dense<0.000000e+00> : vector<256x128xf32>
    %85 = tpu.matmul %82, %84, %cst_48 {dimension_numbers = #tpu.dot_dimension_numbers<[1], [0], [0], [1], [0, 0, 1, 1], [], []>} : vector<256x128xbf16>, vector<128x128xbf16>, vector<256x128xf32> -> vector<256x128xf32>
    %86 = arith.addf %80, %85 : vector<256x128xf32>
    %87 = arith.addf %67, %86 : vector<256x128xf32>
    %cst_49 = arith.constant 0.000000e+00 : f32
    %88 = vector.broadcast %cst_49 : f32 to vector<256x128xf32>
    %c9 = arith.constant 9 : index
    %c0_50 = arith.constant 0 : index
    %89 = vector.load %arg11[%c9, %c0_50] : memref<304x128xf32, #tpu.memory_space<vmem>>, vector<256x128xf32>
    %90 = arith.truncf %89 : vector<256x128xf32> to vector<256x128xbf16>
    %c2 = arith.constant 2 : index
    %c0_51 = arith.constant 0 : index
    %c0_52 = arith.constant 0 : index
    %91 = vector.load %arg5[%c2, %c0_51, %c0_52] : memref<9x128x128xbf16, #tpu.memory_space<vmem>>, vector<1x128x128xbf16>
    %92 = vector.shape_cast %91 : vector<1x128x128xbf16> to vector<128x128xbf16>
    %cst_53 = arith.constant dense<0.000000e+00> : vector<256x128xf32>
    %93 = tpu.matmul %90, %92, %cst_53 {dimension_numbers = #tpu.dot_dimension_numbers<[1], [0], [0], [1], [0, 0, 1, 1], [], []>} : vector<256x128xbf16>, vector<128x128xbf16>, vector<256x128xf32> -> vector<256x128xf32>
    %94 = arith.addf %88, %93 : vector<256x128xf32>
    %c25 = arith.constant 25 : index
    %c0_54 = arith.constant 0 : index
    %95 = vector.load %arg11[%c25, %c0_54] : memref<304x128xf32, #tpu.memory_space<vmem>>, vector<256x128xf32>
    %96 = arith.truncf %95 : vector<256x128xf32> to vector<256x128xbf16>
    %c5 = arith.constant 5 : index
    %c0_55 = arith.constant 0 : index
    %c0_56 = arith.constant 0 : index
    %97 = vector.load %arg5[%c5, %c0_55, %c0_56] : memref<9x128x128xbf16, #tpu.memory_space<vmem>>, vector<1x128x128xbf16>
    %98 = vector.shape_cast %97 : vector<1x128x128xbf16> to vector<128x128xbf16>
    %cst_57 = arith.constant dense<0.000000e+00> : vector<256x128xf32>
    %99 = tpu.matmul %96, %98, %cst_57 {dimension_numbers = #tpu.dot_dimension_numbers<[1], [0], [0], [1], [0, 0, 1, 1], [], []>} : vector<256x128xbf16>, vector<128x128xbf16>, vector<256x128xf32> -> vector<256x128xf32>
    %100 = arith.addf %94, %99 : vector<256x128xf32>
    %c41 = arith.constant 41 : index
    %c0_58 = arith.constant 0 : index
    %101 = vector.load %arg11[%c41, %c0_58] : memref<304x128xf32, #tpu.memory_space<vmem>>, vector<256x128xf32>
    %102 = arith.truncf %101 : vector<256x128xf32> to vector<256x128xbf16>
    %c8_59 = arith.constant 8 : index
    %c0_60 = arith.constant 0 : index
    %c0_61 = arith.constant 0 : index
    %103 = vector.load %arg5[%c8_59, %c0_60, %c0_61] : memref<9x128x128xbf16, #tpu.memory_space<vmem>>, vector<1x128x128xbf16>
    %104 = vector.shape_cast %103 : vector<1x128x128xbf16> to vector<128x128xbf16>
    %cst_62 = arith.constant dense<0.000000e+00> : vector<256x128xf32>
    %105 = tpu.matmul %102, %104, %cst_62 {dimension_numbers = #tpu.dot_dimension_numbers<[1], [0], [0], [1], [0, 0, 1, 1], [], []>} : vector<256x128xbf16>, vector<128x128xbf16>, vector<256x128xf32> -> vector<256x128xf32>
    %106 = arith.addf %100, %105 : vector<256x128xf32>
    %107 = vector.broadcast %44 : vector<256x1xf32> to vector<256x128xf32>
    %108 = arith.mulf %106, %107 : vector<256x128xf32>
    %109 = arith.addf %87, %108 : vector<256x128xf32>
    %c0_63 = arith.constant 0 : index
    %c0_64 = arith.constant 0 : index
    %110 = vector.load %arg6[%c0_63, %c0_64] : memref<1x128xf32, #tpu.memory_space<vmem>>, vector<1x128xf32>
    %111 = vector.broadcast %110 : vector<1x128xf32> to vector<256x128xf32>
    %112 = arith.addf %109, %111 : vector<256x128xf32>
    %113 = arith.truncf %112 : vector<256x128xf32> to vector<256x128xbf16>
    %c0_65 = arith.constant 0 : index
    %c0_66 = arith.constant 0 : index
    %c0_67 = arith.constant 0 : index
    %114 = vector.load %arg9[%c0_65, %c0_66, %c0_67] : memref<1x256x128xbf16, #tpu.memory_space<vmem>>, vector<1x256x128xbf16>
    %115 = vector.shape_cast %114 : vector<1x256x128xbf16> to vector<256x128xbf16>
    %116 = vector.shape_cast %113 : vector<256x128xbf16> to vector<1x256x128xbf16>
    tpu.vector_store %arg9[%c0_65, %c0_66, %c0_67], %116 {strides = array<i32>} : memref<1x256x128xbf16, #tpu.memory_space<vmem>>, vector<1x256x128xbf16>,
    %cst_68 = arith.constant dense<0.000000e+00> : vector<128xf32>
    %117 = vector.multi_reduction <add>, %112, %cst_68 [0] : vector<256x128xf32> to vector<128xf32>
    %118 = vector.shape_cast %117 : vector<128xf32> to vector<1x128xf32>
    %c0_69 = arith.constant 0 : index
    %c0_70 = arith.constant 0 : index
    %c0_71 = arith.constant 0 : index
    %c0_72 = arith.constant 0 : index
    %119 = vector.load %arg10[%c0_69, %c0_70, %c0_71, %c0_72] : memref<1x1x2x128xf32, #tpu.memory_space<vmem>>, vector<1x1x1x128xf32>
    %120 = vector.shape_cast %119 : vector<1x1x1x128xf32> to vector<1x128xf32>
    %121 = vector.shape_cast %118 : vector<1x128xf32> to vector<1x1x1x128xf32>
    tpu.vector_store %arg10[%c0_69, %c0_70, %c0_71, %c0_72], %121 {strides = array<i32>} : memref<1x1x2x128xf32, #tpu.memory_space<vmem>>, vector<1x1x1x128xf32>,
    %122 = arith.mulf %112, %112 : vector<256x128xf32>
    %cst_73 = arith.constant dense<0.000000e+00> : vector<128xf32>
    %123 = vector.multi_reduction <add>, %122, %cst_73 [0] : vector<256x128xf32> to vector<128xf32>
    %124 = vector.shape_cast %123 : vector<128xf32> to vector<1x128xf32>
    %c0_74 = arith.constant 0 : index
    %c0_75 = arith.constant 0 : index
    %c1_76 = arith.constant 1 : index
    %c0_77 = arith.constant 0 : index
    %125 = vector.load %arg10[%c0_74, %c0_75, %c1_76, %c0_77] : memref<1x1x2x128xf32, #tpu.memory_space<vmem>>, vector<1x1x1x128xf32>
    %126 = vector.shape_cast %125 : vector<1x1x1x128xf32> to vector<1x128xf32>
    %127 = vector.shape_cast %124 : vector<1x128xf32> to vector<1x1x1x128xf32>
    tpu.vector_store %arg10[%c0_74, %c0_75, %c1_76, %c0_77], %127 {strides = array<i32>} : memref<1x1x2x128xf32, #tpu.memory_space<vmem>>, vector<1x1x1x128xf32>,
    return
  }
  func.func @transform_0(%arg0: i32, %arg1: i32) -> (i32, i32, i32) {
    %c0_i32 = arith.constant 0 : i32
    %c0_i32_0 = arith.constant 0 : i32
    return %arg0, %arg1, %c0_i32 : i32, i32, i32
  }
  func.func @transform_1(%arg0: i32, %arg1: i32) -> (i32, i32, i32) {
    %c16_i32 = arith.constant 16 : i32
    %0 = arith.muli %arg1, %c16_i32 : i32
    %c1_i32 = arith.constant 1 : i32
    %1 = arith.subi %0, %c1_i32 : i32
    %c0_i32 = arith.constant 0 : i32
    %2 = arith.maxsi %1, %c0_i32 : i32
    %c0_i32_0 = arith.constant 0 : i32
    %c0_i32_1 = arith.constant 0 : i32
    return %arg0, %2, %c0_i32_0 : i32, i32, i32
  }
  func.func @transform_2(%arg0: i32, %arg1: i32) -> (i32, i32, i32) {
    %c1_i32 = arith.constant 1 : i32
    %0 = arith.addi %arg1, %c1_i32 : i32
    %c16_i32 = arith.constant 16 : i32
    %1 = arith.muli %0, %c16_i32 : i32
    %c15_i32 = arith.constant 15 : i32
    %2 = arith.minsi %1, %c15_i32 : i32
    %c0_i32 = arith.constant 0 : i32
    %c0_i32_0 = arith.constant 0 : i32
    return %arg0, %2, %c0_i32 : i32, i32, i32
  }
  func.func @transform_3(%arg0: i32, %arg1: i32) -> (i32, i32, i32) {
    %c0_i32 = arith.constant 0 : i32
    %c0_i32_0 = arith.constant 0 : i32
    %c0_i32_1 = arith.constant 0 : i32
    %c0_i32_2 = arith.constant 0 : i32
    return %c0_i32, %c0_i32_0, %c0_i32_1 : i32, i32, i32
  }
  func.func @transform_4(%arg0: i32, %arg1: i32) -> (i32, i32) {
    %c0_i32 = arith.constant 0 : i32
    %c0_i32_0 = arith.constant 0 : i32
    %c0_i32_1 = arith.constant 0 : i32
    return %c0_i32, %c0_i32_0 : i32, i32
  }
  func.func @transform_5(%arg0: i32, %arg1: i32) -> (i32, i32) {
    %c0_i32 = arith.constant 0 : i32
    %c0_i32_0 = arith.constant 0 : i32
    %c0_i32_1 = arith.constant 0 : i32
    return %c0_i32, %c0_i32_0 : i32, i32
  }
  func.func @transform_6(%arg0: i32, %arg1: i32) -> (i32, i32) {
    %c0_i32 = arith.constant 0 : i32
    %c0_i32_0 = arith.constant 0 : i32
    %c0_i32_1 = arith.constant 0 : i32
    return %c0_i32, %c0_i32_0 : i32, i32
  }
  func.func @transform_7(%arg0: i32, %arg1: i32) -> (i32, i32, i32) {
    %c0_i32 = arith.constant 0 : i32
    %c0_i32_0 = arith.constant 0 : i32
    return %arg0, %arg1, %c0_i32 : i32, i32, i32
  }
  func.func @transform_8(%arg0: i32, %arg1: i32) -> (i32, i32, i32, i32) {
    %c0_i32 = arith.constant 0 : i32
    %c0_i32_0 = arith.constant 0 : i32
    %c0_i32_1 = arith.constant 0 : i32
    return %arg0, %arg1, %c0_i32, %c0_i32_0 : i32, i32, i32, i32
  }
}

module attributes {stable_mosaic.version = 11 : i64} {
  func.func @_conv3x3_kernel(%arg0: i32, %arg1: i32, %arg2: memref<1x256x128xbf16, #tpu.memory_space<vmem>>, %arg3: memref<1x16x128xbf16, #tpu.memory_space<vmem>>, %arg4: memref<1x16x128xbf16, #tpu.memory_space<vmem>>, %arg5: memref<9x128x128xbf16, #tpu.memory_space<vmem>>, %arg6: memref<1x128xf32, #tpu.memory_space<vmem>>, %arg7: memref<1x128xf32, #tpu.memory_space<vmem>>, %arg8: memref<1x128xf32, #tpu.memory_space<vmem>>, %arg9: memref<1x256x128xbf16, #tpu.memory_space<vmem>>, %arg10: memref<1x1x2x128xf32, #tpu.memory_space<vmem>>, %arg11: memref<304x128xf32, #tpu.memory_space<vmem>>) attributes {dimension_semantics = [#tpu.dimension_semantics<parallel>, #tpu.dimension_semantics<parallel>], iteration_bounds = array<i64: 2, 1>, scalar_prefetch = 0 : i64, scratch_operands = 1 : i64, tpu.core_type = #tpu.core_type<tc>, window_params = [{transform_indices = @transform_0, window_bounds = array<i64: 1, 256, 128>}, {transform_indices = @transform_1, window_bounds = array<i64: 1, 16, 128>}, {transform_indices = @transform_2, window_bounds = array<i64: 1, 16, 128>}, {pipeline_mode = #tpu.pipeline_mode<synchronous>, transform_indices = @transform_3, window_bounds = array<i64: 9, 128, 128>}, {pipeline_mode = #tpu.pipeline_mode<synchronous>, transform_indices = @transform_4, window_bounds = array<i64: 1, 128>}, {pipeline_mode = #tpu.pipeline_mode<synchronous>, transform_indices = @transform_5, window_bounds = array<i64: 1, 128>}, {pipeline_mode = #tpu.pipeline_mode<synchronous>, transform_indices = @transform_6, window_bounds = array<i64: 1, 128>}, {transform_indices = @transform_7, window_bounds = array<i64: 1, 256, 128>}, {transform_indices = @transform_8, window_bounds = array<i64: 1, 1, 2, 128>}]} {
    %cst = arith.constant 0.000000e+00 : f32
    %0 = vector.broadcast %cst : f32 to vector<8x128xf32>
    %c0 = arith.constant 0 : index
    %c0_0 = arith.constant 0 : index
    %1 = vector.load %arg11[%c0, %c0_0] : memref<304x128xf32, #tpu.memory_space<vmem>>, vector<8x128xf32>
    tpu.vector_store %arg11[%c0, %c0_0], %0 {strides = array<i32>} : memref<304x128xf32, #tpu.memory_space<vmem>>, vector<8x128xf32>,
    %cst_1 = arith.constant 0.000000e+00 : f32
    %2 = vector.broadcast %cst_1 : f32 to vector<8x128xf32>
    %c296 = arith.constant 296 : index
    %c0_2 = arith.constant 0 : index
    %3 = vector.load %arg11[%c296, %c0_2] : memref<304x128xf32, #tpu.memory_space<vmem>>, vector<8x128xf32>
    tpu.vector_store %arg11[%c296, %c0_2], %2 {strides = array<i32>} : memref<304x128xf32, #tpu.memory_space<vmem>>, vector<8x128xf32>,
    %c0_3 = arith.constant 0 : index
    %c0_4 = arith.constant 0 : index
    %c0_5 = arith.constant 0 : index
    %4 = vector.load %arg2[%c0_3, %c0_4, %c0_5] : memref<1x256x128xbf16, #tpu.memory_space<vmem>>, vector<1x256x128xbf16>
    %5 = vector.shape_cast %4 : vector<1x256x128xbf16> to vector<256x128xbf16>
    %6 = arith.extf %5 : vector<256x128xbf16> to vector<256x128xf32>
    %c0_6 = arith.constant 0 : index
    %c0_7 = arith.constant 0 : index
    %7 = vector.load %arg7[%c0_6, %c0_7] : memref<1x128xf32, #tpu.memory_space<vmem>>, vector<1x128xf32>
    %8 = vector.broadcast %7 : vector<1x128xf32> to vector<256x128xf32>
    %9 = arith.mulf %6, %8 : vector<256x128xf32>
    %c0_8 = arith.constant 0 : index
    %c0_9 = arith.constant 0 : index
    %10 = vector.load %arg8[%c0_8, %c0_9] : memref<1x128xf32, #tpu.memory_space<vmem>>, vector<1x128xf32>
    %11 = vector.broadcast %10 : vector<1x128xf32> to vector<256x128xf32>
    %12 = arith.addf %9, %11 : vector<256x128xf32>
    %cst_10 = arith.constant 0.000000e+00 : f32
    %13 = vector.broadcast %cst_10 : f32 to vector<256x128xf32>
    %14 = arith.maximumf %12, %13 : vector<256x128xf32>
    %c24 = arith.constant 24 : index
    %c0_11 = arith.constant 0 : index
    %15 = vector.load %arg11[%c24, %c0_11] : memref<304x128xf32, #tpu.memory_space<vmem>>, vector<256x128xf32>
    tpu.vector_store %arg11[%c24, %c0_11], %14 {strides = array<i32>} : memref<304x128xf32, #tpu.memory_space<vmem>>, vector<256x128xf32>,
    %c0_i32 = arith.constant 0 : i32
    %16 = arith.cmpi eq, %arg1, %c0_i32 : i32
    %17 = arith.extui %16 : i1 to i32
    %c0_i32_12 = arith.constant 0 : i32
    %18 = arith.cmpi ne, %17, %c0_i32_12 : i32
    scf.if %18 {
      %cst_83 = arith.constant 0.000000e+00 : f32
      %136 = vector.broadcast %cst_83 : f32 to vector<16x128xf32>
      %c8_84 = arith.constant 8 : index
      %c0_85 = arith.constant 0 : index
      %137 = vector.load %arg11[%c8_84, %c0_85] : memref<304x128xf32, #tpu.memory_space<vmem>>, vector<16x128xf32>
      tpu.vector_store %arg11[%c8_84, %c0_85], %136 {strides = array<i32>} : memref<304x128xf32, #tpu.memory_space<vmem>>, vector<16x128xf32>,
    } else {
    }
    %c0_i32_13 = arith.constant 0 : i32
    %19 = arith.cmpi sgt, %arg1, %c0_i32_13 : i32
    %20 = arith.extui %19 : i1 to i32
    %c0_i32_14 = arith.constant 0 : i32
    %21 = arith.cmpi ne, %20, %c0_i32_14 : i32
    scf.if %21 {
      %c0_83 = arith.constant 0 : index
      %c0_84 = arith.constant 0 : index
      %c0_85 = arith.constant 0 : index
      %136 = vector.load %arg3[%c0_83, %c0_84, %c0_85] : memref<1x16x128xbf16, #tpu.memory_space<vmem>>, vector<1x16x128xbf16>
      %137 = vector.shape_cast %136 : vector<1x16x128xbf16> to vector<16x128xbf16>
      %138 = arith.extf %137 : vector<16x128xbf16> to vector<16x128xf32>
      %c0_86 = arith.constant 0 : index
      %c0_87 = arith.constant 0 : index
      %139 = vector.load %arg7[%c0_86, %c0_87] : memref<1x128xf32, #tpu.memory_space<vmem>>, vector<1x128xf32>
      %140 = vector.broadcast %139 : vector<1x128xf32> to vector<16x128xf32>
      %141 = arith.mulf %138, %140 : vector<16x128xf32>
      %c0_88 = arith.constant 0 : index
      %c0_89 = arith.constant 0 : index
      %142 = vector.load %arg8[%c0_88, %c0_89] : memref<1x128xf32, #tpu.memory_space<vmem>>, vector<1x128xf32>
      %143 = vector.broadcast %142 : vector<1x128xf32> to vector<16x128xf32>
      %144 = arith.addf %141, %143 : vector<16x128xf32>
      %cst_90 = arith.constant 0.000000e+00 : f32
      %145 = vector.broadcast %cst_90 : f32 to vector<16x128xf32>
      %146 = arith.maximumf %144, %145 : vector<16x128xf32>
      %c8_91 = arith.constant 8 : index
      %c0_92 = arith.constant 0 : index
      %147 = vector.load %arg11[%c8_91, %c0_92] : memref<304x128xf32, #tpu.memory_space<vmem>>, vector<16x128xf32>
      tpu.vector_store %arg11[%c8_91, %c0_92], %146 {strides = array<i32>} : memref<304x128xf32, #tpu.memory_space<vmem>>, vector<16x128xf32>,
    } else {
    }
    %c0_i32_15 = arith.constant 0 : i32
    %22 = arith.cmpi eq, %arg1, %c0_i32_15 : i32
    %23 = arith.extui %22 : i1 to i32
    %c0_i32_16 = arith.constant 0 : i32
    %24 = arith.cmpi ne, %23, %c0_i32_16 : i32
    scf.if %24 {
      %cst_83 = arith.constant 0.000000e+00 : f32
      %136 = vector.broadcast %cst_83 : f32 to vector<16x128xf32>
      %c280 = arith.constant 280 : index
      %c0_84 = arith.constant 0 : index
      %137 = vector.load %arg11[%c280, %c0_84] : memref<304x128xf32, #tpu.memory_space<vmem>>, vector<16x128xf32>
      tpu.vector_store %arg11[%c280, %c0_84], %136 {strides = array<i32>} : memref<304x128xf32, #tpu.memory_space<vmem>>, vector<16x128xf32>,
    } else {
    }
    %c0_i32_17 = arith.constant 0 : i32
    %25 = arith.cmpi slt, %arg1, %c0_i32_17 : i32
    %26 = arith.extui %25 : i1 to i32
    %c0_i32_18 = arith.constant 0 : i32
    %27 = arith.cmpi ne, %26, %c0_i32_18 : i32
    scf.if %27 {
      %c0_83 = arith.constant 0 : index
      %c0_84 = arith.constant 0 : index
      %c0_85 = arith.constant 0 : index
      %136 = vector.load %arg4[%c0_83, %c0_84, %c0_85] : memref<1x16x128xbf16, #tpu.memory_space<vmem>>, vector<1x16x128xbf16>
      %137 = vector.shape_cast %136 : vector<1x16x128xbf16> to vector<16x128xbf16>
      %138 = arith.extf %137 : vector<16x128xbf16> to vector<16x128xf32>
      %c0_86 = arith.constant 0 : index
      %c0_87 = arith.constant 0 : index
      %139 = vector.load %arg7[%c0_86, %c0_87] : memref<1x128xf32, #tpu.memory_space<vmem>>, vector<1x128xf32>
      %140 = vector.broadcast %139 : vector<1x128xf32> to vector<16x128xf32>
      %141 = arith.mulf %138, %140 : vector<16x128xf32>
      %c0_88 = arith.constant 0 : index
      %c0_89 = arith.constant 0 : index
      %142 = vector.load %arg8[%c0_88, %c0_89] : memref<1x128xf32, #tpu.memory_space<vmem>>, vector<1x128xf32>
      %143 = vector.broadcast %142 : vector<1x128xf32> to vector<16x128xf32>
      %144 = arith.addf %141, %143 : vector<16x128xf32>
      %cst_90 = arith.constant 0.000000e+00 : f32
      %145 = vector.broadcast %cst_90 : f32 to vector<16x128xf32>
      %146 = arith.maximumf %144, %145 : vector<16x128xf32>
      %c280 = arith.constant 280 : index
      %c0_91 = arith.constant 0 : index
      %147 = vector.load %arg11[%c280, %c0_91] : memref<304x128xf32, #tpu.memory_space<vmem>>, vector<16x128xf32>
      tpu.vector_store %arg11[%c280, %c0_91], %146 {strides = array<i32>} : memref<304x128xf32, #tpu.memory_space<vmem>>, vector<16x128xf32>,
    } else {
    }
    %28 = tpu.iota {dimensions = array<i32: 0>} : vector<256x1xi32>
    %c16_i32 = arith.constant 16 : i32
    %c0_i32_19 = arith.constant 0 : i32
    %29 = arith.cmpi eq, %c16_i32, %c0_i32_19 : i32
    %c1_i32 = arith.constant 1 : i32
    %30 = arith.select %29, %c1_i32, %c16_i32 : i32
    %31 = vector.broadcast %30 : i32 to vector<256x1xi32>
    %32 = arith.remsi %28, %31 : vector<256x1xi32>
    %c0_i32_20 = arith.constant 0 : i32
    %33 = vector.broadcast %c0_i32_20 : i32 to vector<256x1xi32>
    %34 = arith.cmpi ne, %32, %33 : vector<256x1xi32>
    %c0_i32_21 = arith.constant 0 : i32
    %35 = vector.broadcast %c0_i32_21 : i32 to vector<256x1xi32>
    %36 = arith.cmpi slt, %32, %35 : vector<256x1xi32>
    %c0_i32_22 = arith.constant 0 : i32
    %37 = arith.cmpi slt, %30, %c0_i32_22 : i32
    %38 = vector.broadcast %37 : i1 to vector<256x1xi1>
    %39 = vector.broadcast %38 : vector<256x1xi1> to vector<256x1xi1>
    %40 = arith.xori %36, %39 : vector<256x1xi1>
    %41 = arith.andi %40, %34 : vector<256x1xi1>
    %42 = vector.broadcast %30 : i32 to vector<256x1xi32>
    %43 = arith.addi %32, %42 : vector<256x1xi32>
    %44 = arith.select %41, %43, %32 : vector<256x1xi1>, vector<256x1xi32>
    %c0_i32_23 = arith.constant 0 : i32
    %45 = vector.broadcast %c0_i32_23 : i32 to vector<256x1xi32>
    %46 = arith.cmpi ne, %44, %45 : vector<256x1xi32>
    %47 = arith.extui %46 : vector<256x1xi1> to vector<256x1xi32>
    %48 = arith.sitofp %47 : vector<256x1xi32> to vector<256x1xf32>
    %c15_i32 = arith.constant 15 : i32
    %49 = vector.broadcast %c15_i32 : i32 to vector<256x1xi32>
    %50 = arith.cmpi ne, %44, %49 : vector<256x1xi32>
    %51 = arith.extui %50 : vector<256x1xi1> to vector<256x1xi32>
    %52 = arith.sitofp %51 : vector<256x1xi32> to vector<256x1xf32>
    %cst_24 = arith.constant 0.000000e+00 : f32
    %53 = vector.broadcast %cst_24 : f32 to vector<256x128xf32>
    %cst_25 = arith.constant 0.000000e+00 : f32
    %54 = vector.broadcast %cst_25 : f32 to vector<256x128xf32>
    %c7 = arith.constant 7 : index
    %c0_26 = arith.constant 0 : index
    %55 = vector.load %arg11[%c7, %c0_26] : memref<304x128xf32, #tpu.memory_space<vmem>>, vector<256x128xf32>
    %56 = arith.truncf %55 : vector<256x128xf32> to vector<256x128xbf16>
    %c0_27 = arith.constant 0 : index
    %c0_28 = arith.constant 0 : index
    %c0_29 = arith.constant 0 : index
    %57 = vector.load %arg5[%c0_27, %c0_28, %c0_29] : memref<9x128x128xbf16, #tpu.memory_space<vmem>>, vector<1x128x128xbf16>
    %58 = vector.shape_cast %57 : vector<1x128x128xbf16> to vector<128x128xbf16>
    %cst_30 = arith.constant dense<0.000000e+00> : vector<256x128xf32>
    %59 = tpu.matmul %56, %58, %cst_30 {dimension_numbers = #tpu.dot_dimension_numbers<[1], [0], [0], [1], [0, 0, 1, 1], [], []>} : vector<256x128xbf16>, vector<128x128xbf16>, vector<256x128xf32> -> vector<256x128xf32>
    %60 = arith.addf %54, %59 : vector<256x128xf32>
    %c23 = arith.constant 23 : index
    %c0_31 = arith.constant 0 : index
    %61 = vector.load %arg11[%c23, %c0_31] : memref<304x128xf32, #tpu.memory_space<vmem>>, vector<256x128xf32>
    %62 = arith.truncf %61 : vector<256x128xf32> to vector<256x128xbf16>
    %c3 = arith.constant 3 : index
    %c0_32 = arith.constant 0 : index
    %c0_33 = arith.constant 0 : index
    %63 = vector.load %arg5[%c3, %c0_32, %c0_33] : memref<9x128x128xbf16, #tpu.memory_space<vmem>>, vector<1x128x128xbf16>
    %64 = vector.shape_cast %63 : vector<1x128x128xbf16> to vector<128x128xbf16>
    %cst_34 = arith.constant dense<0.000000e+00> : vector<256x128xf32>
    %65 = tpu.matmul %62, %64, %cst_34 {dimension_numbers = #tpu.dot_dimension_numbers<[1], [0], [0], [1], [0, 0, 1, 1], [], []>} : vector<256x128xbf16>, vector<128x128xbf16>, vector<256x128xf32> -> vector<256x128xf32>
    %66 = arith.addf %60, %65 : vector<256x128xf32>
    %c39 = arith.constant 39 : index
    %c0_35 = arith.constant 0 : index
    %67 = vector.load %arg11[%c39, %c0_35] : memref<304x128xf32, #tpu.memory_space<vmem>>, vector<256x128xf32>
    %68 = arith.truncf %67 : vector<256x128xf32> to vector<256x128xbf16>
    %c6 = arith.constant 6 : index
    %c0_36 = arith.constant 0 : index
    %c0_37 = arith.constant 0 : index
    %69 = vector.load %arg5[%c6, %c0_36, %c0_37] : memref<9x128x128xbf16, #tpu.memory_space<vmem>>, vector<1x128x128xbf16>
    %70 = vector.shape_cast %69 : vector<1x128x128xbf16> to vector<128x128xbf16>
    %cst_38 = arith.constant dense<0.000000e+00> : vector<256x128xf32>
    %71 = tpu.matmul %68, %70, %cst_38 {dimension_numbers = #tpu.dot_dimension_numbers<[1], [0], [0], [1], [0, 0, 1, 1], [], []>} : vector<256x128xbf16>, vector<128x128xbf16>, vector<256x128xf32> -> vector<256x128xf32>
    %72 = arith.addf %66, %71 : vector<256x128xf32>
    %73 = vector.broadcast %48 : vector<256x1xf32> to vector<256x128xf32>
    %74 = arith.mulf %72, %73 : vector<256x128xf32>
    %75 = arith.addf %53, %74 : vector<256x128xf32>
    %cst_39 = arith.constant 0.000000e+00 : f32
    %76 = vector.broadcast %cst_39 : f32 to vector<256x128xf32>
    %c8 = arith.constant 8 : index
    %c0_40 = arith.constant 0 : index
    %77 = vector.load %arg11[%c8, %c0_40] : memref<304x128xf32, #tpu.memory_space<vmem>>, vector<256x128xf32>
    %78 = arith.truncf %77 : vector<256x128xf32> to vector<256x128xbf16>
    %c1 = arith.constant 1 : index
    %c0_41 = arith.constant 0 : index
    %c0_42 = arith.constant 0 : index
    %79 = vector.load %arg5[%c1, %c0_41, %c0_42] : memref<9x128x128xbf16, #tpu.memory_space<vmem>>, vector<1x128x128xbf16>
    %80 = vector.shape_cast %79 : vector<1x128x128xbf16> to vector<128x128xbf16>
    %cst_43 = arith.constant dense<0.000000e+00> : vector<256x128xf32>
    %81 = tpu.matmul %78, %80, %cst_43 {dimension_numbers = #tpu.dot_dimension_numbers<[1], [0], [0], [1], [0, 0, 1, 1], [], []>} : vector<256x128xbf16>, vector<128x128xbf16>, vector<256x128xf32> -> vector<256x128xf32>
    %82 = arith.addf %76, %81 : vector<256x128xf32>
    %c24_44 = arith.constant 24 : index
    %c0_45 = arith.constant 0 : index
    %83 = vector.load %arg11[%c24_44, %c0_45] : memref<304x128xf32, #tpu.memory_space<vmem>>, vector<256x128xf32>
    %84 = arith.truncf %83 : vector<256x128xf32> to vector<256x128xbf16>
    %c4 = arith.constant 4 : index
    %c0_46 = arith.constant 0 : index
    %c0_47 = arith.constant 0 : index
    %85 = vector.load %arg5[%c4, %c0_46, %c0_47] : memref<9x128x128xbf16, #tpu.memory_space<vmem>>, vector<1x128x128xbf16>
    %86 = vector.shape_cast %85 : vector<1x128x128xbf16> to vector<128x128xbf16>
    %cst_48 = arith.constant dense<0.000000e+00> : vector<256x128xf32>
    %87 = tpu.matmul %84, %86, %cst_48 {dimension_numbers = #tpu.dot_dimension_numbers<[1], [0], [0], [1], [0, 0, 1, 1], [], []>} : vector<256x128xbf16>, vector<128x128xbf16>, vector<256x128xf32> -> vector<256x128xf32>
    %88 = arith.addf %82, %87 : vector<256x128xf32>
    %c40 = arith.constant 40 : index
    %c0_49 = arith.constant 0 : index
    %89 = vector.load %arg11[%c40, %c0_49] : memref<304x128xf32, #tpu.memory_space<vmem>>, vector<256x128xf32>
    %90 = arith.truncf %89 : vector<256x128xf32> to vector<256x128xbf16>
    %c7_50 = arith.constant 7 : index
    %c0_51 = arith.constant 0 : index
    %c0_52 = arith.constant 0 : index
    %91 = vector.load %arg5[%c7_50, %c0_51, %c0_52] : memref<9x128x128xbf16, #tpu.memory_space<vmem>>, vector<1x128x128xbf16>
    %92 = vector.shape_cast %91 : vector<1x128x128xbf16> to vector<128x128xbf16>
    %cst_53 = arith.constant dense<0.000000e+00> : vector<256x128xf32>
    %93 = tpu.matmul %90, %92, %cst_53 {dimension_numbers = #tpu.dot_dimension_numbers<[1], [0], [0], [1], [0, 0, 1, 1], [], []>} : vector<256x128xbf16>, vector<128x128xbf16>, vector<256x128xf32> -> vector<256x128xf32>
    %94 = arith.addf %88, %93 : vector<256x128xf32>
    %95 = arith.addf %75, %94 : vector<256x128xf32>
    %cst_54 = arith.constant 0.000000e+00 : f32
    %96 = vector.broadcast %cst_54 : f32 to vector<256x128xf32>
    %c9 = arith.constant 9 : index
    %c0_55 = arith.constant 0 : index
    %97 = vector.load %arg11[%c9, %c0_55] : memref<304x128xf32, #tpu.memory_space<vmem>>, vector<256x128xf32>
    %98 = arith.truncf %97 : vector<256x128xf32> to vector<256x128xbf16>
    %c2 = arith.constant 2 : index
    %c0_56 = arith.constant 0 : index
    %c0_57 = arith.constant 0 : index
    %99 = vector.load %arg5[%c2, %c0_56, %c0_57] : memref<9x128x128xbf16, #tpu.memory_space<vmem>>, vector<1x128x128xbf16>
    %100 = vector.shape_cast %99 : vector<1x128x128xbf16> to vector<128x128xbf16>
    %cst_58 = arith.constant dense<0.000000e+00> : vector<256x128xf32>
    %101 = tpu.matmul %98, %100, %cst_58 {dimension_numbers = #tpu.dot_dimension_numbers<[1], [0], [0], [1], [0, 0, 1, 1], [], []>} : vector<256x128xbf16>, vector<128x128xbf16>, vector<256x128xf32> -> vector<256x128xf32>
    %102 = arith.addf %96, %101 : vector<256x128xf32>
    %c25 = arith.constant 25 : index
    %c0_59 = arith.constant 0 : index
    %103 = vector.load %arg11[%c25, %c0_59] : memref<304x128xf32, #tpu.memory_space<vmem>>, vector<256x128xf32>
    %104 = arith.truncf %103 : vector<256x128xf32> to vector<256x128xbf16>
    %c5 = arith.constant 5 : index
    %c0_60 = arith.constant 0 : index
    %c0_61 = arith.constant 0 : index
    %105 = vector.load %arg5[%c5, %c0_60, %c0_61] : memref<9x128x128xbf16, #tpu.memory_space<vmem>>, vector<1x128x128xbf16>
    %106 = vector.shape_cast %105 : vector<1x128x128xbf16> to vector<128x128xbf16>
    %cst_62 = arith.constant dense<0.000000e+00> : vector<256x128xf32>
    %107 = tpu.matmul %104, %106, %cst_62 {dimension_numbers = #tpu.dot_dimension_numbers<[1], [0], [0], [1], [0, 0, 1, 1], [], []>} : vector<256x128xbf16>, vector<128x128xbf16>, vector<256x128xf32> -> vector<256x128xf32>
    %108 = arith.addf %102, %107 : vector<256x128xf32>
    %c41 = arith.constant 41 : index
    %c0_63 = arith.constant 0 : index
    %109 = vector.load %arg11[%c41, %c0_63] : memref<304x128xf32, #tpu.memory_space<vmem>>, vector<256x128xf32>
    %110 = arith.truncf %109 : vector<256x128xf32> to vector<256x128xbf16>
    %c8_64 = arith.constant 8 : index
    %c0_65 = arith.constant 0 : index
    %c0_66 = arith.constant 0 : index
    %111 = vector.load %arg5[%c8_64, %c0_65, %c0_66] : memref<9x128x128xbf16, #tpu.memory_space<vmem>>, vector<1x128x128xbf16>
    %112 = vector.shape_cast %111 : vector<1x128x128xbf16> to vector<128x128xbf16>
    %cst_67 = arith.constant dense<0.000000e+00> : vector<256x128xf32>
    %113 = tpu.matmul %110, %112, %cst_67 {dimension_numbers = #tpu.dot_dimension_numbers<[1], [0], [0], [1], [0, 0, 1, 1], [], []>} : vector<256x128xbf16>, vector<128x128xbf16>, vector<256x128xf32> -> vector<256x128xf32>
    %114 = arith.addf %108, %113 : vector<256x128xf32>
    %115 = vector.broadcast %52 : vector<256x1xf32> to vector<256x128xf32>
    %116 = arith.mulf %114, %115 : vector<256x128xf32>
    %117 = arith.addf %95, %116 : vector<256x128xf32>
    %c0_68 = arith.constant 0 : index
    %c0_69 = arith.constant 0 : index
    %118 = vector.load %arg6[%c0_68, %c0_69] : memref<1x128xf32, #tpu.memory_space<vmem>>, vector<1x128xf32>
    %119 = vector.broadcast %118 : vector<1x128xf32> to vector<256x128xf32>
    %120 = arith.addf %117, %119 : vector<256x128xf32>
    %121 = arith.truncf %120 : vector<256x128xf32> to vector<256x128xbf16>
    %c0_70 = arith.constant 0 : index
    %c0_71 = arith.constant 0 : index
    %c0_72 = arith.constant 0 : index
    %122 = vector.load %arg9[%c0_70, %c0_71, %c0_72] : memref<1x256x128xbf16, #tpu.memory_space<vmem>>, vector<1x256x128xbf16>
    %123 = vector.shape_cast %122 : vector<1x256x128xbf16> to vector<256x128xbf16>
    %124 = vector.shape_cast %121 : vector<256x128xbf16> to vector<1x256x128xbf16>
    tpu.vector_store %arg9[%c0_70, %c0_71, %c0_72], %124 {strides = array<i32>} : memref<1x256x128xbf16, #tpu.memory_space<vmem>>, vector<1x256x128xbf16>,
    %cst_73 = arith.constant dense<0.000000e+00> : vector<128xf32>
    %125 = vector.multi_reduction <add>, %120, %cst_73 [0] : vector<256x128xf32> to vector<128xf32>
    %126 = vector.shape_cast %125 : vector<128xf32> to vector<1x128xf32>
    %c0_74 = arith.constant 0 : index
    %c0_75 = arith.constant 0 : index
    %c0_76 = arith.constant 0 : index
    %c0_77 = arith.constant 0 : index
    %127 = vector.load %arg10[%c0_74, %c0_75, %c0_76, %c0_77] : memref<1x1x2x128xf32, #tpu.memory_space<vmem>>, vector<1x1x1x128xf32>
    %128 = vector.shape_cast %127 : vector<1x1x1x128xf32> to vector<1x128xf32>
    %129 = vector.shape_cast %126 : vector<1x128xf32> to vector<1x1x1x128xf32>
    tpu.vector_store %arg10[%c0_74, %c0_75, %c0_76, %c0_77], %129 {strides = array<i32>} : memref<1x1x2x128xf32, #tpu.memory_space<vmem>>, vector<1x1x1x128xf32>,
    %130 = arith.mulf %120, %120 : vector<256x128xf32>
    %cst_78 = arith.constant dense<0.000000e+00> : vector<128xf32>
    %131 = vector.multi_reduction <add>, %130, %cst_78 [0] : vector<256x128xf32> to vector<128xf32>
    %132 = vector.shape_cast %131 : vector<128xf32> to vector<1x128xf32>
    %c0_79 = arith.constant 0 : index
    %c0_80 = arith.constant 0 : index
    %c1_81 = arith.constant 1 : index
    %c0_82 = arith.constant 0 : index
    %133 = vector.load %arg10[%c0_79, %c0_80, %c1_81, %c0_82] : memref<1x1x2x128xf32, #tpu.memory_space<vmem>>, vector<1x1x1x128xf32>
    %134 = vector.shape_cast %133 : vector<1x1x1x128xf32> to vector<1x128xf32>
    %135 = vector.shape_cast %132 : vector<1x128xf32> to vector<1x1x1x128xf32>
    tpu.vector_store %arg10[%c0_79, %c0_80, %c1_81, %c0_82], %135 {strides = array<i32>} : memref<1x1x2x128xf32, #tpu.memory_space<vmem>>, vector<1x1x1x128xf32>,
    return
  }
  func.func @transform_0(%arg0: i32, %arg1: i32) -> (i32, i32, i32) {
    %c0_i32 = arith.constant 0 : i32
    %c0_i32_0 = arith.constant 0 : i32
    return %arg0, %arg1, %c0_i32 : i32, i32, i32
  }
  func.func @transform_1(%arg0: i32, %arg1: i32) -> (i32, i32, i32) {
    %c16_i32 = arith.constant 16 : i32
    %0 = arith.muli %arg1, %c16_i32 : i32
    %c1_i32 = arith.constant 1 : i32
    %1 = arith.subi %0, %c1_i32 : i32
    %c0_i32 = arith.constant 0 : i32
    %2 = arith.maxsi %1, %c0_i32 : i32
    %c0_i32_0 = arith.constant 0 : i32
    %c0_i32_1 = arith.constant 0 : i32
    return %arg0, %2, %c0_i32_0 : i32, i32, i32
  }
  func.func @transform_2(%arg0: i32, %arg1: i32) -> (i32, i32, i32) {
    %c1_i32 = arith.constant 1 : i32
    %0 = arith.addi %arg1, %c1_i32 : i32
    %c16_i32 = arith.constant 16 : i32
    %1 = arith.muli %0, %c16_i32 : i32
    %c15_i32 = arith.constant 15 : i32
    %2 = arith.minsi %1, %c15_i32 : i32
    %c0_i32 = arith.constant 0 : i32
    %c0_i32_0 = arith.constant 0 : i32
    return %arg0, %2, %c0_i32 : i32, i32, i32
  }
  func.func @transform_3(%arg0: i32, %arg1: i32) -> (i32, i32, i32) {
    %c0_i32 = arith.constant 0 : i32
    %c0_i32_0 = arith.constant 0 : i32
    %c0_i32_1 = arith.constant 0 : i32
    %c0_i32_2 = arith.constant 0 : i32
    return %c0_i32, %c0_i32_0, %c0_i32_1 : i32, i32, i32
  }
  func.func @transform_4(%arg0: i32, %arg1: i32) -> (i32, i32) {
    %c0_i32 = arith.constant 0 : i32
    %c0_i32_0 = arith.constant 0 : i32
    %c0_i32_1 = arith.constant 0 : i32
    return %c0_i32, %c0_i32_0 : i32, i32
  }
  func.func @transform_5(%arg0: i32, %arg1: i32) -> (i32, i32) {
    %c0_i32 = arith.constant 0 : i32
    %c0_i32_0 = arith.constant 0 : i32
    %c0_i32_1 = arith.constant 0 : i32
    return %c0_i32, %c0_i32_0 : i32, i32
  }
  func.func @transform_6(%arg0: i32, %arg1: i32) -> (i32, i32) {
    %c0_i32 = arith.constant 0 : i32
    %c0_i32_0 = arith.constant 0 : i32
    %c0_i32_1 = arith.constant 0 : i32
    return %c0_i32, %c0_i32_0 : i32, i32
  }
  func.func @transform_7(%arg0: i32, %arg1: i32) -> (i32, i32, i32) {
    %c0_i32 = arith.constant 0 : i32
    %c0_i32_0 = arith.constant 0 : i32
    return %arg0, %arg1, %c0_i32 : i32, i32, i32
  }
  func.func @transform_8(%arg0: i32, %arg1: i32) -> (i32, i32, i32, i32) {
    %c0_i32 = arith.constant 0 : i32
    %c0_i32_0 = arith.constant 0 : i32
    %c0_i32_1 = arith.constant 0 : i32
    return %arg0, %arg1, %c0_i32, %c0_i32_0 : i32, i32, i32, i32
  }
}

module attributes {stable_mosaic.version = 11 : i64} {
  func.func @_bn_relu_kernel(%arg0: i32, %arg1: memref<512x128xbf16, #tpu.memory_space<vmem>>, %arg2: memref<1x128xf32, #tpu.memory_space<vmem>>, %arg3: memref<1x128xf32, #tpu.memory_space<vmem>>, %arg4: memref<512x128xf32, #tpu.memory_space<vmem>>) attributes {dimension_semantics = [#tpu.dimension_semantics<parallel>], iteration_bounds = array<i64: 1>, scalar_prefetch = 0 : i64, scratch_operands = 0 : i64, tpu.core_type = #tpu.core_type<tc>, window_params = [{transform_indices = @transform_0, window_bounds = array<i64: 512, 128>}, {pipeline_mode = #tpu.pipeline_mode<synchronous>, transform_indices = @transform_1, window_bounds = array<i64: 1, 128>}, {pipeline_mode = #tpu.pipeline_mode<synchronous>, transform_indices = @transform_2, window_bounds = array<i64: 1, 128>}, {transform_indices = @transform_3, window_bounds = array<i64: 512, 128>}]} {
    %c0 = arith.constant 0 : index
    %c0_0 = arith.constant 0 : index
    %0 = vector.load %arg1[%c0, %c0_0] : memref<512x128xbf16, #tpu.memory_space<vmem>>, vector<512x128xbf16>
    %1 = arith.extf %0 : vector<512x128xbf16> to vector<512x128xf32>
    %c0_1 = arith.constant 0 : index
    %c0_2 = arith.constant 0 : index
    %2 = vector.load %arg2[%c0_1, %c0_2] : memref<1x128xf32, #tpu.memory_space<vmem>>, vector<1x128xf32>
    %3 = vector.broadcast %2 : vector<1x128xf32> to vector<512x128xf32>
    %4 = arith.mulf %1, %3 : vector<512x128xf32>
    %c0_3 = arith.constant 0 : index
    %c0_4 = arith.constant 0 : index
    %5 = vector.load %arg3[%c0_3, %c0_4] : memref<1x128xf32, #tpu.memory_space<vmem>>, vector<1x128xf32>
    %6 = vector.broadcast %5 : vector<1x128xf32> to vector<512x128xf32>
    %7 = arith.addf %4, %6 : vector<512x128xf32>
    %cst = arith.constant 0.000000e+00 : f32
    %8 = vector.broadcast %cst : f32 to vector<512x128xf32>
    %9 = arith.maximumf %7, %8 : vector<512x128xf32>
    %c0_5 = arith.constant 0 : index
    %c0_6 = arith.constant 0 : index
    %10 = vector.load %arg4[%c0_5, %c0_6] : memref<512x128xf32, #tpu.memory_space<vmem>>, vector<512x128xf32>
    tpu.vector_store %arg4[%c0_5, %c0_6], %9 {strides = array<i32>} : memref<512x128xf32, #tpu.memory_space<vmem>>, vector<512x128xf32>,
    return
  }
  func.func @transform_0(%arg0: i32) -> (i32, i32) {
    %c0_i32 = arith.constant 0 : i32
    %c0_i32_0 = arith.constant 0 : i32
    return %arg0, %c0_i32 : i32, i32
  }
  func.func @transform_1(%arg0: i32) -> (i32, i32) {
    %c0_i32 = arith.constant 0 : i32
    %c0_i32_0 = arith.constant 0 : i32
    %c0_i32_1 = arith.constant 0 : i32
    return %c0_i32, %c0_i32_0 : i32, i32
  }
  func.func @transform_2(%arg0: i32) -> (i32, i32) {
    %c0_i32 = arith.constant 0 : i32
    %c0_i32_0 = arith.constant 0 : i32
    %c0_i32_1 = arith.constant 0 : i32
    return %c0_i32, %c0_i32_0 : i32, i32
  }
  func.func @transform_3(%arg0: i32) -> (i32, i32) {
    %c0_i32 = arith.constant 0 : i32
    %c0_i32_0 = arith.constant 0 : i32
    return %arg0, %c0_i32 : i32, i32
  }
}

</mosaic_0001>

<bundles_post_ra>
// kernel: tile.8
= control target key start
LH: loop header
LB: loop body
LE: loop exit
PB: predicated region body
PF: predicated region fallthrough
CT: control target
= control target key end

     0   :  { %s22_s0 = inlined_call_operand.vmem [shape: f32[4], index: 0, kind: input, shape index: {}]   ;;  %s23_s1 = inlined_call_operand.vmem [shape: f32[4,4], index: 1, kind: output, shape index: {}]  }
   0x1   :  { %v4_v0 = vld [vmem:[%s22_s0] ss:$0 sm:$0xff] }
   0x2   :  { %5 = vst [vmem:[%s23_s1] sm:$0xf] %v4_v0 }

// kernel: tile.9
= control target key start
LH: loop header
LB: loop body
LE: loop exit
PB: predicated region body
PF: predicated region fallthrough
CT: control target
= control target key end

     0   :  { %vm7_vm0 = vcmask 31744   ;;  %s37_s8 = smov 4   ;;  %s38_s9 = smov 8   ;;  %vm13_vm1 = vcmask 130144   ;;  %vm19_vm2 = vcmask 97344   ;;  %vm25_vm3 = vcmask 64544   ;;  %s55_s0 = inlined_call_operand.vmem [shape: f32[4,4], index: 0, kind: input, shape index: {}]   ;;  %s56_s1 = inlined_call_operand.vmem [shape: f32[16], index: 1, kind: output, shape index: {}]  }
   0x1   :  { %v4_v0 = vld [vmem:[%s55_s0] sm:$0xf]  ;;  %s36_s0 = smov 12  }
   0x2   :  { %5 = vst [vmem:[#allocation1] sm:$0xf] %v4_v0 }
   0x9   :  { %v10_v1 = vld [vmem:[#allocation1 + $0x3] sm:$0x1]   ;;  %v22_v2 = vld [vmem:[#allocation1 + $0x1] sm:$0x1]   ;;  %v6_v3 = vld [vmem:[#allocation1] sm:$0x1]  }
   0xa   :  { %11 = vrot.lane.b32.xlu0 %v10_v1, %s36_s0  ;;  %23 = vrot.lane.b32.xlu1 %v22_v2, %s37_s8  ;;  %v16_v4 = vld [vmem:[#allocation1 + $0x2] sm:$0x1]   ;;  %8 = vst.msk [vmem:[#allocation0] sm:$0x1] %vm7_vm0, %v6_v3  }
   0xe   :  { %17 = vrot.lane.b32.xlu0 %v16_v4, %s38_s9 }
  0x7c   :  { %v12_v5 = vpop.permute.xlu0 %11   ;;  %v24_v6 = vpop.permute.xlu1 %23  }
  0x7d   :  { %14 = vst.msk [vmem:[#allocation0] sm:$0x1] %vm13_vm1, %v12_v5  }
  0x80   :  { %v18_v7 = vpop.permute.xlu0 %17  }
  0x81   :  { %20 = vst.msk [vmem:[#allocation0] sm:$0x1] %vm19_vm2, %v18_v7  }
  0x82   :  { %26 = vst.msk [vmem:[#allocation0] sm:$0x1] %vm25_vm3, %v24_v6  }
  0x89   :  { %v30_v8 = vld [vmem:[#allocation0] sm:$0x1] }
  0x8a   :  { %32 = vst [vmem:[%s56_s1] sm:$0x1] %v30_v8 }

// kernel: nlff_up_forward.6
= control target key start
LH: loop header
LB: loop body
LE: loop exit
PB: predicated region body
PF: predicated region fallthrough
CT: control target
= control target key end

     0   :  { %s602_s1 = inlined_call_operand.vmem [shape: bf16[128,128], index: 1, kind: input, shape index: {}]   ;;  %s603_s0 = inlined_call_operand.vmem [shape: bf16[128,128], index: 0, kind: input, shape index: {}]   ;;  %s604_s2 = inlined_call_operand.vmem [shape: f32[1,128], index: 2, kind: input, shape index: {}]   ;;  %s605_s3 = inlined_call_operand.vmem [shape: bf16[128,128], index: 3, kind: output, shape index: {}]  }
   0x1   :  { %v491_v0 = vld [vmem:[%s602_s1] sm:$0xff]   ;;  %v492_v1 = vld [vmem:[%s602_s1 + $0x8] sm:$0xff]   ;;  %v493_v2 = vld [vmem:[%s602_s1 + $0x10] sm:$0xff]  }
   0x2   :  { %443 = vmatprep.subr.bf16.mxu0 %v491_v0  ;;  %475 = vmatprep.subr.bf16.mxu1 %v491_v0  ;;  %v494_v3 = vld [vmem:[%s602_s1 + $0x18] sm:$0xff]   ;;  %v499_v4 = vld [vmem:[%s603_s0] sm:$0xff]   ;;  %v496_v7 = vld [vmem:[%s602_s1 + $0x28] sm:$0xff]  }
   0x3   :  { %444 = vmatpush3.bf16.msra.mxu0 %v491_v0  ;;  %483 = vmatpush3.bf16.msra.mxu1 %v491_v0  ;;  %v500_v5 = vld [vmem:[%s603_s0 + $0x20] sm:$0xff]   ;;  %v497_v8 = vld [vmem:[%s602_s1 + $0x30] sm:$0xff]   ;;  %v498_v9 = vld [vmem:[%s602_s1 + $0x38] sm:$0xff]  }
   0x4   :  { %445 = vmatprep.subr.bf16.mxu0 %v492_v1  ;;  %476 = vmatprep.subr.bf16.mxu1 %v492_v1  ;;  %v495_v6 = vld [vmem:[%s602_s1 + $0x20] sm:$0xff]   ;;  %v501_v10 = vld [vmem:[%s603_s0 + $0x8] sm:$0xff]   ;;  %v503_v12 = vld [vmem:[%s603_s0 + $0x10] sm:$0xff]  }
   0x5   :  { %459 = vmatprep.mubr.bf16.mxu0 %v499_v4  ;;  %467 = vmatprep.mubr.bf16.mxu1 %v500_v5  ;;  %v502_v11 = vld [vmem:[%s603_s0 + $0x28] sm:$0xff]   ;;  %v504_v13 = vld [vmem:[%s603_s0 + $0x30] sm:$0xff]   ;;  %v505_v14 = vld [vmem:[%s603_s0 + $0x18] sm:$0xff]  }
   0x6   :  { %v506_v15 = vld [vmem:[%s603_s0 + $0x38] sm:$0xff]   ;;  %v331_v17 = vld [vmem:[%s604_s2] ss:$0 sm:$0xff] }
   0x7   :  { %446 = vmatpush3.bf16.msra.mxu0 %v492_v1  ;;  %484 = vmatpush3.bf16.msra.mxu1 %v492_v1 }
   0x8   :  { %447 = vmatprep.subr.bf16.mxu0 %v493_v2  ;;  %477 = vmatprep.subr.bf16.mxu1 %v493_v2 }
   0xb   :  { %448 = vmatpush3.bf16.msra.mxu0 %v493_v2  ;;  %485 = vmatpush3.bf16.msra.mxu1 %v493_v2 }
   0xc   :  { %449 = vmatprep.subr.bf16.mxu0 %v494_v3  ;;  %478 = vmatprep.subr.bf16.mxu1 %v494_v3 }
   0xf   :  { %450 = vmatpush3.bf16.msra.mxu0 %v494_v3  ;;  %486 = vmatpush3.bf16.msra.mxu1 %v494_v3 }
  0x10   :  { %451 = vmatprep.subr.bf16.mxu0 %v495_v6  ;;  %479 = vmatprep.subr.bf16.mxu1 %v495_v6 }
  0x13   :  { %452 = vmatpush3.bf16.msra.mxu0 %v495_v6  ;;  %487 = vmatpush3.bf16.msra.mxu1 %v495_v6 }
  0x14   :  { %453 = vmatprep.subr.bf16.mxu0 %v496_v7  ;;  %480 = vmatprep.subr.bf16.mxu1 %v496_v7 }
  0x17   :  { %454 = vmatpush3.bf16.msra.mxu0 %v496_v7  ;;  %488 = vmatpush3.bf16.msra.mxu1 %v496_v7 }
  0x18   :  { %455 = vmatprep.subr.bf16.mxu0 %v497_v8  ;;  %481 = vmatprep.subr.bf16.mxu1 %v497_v8 }
  0x1b   :  { %456 = vmatpush3.bf16.msra.mxu0 %v497_v8  ;;  %489 = vmatpush3.bf16.msra.mxu1 %v497_v8 }
  0x1c   :  { %457 = vmatprep.subr.bf16.mxu0 %v498_v9  ;;  %482 = vmatprep.subr.bf16.mxu1 %v498_v9 }
  0x1f   :  { %458 = vmatpush3.bf16.msra.mxu0 %v498_v9  ;;  %490 = vmatpush3.bf16.msra.mxu1 %v498_v9 }
  0x22   :  { %460 = vmatmul.mubr.bf16.vlgmr.msra.gmra.mrb[0].mxu0 %v501_v10  ;;  %468 = vmatmul.mubr.bf16.vlgmr.msra.gmra.mrb[0].mxu1 %v502_v11 }
  0x23   :  { %463 = vmatprep.mubr.bf16.mxu0 %v503_v12  ;;  %471 = vmatprep.mubr.bf16.mxu1 %v504_v13 }
  0x2a   :  { %464 = vmatmul.mubr.bf16.gmra.mrb[4].mxu0 %v505_v14  ;;  %472 = vmatmul.mubr.bf16.gmra.mrb[4].mxu1 %v506_v15 }
  0xf5   :  { %v461_v16 = vpop.f32.mrb[0].mxu0  ;;  %v469_v18 = vpop.f32.mrb[0].mxu1 }
  0xf6   :  { %v184_v19 = vpop.f32.mrb[1].mxu0  ;;  %v216_v20 = vpop.f32.mrb[1].mxu1  ;;  %v193_v23 = vadd.f32 %v461_v16, %v331_v17  ;;  %v225_v24 = vadd.f32 %v469_v18, %v331_v17 }
  0xf7   :  { %v462_v21 = vpop.f32.mrb[2].mxu0  ;;  %v470_v22 = vpop.f32.mrb[2].mxu1  ;;  %v185_v29 = vadd.f32 %v331_v17, %v184_v19  ;;  %v217_v30 = vadd.f32 %v331_v17, %v216_v20 }
  0xf8   :  { %v196_v25 = vadd.f32 %v462_v21, %v331_v17  ;;  %v228_v26 = vadd.f32 %v470_v22, %v331_v17  ;;  %v187_v27 = vpop.f32.mrb[3].mxu0  ;;  %v219_v28 = vpop.f32.mrb[3].mxu1 }
  0xf9   :  { %v188_v31 = vadd.f32 %v331_v17, %v187_v27  ;;  %v220_v32 = vadd.f32 %v331_v17, %v219_v28 }
  0xfa   :  { %v388_v33 = vpack.c.bf16 %v196_v25, %v193_v23  ;;  %v408_v34 = vpack.c.bf16 %v228_v26, %v225_v24 }
  0xfb   :  { %v383_v35 = vpack.c.bf16 %v188_v31, %v185_v29  ;;  %v403_v36 = vpack.c.bf16 %v220_v32, %v217_v30 }
  0xfc   :  { %420 = vst [vmem:[%s605_s3 + $0x8] sm:$0xff] %v388_v33   ;;  %424 = vst [vmem:[%s605_s3 + $0x28] sm:$0xff] %v408_v34  }
  0xfd   :  { %384 = vst [vmem:[%s605_s3] sm:$0xff] %v383_v35   ;;  %423 = vst [vmem:[%s605_s3 + $0x20] sm:$0xff] %v403_v36   ;;  %v465_v37 = vpop.f32.mrb[4].mxu0  ;;  %v473_v38 = vpop.f32.mrb[4].mxu1 }
  0xfe   :  { %v200_v39 = vpop.f32.mrb[5].mxu0  ;;  %v232_v40 = vpop.f32.mrb[5].mxu1  ;;  %v209_v43 = vadd.f32 %v465_v37, %v331_v17  ;;  %v241_v44 = vadd.f32 %v473_v38, %v331_v17 }
  0xff   :  { %v466_v41 = vpop.f32.mrb[6].mxu0  ;;  %v474_v42 = vpop.f32.mrb[6].mxu1  ;;  %v201_v49 = vadd.f32 %v331_v17, %v200_v39  ;;  %v233_v50 = vadd.f32 %v331_v17, %v232_v40 }
 0x100   :  { %v212_v45 = vadd.f32 %v466_v41, %v331_v17  ;;  %v244_v46 = vadd.f32 %v474_v42, %v331_v17  ;;  %v203_v47 = vpop.f32.mrb[7].mxu0  ;;  %v235_v48 = vpop.f32.mrb[7].mxu1 }
 0x101   :  { %v204_v51 = vadd.f32 %v331_v17, %v203_v47  ;;  %v236_v52 = vadd.f32 %v331_v17, %v235_v48 }
 0x102   :  { %v398_v53 = vpack.c.bf16 %v212_v45, %v209_v43  ;;  %v418_v54 = vpack.c.bf16 %v244_v46, %v241_v44 }
 0x103   :  { %v393_v55 = vpack.c.bf16 %v204_v51, %v201_v49  ;;  %v413_v56 = vpack.c.bf16 %v236_v52, %v233_v50 }
 0x104   :  { %422 = vst [vmem:[%s605_s3 + $0x18] sm:$0xff] %v398_v53   ;;  %426 = vst [vmem:[%s605_s3 + $0x38] sm:$0xff] %v418_v54  }
 0x105   :  { %421 = vst [vmem:[%s605_s3 + $0x10] sm:$0xff] %v393_v55   ;;  %425 = vst [vmem:[%s605_s3 + $0x30] sm:$0xff] %v413_v56  }

// kernel: nlff_up_forward.7
= control target key start
LH: loop header
LB: loop body
LE: loop exit
PB: predicated region body
PF: predicated region fallthrough
CT: control target
= control target key end

     0   :  { %v1433_v1 = vmov 0   ;;  %v97_v49 = vlaneseq  ;;  %s1957_s1 = inlined_call_operand.vmem [shape: bf16[128,256], index: 1, kind: input, shape index: {}]   ;;  %s1958_s0 = inlined_call_operand.vmem [shape: bf16[512,128], index: 0, kind: input, shape index: {}]   ;;  %s1959_s2 = inlined_call_operand.vmem [shape: f32[1,256], index: 2, kind: input, shape index: {}]   ;;  %s1960_s3 = inlined_call_operand.vmem [shape: bf16[512,256], index: 3, kind: output, shape index: {}]  }
   0x1   :  { %v1377_v0 = vld [vmem:[%s1957_s1 + $0x4] ss:$8 sps:$4 sm:$0xff]   ;;  %411 = vmatprep.mubr.bf16.mxu0 %v1433_v1  ;;  %571 = vmatprep.mubr.bf16.mxu1 %v1433_v1  ;;  %v1379_v2 = vld [vmem:[%s1957_s1] ss:$8 sps:$4 sm:$0xff]   ;;  %v1380_v3 = vld [vmem:[%s1957_s1 + $0x14] ss:$8 sps:$4 sm:$0xff]  }
   0x2   :  { %379 = vmatprep.subr.bf16.mxu0 %v1377_v0  ;;  %1360 = vmatprep.subr.bf16.mxu1 %v1377_v0  ;;  %v1382_v4 = vld [vmem:[%s1957_s1 + $0x10] ss:$8 sps:$4 sm:$0xff]   ;;  %v1383_v5 = vld [vmem:[%s1957_s1 + $0x24] ss:$8 sps:$4 sm:$0xff]   ;;  %v1385_v6 = vld [vmem:[%s1957_s1 + $0x20] ss:$8 sps:$4 sm:$0xff]  }
   0x3   :  { %380 = vmatpush1.bf16.msra.mxu0 %v1379_v2  ;;  %1368 = vmatpush1.bf16.msra.mxu1 %v1379_v2  ;;  %v1386_v7 = vld [vmem:[%s1957_s1 + $0x34] ss:$8 sps:$4 sm:$0xff]   ;;  %v1388_v8 = vld [vmem:[%s1957_s1 + $0x30] ss:$8 sps:$4 sm:$0xff]   ;;  %v1389_v9 = vld [vmem:[%s1957_s1 + $0x44] ss:$8 sps:$4 sm:$0xff]  }
   0x4   :  { %381 = vmatprep.subr.bf16.mxu0 %v1380_v3  ;;  %1361 = vmatprep.subr.bf16.mxu1 %v1380_v3  ;;  %v1391_v10 = vld [vmem:[%s1957_s1 + $0x40] ss:$8 sps:$4 sm:$0xff]   ;;  %v1392_v11 = vld [vmem:[%s1957_s1 + $0x54] ss:$8 sps:$4 sm:$0xff]   ;;  %v1394_v12 = vld [vmem:[%s1957_s1 + $0x50] ss:$8 sps:$4 sm:$0xff]  }
   0x5   :  { %v1395_v13 = vld [vmem:[%s1957_s1 + $0x64] ss:$8 sps:$4 sm:$0xff]   ;;  %v1397_v14 = vld [vmem:[%s1957_s1 + $0x60] ss:$8 sps:$4 sm:$0xff]   ;;  %v1398_v15 = vld [vmem:[%s1957_s1 + $0x74] ss:$8 sps:$4 sm:$0xff]  }
   0x6   :  { %v1400_v16 = vld [vmem:[%s1957_s1 + $0x70] ss:$8 sps:$4 sm:$0xff]   ;;  %v1401_v17 = vld [vmem:[%s1958_s0] sm:$0xff]   ;;  %v1403_v19 = vld [vmem:[%s1958_s0 + $0x8] sm:$0xff]   ;;  %v98_v50 = vshrl.u32 %v97_v49, 7 }
   0x7   :  { %382 = vmatpush1.bf16.msra.mxu0 %v1382_v4  ;;  %1369 = vmatpush1.bf16.msra.mxu1 %v1382_v4  ;;  %v1402_v18 = vld [vmem:[%s1958_s0 + $0x80] sm:$0xff]   ;;  %v1404_v20 = vld [vmem:[%s1958_s0 + $0x88] sm:$0xff]   ;;  %v1405_v21 = vld [vmem:[%s1958_s0 + $0x10] sm:$0xff]  }
   0x8   :  { %383 = vmatprep.subr.bf16.mxu0 %v1383_v5  ;;  %1362 = vmatprep.subr.bf16.mxu1 %v1383_v5  ;;  %v1406_v22 = vld [vmem:[%s1958_s0 + $0x90] sm:$0xff]   ;;  %v1407_v23 = vld [vmem:[%s1958_s0 + $0x18] sm:$0xff]   ;;  %v1409_v25 = vld [vmem:[%s1958_s0 + $0x20] sm:$0xff]   ;;  %v99_v51 = vsub.s32 0, %v98_v50  ;;  %v103_v53 = vsub.s32 1, %v98_v50 }
   0x9   :  { %v1408_v24 = vld [vmem:[%s1958_s0 + $0x98] sm:$0xff]   ;;  %v1410_v26 = vld [vmem:[%s1958_s0 + $0xa0] sm:$0xff]   ;;  %v1411_v27 = vld [vmem:[%s1958_s0 + $0x28] sm:$0xff]  }
   0xa   :  { %v1412_v28 = vld [vmem:[%s1958_s0 + $0xa8] sm:$0xff]   ;;  %v1413_v29 = vld [vmem:[%s1958_s0 + $0x30] sm:$0xff]   ;;  %v1415_v31 = vld [vmem:[%s1958_s0 + $0x38] sm:$0xff]  }
   0xb   :  { %384 = vmatpush1.bf16.msra.mxu0 %v1385_v6  ;;  %1370 = vmatpush1.bf16.msra.mxu1 %v1385_v6  ;;  %v1414_v30 = vld [vmem:[%s1958_s0 + $0xb0] sm:$0xff]   ;;  %v1416_v32 = vld [vmem:[%s1958_s0 + $0xb8] sm:$0xff]   ;;  %v1417_v33 = vld [vmem:[%s1958_s0 + $0x40] sm:$0xff]  }
   0xc   :  { %385 = vmatprep.subr.bf16.mxu0 %v1386_v7  ;;  %1363 = vmatprep.subr.bf16.mxu1 %v1386_v7  ;;  %v1418_v34 = vld [vmem:[%s1958_s0 + $0xc0] sm:$0xff]   ;;  %v1419_v35 = vld [vmem:[%s1958_s0 + $0x48] sm:$0xff]   ;;  %v1421_v37 = vld [vmem:[%s1958_s0 + $0x50] sm:$0xff]  }
   0xd   :  { %v1420_v36 = vld [vmem:[%s1958_s0 + $0xc8] sm:$0xff]   ;;  %v1422_v38 = vld [vmem:[%s1958_s0 + $0xd0] sm:$0xff]   ;;  %v1423_v39 = vld [vmem:[%s1958_s0 + $0x58] sm:$0xff]  }
   0xe   :  { %v1424_v40 = vld [vmem:[%s1958_s0 + $0xd8] sm:$0xff]   ;;  %v1425_v41 = vld [vmem:[%s1958_s0 + $0x60] sm:$0xff]   ;;  %v1427_v43 = vld [vmem:[%s1958_s0 + $0x68] sm:$0xff]  }
   0xf   :  { %386 = vmatpush1.bf16.msra.mxu0 %v1388_v8  ;;  %1371 = vmatpush1.bf16.msra.mxu1 %v1388_v8  ;;  %v1426_v42 = vld [vmem:[%s1958_s0 + $0xe0] sm:$0xff]   ;;  %v1428_v44 = vld [vmem:[%s1958_s0 + $0xe8] sm:$0xff]   ;;  %v1429_v45 = vld [vmem:[%s1958_s0 + $0x70] sm:$0xff]  }
  0x10   :  { %387 = vmatprep.subr.bf16.mxu0 %v1389_v9  ;;  %1364 = vmatprep.subr.bf16.mxu1 %v1389_v9  ;;  %v1430_v46 = vld [vmem:[%s1958_s0 + $0xf0] sm:$0xff]   ;;  %v1431_v47 = vld [vmem:[%s1958_s0 + $0x78] sm:$0xff]   ;;  %v95_v52 = vld [vmem:[%s1959_s2] sm:$0x3] }
  0x11   :  { %v1432_v48 = vld [vmem:[%s1958_s0 + $0xf8] sm:$0xff]   ;;  %v1633_v54 = vrot.slane %v95_v52, %v99_v51  ;;  %v1635_v55 = vrot.slane %v95_v52, %v103_v53 }
  0x13   :  { %388 = vmatpush1.bf16.msra.mxu0 %v1391_v10  ;;  %1372 = vmatpush1.bf16.msra.mxu1 %v1391_v10 }
  0x14   :  { %389 = vmatprep.subr.bf16.mxu0 %v1392_v11  ;;  %1365 = vmatprep.subr.bf16.mxu1 %v1392_v11 }
  0x17   :  { %390 = vmatpush1.bf16.msra.mxu0 %v1394_v12  ;;  %1373 = vmatpush1.bf16.msra.mxu1 %v1394_v12 }
  0x18   :  { %391 = vmatprep.subr.bf16.mxu0 %v1395_v13  ;;  %1366 = vmatprep.subr.bf16.mxu1 %v1395_v13 }
  0x1b   :  { %392 = vmatpush1.bf16.msra.mxu0 %v1397_v14  ;;  %1374 = vmatpush1.bf16.msra.mxu1 %v1397_v14 }
  0x1c   :  { %393 = vmatprep.subr.bf16.mxu0 %v1398_v15  ;;  %1367 = vmatprep.subr.bf16.mxu1 %v1398_v15 }
  0x1f   :  { %394 = vmatpush1.bf16.msra.mxu0 %v1400_v16  ;;  %1375 = vmatpush1.bf16.msra.mxu1 %v1400_v16 }
  0x22   :  { %412 = vmatmul.mubr.bf16.vlgmr.msra.gmra.mrb[0].mxu0 %v1401_v17  ;;  %572 = vmatmul.mubr.bf16.vlgmr.msra.gmra.mrb[0].mxu1 %v1402_v18 }
  0x23   :  { %421 = vmatprep.mubr.bf16.mxu0 %v1433_v1  ;;  %581 = vmatprep.mubr.bf16.mxu1 %v1433_v1 }
  0x2a   :  { %422 = vmatmul.mubr.bf16.gmra.mrb[4].mxu0 %v1403_v19  ;;  %582 = vmatmul.mubr.bf16.gmra.mrb[4].mxu1 %v1404_v20 }
  0x2b   :  { %431 = vmatprep.mubr.bf16.mxu0 %v1433_v1  ;;  %591 = vmatprep.mubr.bf16.mxu1 %v1433_v1 }
  0x32   :  { %432 = vmatmul.mubr.bf16.gmra.mrb[8].mxu0 %v1405_v21  ;;  %592 = vmatmul.mubr.bf16.gmra.mrb[8].mxu1 %v1406_v22 }
  0x33   :  { %441 = vmatprep.mubr.bf16.mxu0 %v1433_v1  ;;  %601 = vmatprep.mubr.bf16.mxu1 %v1433_v1 }
  0x3a   :  { %442 = vmatmul.mubr.bf16.gmra.mrb[12].mxu0 %v1407_v23  ;;  %602 = vmatmul.mubr.bf16.gmra.mrb[12].mxu1 %v1408_v24 }
  0x3b   :  { %451 = vmatprep.mubr.bf16.mxu0 %v1433_v1  ;;  %611 = vmatprep.mubr.bf16.mxu1 %v1433_v1 }
  0x42   :  { %452 = vmatmul.mubr.bf16.gmra.mrb[16].mxu0 %v1409_v25  ;;  %612 = vmatmul.mubr.bf16.gmra.mrb[16].mxu1 %v1410_v26 }
  0x43   :  { %461 = vmatprep.mubr.bf16.mxu0 %v1433_v1  ;;  %621 = vmatprep.mubr.bf16.mxu1 %v1433_v1 }
  0x4a   :  { %462 = vmatmul.mubr.bf16.gmra.mrb[20].mxu0 %v1411_v27  ;;  %622 = vmatmul.mubr.bf16.gmra.mrb[20].mxu1 %v1412_v28 }
  0x4b   :  { %471 = vmatprep.mubr.bf16.mxu0 %v1433_v1  ;;  %631 = vmatprep.mubr.bf16.mxu1 %v1433_v1 }
  0x52   :  { %472 = vmatmul.mubr.bf16.gmra.mrb[24].mxu0 %v1413_v29  ;;  %632 = vmatmul.mubr.bf16.gmra.mrb[24].mxu1 %v1414_v30 }
  0x53   :  { %481 = vmatprep.mubr.bf16.mxu0 %v1433_v1  ;;  %641 = vmatprep.mubr.bf16.mxu1 %v1433_v1 }
  0x5a   :  { %482 = vmatmul.mubr.bf16.gmra.mrb[28].mxu0 %v1415_v31  ;;  %642 = vmatmul.mubr.bf16.gmra.mrb[28].mxu1 %v1416_v32 }
  0x5b   :  { %491 = vmatprep.mubr.bf16.mxu0 %v1433_v1  ;;  %651 = vmatprep.mubr.bf16.mxu1 %v1433_v1 }
  0x62   :  { %492 = vmatmul.mubr.bf16.gmra.mrb[32].mxu0 %v1417_v33  ;;  %652 = vmatmul.mubr.bf16.gmra.mrb[32].mxu1 %v1418_v34 }
  0x63   :  { %501 = vmatprep.mubr.bf16.mxu0 %v1433_v1  ;;  %661 = vmatprep.mubr.bf16.mxu1 %v1433_v1 }
  0x6a   :  { %502 = vmatmul.mubr.bf16.gmra.mrb[36].mxu0 %v1419_v35  ;;  %662 = vmatmul.mubr.bf16.gmra.mrb[36].mxu1 %v1420_v36 }
  0x6b   :  { %511 = vmatprep.mubr.bf16.mxu0 %v1433_v1  ;;  %671 = vmatprep.mubr.bf16.mxu1 %v1433_v1 }
  0x72   :  { %512 = vmatmul.mubr.bf16.gmra.mrb[40].mxu0 %v1421_v37  ;;  %672 = vmatmul.mubr.bf16.gmra.mrb[40].mxu1 %v1422_v38 }
  0x73   :  { %521 = vmatprep.mubr.bf16.mxu0 %v1433_v1  ;;  %681 = vmatprep.mubr.bf16.mxu1 %v1433_v1 }
  0x7a   :  { %522 = vmatmul.mubr.bf16.gmra.mrb[44].mxu0 %v1423_v39  ;;  %682 = vmatmul.mubr.bf16.gmra.mrb[44].mxu1 %v1424_v40 }
  0x7b   :  { %531 = vmatprep.mubr.bf16.mxu0 %v1433_v1  ;;  %691 = vmatprep.mubr.bf16.mxu1 %v1433_v1 }
  0x82   :  { %532 = vmatmul.mubr.bf16.gmra.mrb[48].mxu0 %v1425_v41  ;;  %692 = vmatmul.mubr.bf16.gmra.mrb[48].mxu1 %v1426_v42 }
  0x83   :  { %541 = vmatprep.mubr.bf16.mxu0 %v1433_v1  ;;  %701 = vmatprep.mubr.bf16.mxu1 %v1433_v1 }
  0x8a   :  { %542 = vmatmul.mubr.bf16.gmra.mrb[52].mxu0 %v1427_v43  ;;  %702 = vmatmul.mubr.bf16.gmra.mrb[52].mxu1 %v1428_v44 }
  0x8b   :  { %551 = vmatprep.mubr.bf16.mxu0 %v1433_v1  ;;  %711 = vmatprep.mubr.bf16.mxu1 %v1433_v1 }
  0x92   :  { %552 = vmatmul.mubr.bf16.gmra.mrb[56].mxu0 %v1429_v45  ;;  %712 = vmatmul.mubr.bf16.gmra.mrb[56].mxu1 %v1430_v46 }
  0x93   :  { %561 = vmatprep.mubr.bf16.mxu0 %v1433_v1  ;;  %721 = vmatprep.mubr.bf16.mxu1 %v1433_v1 }
  0x9a   :  { %562 = vmatmul.mubr.bf16.gmra.mrb[60].mxu0 %v1431_v47  ;;  %722 = vmatmul.mubr.bf16.gmra.mrb[60].mxu1 %v1432_v48 }
  0xf5   :  { %v413_v56 = vpop.f32.mrb[0].mxu0  ;;  %v573_v57 = vpop.f32.mrb[0].mxu1 }
  0xf6   :  { %v414_v58 = vadd.f32 %v413_v56, %v1633_v54  ;;  %v574_v59 = vadd.f32 %v573_v57, %v1633_v54  ;;  %v415_v60 = vpop.f32.mrb[1].mxu0  ;;  %v575_v61 = vpop.f32.mrb[1].mxu1 }
  0xf7   :  { %v416_v62 = vadd.f32 %v415_v60, %v1635_v55  ;;  %v576_v63 = vadd.f32 %v575_v61, %v1635_v55  ;;  %v417_v0 = vpop.f32.mrb[2].mxu0  ;;  %v577_v1 = vpop.f32.mrb[2].mxu1 }
  0xf8   :  { %v418_v2 = vadd.f32 %v417_v0, %v1633_v54  ;;  %v578_v3 = vadd.f32 %v577_v1, %v1633_v54  ;;  %v419_v4 = vpop.f32.mrb[3].mxu0  ;;  %v579_v5 = vpop.f32.mrb[3].mxu1 }
  0xf9   :  { %v1296_v6 = vpack.c.bf16 %v416_v62, %v414_v58  ;;  %v1328_v7 = vpack.c.bf16 %v576_v63, %v574_v59  ;;  %v420_v8 = vadd.f32 %v419_v4, %v1635_v55  ;;  %v580_v9 = vadd.f32 %v579_v5, %v1635_v55 }
  0xfb   :  { %1116 = vst [vmem:[%s1960_s3] sm:$0xff] %v1296_v6  ;;  %1148 = vst [vmem:[%s1960_s3 + $0x100] sm:$0xff] %v1328_v7  ;;  %v1297_v10 = vpack.c.bf16 %v420_v8, %v418_v2  ;;  %v1329_v11 = vpack.c.bf16 %v580_v9, %v578_v3 }
  0xfd   :  { %1117 = vst [vmem:[%s1960_s3 + $0x8] sm:$0xff] %v1297_v10  ;;  %1149 = vst [vmem:[%s1960_s3 + $0x108] sm:$0xff] %v1329_v11  ;;  %v423_v12 = vpop.f32.mrb[4].mxu0  ;;  %v583_v13 = vpop.f32.mrb[4].mxu1 }
  0xfe   :  { %v424_v14 = vadd.f32 %v423_v12, %v1633_v54  ;;  %v584_v15 = vadd.f32 %v583_v13, %v1633_v54  ;;  %v425_v16 = vpop.f32.mrb[5].mxu0  ;;  %v585_v17 = vpop.f32.mrb[5].mxu1 }
  0xff   :  { %v426_v18 = vadd.f32 %v425_v16, %v1635_v55  ;;  %v586_v19 = vadd.f32 %v585_v17, %v1635_v55  ;;  %v427_v20 = vpop.f32.mrb[6].mxu0  ;;  %v587_v21 = vpop.f32.mrb[6].mxu1 }
 0x100   :  { %v428_v22 = vadd.f32 %v427_v20, %v1633_v54  ;;  %v588_v23 = vadd.f32 %v587_v21, %v1633_v54  ;;  %v429_v24 = vpop.f32.mrb[7].mxu0  ;;  %v589_v25 = vpop.f32.mrb[7].mxu1 }
 0x101   :  { %v1298_v26 = vpack.c.bf16 %v426_v18, %v424_v14  ;;  %v1330_v27 = vpack.c.bf16 %v586_v19, %v584_v15  ;;  %v430_v28 = vadd.f32 %v429_v24, %v1635_v55  ;;  %v590_v29 = vadd.f32 %v589_v25, %v1635_v55 }
 0x103   :  { %1118 = vst [vmem:[%s1960_s3 + $0x10] sm:$0xff] %v1298_v26  ;;  %1150 = vst [vmem:[%s1960_s3 + $0x110] sm:$0xff] %v1330_v27  ;;  %v1299_v30 = vpack.c.bf16 %v430_v28, %v428_v22  ;;  %v1331_v31 = vpack.c.bf16 %v590_v29, %v588_v23 }
 0x105   :  { %1119 = vst [vmem:[%s1960_s3 + $0x18] sm:$0xff] %v1299_v30  ;;  %1151 = vst [vmem:[%s1960_s3 + $0x118] sm:$0xff] %v1331_v31  ;;  %v433_v32 = vpop.f32.mrb[8].mxu0  ;;  %v593_v33 = vpop.f32.mrb[8].mxu1 }
 0x106   :  { %v434_v34 = vadd.f32 %v433_v32, %v1633_v54  ;;  %v594_v35 = vadd.f32 %v593_v33, %v1633_v54  ;;  %v435_v36 = vpop.f32.mrb[9].mxu0  ;;  %v595_v37 = vpop.f32.mrb[9].mxu1 }
 0x107   :  { %v436_v38 = vadd.f32 %v435_v36, %v1635_v55  ;;  %v596_v39 = vadd.f32 %v595_v37, %v1635_v55  ;;  %v437_v40 = vpop.f32.mrb[10].mxu0  ;;  %v597_v41 = vpop.f32.mrb[10].mxu1 }
 0x108   :  { %v438_v42 = vadd.f32 %v437_v40, %v1633_v54  ;;  %v598_v43 = vadd.f32 %v597_v41, %v1633_v54  ;;  %v439_v44 = vpop.f32.mrb[11].mxu0  ;;  %v599_v45 = vpop.f32.mrb[11].mxu1 }
 0x109   :  { %v1300_v46 = vpack.c.bf16 %v436_v38, %v434_v34  ;;  %v1332_v47 = vpack.c.bf16 %v596_v39, %v594_v35  ;;  %v440_v48 = vadd.f32 %v439_v44, %v1635_v55  ;;  %v600_v49 = vadd.f32 %v599_v45, %v1635_v55 }
 0x10b   :  { %1120 = vst [vmem:[%s1960_s3 + $0x20] sm:$0xff] %v1300_v46  ;;  %1152 = vst [vmem:[%s1960_s3 + $0x120] sm:$0xff] %v1332_v47  ;;  %v1301_v50 = vpack.c.bf16 %v440_v48, %v438_v42  ;;  %v1333_v51 = vpack.c.bf16 %v600_v49, %v598_v43 }
 0x10d   :  { %1121 = vst [vmem:[%s1960_s3 + $0x28] sm:$0xff] %v1301_v50  ;;  %1153 = vst [vmem:[%s1960_s3 + $0x128] sm:$0xff] %v1333_v51  ;;  %v443_v52 = vpop.f32.mrb[12].mxu0  ;;  %v603_v53 = vpop.f32.mrb[12].mxu1 }
 0x10e   :  { %v444_v56 = vadd.f32 %v443_v52, %v1633_v54  ;;  %v604_v57 = vadd.f32 %v603_v53, %v1633_v54  ;;  %v445_v58 = vpop.f32.mrb[13].mxu0  ;;  %v605_v59 = vpop.f32.mrb[13].mxu1 }
 0x10f   :  { %v446_v60 = vadd.f32 %v445_v58, %v1635_v55  ;;  %v606_v61 = vadd.f32 %v605_v59, %v1635_v55  ;;  %v447_v62 = vpop.f32.mrb[14].mxu0  ;;  %v607_v63 = vpop.f32.mrb[14].mxu1 }
 0x110   :  { %v448_v0 = vadd.f32 %v447_v62, %v1633_v54  ;;  %v608_v1 = vadd.f32 %v607_v63, %v1633_v54  ;;  %v449_v2 = vpop.f32.mrb[15].mxu0  ;;  %v609_v3 = vpop.f32.mrb[15].mxu1 }
 0x111   :  { %v1302_v4 = vpack.c.bf16 %v446_v60, %v444_v56  ;;  %v1334_v5 = vpack.c.bf16 %v606_v61, %v604_v57  ;;  %v450_v6 = vadd.f32 %v449_v2, %v1635_v55  ;;  %v610_v7 = vadd.f32 %v609_v3, %v1635_v55 }
 0x113   :  { %1122 = vst [vmem:[%s1960_s3 + $0x30] sm:$0xff] %v1302_v4  ;;  %1154 = vst [vmem:[%s1960_s3 + $0x130] sm:$0xff] %v1334_v5  ;;  %v1303_v8 = vpack.c.bf16 %v450_v6, %v448_v0  ;;  %v1335_v9 = vpack.c.bf16 %v610_v7, %v608_v1 }
 0x115   :  { %1123 = vst [vmem:[%s1960_s3 + $0x38] sm:$0xff] %v1303_v8  ;;  %1155 = vst [vmem:[%s1960_s3 + $0x138] sm:$0xff] %v1335_v9  ;;  %v453_v10 = vpop.f32.mrb[16].mxu0  ;;  %v613_v11 = vpop.f32.mrb[16].mxu1 }
 0x116   :  { %v454_v12 = vadd.f32 %v453_v10, %v1633_v54  ;;  %v614_v13 = vadd.f32 %v613_v11, %v1633_v54  ;;  %v455_v14 = vpop.f32.mrb[17].mxu0  ;;  %v615_v15 = vpop.f32.mrb[17].mxu1 }
 0x117   :  { %v456_v16 = vadd.f32 %v455_v14, %v1635_v55  ;;  %v616_v17 = vadd.f32 %v615_v15, %v1635_v55  ;;  %v457_v18 = vpop.f32.mrb[18].mxu0  ;;  %v617_v19 = vpop.f32.mrb[18].mxu1 }
 0x118   :  { %v458_v20 = vadd.f32 %v457_v18, %v1633_v54  ;;  %v618_v21 = vadd.f32 %v617_v19, %v1633_v54  ;;  %v459_v22 = vpop.f32.mrb[19].mxu0  ;;  %v619_v23 = vpop.f32.mrb[19].mxu1 }
 0x119   :  { %v1304_v24 = vpack.c.bf16 %v456_v16, %v454_v12  ;;  %v1336_v25 = vpack.c.bf16 %v616_v17, %v614_v13  ;;  %v460_v26 = vadd.f32 %v459_v22, %v1635_v55  ;;  %v620_v27 = vadd.f32 %v619_v23, %v1635_v55 }
 0x11b   :  { %1124 = vst [vmem:[%s1960_s3 + $0x40] sm:$0xff] %v1304_v24  ;;  %1156 = vst [vmem:[%s1960_s3 + $0x140] sm:$0xff] %v1336_v25  ;;  %v1305_v28 = vpack.c.bf16 %v460_v26, %v458_v20  ;;  %v1337_v29 = vpack.c.bf16 %v620_v27, %v618_v21 }
 0x11d   :  { %1125 = vst [vmem:[%s1960_s3 + $0x48] sm:$0xff] %v1305_v28  ;;  %1157 = vst [vmem:[%s1960_s3 + $0x148] sm:$0xff] %v1337_v29  ;;  %v463_v30 = vpop.f32.mrb[20].mxu0  ;;  %v623_v31 = vpop.f32.mrb[20].mxu1 }
 0x11e   :  { %v464_v32 = vadd.f32 %v463_v30, %v1633_v54  ;;  %v624_v33 = vadd.f32 %v623_v31, %v1633_v54  ;;  %v465_v34 = vpop.f32.mrb[21].mxu0  ;;  %v625_v35 = vpop.f32.mrb[21].mxu1 }
 0x11f   :  { %v466_v36 = vadd.f32 %v465_v34, %v1635_v55  ;;  %v626_v37 = vadd.f32 %v625_v35, %v1635_v55  ;;  %v467_v38 = vpop.f32.mrb[22].mxu0  ;;  %v627_v39 = vpop.f32.mrb[22].mxu1 }
 0x120   :  { %v468_v40 = vadd.f32 %v467_v38, %v1633_v54  ;;  %v628_v41 = vadd.f32 %v627_v39, %v1633_v54  ;;  %v469_v42 = vpop.f32.mrb[23].mxu0  ;;  %v629_v43 = vpop.f32.mrb[23].mxu1 }
 0x121   :  { %v1306_v44 = vpack.c.bf16 %v466_v36, %v464_v32  ;;  %v1338_v45 = vpack.c.bf16 %v626_v37, %v624_v33  ;;  %v470_v46 = vadd.f32 %v469_v42, %v1635_v55  ;;  %v630_v47 = vadd.f32 %v629_v43, %v1635_v55 }
 0x123   :  { %1126 = vst [vmem:[%s1960_s3 + $0x50] sm:$0xff] %v1306_v44  ;;  %1158 = vst [vmem:[%s1960_s3 + $0x150] sm:$0xff] %v1338_v45  ;;  %v1307_v48 = vpack.c.bf16 %v470_v46, %v468_v40  ;;  %v1339_v49 = vpack.c.bf16 %v630_v47, %v628_v41 }
 0x125   :  { %1127 = vst [vmem:[%s1960_s3 + $0x58] sm:$0xff] %v1307_v48  ;;  %1159 = vst [vmem:[%s1960_s3 + $0x158] sm:$0xff] %v1339_v49  ;;  %v473_v50 = vpop.f32.mrb[24].mxu0  ;;  %v633_v51 = vpop.f32.mrb[24].mxu1 }
 0x126   :  { %v474_v52 = vadd.f32 %v473_v50, %v1633_v54  ;;  %v634_v53 = vadd.f32 %v633_v51, %v1633_v54  ;;  %v475_v56 = vpop.f32.mrb[25].mxu0  ;;  %v635_v57 = vpop.f32.mrb[25].mxu1 }
 0x127   :  { %v476_v58 = vadd.f32 %v475_v56, %v1635_v55  ;;  %v636_v59 = vadd.f32 %v635_v57, %v1635_v55  ;;  %v477_v60 = vpop.f32.mrb[26].mxu0  ;;  %v637_v61 = vpop.f32.mrb[26].mxu1 }
 0x128   :  { %v478_v62 = vadd.f32 %v477_v60, %v1633_v54  ;;  %v638_v63 = vadd.f32 %v637_v61, %v1633_v54  ;;  %v479_v0 = vpop.f32.mrb[27].mxu0  ;;  %v639_v1 = vpop.f32.mrb[27].mxu1 }
 0x129   :  { %v1308_v2 = vpack.c.bf16 %v476_v58, %v474_v52  ;;  %v1340_v3 = vpack.c.bf16 %v636_v59, %v634_v53  ;;  %v480_v4 = vadd.f32 %v479_v0, %v1635_v55  ;;  %v640_v5 = vadd.f32 %v639_v1, %v1635_v55 }
 0x12b   :  { %1128 = vst [vmem:[%s1960_s3 + $0x60] sm:$0xff] %v1308_v2  ;;  %1160 = vst [vmem:[%s1960_s3 + $0x160] sm:$0xff] %v1340_v3  ;;  %v1309_v6 = vpack.c.bf16 %v480_v4, %v478_v62  ;;  %v1341_v7 = vpack.c.bf16 %v640_v5, %v638_v63 }
 0x12d   :  { %1129 = vst [vmem:[%s1960_s3 + $0x68] sm:$0xff] %v1309_v6  ;;  %1161 = vst [vmem:[%s1960_s3 + $0x168] sm:$0xff] %v1341_v7  ;;  %v483_v8 = vpop.f32.mrb[28].mxu0  ;;  %v643_v9 = vpop.f32.mrb[28].mxu1 }
 0x12e   :  { %v484_v10 = vadd.f32 %v483_v8, %v1633_v54  ;;  %v644_v11 = vadd.f32 %v643_v9, %v1633_v54  ;;  %v485_v12 = vpop.f32.mrb[29].mxu0  ;;  %v645_v13 = vpop.f32.mrb[29].mxu1 }
 0x12f   :  { %v486_v14 = vadd.f32 %v485_v12, %v1635_v55  ;;  %v646_v15 = vadd.f32 %v645_v13, %v1635_v55  ;;  %v487_v16 = vpop.f32.mrb[30].mxu0  ;;  %v647_v17 = vpop.f32.mrb[30].mxu1 }
 0x130   :  { %v488_v18 = vadd.f32 %v487_v16, %v1633_v54  ;;  %v648_v19 = vadd.f32 %v647_v17, %v1633_v54  ;;  %v489_v20 = vpop.f32.mrb[31].mxu0  ;;  %v649_v21 = vpop.f32.mrb[31].mxu1 }
 0x131   :  { %v1310_v22 = vpack.c.bf16 %v486_v14, %v484_v10  ;;  %v1342_v23 = vpack.c.bf16 %v646_v15, %v644_v11  ;;  %v490_v24 = vadd.f32 %v489_v20, %v1635_v55  ;;  %v650_v25 = vadd.f32 %v649_v21, %v1635_v55 }
 0x133   :  { %1130 = vst [vmem:[%s1960_s3 + $0x70] sm:$0xff] %v1310_v22  ;;  %1162 = vst [vmem:[%s1960_s3 + $0x170] sm:$0xff] %v1342_v23  ;;  %v1311_v26 = vpack.c.bf16 %v490_v24, %v488_v18  ;;  %v1343_v27 = vpack.c.bf16 %v650_v25, %v648_v19 }
 0x135   :  { %1131 = vst [vmem:[%s1960_s3 + $0x78] sm:$0xff] %v1311_v26  ;;  %1163 = vst [vmem:[%s1960_s3 + $0x178] sm:$0xff] %v1343_v27  ;;  %v493_v28 = vpop.f32.mrb[32].mxu0  ;;  %v653_v29 = vpop.f32.mrb[32].mxu1 }
 0x136   :  { %v494_v30 = vadd.f32 %v493_v28, %v1633_v54  ;;  %v654_v31 = vadd.f32 %v653_v29, %v1633_v54  ;;  %v495_v32 = vpop.f32.mrb[33].mxu0  ;;  %v655_v33 = vpop.f32.mrb[33].mxu1 }
 0x137   :  { %v496_v34 = vadd.f32 %v495_v32, %v1635_v55  ;;  %v656_v35 = vadd.f32 %v655_v33, %v1635_v55  ;;  %v497_v36 = vpop.f32.mrb[34].mxu0  ;;  %v657_v37 = vpop.f32.mrb[34].mxu1 }
 0x138   :  { %v498_v38 = vadd.f32 %v497_v36, %v1633_v54  ;;  %v658_v39 = vadd.f32 %v657_v37, %v1633_v54  ;;  %v499_v40 = vpop.f32.mrb[35].mxu0  ;;  %v659_v41 = vpop.f32.mrb[35].mxu1 }
 0x139   :  { %v1312_v42 = vpack.c.bf16 %v496_v34, %v494_v30  ;;  %v1344_v43 = vpack.c.bf16 %v656_v35, %v654_v31  ;;  %v500_v44 = vadd.f32 %v499_v40, %v1635_v55  ;;  %v660_v45 = vadd.f32 %v659_v41, %v1635_v55 }
 0x13b   :  { %1132 = vst [vmem:[%s1960_s3 + $0x80] sm:$0xff] %v1312_v42  ;;  %1164 = vst [vmem:[%s1960_s3 + $0x180] sm:$0xff] %v1344_v43  ;;  %v1313_v46 = vpack.c.bf16 %v500_v44, %v498_v38  ;;  %v1345_v47 = vpack.c.bf16 %v660_v45, %v658_v39 }
 0x13d   :  { %1133 = vst [vmem:[%s1960_s3 + $0x88] sm:$0xff] %v1313_v46  ;;  %1165 = vst [vmem:[%s1960_s3 + $0x188] sm:$0xff] %v1345_v47  ;;  %v503_v48 = vpop.f32.mrb[36].mxu0  ;;  %v663_v49 = vpop.f32.mrb[36].mxu1 }
 0x13e   :  { %v504_v50 = vadd.f32 %v503_v48, %v1633_v54  ;;  %v664_v51 = vadd.f32 %v663_v49, %v1633_v54  ;;  %v505_v52 = vpop.f32.mrb[37].mxu0  ;;  %v665_v53 = vpop.f32.mrb[37].mxu1 }
 0x13f   :  { %v506_v56 = vadd.f32 %v505_v52, %v1635_v55  ;;  %v666_v57 = vadd.f32 %v665_v53, %v1635_v55  ;;  %v507_v58 = vpop.f32.mrb[38].mxu0  ;;  %v667_v59 = vpop.f32.mrb[38].mxu1 }
 0x140   :  { %v508_v60 = vadd.f32 %v507_v58, %v1633_v54  ;;  %v668_v61 = vadd.f32 %v667_v59, %v1633_v54  ;;  %v509_v62 = vpop.f32.mrb[39].mxu0  ;;  %v669_v63 = vpop.f32.mrb[39].mxu1 }
 0x141   :  { %v1314_v0 = vpack.c.bf16 %v506_v56, %v504_v50  ;;  %v1346_v1 = vpack.c.bf16 %v666_v57, %v664_v51  ;;  %v510_v2 = vadd.f32 %v509_v62, %v1635_v55  ;;  %v670_v3 = vadd.f32 %v669_v63, %v1635_v55 }
 0x143   :  { %1134 = vst [vmem:[%s1960_s3 + $0x90] sm:$0xff] %v1314_v0  ;;  %1166 = vst [vmem:[%s1960_s3 + $0x190] sm:$0xff] %v1346_v1  ;;  %v1315_v4 = vpack.c.bf16 %v510_v2, %v508_v60  ;;  %v1347_v5 = vpack.c.bf16 %v670_v3, %v668_v61 }
 0x145   :  { %1135 = vst [vmem:[%s1960_s3 + $0x98] sm:$0xff] %v1315_v4  ;;  %1167 = vst [vmem:[%s1960_s3 + $0x198] sm:$0xff] %v1347_v5  ;;  %v513_v6 = vpop.f32.mrb[40].mxu0  ;;  %v673_v7 = vpop.f32.mrb[40].mxu1 }
 0x146   :  { %v514_v8 = vadd.f32 %v513_v6, %v1633_v54  ;;  %v674_v9 = vadd.f32 %v673_v7, %v1633_v54  ;;  %v515_v10 = vpop.f32.mrb[41].mxu0  ;;  %v675_v11 = vpop.f32.mrb[41].mxu1 }
 0x147   :  { %v516_v12 = vadd.f32 %v515_v10, %v1635_v55  ;;  %v676_v13 = vadd.f32 %v675_v11, %v1635_v55  ;;  %v517_v14 = vpop.f32.mrb[42].mxu0  ;;  %v677_v15 = vpop.f32.mrb[42].mxu1 }
 0x148   :  { %v518_v16 = vadd.f32 %v517_v14, %v1633_v54  ;;  %v678_v17 = vadd.f32 %v677_v15, %v1633_v54  ;;  %v519_v18 = vpop.f32.mrb[43].mxu0  ;;  %v679_v19 = vpop.f32.mrb[43].mxu1 }
 0x149   :  { %v1316_v20 = vpack.c.bf16 %v516_v12, %v514_v8  ;;  %v1348_v21 = vpack.c.bf16 %v676_v13, %v674_v9  ;;  %v520_v22 = vadd.f32 %v519_v18, %v1635_v55  ;;  %v680_v23 = vadd.f32 %v679_v19, %v1635_v55 }
 0x14b   :  { %1136 = vst [vmem:[%s1960_s3 + $0xa0] sm:$0xff] %v1316_v20  ;;  %1168 = vst [vmem:[%s1960_s3 + $0x1a0] sm:$0xff] %v1348_v21  ;;  %v1317_v24 = vpack.c.bf16 %v520_v22, %v518_v16  ;;  %v1349_v25 = vpack.c.bf16 %v680_v23, %v678_v17 }
 0x14d   :  { %1137 = vst [vmem:[%s1960_s3 + $0xa8] sm:$0xff] %v1317_v24  ;;  %1169 = vst [vmem:[%s1960_s3 + $0x1a8] sm:$0xff] %v1349_v25  ;;  %v523_v26 = vpop.f32.mrb[44].mxu0  ;;  %v683_v27 = vpop.f32.mrb[44].mxu1 }
 0x14e   :  { %v524_v28 = vadd.f32 %v523_v26, %v1633_v54  ;;  %v684_v29 = vadd.f32 %v683_v27, %v1633_v54  ;;  %v525_v30 = vpop.f32.mrb[45].mxu0  ;;  %v685_v31 = vpop.f32.mrb[45].mxu1 }
 0x14f   :  { %v526_v32 = vadd.f32 %v525_v30, %v1635_v55  ;;  %v686_v33 = vadd.f32 %v685_v31, %v1635_v55  ;;  %v527_v34 = vpop.f32.mrb[46].mxu0  ;;  %v687_v35 = vpop.f32.mrb[46].mxu1 }
 0x150   :  { %v528_v36 = vadd.f32 %v527_v34, %v1633_v54  ;;  %v688_v37 = vadd.f32 %v687_v35, %v1633_v54  ;;  %v529_v38 = vpop.f32.mrb[47].mxu0  ;;  %v689_v39 = vpop.f32.mrb[47].mxu1 }
 0x151   :  { %v1318_v40 = vpack.c.bf16 %v526_v32, %v524_v28  ;;  %v1350_v41 = vpack.c.bf16 %v686_v33, %v684_v29  ;;  %v530_v42 = vadd.f32 %v529_v38, %v1635_v55  ;;  %v690_v43 = vadd.f32 %v689_v39, %v1635_v55 }
 0x153   :  { %1138 = vst [vmem:[%s1960_s3 + $0xb0] sm:$0xff] %v1318_v40  ;;  %1170 = vst [vmem:[%s1960_s3 + $0x1b0] sm:$0xff] %v1350_v41  ;;  %v1319_v44 = vpack.c.bf16 %v530_v42, %v528_v36  ;;  %v1351_v45 = vpack.c.bf16 %v690_v43, %v688_v37 }
 0x155   :  { %1139 = vst [vmem:[%s1960_s3 + $0xb8] sm:$0xff] %v1319_v44  ;;  %1171 = vst [vmem:[%s1960_s3 + $0x1b8] sm:$0xff] %v1351_v45  ;;  %v533_v46 = vpop.f32.mrb[48].mxu0  ;;  %v693_v47 = vpop.f32.mrb[48].mxu1 }
 0x156   :  { %v534_v48 = vadd.f32 %v533_v46, %v1633_v54  ;;  %v694_v49 = vadd.f32 %v693_v47, %v1633_v54  ;;  %v535_v50 = vpop.f32.mrb[49].mxu0  ;;  %v695_v51 = vpop.f32.mrb[49].mxu1 }
 0x157   :  { %v536_v52 = vadd.f32 %v535_v50, %v1635_v55  ;;  %v696_v53 = vadd.f32 %v695_v51, %v1635_v55  ;;  %v537_v56 = vpop.f32.mrb[50].mxu0  ;;  %v697_v57 = vpop.f32.mrb[50].mxu1 }
 0x158   :  { %v538_v58 = vadd.f32 %v537_v56, %v1633_v54  ;;  %v698_v59 = vadd.f32 %v697_v57, %v1633_v54  ;;  %v539_v60 = vpop.f32.mrb[51].mxu0  ;;  %v699_v61 = vpop.f32.mrb[51].mxu1 }
 0x159   :  { %v1320_v62 = vpack.c.bf16 %v536_v52, %v534_v48  ;;  %v1352_v63 = vpack.c.bf16 %v696_v53, %v694_v49  ;;  %v540_v0 = vadd.f32 %v539_v60, %v1635_v55  ;;  %v700_v1 = vadd.f32 %v699_v61, %v1635_v55 }
 0x15b   :  { %1140 = vst [vmem:[%s1960_s3 + $0xc0] sm:$0xff] %v1320_v62  ;;  %1172 = vst [vmem:[%s1960_s3 + $0x1c0] sm:$0xff] %v1352_v63  ;;  %v1321_v2 = vpack.c.bf16 %v540_v0, %v538_v58  ;;  %v1353_v3 = vpack.c.bf16 %v700_v1, %v698_v59 }
 0x15d   :  { %1141 = vst [vmem:[%s1960_s3 + $0xc8] sm:$0xff] %v1321_v2  ;;  %1173 = vst [vmem:[%s1960_s3 + $0x1c8] sm:$0xff] %v1353_v3  ;;  %v543_v4 = vpop.f32.mrb[52].mxu0  ;;  %v703_v5 = vpop.f32.mrb[52].mxu1 }
 0x15e   :  { %v544_v6 = vadd.f32 %v543_v4, %v1633_v54  ;;  %v704_v7 = vadd.f32 %v703_v5, %v1633_v54  ;;  %v545_v8 = vpop.f32.mrb[53].mxu0  ;;  %v705_v9 = vpop.f32.mrb[53].mxu1 }
 0x15f   :  { %v546_v10 = vadd.f32 %v545_v8, %v1635_v55  ;;  %v706_v11 = vadd.f32 %v705_v9, %v1635_v55  ;;  %v547_v12 = vpop.f32.mrb[54].mxu0  ;;  %v707_v13 = vpop.f32.mrb[54].mxu1 }
 0x160   :  { %v548_v14 = vadd.f32 %v547_v12, %v1633_v54  ;;  %v708_v15 = vadd.f32 %v707_v13, %v1633_v54  ;;  %v549_v16 = vpop.f32.mrb[55].mxu0  ;;  %v709_v17 = vpop.f32.mrb[55].mxu1 }
 0x161   :  { %v1322_v18 = vpack.c.bf16 %v546_v10, %v544_v6  ;;  %v1354_v19 = vpack.c.bf16 %v706_v11, %v704_v7  ;;  %v550_v20 = vadd.f32 %v549_v16, %v1635_v55  ;;  %v710_v21 = vadd.f32 %v709_v17, %v1635_v55 }
 0x163   :  { %1142 = vst [vmem:[%s1960_s3 + $0xd0] sm:$0xff] %v1322_v18  ;;  %1174 = vst [vmem:[%s1960_s3 + $0x1d0] sm:$0xff] %v1354_v19  ;;  %v1323_v22 = vpack.c.bf16 %v550_v20, %v548_v14  ;;  %v1355_v23 = vpack.c.bf16 %v710_v21, %v708_v15 }
 0x165   :  { %1143 = vst [vmem:[%s1960_s3 + $0xd8] sm:$0xff] %v1323_v22  ;;  %1175 = vst [vmem:[%s1960_s3 + $0x1d8] sm:$0xff] %v1355_v23  ;;  %v553_v24 = vpop.f32.mrb[56].mxu0  ;;  %v713_v25 = vpop.f32.mrb[56].mxu1 }
 0x166   :  { %v554_v26 = vadd.f32 %v553_v24, %v1633_v54  ;;  %v714_v27 = vadd.f32 %v713_v25, %v1633_v54  ;;  %v555_v28 = vpop.f32.mrb[57].mxu0  ;;  %v715_v29 = vpop.f32.mrb[57].mxu1 }
 0x167   :  { %v556_v30 = vadd.f32 %v555_v28, %v1635_v55  ;;  %v716_v31 = vadd.f32 %v715_v29, %v1635_v55  ;;  %v557_v32 = vpop.f32.mrb[58].mxu0  ;;  %v717_v33 = vpop.f32.mrb[58].mxu1 }
 0x168   :  { %v558_v34 = vadd.f32 %v557_v32, %v1633_v54  ;;  %v718_v35 = vadd.f32 %v717_v33, %v1633_v54  ;;  %v559_v36 = vpop.f32.mrb[59].mxu0  ;;  %v719_v37 = vpop.f32.mrb[59].mxu1 }
 0x169   :  { %v1324_v38 = vpack.c.bf16 %v556_v30, %v554_v26  ;;  %v1356_v39 = vpack.c.bf16 %v716_v31, %v714_v27  ;;  %v560_v40 = vadd.f32 %v559_v36, %v1635_v55  ;;  %v720_v41 = vadd.f32 %v719_v37, %v1635_v55 }
 0x16b   :  { %1144 = vst [vmem:[%s1960_s3 + $0xe0] sm:$0xff] %v1324_v38  ;;  %1176 = vst [vmem:[%s1960_s3 + $0x1e0] sm:$0xff] %v1356_v39  ;;  %v1325_v42 = vpack.c.bf16 %v560_v40, %v558_v34  ;;  %v1357_v43 = vpack.c.bf16 %v720_v41, %v718_v35 }
 0x16d   :  { %1145 = vst [vmem:[%s1960_s3 + $0xe8] sm:$0xff] %v1325_v42  ;;  %1177 = vst [vmem:[%s1960_s3 + $0x1e8] sm:$0xff] %v1357_v43  ;;  %v563_v44 = vpop.f32.mrb[60].mxu0  ;;  %v723_v45 = vpop.f32.mrb[60].mxu1 }
 0x16e   :  { %v564_v46 = vadd.f32 %v563_v44, %v1633_v54  ;;  %v724_v47 = vadd.f32 %v723_v45, %v1633_v54  ;;  %v565_v48 = vpop.f32.mrb[61].mxu0  ;;  %v725_v49 = vpop.f32.mrb[61].mxu1 }
 0x16f   :  { %v566_v50 = vadd.f32 %v565_v48, %v1635_v55  ;;  %v726_v51 = vadd.f32 %v725_v49, %v1635_v55  ;;  %v567_v52 = vpop.f32.mrb[62].mxu0  ;;  %v727_v53 = vpop.f32.mrb[62].mxu1 }
 0x170   :  { %v568_v56 = vadd.f32 %v567_v52, %v1633_v54  ;;  %v728_v57 = vadd.f32 %v727_v53, %v1633_v54  ;;  %v569_v58 = vpop.f32.mrb[63].mxu0  ;;  %v729_v59 = vpop.f32.mrb[63].mxu1 }
 0x171   :  { %v1326_v60 = vpack.c.bf16 %v566_v50, %v564_v46  ;;  %v1358_v61 = vpack.c.bf16 %v726_v51, %v724_v47  ;;  %v570_v62 = vadd.f32 %v569_v58, %v1635_v55  ;;  %v730_v63 = vadd.f32 %v729_v59, %v1635_v55 }
 0x173   :  { %1146 = vst [vmem:[%s1960_s3 + $0xf0] sm:$0xff] %v1326_v60  ;;  %1178 = vst [vmem:[%s1960_s3 + $0x1f0] sm:$0xff] %v1358_v61  ;;  %v1327_v0 = vpack.c.bf16 %v570_v62, %v568_v56  ;;  %v1359_v1 = vpack.c.bf16 %v730_v63, %v728_v57 }
 0x175   :  { %1147 = vst [vmem:[%s1960_s3 + $0xf8] sm:$0xff] %v1327_v0  ;;  %1179 = vst [vmem:[%s1960_s3 + $0x1f8] sm:$0xff] %v1359_v1 }

// kernel: nlff_up_forward.11
= control target key start
LH: loop header
LB: loop body
LE: loop exit
PB: predicated region body
PF: predicated region fallthrough
CT: control target
= control target key end

     0   :  { %s1023_s0 = inlined_call_operand.vmem [shape: bf16[512,128], index: 0, kind: input, shape index: {}]   ;;  %s1024_s1 = inlined_call_operand.vmem [shape: f32[1,128], index: 1, kind: input, shape index: {}]   ;;  %s1025_s2 = inlined_call_operand.vmem [shape: f32[1,128], index: 2, kind: input, shape index: {}]   ;;  %s1026_s3 = inlined_call_operand.vmem [shape: f32[512,128], index: 3, kind: output, shape index: {}]  }
   0x1   :  { %v419_v0 = vld [vmem:[%s1023_s0] sm:$0xff]   ;;  %v546_v4 = vld [vmem:[%s1023_s0 + $0x8] sm:$0xff]   ;;  %v547_v5 = vld [vmem:[%s1023_s0 + $0x10] sm:$0xff]  }
   0x2   :  { %v603_v1 = vld [vmem:[%s1024_s1] ss:$0 sm:$0xff]  ;;  %v420_v2 = vunpack.c.l.bf16 %v419_v0  ;;  %v421_v3 = vunpack.c.h.bf16 %v419_v0  ;;  %v548_v6 = vld [vmem:[%s1023_s0 + $0x18] sm:$0xff]   ;;  %v424_v8 = vunpack.c.l.bf16 %v546_v4  ;;  %v425_v9 = vunpack.c.h.bf16 %v546_v4  ;;  %v550_v33 = vld [vmem:[%s1023_s0 + $0x28] sm:$0xff]  }
   0x3   :  { %v617_v7 = vld [vmem:[%s1025_s2] ss:$0 sm:$0xff]  ;;  %v428_v10 = vunpack.c.l.bf16 %v547_v5  ;;  %v429_v11 = vunpack.c.h.bf16 %v547_v5  ;;  %v432_v14 = vunpack.c.l.bf16 %v548_v6  ;;  %v433_v15 = vunpack.c.h.bf16 %v548_v6  ;;  %v551_v34 = vld [vmem:[%s1023_s0 + $0x30] sm:$0xff]   ;;  %v552_v39 = vld [vmem:[%s1023_s0 + $0x38] sm:$0xff]  }
   0x4   :  { %v149_v12 = vmul.f32 %v420_v2, %v603_v1  ;;  %v150_v13 = vmul.f32 %v421_v3, %v603_v1  ;;  %v151_v16 = vmul.f32 %v424_v8, %v603_v1  ;;  %v152_v17 = vmul.f32 %v425_v9, %v603_v1  ;;  %v549_v28 = vld [vmem:[%s1023_s0 + $0x20] sm:$0xff]   ;;  %v554_v6 = vld [vmem:[%s1023_s0 + $0x48] sm:$0xff]   ;;  %v555_v8 = vld [vmem:[%s1023_s0 + $0x50] sm:$0xff]  }
   0x5   :  { %v153_v18 = vmul.f32 %v428_v10, %v603_v1  ;;  %v154_v19 = vmul.f32 %v429_v11, %v603_v1  ;;  %v155_v22 = vmul.f32 %v432_v14, %v603_v1  ;;  %v156_v23 = vmul.f32 %v433_v15, %v603_v1  ;;  %v553_v0 = vld [vmem:[%s1023_s0 + $0x40] sm:$0xff]  }
   0x6   :  { %v220_v20 = vadd.f32 %v617_v7, %v149_v12  ;;  %v221_v21 = vadd.f32 %v617_v7, %v150_v13  ;;  %v222_v24 = vadd.f32 %v617_v7, %v151_v16  ;;  %v223_v25 = vadd.f32 %v617_v7, %v152_v17  ;;  %v556_v13 = vld [vmem:[%s1023_s0 + $0x58] sm:$0xff]  }
   0x7   :  { %v224_v26 = vadd.f32 %v617_v7, %v153_v18  ;;  %v225_v27 = vadd.f32 %v617_v7, %v154_v19  ;;  %v226_v31 = vadd.f32 %v617_v7, %v155_v22  ;;  %v227_v32 = vadd.f32 %v617_v7, %v156_v23 }
   0x8   :  { %v284_v29 = vmax.f32 %v220_v20, 0.0  ;;  %v285_v30 = vmax.f32 %v221_v21, 0.0  ;;  %v286_v35 = vmax.f32 %v222_v24, 0.0  ;;  %v287_v36 = vmax.f32 %v223_v25, 0.0 }
   0x9   :  { %v288_v37 = vmax.f32 %v224_v26, 0.0  ;;  %v289_v38 = vmax.f32 %v225_v27, 0.0  ;;  %v290_v40 = vmax.f32 %v226_v31, 0.0  ;;  %v291_v41 = vmax.f32 %v227_v32, 0.0 }
   0xa   :  { %348 = vst [vmem:[%s1026_s3] sm:$0xff] %v284_v29  ;;  %349 = vst [vmem:[%s1026_s3 + $0x8] sm:$0xff] %v285_v30  ;;  %v436_v42 = vunpack.c.l.bf16 %v549_v28  ;;  %v437_v43 = vunpack.c.h.bf16 %v549_v28  ;;  %v440_v44 = vunpack.c.l.bf16 %v550_v33  ;;  %v441_v45 = vunpack.c.h.bf16 %v550_v33 }
   0xb   :  { %350 = vst [vmem:[%s1026_s3 + $0x10] sm:$0xff] %v286_v35  ;;  %351 = vst [vmem:[%s1026_s3 + $0x18] sm:$0xff] %v287_v36  ;;  %v444_v46 = vunpack.c.l.bf16 %v551_v34  ;;  %v445_v47 = vunpack.c.h.bf16 %v551_v34  ;;  %v448_v50 = vunpack.c.l.bf16 %v552_v39  ;;  %v449_v51 = vunpack.c.h.bf16 %v552_v39 }
   0xc   :  { %352 = vst [vmem:[%s1026_s3 + $0x20] sm:$0xff] %v288_v37  ;;  %353 = vst [vmem:[%s1026_s3 + $0x28] sm:$0xff] %v289_v38  ;;  %v157_v48 = vmul.f32 %v436_v42, %v603_v1  ;;  %v158_v49 = vmul.f32 %v437_v43, %v603_v1  ;;  %v159_v52 = vmul.f32 %v440_v44, %v603_v1  ;;  %v452_v16 = vunpack.c.l.bf16 %v553_v0  ;;  %v557_v38 = vld [vmem:[%s1023_s0 + $0x60] sm:$0xff]   ;;  %v558_v43 = vld [vmem:[%s1023_s0 + $0x68] sm:$0xff]  }
   0xd   :  { %354 = vst [vmem:[%s1026_s3 + $0x30] sm:$0xff] %v290_v40  ;;  %355 = vst [vmem:[%s1026_s3 + $0x38] sm:$0xff] %v291_v41  ;;  %v160_v53 = vmul.f32 %v441_v45, %v603_v1  ;;  %v161_v54 = vmul.f32 %v444_v46, %v603_v1  ;;  %v162_v55 = vmul.f32 %v445_v47, %v603_v1  ;;  %v453_v17 = vunpack.c.h.bf16 %v553_v0  ;;  %v559_v44 = vld [vmem:[%s1023_s0 + $0x70] sm:$0xff]  }
   0xe   :  { %v228_v56 = vadd.f32 %v617_v7, %v157_v48  ;;  %v229_v57 = vadd.f32 %v617_v7, %v158_v49  ;;  %v163_v58 = vmul.f32 %v448_v50, %v603_v1  ;;  %v164_v59 = vmul.f32 %v449_v51, %v603_v1  ;;  %v560_v49 = vld [vmem:[%s1023_s0 + $0x78] sm:$0xff]  }
   0xf   :  { %v230_v60 = vadd.f32 %v617_v7, %v159_v52  ;;  %v231_v61 = vadd.f32 %v617_v7, %v160_v53  ;;  %v232_v62 = vadd.f32 %v617_v7, %v161_v54  ;;  %v233_v63 = vadd.f32 %v617_v7, %v162_v55 }
  0x10   :  { %v292_v2 = vmax.f32 %v228_v56, 0.0  ;;  %v293_v3 = vmax.f32 %v229_v57, 0.0  ;;  %v234_v4 = vadd.f32 %v617_v7, %v163_v58  ;;  %v235_v5 = vadd.f32 %v617_v7, %v164_v59 }
  0x11   :  { %v294_v9 = vmax.f32 %v230_v60, 0.0  ;;  %v295_v10 = vmax.f32 %v231_v61, 0.0  ;;  %v296_v11 = vmax.f32 %v232_v62, 0.0  ;;  %v297_v12 = vmax.f32 %v233_v63, 0.0 }
  0x12   :  { %356 = vst [vmem:[%s1026_s3 + $0x40] sm:$0xff] %v292_v2  ;;  %357 = vst [vmem:[%s1026_s3 + $0x48] sm:$0xff] %v293_v3  ;;  %v298_v14 = vmax.f32 %v234_v4, 0.0  ;;  %v299_v15 = vmax.f32 %v235_v5, 0.0  ;;  %v456_v18 = vunpack.c.l.bf16 %v554_v6  ;;  %v457_v19 = vunpack.c.h.bf16 %v554_v6 }
  0x13   :  { %358 = vst [vmem:[%s1026_s3 + $0x50] sm:$0xff] %v294_v9  ;;  %359 = vst [vmem:[%s1026_s3 + $0x58] sm:$0xff] %v295_v10  ;;  %v460_v20 = vunpack.c.l.bf16 %v555_v8  ;;  %v461_v21 = vunpack.c.h.bf16 %v555_v8  ;;  %v165_v22 = vmul.f32 %v452_v16, %v603_v1  ;;  %v166_v23 = vmul.f32 %v453_v17, %v603_v1  ;;  %v562_v17 = vld [vmem:[%s1023_s0 + $0x88] sm:$0xff]  }
  0x14   :  { %360 = vst [vmem:[%s1026_s3 + $0x60] sm:$0xff] %v296_v11  ;;  %361 = vst [vmem:[%s1026_s3 + $0x68] sm:$0xff] %v297_v12  ;;  %v464_v24 = vunpack.c.l.bf16 %v556_v13  ;;  %v465_v25 = vunpack.c.h.bf16 %v556_v13  ;;  %v167_v26 = vmul.f32 %v456_v18, %v603_v1  ;;  %v168_v27 = vmul.f32 %v457_v19, %v603_v1  ;;  %v561_v12 = vld [vmem:[%s1023_s0 + $0x80] sm:$0xff]   ;;  %v563_v18 = vld [vmem:[%s1023_s0 + $0x90] sm:$0xff]  }
  0x15   :  { %362 = vst [vmem:[%s1026_s3 + $0x70] sm:$0xff] %v298_v14  ;;  %363 = vst [vmem:[%s1026_s3 + $0x78] sm:$0xff] %v299_v15  ;;  %v169_v28 = vmul.f32 %v460_v20, %v603_v1  ;;  %v170_v29 = vmul.f32 %v461_v21, %v603_v1  ;;  %v236_v30 = vadd.f32 %v617_v7, %v165_v22  ;;  %v468_v52 = vunpack.c.l.bf16 %v557_v38 }
  0x16   :  { %v237_v31 = vadd.f32 %v617_v7, %v166_v23  ;;  %v171_v32 = vmul.f32 %v464_v24, %v603_v1  ;;  %v172_v33 = vmul.f32 %v465_v25, %v603_v1  ;;  %v238_v34 = vadd.f32 %v617_v7, %v167_v26  ;;  %v564_v23 = vld [vmem:[%s1023_s0 + $0x98] sm:$0xff]  }
  0x17   :  { %v239_v35 = vadd.f32 %v617_v7, %v168_v27  ;;  %v240_v36 = vadd.f32 %v617_v7, %v169_v28  ;;  %v241_v37 = vadd.f32 %v617_v7, %v170_v29  ;;  %v300_v39 = vmax.f32 %v236_v30, 0.0 }
  0x18   :  { %v301_v40 = vmax.f32 %v237_v31, 0.0  ;;  %v242_v41 = vadd.f32 %v617_v7, %v171_v32  ;;  %v243_v42 = vadd.f32 %v617_v7, %v172_v33  ;;  %v302_v45 = vmax.f32 %v238_v34, 0.0 }
  0x19   :  { %v303_v46 = vmax.f32 %v239_v35, 0.0  ;;  %v304_v47 = vmax.f32 %v240_v36, 0.0  ;;  %v305_v48 = vmax.f32 %v241_v37, 0.0  ;;  %364 = vst [vmem:[%s1026_s3 + $0x80] sm:$0xff] %v300_v39  ;;  %v469_v53 = vunpack.c.h.bf16 %v557_v38 }
  0x1a   :  { %365 = vst [vmem:[%s1026_s3 + $0x88] sm:$0xff] %v301_v40  ;;  %v306_v50 = vmax.f32 %v242_v41, 0.0  ;;  %v307_v51 = vmax.f32 %v243_v42, 0.0  ;;  %366 = vst [vmem:[%s1026_s3 + $0x90] sm:$0xff] %v302_v45  ;;  %v472_v54 = vunpack.c.l.bf16 %v558_v43  ;;  %v473_v55 = vunpack.c.h.bf16 %v558_v43 }
  0x1b   :  { %367 = vst [vmem:[%s1026_s3 + $0x98] sm:$0xff] %v303_v46  ;;  %368 = vst [vmem:[%s1026_s3 + $0xa0] sm:$0xff] %v304_v47  ;;  %v476_v56 = vunpack.c.l.bf16 %v559_v44  ;;  %v477_v57 = vunpack.c.h.bf16 %v559_v44  ;;  %v173_v58 = vmul.f32 %v468_v52, %v603_v1  ;;  %v174_v59 = vmul.f32 %v469_v53, %v603_v1  ;;  %v566_v53 = vld [vmem:[%s1023_s0 + $0xa8] sm:$0xff]  }
  0x1c   :  { %369 = vst [vmem:[%s1026_s3 + $0xa8] sm:$0xff] %v305_v48  ;;  %370 = vst [vmem:[%s1026_s3 + $0xb0] sm:$0xff] %v306_v50  ;;  %v480_v60 = vunpack.c.l.bf16 %v560_v49  ;;  %v481_v61 = vunpack.c.h.bf16 %v560_v49  ;;  %v175_v62 = vmul.f32 %v472_v54, %v603_v1  ;;  %v176_v63 = vmul.f32 %v473_v55, %v603_v1  ;;  %v565_v48 = vld [vmem:[%s1023_s0 + $0xa0] sm:$0xff]   ;;  %v567_v54 = vld [vmem:[%s1023_s0 + $0xb0] sm:$0xff]  }
  0x1d   :  { %371 = vst [vmem:[%s1026_s3 + $0xb8] sm:$0xff] %v307_v51  ;;  %v177_v0 = vmul.f32 %v476_v56, %v603_v1  ;;  %v178_v2 = vmul.f32 %v477_v57, %v603_v1  ;;  %v244_v3 = vadd.f32 %v617_v7, %v173_v58  ;;  %v245_v4 = vadd.f32 %v617_v7, %v174_v59  ;;  %v568_v59 = vld [vmem:[%s1023_s0 + $0xb8] sm:$0xff]  }
  0x1e   :  { %v179_v5 = vmul.f32 %v480_v60, %v603_v1  ;;  %v180_v6 = vmul.f32 %v481_v61, %v603_v1  ;;  %v246_v8 = vadd.f32 %v617_v7, %v175_v62  ;;  %v247_v9 = vadd.f32 %v617_v7, %v176_v63 }
  0x1f   :  { %v248_v10 = vadd.f32 %v617_v7, %v177_v0  ;;  %v249_v11 = vadd.f32 %v617_v7, %v178_v2  ;;  %v308_v13 = vmax.f32 %v244_v3, 0.0  ;;  %v309_v14 = vmax.f32 %v245_v4, 0.0 }
  0x20   :  { %v250_v15 = vadd.f32 %v617_v7, %v179_v5  ;;  %v251_v16 = vadd.f32 %v617_v7, %v180_v6  ;;  %v310_v19 = vmax.f32 %v246_v8, 0.0  ;;  %v311_v20 = vmax.f32 %v247_v9, 0.0 }
  0x21   :  { %v312_v21 = vmax.f32 %v248_v10, 0.0  ;;  %v313_v22 = vmax.f32 %v249_v11, 0.0  ;;  %372 = vst [vmem:[%s1026_s3 + $0xc0] sm:$0xff] %v308_v13  ;;  %373 = vst [vmem:[%s1026_s3 + $0xc8] sm:$0xff] %v309_v14  ;;  %v484_v26 = vunpack.c.l.bf16 %v561_v12  ;;  %v485_v27 = vunpack.c.h.bf16 %v561_v12 }
  0x22   :  { %v314_v24 = vmax.f32 %v250_v15, 0.0  ;;  %v315_v25 = vmax.f32 %v251_v16, 0.0  ;;  %374 = vst [vmem:[%s1026_s3 + $0xd0] sm:$0xff] %v310_v19  ;;  %375 = vst [vmem:[%s1026_s3 + $0xd8] sm:$0xff] %v311_v20  ;;  %v488_v28 = vunpack.c.l.bf16 %v562_v17  ;;  %v489_v29 = vunpack.c.h.bf16 %v562_v17 }
  0x23   :  { %376 = vst [vmem:[%s1026_s3 + $0xe0] sm:$0xff] %v312_v21  ;;  %377 = vst [vmem:[%s1026_s3 + $0xe8] sm:$0xff] %v313_v22  ;;  %v492_v30 = vunpack.c.l.bf16 %v563_v18  ;;  %v493_v31 = vunpack.c.h.bf16 %v563_v18  ;;  %v181_v32 = vmul.f32 %v484_v26, %v603_v1  ;;  %v182_v33 = vmul.f32 %v485_v27, %v603_v1  ;;  %v569_v22 = vld [vmem:[%s1023_s0 + $0xc0] sm:$0xff]   ;;  %v570_v27 = vld [vmem:[%s1023_s0 + $0xc8] sm:$0xff]  }
  0x24   :  { %378 = vst [vmem:[%s1026_s3 + $0xf0] sm:$0xff] %v314_v24  ;;  %379 = vst [vmem:[%s1026_s3 + $0xf8] sm:$0xff] %v315_v25  ;;  %v496_v34 = vunpack.c.l.bf16 %v564_v23  ;;  %v497_v35 = vunpack.c.h.bf16 %v564_v23  ;;  %v183_v36 = vmul.f32 %v488_v28, %v603_v1  ;;  %v184_v37 = vmul.f32 %v489_v29, %v603_v1  ;;  %v571_v28 = vld [vmem:[%s1023_s0 + $0xd0] sm:$0xff]  }
  0x25   :  { %v185_v38 = vmul.f32 %v492_v30, %v603_v1  ;;  %v186_v39 = vmul.f32 %v493_v31, %v603_v1  ;;  %v252_v40 = vadd.f32 %v617_v7, %v181_v32  ;;  %v253_v41 = vadd.f32 %v617_v7, %v182_v33  ;;  %v572_v33 = vld [vmem:[%s1023_s0 + $0xd8] sm:$0xff]  }
  0x26   :  { %v187_v42 = vmul.f32 %v496_v34, %v603_v1  ;;  %v188_v43 = vmul.f32 %v497_v35, %v603_v1  ;;  %v254_v44 = vadd.f32 %v617_v7, %v183_v36  ;;  %v255_v45 = vadd.f32 %v617_v7, %v184_v37 }
  0x27   :  { %v256_v46 = vadd.f32 %v617_v7, %v185_v38  ;;  %v257_v47 = vadd.f32 %v617_v7, %v186_v39  ;;  %v316_v49 = vmax.f32 %v252_v40, 0.0  ;;  %v317_v50 = vmax.f32 %v253_v41, 0.0 }
  0x28   :  { %v258_v51 = vadd.f32 %v617_v7, %v187_v42  ;;  %v259_v52 = vadd.f32 %v617_v7, %v188_v43  ;;  %v318_v55 = vmax.f32 %v254_v44, 0.0  ;;  %v319_v56 = vmax.f32 %v255_v45, 0.0 }
  0x29   :  { %v320_v57 = vmax.f32 %v256_v46, 0.0  ;;  %v321_v58 = vmax.f32 %v257_v47, 0.0  ;;  %380 = vst [vmem:[%s1026_s3 + $0x100] sm:$0xff] %v316_v49  ;;  %381 = vst [vmem:[%s1026_s3 + $0x108] sm:$0xff] %v317_v50  ;;  %v500_v62 = vunpack.c.l.bf16 %v565_v48  ;;  %v501_v63 = vunpack.c.h.bf16 %v565_v48 }
  0x2a   :  { %v322_v60 = vmax.f32 %v258_v51, 0.0  ;;  %v323_v61 = vmax.f32 %v259_v52, 0.0  ;;  %382 = vst [vmem:[%s1026_s3 + $0x110] sm:$0xff] %v318_v55  ;;  %383 = vst [vmem:[%s1026_s3 + $0x118] sm:$0xff] %v319_v56  ;;  %v504_v0 = vunpack.c.l.bf16 %v566_v53  ;;  %v505_v2 = vunpack.c.h.bf16 %v566_v53 }
  0x2b   :  { %384 = vst [vmem:[%s1026_s3 + $0x120] sm:$0xff] %v320_v57  ;;  %385 = vst [vmem:[%s1026_s3 + $0x128] sm:$0xff] %v321_v58  ;;  %v508_v3 = vunpack.c.l.bf16 %v567_v54  ;;  %v509_v4 = vunpack.c.h.bf16 %v567_v54  ;;  %v189_v5 = vmul.f32 %v500_v62, %v603_v1  ;;  %v190_v6 = vmul.f32 %v501_v63, %v603_v1  ;;  %v573_v58 = vld [vmem:[%s1023_s0 + $0xe0] sm:$0xff]   ;;  %v574_v63 = vld [vmem:[%s1023_s0 + $0xe8] sm:$0xff]  }
  0x2c   :  { %386 = vst [vmem:[%s1026_s3 + $0x130] sm:$0xff] %v322_v60  ;;  %387 = vst [vmem:[%s1026_s3 + $0x138] sm:$0xff] %v323_v61  ;;  %v512_v8 = vunpack.c.l.bf16 %v568_v59  ;;  %v513_v9 = vunpack.c.h.bf16 %v568_v59  ;;  %v191_v10 = vmul.f32 %v504_v0, %v603_v1  ;;  %v192_v11 = vmul.f32 %v505_v2, %v603_v1  ;;  %v575_v0 = vld [vmem:[%s1023_s0 + $0xf0] sm:$0xff]  }
  0x2d   :  { %v193_v12 = vmul.f32 %v508_v3, %v603_v1  ;;  %v194_v13 = vmul.f32 %v509_v4, %v603_v1  ;;  %v260_v14 = vadd.f32 %v617_v7, %v189_v5  ;;  %v261_v15 = vadd.f32 %v617_v7, %v190_v6  ;;  %v576_v6 = vld [vmem:[%s1023_s0 + $0xf8] sm:$0xff]  }
  0x2e   :  { %v195_v16 = vmul.f32 %v512_v8, %v603_v1  ;;  %v196_v17 = vmul.f32 %v513_v9, %v603_v1  ;;  %v262_v18 = vadd.f32 %v617_v7, %v191_v10  ;;  %v263_v19 = vadd.f32 %v617_v7, %v192_v11 }
  0x2f   :  { %v264_v20 = vadd.f32 %v617_v7, %v193_v12  ;;  %v265_v21 = vadd.f32 %v617_v7, %v194_v13  ;;  %v324_v23 = vmax.f32 %v260_v14, 0.0  ;;  %v325_v24 = vmax.f32 %v261_v15, 0.0 }
  0x30   :  { %v266_v25 = vadd.f32 %v617_v7, %v195_v16  ;;  %v267_v26 = vadd.f32 %v617_v7, %v196_v17  ;;  %v326_v29 = vmax.f32 %v262_v18, 0.0  ;;  %v327_v30 = vmax.f32 %v263_v19, 0.0 }
  0x31   :  { %v328_v31 = vmax.f32 %v264_v20, 0.0  ;;  %v329_v32 = vmax.f32 %v265_v21, 0.0  ;;  %388 = vst [vmem:[%s1026_s3 + $0x140] sm:$0xff] %v324_v23  ;;  %389 = vst [vmem:[%s1026_s3 + $0x148] sm:$0xff] %v325_v24  ;;  %v516_v36 = vunpack.c.l.bf16 %v569_v22  ;;  %v517_v37 = vunpack.c.h.bf16 %v569_v22 }
  0x32   :  { %v330_v34 = vmax.f32 %v266_v25, 0.0  ;;  %v331_v35 = vmax.f32 %v267_v26, 0.0  ;;  %390 = vst [vmem:[%s1026_s3 + $0x150] sm:$0xff] %v326_v29  ;;  %391 = vst [vmem:[%s1026_s3 + $0x158] sm:$0xff] %v327_v30  ;;  %v520_v38 = vunpack.c.l.bf16 %v570_v27  ;;  %v521_v39 = vunpack.c.h.bf16 %v570_v27 }
  0x33   :  { %392 = vst [vmem:[%s1026_s3 + $0x160] sm:$0xff] %v328_v31  ;;  %393 = vst [vmem:[%s1026_s3 + $0x168] sm:$0xff] %v329_v32  ;;  %v524_v40 = vunpack.c.l.bf16 %v571_v28  ;;  %v525_v41 = vunpack.c.h.bf16 %v571_v28  ;;  %v197_v42 = vmul.f32 %v516_v36, %v603_v1  ;;  %v198_v43 = vmul.f32 %v517_v37, %v603_v1 }
  0x34   :  { %394 = vst [vmem:[%s1026_s3 + $0x170] sm:$0xff] %v330_v34  ;;  %395 = vst [vmem:[%s1026_s3 + $0x178] sm:$0xff] %v331_v35  ;;  %v528_v44 = vunpack.c.l.bf16 %v572_v33  ;;  %v529_v45 = vunpack.c.h.bf16 %v572_v33  ;;  %v199_v46 = vmul.f32 %v520_v38, %v603_v1  ;;  %v200_v47 = vmul.f32 %v521_v39, %v603_v1 }
  0x35   :  { %v201_v48 = vmul.f32 %v524_v40, %v603_v1  ;;  %v202_v49 = vmul.f32 %v525_v41, %v603_v1  ;;  %v268_v50 = vadd.f32 %v617_v7, %v197_v42  ;;  %v269_v51 = vadd.f32 %v617_v7, %v198_v43 }
  0x36   :  { %v203_v52 = vmul.f32 %v528_v44, %v603_v1  ;;  %v204_v53 = vmul.f32 %v529_v45, %v603_v1  ;;  %v270_v54 = vadd.f32 %v617_v7, %v199_v46  ;;  %v271_v55 = vadd.f32 %v617_v7, %v200_v47 }
  0x37   :  { %v272_v56 = vadd.f32 %v617_v7, %v201_v48  ;;  %v273_v57 = vadd.f32 %v617_v7, %v202_v49  ;;  %v332_v59 = vmax.f32 %v268_v50, 0.0  ;;  %v333_v60 = vmax.f32 %v269_v51, 0.0 }
  0x38   :  { %v274_v61 = vadd.f32 %v617_v7, %v203_v52  ;;  %v275_v62 = vadd.f32 %v617_v7, %v204_v53  ;;  %v334_v2 = vmax.f32 %v270_v54, 0.0  ;;  %v335_v3 = vmax.f32 %v271_v55, 0.0 }
  0x39   :  { %v336_v4 = vmax.f32 %v272_v56, 0.0  ;;  %v337_v5 = vmax.f32 %v273_v57, 0.0  ;;  %396 = vst [vmem:[%s1026_s3 + $0x180] sm:$0xff] %v332_v59  ;;  %397 = vst [vmem:[%s1026_s3 + $0x188] sm:$0xff] %v333_v60  ;;  %v532_v10 = vunpack.c.l.bf16 %v573_v58  ;;  %v533_v11 = vunpack.c.h.bf16 %v573_v58 }
  0x3a   :  { %v338_v8 = vmax.f32 %v274_v61, 0.0  ;;  %v339_v9 = vmax.f32 %v275_v62, 0.0  ;;  %398 = vst [vmem:[%s1026_s3 + $0x190] sm:$0xff] %v334_v2  ;;  %399 = vst [vmem:[%s1026_s3 + $0x198] sm:$0xff] %v335_v3  ;;  %v536_v12 = vunpack.c.l.bf16 %v574_v63  ;;  %v537_v13 = vunpack.c.h.bf16 %v574_v63 }
  0x3b   :  { %400 = vst [vmem:[%s1026_s3 + $0x1a0] sm:$0xff] %v336_v4  ;;  %401 = vst [vmem:[%s1026_s3 + $0x1a8] sm:$0xff] %v337_v5  ;;  %v540_v14 = vunpack.c.l.bf16 %v575_v0  ;;  %v541_v15 = vunpack.c.h.bf16 %v575_v0  ;;  %v205_v16 = vmul.f32 %v532_v10, %v603_v1  ;;  %v206_v17 = vmul.f32 %v533_v11, %v603_v1 }
  0x3c   :  { %402 = vst [vmem:[%s1026_s3 + $0x1b0] sm:$0xff] %v338_v8  ;;  %403 = vst [vmem:[%s1026_s3 + $0x1b8] sm:$0xff] %v339_v9  ;;  %v544_v18 = vunpack.c.l.bf16 %v576_v6  ;;  %v545_v19 = vunpack.c.h.bf16 %v576_v6  ;;  %v207_v20 = vmul.f32 %v536_v12, %v603_v1  ;;  %v208_v21 = vmul.f32 %v537_v13, %v603_v1 }
  0x3d   :  { %v209_v22 = vmul.f32 %v540_v14, %v603_v1  ;;  %v210_v23 = vmul.f32 %v541_v15, %v603_v1  ;;  %v276_v24 = vadd.f32 %v617_v7, %v205_v16  ;;  %v277_v25 = vadd.f32 %v617_v7, %v206_v17 }
  0x3e   :  { %v211_v26 = vmul.f32 %v544_v18, %v603_v1  ;;  %v212_v27 = vmul.f32 %v545_v19, %v603_v1  ;;  %v278_v28 = vadd.f32 %v617_v7, %v207_v20  ;;  %v279_v29 = vadd.f32 %v617_v7, %v208_v21 }
  0x3f   :  { %v280_v30 = vadd.f32 %v617_v7, %v209_v22  ;;  %v281_v31 = vadd.f32 %v617_v7, %v210_v23  ;;  %v340_v32 = vmax.f32 %v276_v24, 0.0  ;;  %v341_v33 = vmax.f32 %v277_v25, 0.0 }
  0x40   :  { %v282_v34 = vadd.f32 %v617_v7, %v211_v26  ;;  %v283_v35 = vadd.f32 %v617_v7, %v212_v27  ;;  %v342_v36 = vmax.f32 %v278_v28, 0.0  ;;  %v343_v37 = vmax.f32 %v279_v29, 0.0 }
  0x41   :  { %v344_v38 = vmax.f32 %v280_v30, 0.0  ;;  %v345_v39 = vmax.f32 %v281_v31, 0.0  ;;  %404 = vst [vmem:[%s1026_s3 + $0x1c0] sm:$0xff] %v340_v32  ;;  %405 = vst [vmem:[%s1026_s3 + $0x1c8] sm:$0xff] %v341_v33 }
  0x42   :  { %v346_v1 = vmax.f32 %v282_v34, 0.0  ;;  %v347_v40 = vmax.f32 %v283_v35, 0.0  ;;  %406 = vst [vmem:[%s1026_s3 + $0x1d0] sm:$0xff] %v342_v36  ;;  %407 = vst [vmem:[%s1026_s3 + $0x1d8] sm:$0xff] %v343_v37 }
  0x43   :  { %408 = vst [vmem:[%s1026_s3 + $0x1e0] sm:$0xff] %v344_v38  ;;  %409 = vst [vmem:[%s1026_s3 + $0x1e8] sm:$0xff] %v345_v39 }
  0x44   :  { %410 = vst [vmem:[%s1026_s3 + $0x1f0] sm:$0xff] %v346_v1  ;;  %411 = vst [vmem:[%s1026_s3 + $0x1f8] sm:$0xff] %v347_v40 }

// kernel: nlff_up_forward.9
= control target key start
LH: loop header
LB: loop body
LE: loop exit
PB: predicated region body
PF: predicated region fallthrough
CT: control target
= control target key end

     0   :  { %s5821_s26 = smov 0   ;;  %s5823_s2 = smov 0   ;;  %s6906_s0 = inlined_call_operand.vmem [shape: bf16[2,256,128], index: 0, kind: input, shape index: {}, may-alias: {0,1,2}]   ;;  %s6907_s1 = inlined_call_operand.vmem [shape: bf16[2,256,128], index: 1, kind: input, shape index: {}, may-alias: {0,1,2}]   ;;  %s6908_s2 = inlined_call_operand.vmem [shape: bf16[2,256,128], index: 2, kind: input, shape index: {}, may-alias: {0,1,2}]   ;;  %s6909_s3 = inlined_call_operand.vmem [shape: bf16[9,128,128], index: 3, kind: input, shape index: {}]   ;;  %s6910_s4 = inlined_call_operand.vmem [shape: f32[1,128], index: 4, kind: input, shape index: {}]   ;;  %s6911_s5 = inlined_call_operand.vmem [shape: f32[1,128], index: 5, kind: input, shape index: {}]   ;;  %s6912_s6 = inlined_call_operand.vmem [shape: f32[1,128], index: 6, kind: input, shape index: {}]   ;;  %s6913_s7 = inlined_call_operand.vmem [shape: bf16[2,256,128], index: 7, kind: output, shape index: {0}]   ;;  %s6914_s8 = inlined_call_operand.vmem [shape: f32[2,1,2,128], index: 8, kind: output, shape index: {1}]  }
   0x1   :  { %s5825_s27 = smov 0  }
   0x2 LB: > { %s31_s5 = sadd.s32 1, %s5769_s2  ;;  %p4292_p0 = scmp.ge.s32.totalorder %s5773_s27, 1  ;;  %s5773_s27 = sphi %s5825_s27, %s19_s27   ;;  %s5769_s2 = sphi %s5823_s2, %s6992_s2   ;;  %s5765_s26 = sphi %s5821_s26, %s6991_s26  }
   0x3   : > { %p33_p1 = scmp.ge.s32.totalorder %s31_s5, 2  ;;  %p354_p2 = scmp.lt.s32.totalorder %s5773_s27, 3 }
   0x5   : > { %s6994_s5 = smov (%p33_p1, %s31_s5), 0  ;;  %p355_p3 = pnand %p4292_p0, %p354_p2 }
   0x7   : > { %358 = sbr.rel (%p355_p3) target bundleno = 572 (0x23c), region = 48 }
   0xe   : > { %v5661_v0 = vld [vmem:[%s6909_s3 + $0xc0] sm:$0xff]   ;;  %v5663_v2 = vld [vmem:[%s6909_s3 + $0xc8] sm:$0xff]   ;;  %p430_p4 = scmp.lt.s32.totalorder %s5765_s26, 1  ;;  %v5775_v3 = vmov 0.0   ;;  %v5665_v5 = vld [vmem:[%s6909_s3 + $0xd0] sm:$0xff]  }
   0xf   : > { %v5847_v1 = vld [vmem:[%s6909_s3] sm:$0xff]   ;;  %4996 = vmatprep.subr.bf16.mxu1 %v5661_v0  ;;  %596 = vst [vmem:[#allocation2 + $0x10] sm:$0xff] %v5775_v3  ;;  %493 = vst [vmem:[#allocation2] sm:$0xff] %v5775_v3  ;;  %v5857_v4 = vld [vmem:[%s6909_s3 + $0x8] sm:$0xff]  }
  0x10   : > { %494 = vst [vmem:[#allocation2 + $0x128] sm:$0xff] %v5775_v3  ;;  %595 = vst [vmem:[#allocation2 + $0x8] sm:$0xff] %v5775_v3  ;;  %5044 = vmatprep.subr.bf16.mxu0 %v5847_v1  ;;  %4997 = vmatpush3.bf16.msra.mxu1 %v5661_v0  ;;  %v5867_v6 = vld [vmem:[%s6909_s3 + $0x10] sm:$0xff]   ;;  %s6996_s26 = smov (!%p430_p4, %s5765_s26), 1  ;;  %v5667_v7 = vld [vmem:[%s6909_s3 + $0xd8] sm:$0xff]  }
  0x11   : > { %610 = vst [vmem:[#allocation2 + $0x118] sm:$0xff] %v5775_v3  ;;  %611 = vst [vmem:[#allocation2 + $0x120] sm:$0xff] %v5775_v3  ;;  %5045 = vmatpush3.bf16.msra.mxu0 %v5847_v1  ;;  %4998 = vmatprep.subr.bf16.mxu1 %v5663_v2  ;;  %v5882_v8 = vld [vmem:[%s6909_s3 + $0x18] sm:$0xff]   ;;  %s4569_s21 = sshll.u32 %s6996_s26, 7  ;;  %v5669_v9 = vld [vmem:[%s6909_s3 + $0xe0] sm:$0xff]  }
  0x12   : > { %5046 = vmatprep.subr.bf16.mxu0 %v5857_v4  ;;  %v5893_v10 = vld [vmem:[%s6909_s3 + $0x20] sm:$0xff]   ;;  %s5900_s28 = scalar_lea.vmem %s6906_s0, %s4569_s21  ;;  %v5671_v11 = vld [vmem:[%s6909_s3 + $0xe8] sm:$0xff]   ;;  %v5673_v24 = vld [vmem:[%s6909_s3 + $0xf0] sm:$0xff]   ;;  %s6712_s13 = scalar_lea.vmem %s6913_s7, %s4569_s21 }
  0x13   : > { %v5908_v12 = vld [vmem:[%s6909_s3 + $0x28] sm:$0xff]   ;;  %v4607_v13 = vld [vmem:[%s5900_s28] sm:$0xff]   ;;  %v4751_v22 = vld [vmem:[%s5900_s28 + $0x10] sm:$0xff]   ;;  %s4301_s21 = sshll.u32 %s6996_s26, 1 }
  0x14   : > { %4999 = vmatpush3.bf16.msra.mxu1 %v5663_v2  ;;  %v4608_v16 = vunpack.c.l.bf16 %v4607_v13  ;;  %v4609_v17 = vunpack.c.h.bf16 %v4607_v13  ;;  %v4750_v19 = vld [vmem:[%s5900_s28 + $0x8] sm:$0xff]   ;;  %v4752_v23 = vld [vmem:[%s5900_s28 + $0x18] sm:$0xff]   ;;  %v4616_v25 = vunpack.c.l.bf16 %v4751_v22  ;;  %v4617_v26 = vunpack.c.h.bf16 %v4751_v22  ;;  %v5924_v29 = vld [vmem:[%s6909_s3 + $0x30] sm:$0xff]   ;;  %s491_s16 = scalar_lea.vmem %s6914_s8, %s4301_s21 }
  0x15   : > { %5047 = vmatpush3.bf16.msra.mxu0 %v5857_v4  ;;  %5000 = vmatprep.subr.bf16.mxu1 %v5665_v5  ;;  %v4612_v20 = vunpack.c.l.bf16 %v4750_v19  ;;  %v4613_v21 = vunpack.c.h.bf16 %v4750_v19  ;;  %v4620_v27 = vunpack.c.l.bf16 %v4752_v23  ;;  %v4621_v28 = vunpack.c.h.bf16 %v4752_v23  ;;  %v4753_v30 = vld [vmem:[%s5900_s28 + $0x20] sm:$0xff]   ;;  %v4754_v31 = vld [vmem:[%s5900_s28 + $0x28] sm:$0xff]   ;;  %v5675_v32 = vld [vmem:[%s6909_s3 + $0xf8] sm:$0xff]  }
  0x16   : > { %5048 = vmatprep.subr.bf16.mxu0 %v5867_v6  ;;  %559 = vst [vmem:[#allocation2 + $0x18] sm:$0xff] %v4608_v16  ;;  %560 = vst [vmem:[#allocation2 + $0x20] sm:$0xff] %v4609_v17  ;;  %v4624_v33 = vunpack.c.l.bf16 %v4753_v30  ;;  %v4625_v34 = vunpack.c.h.bf16 %v4753_v30  ;;  %v4628_v35 = vunpack.c.l.bf16 %v4754_v31  ;;  %v4629_v36 = vunpack.c.h.bf16 %v4754_v31  ;;  %v5935_v37 = vld [vmem:[%s6909_s3 + $0x38] sm:$0xff]   ;;  %v4755_v38 = vld [vmem:[%s5900_s28 + $0x30] sm:$0xff]  }
  0x17   : > { %v1231_v14 = vld [vmem:[#allocation2 + $0x7] sm:$0xff]  ;;  %v1232_v15 = vld [vmem:[#allocation2 + $0xf] sm:$0xff]  ;;  %561 = vst [vmem:[#allocation2 + $0x28] sm:$0xff] %v4612_v20  ;;  %562 = vst [vmem:[#allocation2 + $0x30] sm:$0xff] %v4613_v21  ;;  %v4632_v39 = vunpack.c.l.bf16 %v4755_v38  ;;  %v4633_v40 = vunpack.c.h.bf16 %v4755_v38 }
  0x18   : > { %5001 = vmatpush3.bf16.msra.mxu1 %v5665_v5  ;;  %v1263_v18 = vpack.c.bf16 %v1232_v15, %v1231_v14  ;;  %563 = vst [vmem:[#allocation2 + $0x38] sm:$0xff] %v4616_v25  ;;  %564 = vst [vmem:[#allocation2 + $0x40] sm:$0xff] %v4617_v26  ;;  %v4756_v41 = vld [vmem:[%s5900_s28 + $0x38] sm:$0xff]   ;;  %v4757_v49 = vld [vmem:[%s5900_s28 + $0x40] sm:$0xff]  }
  0x19   : > { %5049 = vmatpush3.bf16.msra.mxu0 %v5867_v6  ;;  %5002 = vmatprep.subr.bf16.mxu1 %v5667_v7  ;;  %565 = vst [vmem:[#allocation2 + $0x48] sm:$0xff] %v4620_v27  ;;  %566 = vst [vmem:[#allocation2 + $0x50] sm:$0xff] %v4621_v28  ;;  %v4636_v44 = vunpack.c.l.bf16 %v4756_v41  ;;  %v4637_v45 = vunpack.c.h.bf16 %v4756_v41  ;;  %v5677_v50 = vld [vmem:[%s6909_s3 + $0x180] sm:$0xff]   ;;  %v4640_v53 = vunpack.c.l.bf16 %v4757_v49  ;;  %v4641_v54 = vunpack.c.h.bf16 %v4757_v49  ;;  %v4758_v56 = vld [vmem:[%s5900_s28 + $0x48] sm:$0xff]  }
  0x1a   : > { %5050 = vmatprep.subr.bf16.mxu0 %v5882_v8  ;;  %5060 = vmatprep.mubr.bf16.mxu0 %v1263_v18  ;;  %567 = vst [vmem:[#allocation2 + $0x58] sm:$0xff] %v4624_v33  ;;  %568 = vst [vmem:[#allocation2 + $0x60] sm:$0xff] %v4625_v34  ;;  %v4644_v57 = vunpack.c.l.bf16 %v4758_v56  ;;  %v4645_v58 = vunpack.c.h.bf16 %v4758_v56  ;;  %v4759_v59 = vld [vmem:[%s5900_s28 + $0x50] sm:$0xff]   ;;  %v5678_v63 = vld [vmem:[%s6909_s3 + $0x188] sm:$0xff]  }
  0x1b   : > { %569 = vst [vmem:[#allocation2 + $0x68] sm:$0xff] %v4628_v35  ;;  %570 = vst [vmem:[#allocation2 + $0x70] sm:$0xff] %v4629_v36  ;;  %v4648_v61 = vunpack.c.l.bf16 %v4759_v59  ;;  %v4649_v62 = vunpack.c.h.bf16 %v4759_v59  ;;  %v4760_v0 = vld [vmem:[%s5900_s28 + $0x58] sm:$0xff]   ;;  %v4761_v13 = vld [vmem:[%s5900_s28 + $0x60] sm:$0xff]  }
  0x1c   : > { %5003 = vmatpush3.bf16.msra.mxu1 %v5667_v7  ;;  %571 = vst [vmem:[#allocation2 + $0x78] sm:$0xff] %v4632_v39  ;;  %572 = vst [vmem:[#allocation2 + $0x80] sm:$0xff] %v4633_v40  ;;  %v4652_v3 = vunpack.c.l.bf16 %v4760_v0  ;;  %v4653_v5 = vunpack.c.h.bf16 %v4760_v0  ;;  %v4762_v14 = vld [vmem:[%s5900_s28 + $0x68] sm:$0xff]   ;;  %v5679_v15 = vld [vmem:[%s6909_s3 + $0x190] sm:$0xff]   ;;  %v4657_v16 = vunpack.c.h.bf16 %v4761_v13 }
  0x1d   : > { %5051 = vmatpush3.bf16.msra.mxu0 %v5882_v8  ;;  %5004 = vmatprep.subr.bf16.mxu1 %v5669_v9  ;;  %v1233_v42 = vld [vmem:[#allocation2 + $0x17] sm:$0xff]  ;;  %v1234_v43 = vld [vmem:[#allocation2 + $0x1f] sm:$0xff]  ;;  %573 = vst [vmem:[#allocation2 + $0x88] sm:$0xff] %v4636_v44  ;;  %574 = vst [vmem:[#allocation2 + $0x90] sm:$0xff] %v4637_v45  ;;  %v4660_v17 = vunpack.c.l.bf16 %v4762_v14  ;;  %v4661_v18 = vunpack.c.h.bf16 %v4762_v14 }
  0x1e   : > { %5052 = vmatprep.subr.bf16.mxu0 %v5893_v10  ;;  %v1264_v46 = vpack.c.bf16 %v1234_v43, %v1233_v42  ;;  %v1235_v47 = vld [vmem:[#allocation2 + $0x27] sm:$0xff]  ;;  %v1236_v48 = vld [vmem:[#allocation2 + $0x2f] sm:$0xff]  ;;  %575 = vst [vmem:[#allocation2 + $0x98] sm:$0xff] %v4640_v53  ;;  %576 = vst [vmem:[#allocation2 + $0xa0] sm:$0xff] %v4641_v54 }
  0x1f   : > { %v1237_v51 = vld [vmem:[#allocation2 + $0x37] sm:$0xff]  ;;  %v1238_v52 = vld [vmem:[#allocation2 + $0x3f] sm:$0xff]  ;;  %v5946_v55 = vpack.c.bf16 %v1236_v48, %v1235_v47  ;;  %577 = vst [vmem:[#allocation2 + $0xa8] sm:$0xff] %v4644_v57  ;;  %578 = vst [vmem:[#allocation2 + $0xb0] sm:$0xff] %v4645_v58 }
  0x20   : > { %5005 = vmatpush3.bf16.msra.mxu1 %v5669_v9  ;;  %5012 = vmatprep.mubr.bf16.mxu1 %v1264_v46  ;;  %v5952_v60 = vpack.c.bf16 %v1238_v52, %v1237_v51  ;;  %v1239_v2 = vld [vmem:[#allocation2 + $0x47] sm:$0xff]  ;;  %579 = vst [vmem:[#allocation2 + $0xb8] sm:$0xff] %v4648_v61  ;;  %580 = vst [vmem:[#allocation2 + $0xc0] sm:$0xff] %v4649_v62  ;;  %v1240_v7 = vld [vmem:[#allocation2 + $0x4f] sm:$0xff] }
  0x21   : > { %5053 = vmatpush3.bf16.msra.mxu0 %v5893_v10  ;;  %5006 = vmatprep.subr.bf16.mxu1 %v5671_v11  ;;  %v1241_v9 = vld [vmem:[#allocation2 + $0x57] sm:$0xff]  ;;  %581 = vst [vmem:[#allocation2 + $0xc8] sm:$0xff] %v4652_v3  ;;  %582 = vst [vmem:[#allocation2 + $0xd0] sm:$0xff] %v4653_v5  ;;  %v5968_v20 = vpack.c.bf16 %v1240_v7, %v1239_v2  ;;  %v5682_v35 = vld [vmem:[%s6909_s3 + $0x1a8] sm:$0xff]  }
  0x22   : > { %5054 = vmatprep.subr.bf16.mxu0 %v5908_v12  ;;  %v4763_v19 = vld [vmem:[%s5900_s28 + $0x70] sm:$0xff]   ;;  %v4764_v23 = vld [vmem:[%s5900_s28 + $0x78] sm:$0xff]   ;;  %584 = vst [vmem:[#allocation2 + $0xe0] sm:$0xff] %v4657_v16  ;;  %585 = vst [vmem:[#allocation2 + $0xe8] sm:$0xff] %v4660_v17 }
  0x23   : > { %v4664_v21 = vunpack.c.l.bf16 %v4763_v19  ;;  %v4665_v22 = vunpack.c.h.bf16 %v4763_v19  ;;  %586 = vst [vmem:[#allocation2 + $0xf0] sm:$0xff] %v4661_v18  ;;  %v4668_v25 = vunpack.c.l.bf16 %v4764_v23  ;;  %v4669_v26 = vunpack.c.h.bf16 %v4764_v23  ;;  %v5680_v27 = vld [vmem:[%s6909_s3 + $0x198] sm:$0xff]   ;;  %v1244_v28 = vld [vmem:[#allocation2 + $0x6f] sm:$0xff]  ;;  %v6029_v47 = vld [vmem:[%s6909_s3 + $0x100] sm:$0xff]  }
  0x24   : > { %5007 = vmatpush3.bf16.msra.mxu1 %v5671_v11  ;;  %v1242_v11 = vld [vmem:[#allocation2 + $0x5f] sm:$0xff]  ;;  %v1245_v30 = vld [vmem:[#allocation2 + $0x77] sm:$0xff]  ;;  %v1247_v36 = vld [vmem:[#allocation2 + $0x87] sm:$0xff] }
  0x25   : > { %5055 = vmatpush3.bf16.msra.mxu0 %v5908_v12  ;;  %5008 = vmatprep.subr.bf16.mxu1 %v5673_v24  ;;  %587 = vst [vmem:[#allocation2 + $0xf8] sm:$0xff] %v4664_v21  ;;  %588 = vst [vmem:[#allocation2 + $0x100] sm:$0xff] %v4665_v22  ;;  %v1246_v31 = vld [vmem:[#allocation2 + $0x7f] sm:$0xff]  ;;  %v1248_v38 = vld [vmem:[#allocation2 + $0x8f] sm:$0xff] }
  0x26   : > { %5056 = vmatprep.subr.bf16.mxu0 %v5924_v29  ;;  %589 = vst [vmem:[#allocation2 + $0x108] sm:$0xff] %v4668_v25  ;;  %590 = vst [vmem:[#allocation2 + $0x110] sm:$0xff] %v4669_v26  ;;  %v5990_v34 = vpack.c.bf16 %v1246_v31, %v1245_v30  ;;  %v1250_v39 = vld [vmem:[#allocation2 + $0x9f] sm:$0xff]  ;;  %v5683_v40 = vld [vmem:[%s6909_s3 + $0x1b0] sm:$0xff]  }
  0x27   : > { %v5684_v42 = vld [vmem:[%s6909_s3 + $0x1b8] sm:$0xff]   ;;  %v1251_v43 = vld [vmem:[#allocation2 + $0xa7] sm:$0xff]  ;;  %v5696_v3 = vld [vmem:[%s6909_s3 + $0x170] sm:$0xff]  }
  0x28   : > { %5009 = vmatpush3.bf16.msra.mxu1 %v5673_v24  ;;  %v5973_v24 = vpack.c.bf16 %v1242_v11, %v1241_v9  ;;  %v1253_v44 = vld [vmem:[#allocation2 + $0xb7] sm:$0xff]  ;;  %v1254_v45 = vld [vmem:[#allocation2 + $0xbf] sm:$0xff]  ;;  %v5686_v49 = vld [vmem:[%s6909_s3 + $0x148] sm:$0xff]  }
  0x29   : > { %5057 = vmatpush3.bf16.msra.mxu0 %v5924_v29  ;;  %5010 = vmatprep.subr.bf16.mxu1 %v5675_v32  ;;  %v6031_v48 = vpack.c.bf16 %v1254_v45, %v1253_v44  ;;  %v1259_v56 = vld [vmem:[#allocation2 + $0xe7] sm:$0xff]  ;;  %v5699_v7 = vld [vmem:[%s6909_s3 + $0x178] sm:$0xff]   ;;  %v5698_v18 = vld [vmem:[%s6909_s3 + $0x130] sm:$0xff]  }
  0x2a   : > { %5058 = vmatprep.subr.bf16.mxu0 %v5935_v37  ;;  %v1260_v57 = vld [vmem:[#allocation2 + $0xef] sm:$0xff]  ;;  %v5704_v9 = vld [vmem:[%s6909_s3 + $0x80] sm:$0xff]   ;;  %v5694_v14 = vld [vmem:[%s6909_s3 + $0x118] sm:$0xff]  }
  0x2b   : > { %v1277_v61 = vpack.c.bf16 %v1260_v57, %v1259_v56  ;;  %v5691_v11 = vld [vmem:[%s6909_s3 + $0x108] sm:$0xff]   ;;  %v1764_v17 = vld [vmem:[#allocation2 + $0x11f] sm:$0xff]  ;;  %v2961_v56 = vld [vmem:[#allocation2 + $0x91] sm:$0xff] }
  0x2c   : > { %5011 = vmatpush3.bf16.msra.mxu1 %v5675_v32  ;;  %v5681_v32 = vld [vmem:[%s6909_s3 + $0x1a0] sm:$0xff]   ;;  %v1261_v58 = vld [vmem:[#allocation2 + $0xf7] sm:$0xff]  ;;  %v2948_v26 = vld [vmem:[#allocation2 + $0x29] sm:$0xff] }
  0x2d   : > { %5059 = vmatpush3.bf16.msra.mxu0 %v5935_v37  ;;  %5428 = vmatprep.subr.bf16.mxu1 %v5847_v1  ;;  %v1262_v59 = vld [vmem:[#allocation2 + $0xff] sm:$0xff]  ;;  %v1295_v0 = vld [vmem:[#allocation2 + $0x107] sm:$0xff]  ;;  %v1296_v2 = vld [vmem:[#allocation2 + $0x10f] sm:$0xff] }
  0x2e   : > { %5092 = vmatprep.subr.bf16.mxu0 %v5677_v50  ;;  %v6053_v62 = vpack.c.bf16 %v1262_v59, %v1261_v58  ;;  %v1297_v5 = vpack.c.bf16 %v1296_v2, %v1295_v0  ;;  %v1763_v16 = vld [vmem:[#allocation2 + $0x117] sm:$0xff]  ;;  %v6101_v23 = vld [vmem:[%s5900_s28] sm:$0xff] }
  0x2f   : > { %5013 = vmatmul.mubr.bf16.vlgmr.msra.gmra.mrb[0].mxu1 %v5946_v55  ;;  %v2946_v19 = vld [vmem:[#allocation2 + $0x19] sm:$0xff]  ;;  %v1780_v21 = vpack.c.bf16 %v1764_v17, %v1763_v16  ;;  %v2951_v30 = vld [vmem:[#allocation2 + $0x41] sm:$0xff]  ;;  %v5727_v59 = vld [vmem:[%s6909_s3 + $0x70] sm:$0xff]  }
  0x30   : > { %5061 = vmatmul.mubr.bf16.vlgmr.msra.gmra.mrb[0].mxu0 %v1264_v46  ;;  %5436 = vmatpush3.bf16.msra.mxu1 %v5847_v1  ;;  %v4656_v1 = vunpack.c.l.bf16 %v4761_v13  ;;  %v5692_v13 = vld [vmem:[%s6909_s3 + $0x110] sm:$0xff]   ;;  %v5700_v22 = vld [vmem:[%s6909_s3 + $0x138] sm:$0xff]   ;;  %v5703_v25 = vld [vmem:[%s6909_s3 + $0x40] sm:$0xff]  }
  0x31   : > { %5093 = vmatpush3.bf16.msra.mxu0 %v5677_v50  ;;  %5016 = vmatprep.mubr.bf16.mxu1 %v5952_v60  ;;  %v1256_v50 = vld [vmem:[#allocation2 + $0xcf] sm:$0xff]  ;;  %v5715_v44 = vld [vmem:[%s6909_s3 + $0x58] sm:$0xff]   ;;  %v2963_v58 = vld [vmem:[#allocation2 + $0xa1] sm:$0xff] }
  0x32   : > { %5094 = vmatprep.subr.bf16.mxu0 %v5678_v63  ;;  %5064 = vmatprep.mubr.bf16.mxu0 %v5946_v55  ;;  %583 = vst [vmem:[#allocation2 + $0xd8] sm:$0xff] %v4656_v1  ;;  %v5697_v1 = vld [vmem:[%s6909_s3 + $0x128] sm:$0xff]   ;;  %v5716_v45 = vld [vmem:[%s6909_s3 + $0x98] sm:$0xff]   ;;  %v6221_v16 = vld [vmem:[%s5900_s28 + $0x50] sm:$0xff] }
  0x33   : > { %5429 = vmatprep.subr.bf16.mxu1 %v5857_v4  ;;  %v2962_v57 = vld [vmem:[#allocation2 + $0x99] sm:$0xff] }
  0x34   : > { %5437 = vmatpush3.bf16.msra.mxu1 %v5857_v4  ;;  %v1243_v4 = vld [vmem:[#allocation2 + $0x67] sm:$0xff]  ;;  %v6197_v0 = vpack.c.bf16 %v2963_v58, %v2962_v57  ;;  %v5731_v2 = vld [vmem:[%s6909_s3 + $0x78] sm:$0xff]   ;;  %v5745_v57 = vld [vmem:[%s6909_s3 + $0x1f0] sm:$0xff]  }
  0x35   : > { %5095 = vmatpush3.bf16.msra.mxu0 %v5678_v63  ;;  %5430 = vmatprep.subr.bf16.mxu1 %v5867_v6  ;;  %v5987_v33 = vpack.c.bf16 %v1244_v28, %v1243_v4  ;;  %v5693_v63 = vld [vmem:[%s6909_s3 + $0x168] sm:$0xff]   ;;  %v2950_v28 = vld [vmem:[#allocation2 + $0x39] sm:$0xff] }
  0x36   : > { %5096 = vmatprep.subr.bf16.mxu0 %v5679_v15  ;;  %v6112_v4 = vld [vmem:[%s5900_s28 + $0x8] sm:$0xff]  ;;  %v5748_v58 = vld [vmem:[%s6909_s3 + $0x238] sm:$0xff]  }
  0x37   : > { %5017 = vmatmul.mubr.bf16.gmra.mrb[4].mxu1 %v5968_v20 }
  0x38   : > { %5065 = vmatmul.mubr.bf16.gmra.mrb[4].mxu0 %v5952_v60  ;;  %5020 = vmatprep.mubr.bf16.mxu1 %v5973_v24 }
  0x39   : > { %5097 = vmatpush3.bf16.msra.mxu0 %v5679_v15  ;;  %5068 = vmatprep.mubr.bf16.mxu0 %v5968_v20  ;;  %v1257_v51 = vld [vmem:[#allocation2 + $0xd7] sm:$0xff]  ;;  %v1258_v52 = vld [vmem:[#allocation2 + $0xdf] sm:$0xff] }
  0x3a   : > { %5098 = vmatprep.subr.bf16.mxu0 %v5680_v27  ;;  %5438 = vmatpush3.bf16.msra.mxu1 %v5867_v6  ;;  %v1249_v6 = vld [vmem:[#allocation2 + $0x97] sm:$0xff]  ;;  %v1276_v54 = vpack.c.bf16 %v1258_v52, %v1257_v51  ;;  %v5695_v15 = vld [vmem:[%s6909_s3 + $0x120] sm:$0xff]  }
  0x3b   : > { %5431 = vmatprep.subr.bf16.mxu1 %v5882_v8  ;;  %v6008_v41 = vpack.c.bf16 %v1250_v39, %v1249_v6  ;;  %v5711_v6 = vld [vmem:[%s6909_s3 + $0x50] sm:$0xff]   ;;  %v2954_v39 = vld [vmem:[#allocation2 + $0x59] sm:$0xff] }
  0x3c   : > { %v6169_v52 = vld [vmem:[%s5900_s28 + $0x30] sm:$0xff] }
  0x3d   : > { %5099 = vmatpush3.bf16.msra.mxu0 %v5680_v27  ;;  %v2949_v27 = vld [vmem:[#allocation2 + $0x31] sm:$0xff] }
  0x3e   : > { %5100 = vmatprep.subr.bf16.mxu0 %v5681_v32  ;;  %5439 = vmatpush3.bf16.msra.mxu1 %v5882_v8  ;;  %v6005_v8 = vpack.c.bf16 %v1248_v38, %v1247_v36  ;;  %v6114_v31 = vpack.c.bf16 %v2949_v27, %v2948_v26  ;;  %v2952_v36 = vld [vmem:[#allocation2 + $0x49] sm:$0xff]  ;;  %v2953_v38 = vld [vmem:[#allocation2 + $0x51] sm:$0xff]  ;;  %v6235_v26 = vld [vmem:[%s5900_s28 + $0x60] sm:$0xff] }
  0x3f   : > { %5021 = vmatmul.mubr.bf16.gmra.mrb[8].mxu1 %v5987_v33  ;;  %5432 = vmatprep.subr.bf16.mxu1 %v5893_v10 }
  0x40   : > { %5069 = vmatmul.mubr.bf16.gmra.mrb[8].mxu0 %v5973_v24  ;;  %5024 = vmatprep.mubr.bf16.mxu1 %v5990_v34 }
  0x41   : > { %5101 = vmatpush3.bf16.msra.mxu0 %v5681_v32  ;;  %5072 = vmatprep.mubr.bf16.mxu0 %v5987_v33  ;;  %v6117_v32 = vld [vmem:[%s5900_s28 + $0x10] sm:$0xff] }
  0x42   : > { %5102 = vmatprep.subr.bf16.mxu0 %v5682_v35  ;;  %5440 = vmatpush3.bf16.msra.mxu1 %v5893_v10  ;;  %v1252_v10 = vld [vmem:[#allocation2 + $0xaf] sm:$0xff] }
  0x43   : > { %5433 = vmatprep.subr.bf16.mxu1 %v5908_v12  ;;  %v6023_v46 = vpack.c.bf16 %v1252_v10, %v1251_v43  ;;  %v6143_v43 = vld [vmem:[%s5900_s28 + $0x20] sm:$0xff] }
  0x45   : > { %5103 = vmatpush3.bf16.msra.mxu0 %v5682_v35  ;;  %v5708_v35 = vld [vmem:[%s6909_s3 + $0x88] sm:$0xff]  }
  0x46   : > { %5104 = vmatprep.subr.bf16.mxu0 %v5683_v40  ;;  %5441 = vmatpush3.bf16.msra.mxu1 %v5908_v12  ;;  %v5685_v12 = vld [vmem:[%s6909_s3 + $0x140] sm:$0xff]  }
  0x47   : > { %5025 = vmatmul.mubr.bf16.gmra.mrb[12].mxu1 %v6005_v8  ;;  %5434 = vmatprep.subr.bf16.mxu1 %v5924_v29 }
  0x48   : > { %5073 = vmatmul.mubr.bf16.gmra.mrb[12].mxu0 %v5990_v34  ;;  %5028 = vmatprep.mubr.bf16.mxu1 %v6008_v41 }
  0x49   : > { %5105 = vmatpush3.bf16.msra.mxu0 %v5683_v40  ;;  %5108 = vmatprep.mubr.bf16.mxu0 %v5946_v55  ;;  %v5688_v55 = vld [vmem:[%s6909_s3 + $0x158] sm:$0xff]   ;;  %v2955_v40 = vld [vmem:[#allocation2 + $0x61] sm:$0xff] }
  0x4a   : > { %5106 = vmatprep.subr.bf16.mxu0 %v5684_v42  ;;  %5442 = vmatpush3.bf16.msra.mxu1 %v5924_v29  ;;  %v1255_v29 = vld [vmem:[#allocation2 + $0xc7] sm:$0xff]  ;;  %v6145_v10 = vpack.c.bf16 %v2955_v40, %v2954_v39 }
  0x4b   : > { %5435 = vmatprep.subr.bf16.mxu1 %v5935_v37  ;;  %v1275_v53 = vpack.c.bf16 %v1256_v50, %v1255_v29  ;;  %v6161_v29 = vld [vmem:[%s5900_s28 + $0x28] sm:$0xff]  ;;  %v5720_v50 = vld [vmem:[%s6909_s3 + $0xa0] sm:$0xff]  }
  0x4c   : > { %v3009_v40 = vld [vmem:[#allocation2 + $0x109] sm:$0xff] }
  0x4d   : > { %5107 = vmatpush3.bf16.msra.mxu0 %v5684_v42  ;;  %v6140_v42 = vpack.c.bf16 %v2953_v38, %v2952_v36  ;;  %v6244_v36 = vld [vmem:[%s5900_s28 + $0x68] sm:$0xff] }
  0x4e   : > { %5284 = vmatprep.subr.bf16.mxu0 %v5685_v12  ;;  %5443 = vmatpush3.bf16.msra.mxu1 %v5935_v37  ;;  %v5687_v37 = vld [vmem:[%s6909_s3 + $0x150] sm:$0xff]  }
  0x4f   : > { %5029 = vmatmul.mubr.bf16.gmra.mrb[16].mxu1 %v6023_v46  ;;  %5140 = vmatprep.subr.bf16.mxu1 %v6029_v47 }
  0x50   : > { %5109 = vmatmul.mubr.bf16.vlgmr.msra.gmra.mrb[0].mxu0 %v5952_v60  ;;  %5032 = vmatprep.mubr.bf16.mxu1 %v6031_v48  ;;  %v5690_v60 = vld [vmem:[%s6909_s3 + $0x160] sm:$0xff]  }
  0x51   : > { %5285 = vmatpush3.bf16.msra.mxu0 %v5685_v12  ;;  %5112 = vmatprep.mubr.bf16.mxu0 %v5968_v20  ;;  %v2947_v20 = vld [vmem:[#allocation2 + $0x21] sm:$0xff]  ;;  %v2956_v12 = vld [vmem:[#allocation2 + $0x69] sm:$0xff] }
  0x52   : > { %5286 = vmatprep.subr.bf16.mxu0 %v5686_v49 }
  0x55   : > { %5287 = vmatpush3.bf16.msra.mxu0 %v5686_v49  ;;  %v5719_v49 = vld [vmem:[%s6909_s3 + $0x60] sm:$0xff]  }
  0x56   : > { %5288 = vmatprep.subr.bf16.mxu0 %v5687_v37 }
  0x57   : > { %5033 = vmatmul.mubr.bf16.gmra.mrb[20].mxu1 %v1275_v53 }
  0x58   : > { %5113 = vmatmul.mubr.bf16.gmra.mrb[4].mxu0 %v5973_v24  ;;  %5036 = vmatprep.mubr.bf16.mxu1 %v1276_v54  ;;  %v6103_v24 = vpack.c.bf16 %v2947_v20, %v2946_v19  ;;  %v2969_v19 = vld [vmem:[#allocation2 + $0xd1] sm:$0xff]  ;;  %v2970_v20 = vld [vmem:[#allocation2 + $0xd9] sm:$0xff] }
  0x59   : > { %5116 = vmatprep.mubr.bf16.mxu0 %v5987_v33  ;;  %5289 = vmatpush3.bf16.msra.mxu0 %v5687_v37  ;;  %v6119_v33 = vpack.c.bf16 %v2951_v30, %v2950_v28  ;;  %v2972_v28 = vld [vmem:[#allocation2 + $0xe9] sm:$0xff]  ;;  %v2973_v30 = vld [vmem:[#allocation2 + $0xf1] sm:$0xff] }
  0x5a   : > { %5290 = vmatprep.subr.bf16.mxu0 %v5688_v55  ;;  %v6246_v38 = vpack.c.bf16 %v2973_v30, %v2972_v28 }
  0x5d   : > { %5291 = vmatpush3.bf16.msra.mxu0 %v5688_v55  ;;  %v2960_v55 = vld [vmem:[#allocation2 + $0x89] sm:$0xff] }
  0x5e   : > { %5292 = vmatprep.subr.bf16.mxu0 %v5690_v60 }
  0x5f   : > { %5037 = vmatmul.mubr.bf16.gmra.mrb[24].mxu1 %v1277_v61 }
  0x60   : > { %5117 = vmatmul.mubr.bf16.gmra.mrb[8].mxu0 %v5990_v34  ;;  %5040 = vmatprep.mubr.bf16.mxu1 %v6053_v62  ;;  %v5707_v34 = vld [vmem:[%s6909_s3 + $0x48] sm:$0xff]  }
  0x61   : > { %5120 = vmatprep.mubr.bf16.mxu0 %v6005_v8  ;;  %5293 = vmatpush3.bf16.msra.mxu0 %v5690_v60  ;;  %v6187_v60 = vld [vmem:[%s5900_s28 + $0x38] sm:$0xff] }
  0x62   : > { %5294 = vmatprep.subr.bf16.mxu0 %v5693_v63 }
  0x65   : > { %5295 = vmatpush3.bf16.msra.mxu0 %v5693_v63  ;;  %v6195_v63 = vld [vmem:[%s5900_s28 + $0x40] sm:$0xff] }
  0x66   : > { %5296 = vmatprep.subr.bf16.mxu0 %v5696_v3 }
  0x67   : > { %5041 = vmatmul.mubr.bf16.gmra.mrb[28].mxu1 %v1297_v5 }
  0x68   : > { %5121 = vmatmul.mubr.bf16.gmra.mrb[12].mxu0 %v6008_v41  ;;  %5076 = vmatprep.mubr.bf16.mxu1 %v6005_v8  ;;  %v5712_v8 = vld [vmem:[%s6909_s3 + $0x90] sm:$0xff]  }
  0x69   : > { %5124 = vmatprep.mubr.bf16.mxu0 %v6023_v46  ;;  %5297 = vmatpush3.bf16.msra.mxu0 %v5696_v3  ;;  %v5732_v3 = vld [vmem:[%s6909_s3 + $0xb8] sm:$0xff]  }
  0x6a   : > { %5298 = vmatprep.subr.bf16.mxu0 %v5699_v7 }
  0x6d   : > { %5299 = vmatpush3.bf16.msra.mxu0 %v5699_v7  ;;  %v2965_v7 = vld [vmem:[#allocation2 + $0xb1] sm:$0xff] }
  0x6e   : > { %5332 = vmatprep.subr.bf16.mxu0 %v5704_v9 }
  0x6f   : > { %5077 = vmatmul.mubr.bf16.vlgmr.msra.gmra.mrb[16].mxu1 %v6008_v41  ;;  %v6138_v41 = vld [vmem:[%s5900_s28 + $0x18] sm:$0xff] }
  0x70   : > { %5125 = vmatmul.mubr.bf16.gmra.mrb[16].mxu0 %v6031_v48  ;;  %5141 = vmatpush3.bf16.msra.mxu1 %v6029_v47  ;;  %v2958_v47 = vld [vmem:[#allocation2 + $0x79] sm:$0xff] }
  0x71   : > { %5142 = vmatprep.subr.bf16.mxu1 %v5691_v11  ;;  %5080 = vmatprep.mubr.bf16.mxu1 %v6023_v46  ;;  %v2957_v46 = vld [vmem:[#allocation2 + $0x71] sm:$0xff] }
  0x72   : > { %5128 = vmatprep.mubr.bf16.mxu0 %v1275_v53  ;;  %v6166_v51 = vpack.c.bf16 %v2957_v46, %v2956_v12  ;;  %v5730_v12 = vld [vmem:[%s5900_s28 + $0x78] sm:$0xff] }
  0x74   : > { %5143 = vmatpush3.bf16.msra.mxu1 %v5691_v11  ;;  %v2967_v11 = vld [vmem:[#allocation2 + $0xc1] sm:$0xff] }
  0x75   : > { %5144 = vmatprep.subr.bf16.mxu1 %v5692_v13 }
  0x77   : > { %5081 = vmatmul.mubr.bf16.gmra.mrb[20].mxu1 %v6031_v48  ;;  %v2959_v48 = vld [vmem:[#allocation2 + $0x81] sm:$0xff] }
  0x78   : > { %5129 = vmatmul.mubr.bf16.gmra.mrb[20].mxu0 %v1276_v54  ;;  %5145 = vmatpush3.bf16.msra.mxu1 %v5692_v13  ;;  %v6171_v37 = vpack.c.bf16 %v2959_v48, %v2958_v47  ;;  %v5733_v13 = vld [vmem:[%s6909_s3 + $0x1c0] sm:$0xff]   ;;  %v6260_v47 = vld [vmem:[#allocation2 + $0x10] sm:$0xff] }
  0x79   : > { %5146 = vmatprep.subr.bf16.mxu1 %v5694_v14  ;;  %5084 = vmatprep.mubr.bf16.mxu1 %v1275_v53  ;;  %v5723_v53 = vld [vmem:[%s6909_s3 + $0x68] sm:$0xff]   ;;  %v6264_v48 = vpack.c.bf16 %v6260_v47, %v6260_v47 }
  0x7a   : > { %5132 = vmatprep.mubr.bf16.mxu0 %v1277_v61 }
  0x7c   : > { %5147 = vmatpush3.bf16.msra.mxu1 %v5694_v14  ;;  %v6213_v14 = vld [vmem:[%s5900_s28 + $0x48] sm:$0xff] }
  0x7d   : > { %5148 = vmatprep.subr.bf16.mxu1 %v5695_v15 }
  0x7f   : > { %5085 = vmatmul.mubr.bf16.gmra.mrb[24].mxu1 %v1276_v54  ;;  %v5724_v54 = vld [vmem:[%s6909_s3 + $0xa8] sm:$0xff]  }
  0x80   : > { %5133 = vmatmul.mubr.bf16.gmra.mrb[24].mxu0 %v6053_v62  ;;  %5149 = vmatpush3.bf16.msra.mxu1 %v5695_v15  ;;  %v5734_v15 = vld [vmem:[%s6909_s3 + $0x200] sm:$0xff]  }
  0x81   : > { %5150 = vmatprep.subr.bf16.mxu1 %v5697_v1  ;;  %5088 = vmatprep.mubr.bf16.mxu1 %v1277_v61  ;;  %v5728_v61 = vld [vmem:[%s6909_s3 + $0xb0] sm:$0xff]  }
  0x82   : > { %5136 = vmatprep.mubr.bf16.mxu0 %v1297_v5  ;;  %v2964_v5 = vld [vmem:[#allocation2 + $0xa9] sm:$0xff] }
  0x84   : > { %5151 = vmatpush3.bf16.msra.mxu1 %v5697_v1  ;;  %v6218_v1 = vpack.c.bf16 %v2965_v7, %v2964_v5  ;;  %v2608_v5 = vld [vmem:[#allocation2 + $0x38] sm:$0xff]  ;;  %v2609_v7 = vld [vmem:[#allocation2 + $0x40] sm:$0xff] }
  0x85   : > { %5152 = vmatprep.subr.bf16.mxu1 %v5698_v18 }
  0x87   : > { %5089 = vmatmul.mubr.bf16.gmra.mrb[28].mxu1 %v6053_v62  ;;  %v6192_v62 = vpack.c.bf16 %v2961_v56, %v2960_v55  ;;  %v5741_v55 = vld [vmem:[%s6909_s3 + $0x1e0] sm:$0xff]   ;;  %v5744_v56 = vld [vmem:[%s6909_s3 + $0x228] sm:$0xff]  }
  0x88   : > { %5137 = vmatmul.mubr.bf16.gmra.mrb[28].mxu0 %v1780_v21  ;;  %5153 = vmatpush3.bf16.msra.mxu1 %v5698_v18  ;;  %v2968_v18 = vld [vmem:[#allocation2 + $0xc9] sm:$0xff]  ;;  %v2971_v21 = vld [vmem:[#allocation2 + $0xe1] sm:$0xff] }
  0x89   : > { %5154 = vmatprep.subr.bf16.mxu1 %v5700_v22  ;;  %5156 = vmatprep.mubr.bf16.mxu1 %v6101_v23  ;;  %v6237_v27 = vpack.c.bf16 %v2971_v21, %v2970_v20  ;;  %v2612_v20 = vld [vmem:[#allocation2 + $0x58] sm:$0xff]  ;;  %v2613_v21 = vld [vmem:[#allocation2 + $0x60] sm:$0xff] }
  0x8a   : > { %5300 = vmatprep.mubr.bf16.mxu0 %v6103_v24  ;;  %v2641_v30 = vpack.c.bf16 %v2613_v21, %v2612_v20 }
  0x8c   : > { %5155 = vmatpush3.bf16.msra.mxu1 %v5700_v22  ;;  %v6230_v22 = vld [vmem:[%s5900_s28 + $0x58] sm:$0xff] }
  0x8d   : > { %5188 = vmatprep.subr.bf16.mxu1 %v5703_v25 }
  0x8f   : > { %5157 = vmatmul.mubr.bf16.vlgmr.msra.gmra.mrb[32].mxu1 %v6112_v4 }
  0x90   : > { %5301 = vmatmul.mubr.bf16.vlgmr.msra.gmra.mrb[32].mxu0 %v6114_v31  ;;  %5189 = vmatpush3.bf16.msra.mxu1 %v5703_v25  ;;  %v6232_v25 = vpack.c.bf16 %v2969_v19, %v2968_v18 }
  0x91   : > { %5333 = vmatpush3.bf16.msra.mxu0 %v5704_v9  ;;  %5160 = vmatprep.mubr.bf16.mxu1 %v6117_v32  ;;  %v2966_v9 = vld [vmem:[#allocation2 + $0xb9] sm:$0xff] }
  0x92   : > { %5304 = vmatprep.mubr.bf16.mxu0 %v6119_v33  ;;  %5190 = vmatprep.subr.bf16.mxu1 %v5707_v34  ;;  %v6223_v17 = vpack.c.bf16 %v2967_v11, %v2966_v9  ;;  %v2610_v9 = vld [vmem:[#allocation2 + $0x48] sm:$0xff]  ;;  %v2611_v11 = vld [vmem:[#allocation2 + $0x50] sm:$0xff] }
  0x93   : > { %5334 = vmatprep.subr.bf16.mxu0 %v5708_v35  ;;  %v2640_v18 = vpack.c.bf16 %v2611_v11, %v2610_v9  ;;  %v2629_v11 = vld [vmem:[#allocation2 + $0xe0] sm:$0xff] }
  0x94   : > { %5191 = vmatpush3.bf16.msra.mxu1 %v5707_v34  ;;  %v2974_v34 = vld [vmem:[#allocation2 + $0xf9] sm:$0xff] }
  0x95   : > { %5335 = vmatpush3.bf16.msra.mxu0 %v5708_v35  ;;  %5192 = vmatprep.subr.bf16.mxu1 %v5711_v6  ;;  %v2975_v35 = vld [vmem:[#allocation2 + $0x101] sm:$0xff] }
  0x96   : > { %5336 = vmatprep.subr.bf16.mxu0 %v5712_v8  ;;  %v6251_v39 = vpack.c.bf16 %v2975_v35, %v2974_v34 }
  0x97   : > { %5161 = vmatmul.mubr.bf16.gmra.mrb[36].mxu1 %v6138_v41 }
  0x98   : > { %5305 = vmatmul.mubr.bf16.gmra.mrb[36].mxu0 %v6140_v42  ;;  %5164 = vmatprep.mubr.bf16.mxu1 %v6143_v43 }
  0x99   : > { %5308 = vmatprep.mubr.bf16.mxu0 %v6145_v10  ;;  %5193 = vmatpush3.bf16.msra.mxu1 %v5711_v6  ;;  %v6249_v6 = vld [vmem:[%s5900_s28 + $0x70] sm:$0xff] }
  0x9a   : > { %5337 = vmatpush3.bf16.msra.mxu0 %v5712_v8  ;;  %5194 = vmatprep.subr.bf16.mxu1 %v5715_v44  ;;  %v3010_v8 = vld [vmem:[#allocation2 + $0x111] sm:$0xff] }
  0x9b   : > { %5338 = vmatprep.subr.bf16.mxu0 %v5716_v45  ;;  %v6258_v46 = vpack.c.bf16 %v3010_v8, %v3009_v40  ;;  %v2619_v40 = vld [vmem:[#allocation2 + $0x90] sm:$0xff] }
  0x9d   : > { %5195 = vmatpush3.bf16.msra.mxu1 %v5715_v44  ;;  %v2944_v44 = vld [vmem:[#allocation2 + $0x9] sm:$0xff] }
  0x9e   : > { %5339 = vmatpush3.bf16.msra.mxu0 %v5716_v45  ;;  %5196 = vmatprep.subr.bf16.mxu1 %v5719_v49  ;;  %v2945_v45 = vld [vmem:[#allocation2 + $0x11] sm:$0xff] }
  0x9f   : > { %5165 = vmatmul.mubr.bf16.gmra.mrb[40].mxu1 %v6161_v29  ;;  %5340 = vmatprep.subr.bf16.mxu0 %v5720_v50 }
  0xa0   : > { %5309 = vmatmul.mubr.bf16.gmra.mrb[40].mxu0 %v6166_v51  ;;  %5168 = vmatprep.mubr.bf16.mxu1 %v6169_v52 }
  0xa1   : > { %5312 = vmatprep.mubr.bf16.mxu0 %v6171_v37  ;;  %5197 = vmatpush3.bf16.msra.mxu1 %v5719_v49  ;;  %v2976_v49 = vpack.c.bf16 %v2945_v45, %v2944_v44 }
  0xa2   : > { %5341 = vmatpush3.bf16.msra.mxu0 %v5720_v50  ;;  %5198 = vmatprep.subr.bf16.mxu1 %v5723_v53  ;;  %v5735_v50 = vld [vmem:[%s6909_s3 + $0x1c8] sm:$0xff]  }
  0xa3   : > { %5342 = vmatprep.subr.bf16.mxu0 %v5724_v54 }
  0xa5   : > { %5199 = vmatpush3.bf16.msra.mxu1 %v5723_v53  ;;  %v5736_v53 = vld [vmem:[%s6909_s3 + $0x208] sm:$0xff]  }
  0xa6   : > { %5343 = vmatpush3.bf16.msra.mxu0 %v5724_v54  ;;  %5200 = vmatprep.subr.bf16.mxu1 %v5727_v59  ;;  %v5737_v54 = vld [vmem:[%s6909_s3 + $0x1d0] sm:$0xff]  }
  0xa7   : > { %5169 = vmatmul.mubr.bf16.gmra.mrb[44].mxu1 %v6187_v60  ;;  %5344 = vmatprep.subr.bf16.mxu0 %v5728_v61 }
  0xa8   : > { %5313 = vmatmul.mubr.bf16.gmra.mrb[44].mxu0 %v6192_v62  ;;  %5172 = vmatprep.mubr.bf16.mxu1 %v6195_v63 }
  0xa9   : > { %5316 = vmatprep.mubr.bf16.mxu0 %v6197_v0  ;;  %5201 = vmatpush3.bf16.msra.mxu1 %v5727_v59  ;;  %v2607_v59 = vld [vmem:[#allocation2 + $0x30] sm:$0xff] }
  0xaa   : > { %5345 = vmatpush3.bf16.msra.mxu0 %v5728_v61  ;;  %5202 = vmatprep.subr.bf16.mxu1 %v5731_v2 }
  0xab   : > { %5346 = vmatprep.subr.bf16.mxu0 %v5732_v3 }
  0xad   : > { %5203 = vmatpush3.bf16.msra.mxu1 %v5731_v2 }
  0xae   : > { %5347 = vmatpush3.bf16.msra.mxu0 %v5732_v3  ;;  %5236 = vmatprep.subr.bf16.mxu1 %v5733_v13 }
  0xaf   : > { %5173 = vmatmul.mubr.bf16.gmra.mrb[48].mxu1 %v6213_v14  ;;  %5380 = vmatprep.subr.bf16.mxu0 %v5734_v15 }
  0xb0   : > { %5317 = vmatmul.mubr.bf16.gmra.mrb[48].mxu0 %v6218_v1  ;;  %5176 = vmatprep.mubr.bf16.mxu1 %v6221_v16 }
  0xb1   : > { %5320 = vmatprep.mubr.bf16.mxu0 %v6223_v17 }
  0xb7   : > { %5177 = vmatmul.mubr.bf16.gmra.mrb[52].mxu1 %v6230_v22 }
  0xb8   : > { %5321 = vmatmul.mubr.bf16.gmra.mrb[52].mxu0 %v6232_v25  ;;  %5180 = vmatprep.mubr.bf16.mxu1 %v6235_v26 }
  0xb9   : > { %5324 = vmatprep.mubr.bf16.mxu0 %v6237_v27 }
  0xbf   : > { %5181 = vmatmul.mubr.bf16.gmra.mrb[56].mxu1 %v6244_v36 }
  0xc0   : > { %5325 = vmatmul.mubr.bf16.gmra.mrb[56].mxu0 %v6246_v38  ;;  %5184 = vmatprep.mubr.bf16.mxu1 %v6249_v6 }
  0xc1   : > { %5328 = vmatprep.mubr.bf16.mxu0 %v6251_v39 }
  0xc7   : > { %5185 = vmatmul.mubr.bf16.gmra.mrb[60].mxu1 %v5730_v12 }
  0xc8   : > { %5329 = vmatmul.mubr.bf16.gmra.mrb[60].mxu0 %v6258_v46  ;;  %5204 = vmatprep.mubr.bf16.mxu1 %v6264_v48 }
  0xc9   : > { %5348 = vmatprep.mubr.bf16.mxu0 %v2976_v49 }
  0xcf   : > { %5205 = vmatmul.mubr.bf16.vlgmr.msra.gmra.mrb[32].mxu1 %v6101_v23  ;;  %v5738_v23 = vld [vmem:[%s6909_s3 + $0x210] sm:$0xff]  }
  0xd0   : > { %5349 = vmatmul.mubr.bf16.vlgmr.msra.gmra.mrb[32].mxu0 %v6103_v24  ;;  %5237 = vmatpush3.bf16.msra.mxu1 %v5733_v13  ;;  %v5739_v24 = vld [vmem:[%s6909_s3 + $0x1d8] sm:$0xff]  }
  0xd1   : > { %5381 = vmatpush3.bf16.msra.mxu0 %v5734_v15  ;;  %5208 = vmatprep.mubr.bf16.mxu1 %v6112_v4  ;;  %v5740_v4 = vld [vmem:[%s6909_s3 + $0x218] sm:$0xff]   ;;  %v2639_v15 = vpack.c.bf16 %v2609_v7, %v2608_v5 }
  0xd2   : > { %5352 = vmatprep.mubr.bf16.mxu0 %v6114_v31  ;;  %5238 = vmatprep.subr.bf16.mxu1 %v5735_v50 }
  0xd3   : > { %5382 = vmatprep.subr.bf16.mxu0 %v5736_v53 }
  0xd4   : > { %5239 = vmatpush3.bf16.msra.mxu1 %v5735_v50 }
  0xd5   : > { %5383 = vmatpush3.bf16.msra.mxu0 %v5736_v53  ;;  %5240 = vmatprep.subr.bf16.mxu1 %v5737_v54  ;;  %v2621_v53 = vld [vmem:[#allocation2 + $0xa0] sm:$0xff] }
  0xd6   : > { %5384 = vmatprep.subr.bf16.mxu0 %v5738_v23 }
  0xd7   : > { %5209 = vmatmul.mubr.bf16.gmra.mrb[36].mxu1 %v6117_v32  ;;  %v5742_v32 = vld [vmem:[%s6909_s3 + $0x220] sm:$0xff]  }
  0xd8   : > { %5353 = vmatmul.mubr.bf16.gmra.mrb[36].mxu0 %v6119_v33  ;;  %5212 = vmatprep.mubr.bf16.mxu1 %v6138_v41  ;;  %v5743_v41 = vld [vmem:[%s6909_s3 + $0x1e8] sm:$0xff]  }
  0xd9   : > { %5356 = vmatprep.mubr.bf16.mxu0 %v6140_v42  ;;  %5241 = vmatpush3.bf16.msra.mxu1 %v5737_v54  ;;  %v2623_v54 = vld [vmem:[#allocation2 + $0xb0] sm:$0xff] }
  0xda   : > { %5385 = vmatpush3.bf16.msra.mxu0 %v5738_v23  ;;  %5242 = vmatprep.subr.bf16.mxu1 %v5739_v24 }
  0xdb   : > { %5386 = vmatprep.subr.bf16.mxu0 %v5740_v4 }
  0xdd   : > { %5243 = vmatpush3.bf16.msra.mxu1 %v5739_v24 }
  0xde   : > { %5387 = vmatpush3.bf16.msra.mxu0 %v5740_v4  ;;  %5244 = vmatprep.subr.bf16.mxu1 %v5741_v55 }
  0xdf   : > { %5213 = vmatmul.mubr.bf16.gmra.mrb[40].mxu1 %v6143_v43  ;;  %5388 = vmatprep.subr.bf16.mxu0 %v5742_v32  ;;  %v5746_v43 = vld [vmem:[%s6909_s3 + $0x230] sm:$0xff]  }
  0xe0   : > { %5357 = vmatmul.mubr.bf16.gmra.mrb[40].mxu0 %v6145_v10  ;;  %5216 = vmatprep.mubr.bf16.mxu1 %v6161_v29  ;;  %v5747_v29 = vld [vmem:[%s6909_s3 + $0x1f8] sm:$0xff]  }
  0xe1   : > { %5360 = vmatprep.mubr.bf16.mxu0 %v6166_v51  ;;  %5245 = vmatpush3.bf16.msra.mxu1 %v5741_v55 }
  0xe2   : > { %5389 = vmatpush3.bf16.msra.mxu0 %v5742_v32  ;;  %5246 = vmatprep.subr.bf16.mxu1 %v5743_v41 }
  0xe3   : > { %5390 = vmatprep.subr.bf16.mxu0 %v5744_v56 }
  0xe5   : > { %5247 = vmatpush3.bf16.msra.mxu1 %v5743_v41 }
  0xe6   : > { %5391 = vmatpush3.bf16.msra.mxu0 %v5744_v56  ;;  %5248 = vmatprep.subr.bf16.mxu1 %v5745_v57 }
  0xe7   : > { %5217 = vmatmul.mubr.bf16.gmra.mrb[44].mxu1 %v6169_v52  ;;  %5392 = vmatprep.subr.bf16.mxu0 %v5746_v43  ;;  %v2606_v52 = vld [vmem:[#allocation2 + $0x28] sm:$0xff] }
  0xe8   : > { %5361 = vmatmul.mubr.bf16.gmra.mrb[44].mxu0 %v6171_v37  ;;  %5220 = vmatprep.mubr.bf16.mxu1 %v6187_v60  ;;  %v2638_v2 = vpack.c.bf16 %v2607_v59, %v2606_v52  ;;  %v2627_v52 = vld [vmem:[#allocation2 + $0xd0] sm:$0xff] }
  0xe9   : > { %5364 = vmatprep.mubr.bf16.mxu0 %v6192_v62  ;;  %5249 = vmatpush3.bf16.msra.mxu1 %v5745_v57 }
  0xea   : > { %5393 = vmatpush3.bf16.msra.mxu0 %v5746_v43  ;;  %5250 = vmatprep.subr.bf16.mxu1 %v5747_v29 }
  0xeb   : > { %5394 = vmatprep.subr.bf16.mxu0 %v5748_v58 }
  0xed   : > { %5251 = vmatpush3.bf16.msra.mxu1 %v5747_v29  ;;  %v2625_v29 = vld [vmem:[#allocation2 + $0xc0] sm:$0xff] }
  0xee   : > { %5395 = vmatpush3.bf16.msra.mxu0 %v5748_v58  ;;  %v2626_v58 = vld [vmem:[#allocation2 + $0xc8] sm:$0xff] }
  0xef   : > { %5221 = vmatmul.mubr.bf16.gmra.mrb[48].mxu1 %v6195_v63 }
  0xf0   : > { %5365 = vmatmul.mubr.bf16.gmra.mrb[48].mxu0 %v6197_v0  ;;  %5224 = vmatprep.mubr.bf16.mxu1 %v6213_v14 }
  0xf1   : > { %5368 = vmatprep.mubr.bf16.mxu0 %v6218_v1 }
  0xf7   : > { %5225 = vmatmul.mubr.bf16.gmra.mrb[52].mxu1 %v6221_v16 }
  0xf8   : > { %5369 = vmatmul.mubr.bf16.gmra.mrb[52].mxu0 %v6223_v17  ;;  %5228 = vmatprep.mubr.bf16.mxu1 %v6230_v22  ;;  %v2615_v22 = vld [vmem:[#allocation2 + $0x70] sm:$0xff] }
  0xf9   : > { %5372 = vmatprep.mubr.bf16.mxu0 %v6232_v25 }
  0xff   : > { %5229 = vmatmul.mubr.bf16.gmra.mrb[56].mxu1 %v6235_v26 }
 0x100   : > { %5373 = vmatmul.mubr.bf16.gmra.mrb[56].mxu0 %v6237_v27  ;;  %5232 = vmatprep.mubr.bf16.mxu1 %v6244_v36 }
 0x101   : > { %5376 = vmatprep.mubr.bf16.mxu0 %v6246_v38 }
 0x102   : > { %v5014_v60 = vpop.f32.mrb[0].mxu1 }
 0x103   : > { %v1397_v61 = vpop.f32.mrb[1].mxu1 }
 0x104   : > { %v5015_v63 = vpop.f32.mrb[2].mxu1 }
 0x105   : > { %v1400_v3 = vpop.f32.mrb[3].mxu1 }
 0x107   : > { %5233 = vmatmul.mubr.bf16.gmra.mrb[60].mxu1 %v6249_v6  ;;  %v2617_v6 = vld [vmem:[#allocation2 + $0x80] sm:$0xff] }
 0x108   : > { %5377 = vmatmul.mubr.bf16.gmra.mrb[60].mxu0 %v6251_v39  ;;  %5252 = vmatprep.mubr.bf16.mxu1 %v2638_v2 }
 0x109   : > { %5396 = vmatprep.mubr.bf16.mxu0 %v6114_v31  ;;  %v2614_v31 = vld [vmem:[#allocation2 + $0x68] sm:$0xff] }
 0x10a   : > { %v5018_v13 = vpop.f32.mrb[4].mxu1  ;;  %v2642_v35 = vpack.c.bf16 %v2615_v22, %v2614_v31 }
 0x10b   : > { %v6341_v14 = vpop.f32.mrb[5].mxu1 }
 0x10c   : > { %v6343_v16 = vpop.f32.mrb[6].mxu1 }
 0x10d   : > { %v6345_v19 = vpop.f32.mrb[7].mxu1 }
 0x10f   : > { %5253 = vmatmul.mubr.bf16.vlgmr.msra.gmra.mrb[32].mxu1 %v2639_v15  ;;  %v2631_v15 = vld [vmem:[#allocation2 + $0xf0] sm:$0xff] }
 0x110   : > { %5397 = vmatmul.mubr.bf16.vlgmr.msra.gmra.mrb[32].mxu0 %v6119_v33  ;;  %5256 = vmatprep.mubr.bf16.mxu1 %v2640_v18  ;;  %v2616_v33 = vld [vmem:[#allocation2 + $0x78] sm:$0xff] }
 0x111   : > { %5400 = vmatprep.mubr.bf16.mxu0 %v6140_v42  ;;  %v2618_v42 = vld [vmem:[#allocation2 + $0x88] sm:$0xff]  ;;  %v2643_v45 = vpack.c.bf16 %v2617_v6, %v2616_v33  ;;  %v2635_v33 = vld [vmem:[#allocation2 + $0x110] sm:$0xff] }
 0x112   : > { %v6349_v26 = vpop.f32.mrb[8].mxu1  ;;  %v2644_v49 = vpack.c.bf16 %v2619_v40, %v2618_v42 }
 0x113   : > { %v6351_v28 = vpop.f32.mrb[9].mxu1 }
 0x114   : > { %v6353_v34 = vpop.f32.mrb[10].mxu1 }
 0x115   : > { %v6355_v36 = vpop.f32.mrb[11].mxu1 }
 0x117   : > { %5257 = vmatmul.mubr.bf16.gmra.mrb[36].mxu1 %v2641_v30 }
 0x118   : > { %5401 = vmatmul.mubr.bf16.gmra.mrb[36].mxu0 %v6145_v10  ;;  %5260 = vmatprep.mubr.bf16.mxu1 %v2642_v35  ;;  %v2620_v10 = vld [vmem:[#allocation2 + $0x98] sm:$0xff]  ;;  %v2634_v35 = vld [vmem:[#allocation2 + $0x108] sm:$0xff] }
 0x119   : > { %5404 = vmatprep.mubr.bf16.mxu0 %v6166_v51  ;;  %v2622_v51 = vld [vmem:[#allocation2 + $0xa8] sm:$0xff]  ;;  %v2645_v24 = vpack.c.bf16 %v2621_v53, %v2620_v10  ;;  %v2652_v40 = vpack.c.bf16 %v2635_v33, %v2634_v35 }
 0x11a   : > { %v6359_v8 = vpop.f32.mrb[12].mxu1  ;;  %v2646_v32 = vpack.c.bf16 %v2623_v54, %v2622_v51 }
 0x11b   : > { %v6361_v44 = vpop.f32.mrb[13].mxu1 }
 0x11c   : > { %v6363_v12 = vpop.f32.mrb[14].mxu1 }
 0x11d   : > { %v6365_v50 = vpop.f32.mrb[15].mxu1 }
 0x11f   : > { %5261 = vmatmul.mubr.bf16.gmra.mrb[40].mxu1 %v2643_v45 }
 0x120   : > { %5405 = vmatmul.mubr.bf16.gmra.mrb[40].mxu0 %v6171_v37  ;;  %5264 = vmatprep.mubr.bf16.mxu1 %v2644_v49 }
 0x121   : > { %5408 = vmatprep.mubr.bf16.mxu0 %v6192_v62  ;;  %v2624_v62 = vld [vmem:[#allocation2 + $0xb8] sm:$0xff] }
 0x123   : > { %v5110_v23 = vpop.f32.mrb[0].mxu0 }
 0x124   : > { %v6369_v4 = vadd.f32 %v5110_v23, %v5014_v60  ;;  %v1880_v55 = vpop.f32.mrb[1].mxu0  ;;  %v2647_v60 = vpack.c.bf16 %v2625_v29, %v2624_v62 }
 0x125   : > { %v6371_v41 = vadd.f32 %v1880_v55, %v1397_v61  ;;  %v5111_v56 = vpop.f32.mrb[2].mxu0 }
 0x126   : > { %v6373_v57 = vadd.f32 %v5111_v56, %v5015_v63  ;;  %v1883_v43 = vpop.f32.mrb[3].mxu0  ;;  %v2648_v63 = vpack.c.bf16 %v2627_v52, %v2626_v58 }
 0x127   : > { %v6375_v37 = vadd.f32 %v1883_v43, %v1400_v3  ;;  %5265 = vmatmul.mubr.bf16.gmra.mrb[44].mxu1 %v2645_v24 }
 0x128   : > { %5409 = vmatmul.mubr.bf16.gmra.mrb[44].mxu0 %v6197_v0  ;;  %5268 = vmatprep.mubr.bf16.mxu1 %v2646_v32 }
 0x129   : > { %5412 = vmatprep.mubr.bf16.mxu0 %v6218_v1  ;;  %v2628_v1 = vld [vmem:[#allocation2 + $0xd8] sm:$0xff] }
 0x12a   : > { %v2649_v18 = vpack.c.bf16 %v2629_v11, %v2628_v1 }
 0x12b   : > { %v5114_v59 = vpop.f32.mrb[4].mxu0 }
 0x12c   : > { %v6379_v61 = vadd.f32 %v5114_v59, %v5018_v13  ;;  %v1896_v2 = vpop.f32.mrb[5].mxu0  ;;  %v2630_v13 = vld [vmem:[#allocation2 + $0xe8] sm:$0xff] }
 0x12d   : > { %v6382_v5 = vadd.f32 %v1896_v2, %v6341_v14  ;;  %v5115_v3 = vpop.f32.mrb[6].mxu0  ;;  %v2650_v21 = vpack.c.bf16 %v2631_v15, %v2630_v13 }
 0x12e   : > { %v6385_v7 = vadd.f32 %v5115_v3, %v6343_v16  ;;  %v1899_v0 = vpop.f32.mrb[7].mxu0 }
 0x12f   : > { %v6388_v9 = vadd.f32 %v1899_v0, %v6345_v19  ;;  %5269 = vmatmul.mubr.bf16.gmra.mrb[48].mxu1 %v2647_v60 }
 0x130   : > { %5413 = vmatmul.mubr.bf16.gmra.mrb[48].mxu0 %v6223_v17  ;;  %5272 = vmatprep.mubr.bf16.mxu1 %v2648_v63 }
 0x131   : > { %5416 = vmatprep.mubr.bf16.mxu0 %v6232_v25  ;;  %v2632_v25 = vld [vmem:[#allocation2 + $0xf8] sm:$0xff] }
 0x133   : > { %v5118_v14 = vpop.f32.mrb[8].mxu0 }
 0x134   : > { %v6393_v20 = vadd.f32 %v5118_v14, %v6349_v26  ;;  %v1912_v16 = vpop.f32.mrb[9].mxu0  ;;  %v2633_v26 = vld [vmem:[#allocation2 + $0x100] sm:$0xff] }
 0x135   : > { %v6396_v19 = vadd.f32 %v1912_v16, %v6351_v28  ;;  %v5119_v31 = vpop.f32.mrb[10].mxu0  ;;  %v2651_v6 = vpack.c.bf16 %v2633_v26, %v2632_v25 }
 0x136   : > { %v6399_v17 = vadd.f32 %v5119_v31, %v6353_v34  ;;  %v1915_v22 = vpop.f32.mrb[11].mxu0 }
 0x137   : > { %v6402_v30 = vadd.f32 %v1915_v22, %v6355_v36  ;;  %5273 = vmatmul.mubr.bf16.gmra.mrb[52].mxu1 %v2649_v18 }
 0x138   : > { %5417 = vmatmul.mubr.bf16.gmra.mrb[52].mxu0 %v6237_v27  ;;  %5276 = vmatprep.mubr.bf16.mxu1 %v2650_v21 }
 0x139   : > { %5420 = vmatprep.mubr.bf16.mxu0 %v6246_v38  ;;  %v3477_v38 = vld [vmem:[#allocation2 + $0x119] sm:$0xff] }
 0x13b   : > { %v5122_v28 = vpop.f32.mrb[12].mxu0 }
 0x13c   : > { %v6407_v42 = vadd.f32 %v5122_v28, %v6359_v8  ;;  %v1928_v34 = vpop.f32.mrb[13].mxu0  ;;  %v3478_v8 = vld [vmem:[#allocation2 + $0x121] sm:$0xff] }
 0x13d   : > { %v6410_v36 = vadd.f32 %v1928_v34, %v6361_v44  ;;  %v5123_v45 = vpop.f32.mrb[14].mxu0  ;;  %v3494_v24 = vpack.c.bf16 %v3478_v8, %v3477_v38 }
 0x13e   : > { %v6413_v27 = vadd.f32 %v5123_v45, %v6363_v12  ;;  %v1931_v49 = vpop.f32.mrb[15].mxu0 }
 0x13f   : > { %v6416_v10 = vadd.f32 %v1931_v49, %v6365_v50  ;;  %5277 = vmatmul.mubr.bf16.gmra.mrb[56].mxu1 %v2651_v6 }
 0x140   : > { %5421 = vmatmul.mubr.bf16.gmra.mrb[56].mxu0 %v6251_v39  ;;  %5280 = vmatprep.mubr.bf16.mxu1 %v2652_v40 }
 0x141   : > { %5424 = vmatprep.mubr.bf16.mxu0 %v6258_v46 }
 0x142   : > { %v5078_v53 = vpop.f32.mrb[16].mxu1 }
 0x143   : > { %v5126_v51 = vpop.f32.mrb[16].mxu0  ;;  %v1670_v44 = vpop.f32.mrb[17].mxu1 }
 0x144   : > { %v6420_v54 = vadd.f32 %v5126_v51, %v5078_v53  ;;  %v1944_v23 = vpop.f32.mrb[17].mxu0  ;;  %v5079_v12 = vpop.f32.mrb[18].mxu1 }
 0x145   : > { %v6422_v55 = vadd.f32 %v1944_v23, %v1670_v44  ;;  %v5127_v50 = vpop.f32.mrb[18].mxu0  ;;  %v1673_v32 = vpop.f32.mrb[19].mxu1  ;;  %v622_v44 = vlaneseq }
 0x146   : > { %v6424_v56 = vadd.f32 %v5127_v50, %v5079_v12  ;;  %v1947_v39 = vpop.f32.mrb[19].mxu0 }
 0x147   : > { %v6426_v43 = vadd.f32 %v1947_v39, %v1673_v32  ;;  %5281 = vmatmul.mubr.bf16.gmra.mrb[60].mxu1 %v6264_v48  ;;  %v6453_v23 = vshrl.u32 %v622_v44, 7 }
 0x148   : > { %5425 = vmatmul.mubr.bf16.gmra.mrb[60].mxu0 %v3494_v24 }
 0x149   : > { %v625_v12 = vadd.s32 16, %v6453_v23  ;;  %v629_v24 = vadd.s32 48, %v6453_v23  ;;  %v627_v50 = vadd.s32 32, %v6453_v23  ;;  %v633_v32 = vadd.s32 80, %v6453_v23 }
 0x14a   : > { %v5082_v46 = vpop.f32.mrb[20].mxu1 }
 0x14b   : > { %v5130_v62 = vpop.f32.mrb[20].mxu0  ;;  %v1686_v29 = vpop.f32.mrb[21].mxu1  ;;  %v673_v39 = vand.u32 15, %v625_v12 }
 0x14c   : > { %v6429_v58 = vadd.f32 %v5130_v62, %v5082_v46  ;;  %v1960_v52 = vpop.f32.mrb[21].mxu0  ;;  %v5083_v59 = vpop.f32.mrb[22].mxu1  ;;  %v659_v46 = vand.u32 15, %v6453_v23  ;;  %v701_v62 = vand.u32 15, %v629_v24 }
 0x14d   : > { %v6431_v60 = vadd.f32 %v1960_v52, %v1686_v29  ;;  %v5131_v2 = vpop.f32.mrb[22].mxu0  ;;  %v1689_v63 = vpop.f32.mrb[23].mxu1  ;;  %v687_v29 = vand.u32 15, %v627_v50  ;;  %v631_v52 = vadd.s32 64, %v6453_v23  ;;  %vm6468_vm0 = vcmp.ne.s32.totalorder %v673_v39, 0 }
 0x14e   : > { %v6433_v3 = vadd.f32 %v5131_v2, %v5083_v59  ;;  %v1963_v0 = vpop.f32.mrb[23].mxu0  ;;  %v729_v59 = vand.u32 15, %v633_v32  ;;  %v637_v2 = vadd.s32 112, %v6453_v23  ;;  %vm6475_vm1 = vcmp.ne.s32.totalorder %v659_v46, 0 }
 0x14f   : > { %v6435_v1 = vadd.f32 %v1963_v0, %v1689_v63  ;;  %v635_v63 = vadd.s32 96, %v6453_v23  ;;  %v641_v0 = vadd.s32 144, %v6453_v23  ;;  %vm6479_vm2 = vcmp.ne.s32.totalorder %v701_v62, 0 }
 0x150   : > { %vm6483_vm3 = vcmp.ne.s32.totalorder %v687_v29, 0  ;;  %vm6487_vm4 = vcmp.ne.s32.totalorder %v729_v59, 0  ;;  %v4303_v32 = vsel %vm6468_vm0, 1.0, %v6260_v47  ;;  %v4302_v29 = vsel %vm6475_vm1, 1.0, %v6260_v47 }
 0x151   : > { %v4304_v59 = vsel %vm6483_vm3, 1.0, %v6260_v47 }
 0x152   : > { %v5086_v11 = vpop.f32.mrb[24].mxu1 }
 0x153   : > { %v5134_v13 = vpop.f32.mrb[24].mxu0  ;;  %v1702_v48 = vpop.f32.mrb[25].mxu1 }
 0x154   : > { %v6437_v15 = vadd.f32 %v5134_v13, %v5086_v11  ;;  %v1976_v14 = vpop.f32.mrb[25].mxu0  ;;  %v5087_v18 = vpop.f32.mrb[26].mxu1  ;;  %v639_v11 = vadd.s32 128, %v6453_v23  ;;  %v645_v13 = vadd.s32 176, %v6453_v23 }
 0x155   : > { %v6439_v16 = vadd.f32 %v1976_v14, %v1702_v48  ;;  %v5135_v21 = vpop.f32.mrb[26].mxu0  ;;  %v1705_v31 = vpop.f32.mrb[27].mxu1  ;;  %v643_v48 = vadd.s32 160, %v6453_v23  ;;  %v649_v14 = vadd.s32 208, %v6453_v23 }
 0x156   : > { %v6441_v22 = vadd.f32 %v5135_v21, %v5087_v18  ;;  %v1979_v25 = vpop.f32.mrb[27].mxu0  ;;  %v647_v21 = vadd.s32 192, %v6453_v23  ;;  %v771_v44 = vand.u32 15, %v639_v11  ;;  %v813_v12 = vand.u32 15, %v645_v13 }
 0x157   : > { %v6443_v26 = vadd.f32 %v1979_v25, %v1705_v31  ;;  %v653_v31 = vadd.s32 240, %v6453_v23  ;;  %v651_v25 = vadd.s32 224, %v6453_v23  ;;  %v799_v24 = vand.u32 15, %v643_v48 }
 0x158   : > { %v841_v50 = vand.u32 15, %v649_v14  ;;  %v827_v39 = vand.u32 15, %v647_v21  ;;  %vm6522_vm9 = vcmp.ne.s32.totalorder %v771_v44, 0  ;;  %vm6526_vm10 = vcmp.ne.s32.totalorder %v813_v12, 0 }
 0x159   : > { %v869_v46 = vand.u32 15, %v653_v31  ;;  %v855_v62 = vand.u32 15, %v651_v25  ;;  %vm6530_vm11 = vcmp.ne.s32.totalorder %v799_v24, 0  ;;  %v626_v31 = vadd.s32 24, %v6453_v23 }
 0x15a   : > { %v5090_v35 = vpop.f32.mrb[28].mxu1  ;;  %vm6534_vm12 = vcmp.ne.s32.totalorder %v841_v50, 0  ;;  %vm6539_vm13 = vcmp.ne.s32.totalorder %v827_v39, 0  ;;  %v4313_v44 = vsel %vm6526_vm10, 1.0, %v6260_v47  ;;  %v4312_v12 = vsel %vm6530_vm11, 1.0, %v6260_v47 }
 0x15b   : > { %v5138_v33 = vpop.f32.mrb[28].mxu0  ;;  %v1718_v28 = vpop.f32.mrb[29].mxu1  ;;  %vm6543_vm14 = vcmp.ne.s32.totalorder %v869_v46, 0  ;;  %vm6547_vm15 = vcmp.ne.s32.totalorder %v855_v62, 0  ;;  %v4315_v24 = vsel %vm6534_vm12, 1.0, %v6260_v47  ;;  %v4314_v50 = vsel %vm6539_vm13, 1.0, %v6260_v47 }
 0x15c   : > { %v6445_v6 = vadd.f32 %v5138_v33, %v5090_v35  ;;  %v1992_v34 = vpop.f32.mrb[29].mxu0  ;;  %v5091_v40 = vpop.f32.mrb[30].mxu1  ;;  %v4317_v39 = vsel %vm6543_vm14, 1.0, %v6260_v47  ;;  %v2041_v62 = vmul.f32 %v6369_v4, %v4303_v32  ;;  %v6591_v13 = vmul.f32 %v6382_v5, %v4304_v59 }
 0x15d   : > { %v6447_v45 = vadd.f32 %v1992_v34, %v1718_v28  ;;  %v5139_v49 = vpop.f32.mrb[30].mxu0  ;;  %v1721_v38 = vpop.f32.mrb[31].mxu1  ;;  %v715_v34 = vand.u32 15, %v631_v52  ;;  %v4305_v52 = vsel %vm6479_vm2, 1.0, %v6260_v47  ;;  %v630_v48 = vadd.s32 56, %v6453_v23 }
 0x15e   : > { %v6449_v8 = vadd.f32 %v5139_v49, %v5091_v40  ;;  %v1995_v53 = vpop.f32.mrb[31].mxu0  ;;  %v757_v49 = vand.u32 15, %v637_v2  ;;  %v4307_v2 = vsel %vm6487_vm4, 1.0, %v6260_v47  ;;  %v6588_v11 = vmul.f32 %v6379_v61, %v4305_v52 }
 0x15f   : > { %v6451_v51 = vadd.f32 %v1995_v53, %v1721_v38  ;;  %v743_v38 = vand.u32 15, %v635_v63  ;;  %v785_v53 = vand.u32 15, %v641_v0  ;;  %vm6506_vm5 = vcmp.ne.s32.totalorder %v715_v34, 0 }
 0x160   : > { %6915 = vst [vmem:[#allocation3_spill] sm:$0xff] %v6449_v8  ;;  %vm6510_vm6 = vcmp.ne.s32.totalorder %v757_v49, 0  ;;  %v4306_v28 = vsel %vm6506_vm5, 1.0, %v6260_v47  ;;  %v2039_v63 = vmul.f32 %v6371_v41, %v4302_v29  ;;  %v680_v0 = vand.u32 15, %v626_v31 }
 0x161   : > { %6916 = vst [vmem:[#allocation4_spill] sm:$0xff] %v6451_v51  ;;  %vm6514_vm7 = vcmp.ne.s32.totalorder %v743_v38, 0  ;;  %vm6518_vm8 = vcmp.ne.s32.totalorder %v785_v53, 0  ;;  %v4309_v34 = vsel %vm6510_vm6, 1.0, %v6260_v47  ;;  %v624_v38 = vadd.s32 8, %v6453_v23 }
 0x162   : > { %v4308_v40 = vsel %vm6514_vm7, 1.0, %v6260_v47  ;;  %v4311_v49 = vsel %vm6518_vm8, 1.0, %v6260_v47  ;;  %v4310_v53 = vsel %vm6522_vm9, 1.0, %v6260_v47  ;;  %v628_v14 = vadd.s32 40, %v6453_v23 }
 0x163   : > { %v6596_v18 = vmul.f32 %v6393_v20, %v4307_v2  ;;  %v666_v21 = vand.u32 15, %v624_v38  ;;  %v6599_v25 = vmul.f32 %v6396_v19, %v4306_v28  ;;  %v634_v4 = vadd.s32 88, %v6453_v23 }
 0x164   : > { %v632_v41 = vadd.s32 72, %v6453_v23  ;;  %v6604_v61 = vmul.f32 %v6407_v42, %v4309_v34  ;;  %v6607_v5 = vmul.f32 %v6410_v36, %v4308_v40  ;;  %v638_v32 = vadd.s32 120, %v6453_v23 }
 0x165   : > { %v6611_v29 = vmul.f32 %v6420_v54, %v4311_v49  ;;  %vm6613_vm0 = vcmp.ne.s32.totalorder %v680_v0, 15  ;;  %v636_v19 = vadd.s32 104, %v6453_v23  ;;  %v6619_v52 = vmul.f32 %v6422_v55, %v4310_v53 }
 0x166   : > { %v642_v42 = vadd.s32 152, %v6453_v23  ;;  %v708_v59 = vand.u32 15, %v630_v48  ;;  %v694_v2 = vand.u32 15, %v628_v14  ;;  %v6623_v36 = vmul.f32 %v6429_v58, %v4313_v44 }
 0x167   : > { %v6626_v31 = vmul.f32 %v6431_v60, %v4312_v12  ;;  %vm6628_vm1 = vcmp.ne.s32.totalorder %v666_v21, 15  ;;  %v736_v35 = vand.u32 15, %v634_v4  ;;  %v722_v28 = vand.u32 15, %v632_v41 }
 0x168   : > { %v6633_v34 = vmul.f32 %v6437_v15, %v4315_v24  ;;  %v4319_v40 = vsel %vm6613_vm0, 1.0, %v6260_v47  ;;  %v764_v49 = vand.u32 15, %v638_v32  ;;  %v6639_v58 = vmul.f32 %v6439_v16, %v4314_v50 }
 0x169   : > { %v6642_v60 = vmul.f32 %v6445_v6, %v4317_v39  ;;  %v750_v12 = vand.u32 15, %v636_v19  ;;  %v792_v0 = vand.u32 15, %v642_v42  ;;  %v640_v15 = vadd.s32 136, %v6453_v23  ;;  %v6659_v39 = vld [vmem:[%s6910_s4] ss:$0 sm:$0xff] }
 0x16a   : > { %v4318_v21 = vsel %vm6628_vm1, 1.0, %v6260_v47  ;;  %vm6648_vm2 = vcmp.ne.s32.totalorder %v708_v59, 15  ;;  %vm6652_vm3 = vcmp.ne.s32.totalorder %v694_v2, 15  ;;  %vm6662_vm4 = vcmp.ne.s32.totalorder %v736_v35, 15 }
 0x16b   : > { %6953 = vst [vmem:[#allocation5_spill] sm:$0xff] %v6642_v60  ;;  %vm6666_vm5 = vcmp.ne.s32.totalorder %v722_v28, 15  ;;  %vm6671_vm6 = vcmp.ne.s32.totalorder %v764_v49, 15  ;;  %vm6675_vm7 = vcmp.ne.s32.totalorder %v750_v12, 15  ;;  %vm6679_vm8 = vcmp.ne.s32.totalorder %v792_v0, 15 }
 0x16c   : > { %v778_v28 = vand.u32 15, %v640_v15  ;;  %v4320_v49 = vsel %vm6652_vm3, 1.0, %v6260_v47 }
 0x16e   : > { %vm6716_vm9 = vcmp.ne.s32.totalorder %v778_v28, 15 }
 0x1e2   : > { %v5254_v55 = vpop.f32.mrb[32].mxu1 }
 0x1e3   : > { %v2914_v38 = vadd.f32 %v5254_v55, %v2041_v62  ;;  %v5398_v53 = vpop.f32.mrb[32].mxu0  ;;  %v2753_v44 = vpop.f32.mrb[33].mxu1 }
 0x1e4   : > { %v2912_v24 = vadd.f32 %v2753_v44, %v2039_v63  ;;  %v3594_v48 = vpop.f32.mrb[33].mxu0  ;;  %v5255_v14 = vpop.f32.mrb[34].mxu1 }
 0x1e5   : > { %v3787_v50 = vadd.f32 %v5398_v53, %v2914_v38  ;;  %v2915_v62 = vadd.f32 %v6373_v57, %v5255_v14  ;;  %v5399_v63 = vpop.f32.mrb[34].mxu0  ;;  %v2756_v4 = vpop.f32.mrb[35].mxu1 }
 0x1e6   : > { %v3785_v20 = vadd.f32 %v3594_v48, %v2912_v24  ;;  %v3756_v19 = vmul.f32 %v5399_v63, %v4319_v40  ;;  %v2913_v42 = vadd.f32 %v6375_v37, %v2756_v4  ;;  %v3597_v59 = vpop.f32.mrb[35].mxu0  ;;  %v4321_v37 = vsel %vm6648_vm2, 1.0, %v6260_v47 }
 0x1e7   : > { %v3754_v57 = vmul.f32 %v4318_v21, %v3597_v59  ;;  %v3826_v0 = vadd.f32 %v6659_v39, %v3787_v50  ;;  %v646_v63 = vadd.s32 184, %v6453_v23 }
 0x1e8   : > { %v3824_v55 = vadd.f32 %v6659_v39, %v3785_v20  ;;  %v3788_v40 = vadd.f32 %v3756_v19, %v2915_v62 }
 0x1e9   : > { %v3786_v38 = vadd.f32 %v3754_v57, %v2913_v42  ;;  %v6723_v57 = vadd.s32 168, %v6453_v23 }
 0x1ea   : > { %v3827_v15 = vadd.f32 %v6659_v39, %v3788_v40  ;;  %v5258_v24 = vpop.f32.mrb[36].mxu1  ;;  %v4054_v4 = vmul.f32 %v3824_v55, %v3824_v55 }
 0x1eb   : > { %v3825_v21 = vadd.f32 %v6659_v39, %v3786_v38  ;;  %v2918_v16 = vadd.f32 %v5258_v24, %v6588_v11  ;;  %v5402_v6 = vpop.f32.mrb[36].mxu0  ;;  %v2769_v50 = vpop.f32.mrb[37].mxu1 }
 0x1ec   : > { %v4678_v20 = vpack.c.bf16 %v3827_v15, %v3826_v0  ;;  %v2916_v19 = vadd.f32 %v2769_v50, %v6591_v13  ;;  %v3610_v42 = vpop.f32.mrb[37].mxu0  ;;  %v5259_v59 = vpop.f32.mrb[38].mxu1  ;;  %v4056_v50 = vmul.f32 %v3826_v0, %v3826_v0 }
 0x1ed   : > { %v4673_v11 = vpack.c.bf16 %v3825_v21, %v3824_v55  ;;  %v4016_v40 = vadd.f32 %v3825_v21, %v3824_v55  ;;  %v4055_v38 = vmul.f32 %v3825_v21, %v3825_v21  ;;  %v3791_v24 = vadd.f32 %v5402_v6, %v2918_v16  ;;  %v5403_v28 = vpop.f32.mrb[38].mxu0  ;;  %v2772_v46 = vpop.f32.mrb[39].mxu1 }
 0x1ee   : > { %4765 = vst [vmem:[%s6712_s13 + $0x8] sm:$0xff] %v4678_v20   ;;  %v3789_v14 = vadd.f32 %v3610_v42, %v2916_v19  ;;  %v2919_v48 = vadd.f32 %v6385_v7, %v5259_v59  ;;  %v3760_v12 = vmul.f32 %v5403_v28, %v4321_v37  ;;  %v2917_v44 = vadd.f32 %v6388_v9, %v2772_v46  ;;  %v3613_v13 = vpop.f32.mrb[39].mxu0 }
 0x1ef   : > { %4674 = vst [vmem:[%s6712_s13] sm:$0xff] %v4673_v11   ;;  %v4086_v53 = vadd.f32 %v4055_v38, %v4054_v4  ;;  %v4017_v51 = vadd.f32 %v4016_v40, %v3826_v0  ;;  %v3758_v8 = vmul.f32 %v4320_v49, %v3613_v13  ;;  %v3830_v60 = vadd.f32 %v6659_v39, %v3791_v24 }
 0x1f0   : > { %v3828_v55 = vadd.f32 %v6659_v39, %v3789_v14  ;;  %v3792_v21 = vadd.f32 %v3760_v12, %v2919_v48  ;;  %v820_v16 = vand.u32 15, %v646_v63  ;;  %v4057_v6 = vmul.f32 %v3827_v15, %v3827_v15 }
 0x1f1   : > { %v4018_v20 = vadd.f32 %v4017_v51, %v3827_v15  ;;  %v4087_v19 = vadd.f32 %v4086_v53, %v4056_v50  ;;  %v3790_v42 = vadd.f32 %v3758_v8, %v2917_v44  ;;  %v4326_v46 = vsel %vm6716_vm9, 1.0, %v6260_v47 }
 0x1f2   : > { %v4058_v7 = vmul.f32 %v3828_v55, %v3828_v55  ;;  %v3831_v37 = vadd.f32 %v6659_v39, %v3792_v21  ;;  %v5262_v9 = vpop.f32.mrb[40].mxu1  ;;  %v806_v49 = vand.u32 15, %v6723_v57  ;;  %v4060_v8 = vmul.f32 %v3830_v60, %v3830_v60 }
 0x1f3   : > { %v4019_v0 = vadd.f32 %v4018_v20, %v3828_v55  ;;  %v4088_v4 = vadd.f32 %v4087_v19, %v4057_v6  ;;  %v3829_v14 = vadd.f32 %v6659_v39, %v3790_v42  ;;  %v2922_v12 = vadd.f32 %v5262_v9, %v6596_v18  ;;  %v5406_v51 = vpop.f32.mrb[40].mxu0  ;;  %v2785_v53 = vpop.f32.mrb[41].mxu1 }
 0x1f4   : > { %v4688_v44 = vpack.c.bf16 %v3831_v37, %v3830_v60  ;;  %v2920_v15 = vadd.f32 %v2785_v53, %v6599_v25  ;;  %v3626_v48 = vpop.f32.mrb[41].mxu0  ;;  %v5263_v63 = vpop.f32.mrb[42].mxu1  ;;  %vm6739_vm10 = vcmp.ne.s32.totalorder %v820_v16, 15  ;;  %v6972_v25 = vsel %vm6662_vm4, 1.0, %v6260_v47 }
 0x1f5   : > { %v4089_v57 = vadd.f32 %v4088_v4, %v4058_v7  ;;  %v4683_v11 = vpack.c.bf16 %v3829_v14, %v3828_v55  ;;  %v4020_v40 = vadd.f32 %v4019_v0, %v3829_v14  ;;  %v4059_v38 = vmul.f32 %v3829_v14, %v3829_v14  ;;  %v5407_v24 = vpop.f32.mrb[42].mxu0  ;;  %v2788_v28 = vpop.f32.mrb[43].mxu1 }
 0x1f6   : > { %4767 = vst [vmem:[%s6712_s13 + $0x18] sm:$0xff] %v4688_v44   ;;  %v3795_v18 = vadd.f32 %v5406_v51, %v2922_v12  ;;  %v3793_v13 = vadd.f32 %v3626_v48, %v2920_v15  ;;  %v2923_v50 = vadd.f32 %v6399_v17, %v5263_v63  ;;  %v3764_v21 = vmul.f32 %v5407_v24, %v6972_v25  ;;  %v3629_v16 = vpop.f32.mrb[43].mxu0 }
 0x1f7   : > { %4766 = vst [vmem:[%s6712_s13 + $0x10] sm:$0xff] %v4683_v11   ;;  %v4090_v6 = vadd.f32 %v4089_v57, %v4059_v38  ;;  %v4021_v20 = vadd.f32 %v4020_v40, %v3830_v60  ;;  %v2921_v55 = vadd.f32 %v6402_v30, %v2788_v28  ;;  %v6973_v19 = vsel %vm6666_vm5, 1.0, %v6260_v47 }
 0x1f8   : > { %v3762_v42 = vmul.f32 %v6973_v19, %v3629_v16  ;;  %v3834_v7 = vadd.f32 %v6659_v39, %v3795_v18  ;;  %v3832_v17 = vadd.f32 %v6659_v39, %v3793_v13  ;;  %v3796_v9 = vadd.f32 %v3764_v21, %v2923_v50 }
 0x1f9   : > { %v4329_v41 = vsel %vm6739_vm10, 1.0, %v6260_v47  ;;  %v4061_v0 = vmul.f32 %v3831_v37, %v3831_v37  ;;  %v4022_v4 = vadd.f32 %v4021_v20, %v3831_v37  ;;  %v4091_v14 = vadd.f32 %v4090_v6, %v4060_v8 }
 0x1fa   : > { %v3794_v60 = vadd.f32 %v3762_v42, %v2921_v55  ;;  %v4062_v12 = vmul.f32 %v3832_v17, %v3832_v17  ;;  %v3835_v30 = vadd.f32 %v6659_v39, %v3796_v9  ;;  %v5266_v32 = vpop.f32.mrb[44].mxu1  ;;  %vm6761_vm11 = vcmp.ne.s32.totalorder %v806_v49, 15 }
 0x1fb   : > { %v650_v53 = vadd.s32 216, %v6453_v23  ;;  %v4023_v44 = vadd.f32 %v4022_v4, %v3832_v17  ;;  %v4092_v15 = vadd.f32 %v4091_v14, %v4061_v0  ;;  %v2926_v63 = vadd.f32 %v5266_v32, %v6604_v61  ;;  %v5410_v37 = vpop.f32.mrb[44].mxu0  ;;  %v2801_v8 = vpop.f32.mrb[45].mxu1 }
 0x1fc   : > { %v3833_v48 = vadd.f32 %v6659_v39, %v3794_v60  ;;  %v4064_v57 = vmul.f32 %v3834_v7, %v3834_v7  ;;  %v4698_v11 = vpack.c.bf16 %v3835_v30, %v3834_v7  ;;  %v2924_v40 = vadd.f32 %v2801_v8, %v6607_v5  ;;  %v3642_v49 = vpop.f32.mrb[45].mxu0  ;;  %v5267_v38 = vpop.f32.mrb[46].mxu1 }
 0x1fd   : > { %v6770_v24 = vadd.s32 200, %v6453_v23  ;;  %v4093_v28 = vadd.f32 %v4092_v15, %v4062_v12  ;;  %v5411_v25 = vpop.f32.mrb[46].mxu0  ;;  %v2804_v21 = vpop.f32.mrb[47].mxu1  ;;  %v3799_v61 = vadd.f32 %v5410_v37, %v2926_v63  ;;  %v2927_v6 = vadd.f32 %v6413_v27, %v5267_v38 }
 0x1fe   : > { %v4693_v18 = vpack.c.bf16 %v3833_v48, %v3832_v17  ;;  %v4024_v13 = vadd.f32 %v4023_v44, %v3833_v48  ;;  %v4063_v50 = vmul.f32 %v3833_v48, %v3833_v48  ;;  %4769 = vst [vmem:[%s6712_s13 + $0x28] sm:$0xff] %v4698_v11   ;;  %v3797_v16 = vadd.f32 %v3642_v49, %v2924_v40  ;;  %v3645_v55 = vpop.f32.mrb[47].mxu0 }
 0x1ff   : > { %v6976_v5 = vsel %vm6671_vm6, 1.0, %v6260_v47  ;;  %v2925_v17 = vadd.f32 %v6416_v10, %v2804_v21  ;;  %v6977_v9 = vsel %vm6675_vm7, 1.0, %v6260_v47  ;;  %v3838_v4 = vadd.f32 %v6659_v39, %v3799_v61  ;;  %v6787_v10 = vld [vmem:[#allocation2 + $0x10] sm:$0xff] }
 0x200   : > { %v3768_v20 = vmul.f32 %v5411_v25, %v6976_v5  ;;  %4768 = vst [vmem:[%s6712_s13 + $0x20] sm:$0xff] %v4693_v18   ;;  %v4094_v19 = vadd.f32 %v4093_v28, %v4063_v50  ;;  %v4025_v42 = vadd.f32 %v4024_v13, %v3834_v7  ;;  %v3766_v0 = vmul.f32 %v6977_v9, %v3645_v55 }
 0x201   : > { %v3836_v27 = vadd.f32 %v6659_v39, %v3797_v16  ;;  %v848_v2 = vand.u32 15, %v650_v53  ;;  %v4065_v60 = vmul.f32 %v3835_v30, %v3835_v30  ;;  %v4328_v54 = vsel %vm6761_vm11, 1.0, %v6787_v10 }
 0x202   : > { %v3800_v14 = vadd.f32 %v3768_v20, %v2927_v6  ;;  %v4026_v12 = vadd.f32 %v4025_v42, %v3835_v30  ;;  %v4095_v32 = vadd.f32 %v4094_v19, %v4064_v57  ;;  %v3798_v44 = vadd.f32 %v3766_v0, %v2925_v17  ;;  %v5270_v48 = vpop.f32.mrb[48].mxu1 }
 0x203   : > { %v4066_v15 = vmul.f32 %v3836_v27, %v3836_v27  ;;  %v834_v63 = vand.u32 15, %v6770_v24  ;;  %v2930_v30 = vadd.f32 %v5270_v48, %v6611_v29  ;;  %v5414_v57 = vpop.f32.mrb[48].mxu0  ;;  %v2817_v11 = vpop.f32.mrb[49].mxu1  ;;  %v4068_v40 = vmul.f32 %v3838_v4, %v3838_v4 }
 0x204   : > { %v3839_v7 = vadd.f32 %v6659_v39, %v3800_v14  ;;  %v4027_v37 = vadd.f32 %v4026_v12, %v3836_v27  ;;  %v4096_v8 = vadd.f32 %v4095_v32, %v4065_v60  ;;  %v3837_v53 = vadd.f32 %v6659_v39, %v3798_v44  ;;  %v3658_v28 = vpop.f32.mrb[49].mxu0  ;;  %v5271_v18 = vpop.f32.mrb[50].mxu1 }
 0x205   : > { %v2928_v38 = vadd.f32 %v2817_v11, %v6619_v52  ;;  %vm6796_vm12 = vcmp.ne.s32.totalorder %v848_v2, 15  ;;  %v5415_v61 = vpop.f32.mrb[50].mxu0  ;;  %v2820_v16 = vpop.f32.mrb[51].mxu1  ;;  %v3803_v29 = vadd.f32 %v5414_v57, %v2930_v30  ;;  %v2931_v5 = vadd.f32 %v6424_v56, %v5271_v18 }
 0x206   : > { %v4708_v49 = vpack.c.bf16 %v3839_v7, %v3838_v4  ;;  %v4097_v24 = vadd.f32 %v4096_v8, %v4066_v15  ;;  %v4703_v50 = vpack.c.bf16 %v3837_v53, %v3836_v27  ;;  %v4028_v25 = vadd.f32 %v4027_v37, %v3837_v53  ;;  %v3661_v55 = vpop.f32.mrb[51].mxu0 }
 0x207   : > { %v4067_v21 = vmul.f32 %v3837_v53, %v3837_v53  ;;  %v3801_v6 = vadd.f32 %v3658_v28, %v2928_v38  ;;  %v6980_v52 = vsel %vm6679_vm8, 1.0, %v6260_v47  ;;  %v2929_v17 = vadd.f32 %v6426_v43, %v2820_v16 }
 0x208   : > { %4771 = vst [vmem:[%s6712_s13 + $0x38] sm:$0xff] %v4708_v49   ;;  %v3772_v20 = vmul.f32 %v5415_v61, %v6980_v52  ;;  %4770 = vst [vmem:[%s6712_s13 + $0x30] sm:$0xff] %v4703_v50   ;;  %v4029_v42 = vadd.f32 %v4028_v25, %v3838_v4  ;;  %v3770_v9 = vmul.f32 %v4326_v46, %v3661_v55  ;;  %v4331_v35 = vsel %vm6796_vm12, 1.0, %v6787_v10 }
 0x209   : > { %v4098_v19 = vadd.f32 %v4097_v24, %v4067_v21  ;;  %v3842_v0 = vadd.f32 %v6659_v39, %v3803_v29  ;;  %v3840_v56 = vadd.f32 %v6659_v39, %v3801_v6  ;;  %v4069_v14 = vmul.f32 %v3839_v7, %v3839_v7 }
 0x20a   : > { %v3804_v27 = vadd.f32 %v3772_v20, %v2931_v5  ;;  %v4030_v2 = vadd.f32 %v4029_v42, %v3839_v7  ;;  %v3802_v4 = vadd.f32 %v3770_v9, %v2929_v17  ;;  %v5274_v62 = vpop.f32.mrb[52].mxu1  ;;  %vm6818_vm13 = vcmp.ne.s32.totalorder %v834_v63, 15 }
 0x20b   : > { %v4099_v60 = vadd.f32 %v4098_v19, %v4068_v40  ;;  %v4070_v12 = vmul.f32 %v3840_v56, %v3840_v56  ;;  %v654_v46 = vadd.s32 248, %v6453_v23  ;;  %v2934_v37 = vadd.f32 %v5274_v62, %v6623_v36  ;;  %v5418_v7 = vpop.f32.mrb[52].mxu0  ;;  %v2833_v8 = vpop.f32.mrb[53].mxu1 }
 0x20c   : > { %v3843_v43 = vadd.f32 %v6659_v39, %v3804_v27  ;;  %v4031_v44 = vadd.f32 %v4030_v2, %v3840_v56  ;;  %v3841_v48 = vadd.f32 %v6659_v39, %v3802_v4  ;;  %v4072_v53 = vmul.f32 %v3842_v0, %v3842_v0  ;;  %v3674_v63 = vpop.f32.mrb[53].mxu0  ;;  %v5275_v11 = vpop.f32.mrb[54].mxu1 }
 0x20d   : > { %v4100_v15 = vadd.f32 %v4099_v60, %v4069_v14  ;;  %v2932_v57 = vadd.f32 %v2833_v8, %v6626_v31  ;;  %v6827_v40 = vadd.s32 232, %v6453_v23  ;;  %v5419_v24 = vpop.f32.mrb[54].mxu0  ;;  %v2836_v50 = vpop.f32.mrb[55].mxu1  ;;  %v3807_v36 = vadd.f32 %v5418_v7, %v2934_v37 }
 0x20e   : > { %v4718_v30 = vpack.c.bf16 %v3843_v43, %v3842_v0  ;;  %v4713_v38 = vpack.c.bf16 %v3841_v48, %v3840_v56  ;;  %v4032_v28 = vadd.f32 %v4031_v44, %v3841_v48  ;;  %v4071_v18 = vmul.f32 %v3841_v48, %v3841_v48  ;;  %v3677_v61 = vpop.f32.mrb[55].mxu0 }
 0x20f   : > { %v4101_v49 = vadd.f32 %v4100_v15, %v4070_v12  ;;  %v3805_v25 = vadd.f32 %v3674_v63, %v2932_v57  ;;  %v2935_v21 = vadd.f32 %v6433_v3, %v5275_v11  ;;  %v3776_v31 = vmul.f32 %v5419_v24, %v4329_v41 }
 0x210   : > { %4773 = vst [vmem:[%s6712_s13 + $0x48] sm:$0xff] %v4718_v30   ;;  %4772 = vst [vmem:[%s6712_s13 + $0x40] sm:$0xff] %v4713_v38   ;;  %v4033_v16 = vadd.f32 %v4032_v28, %v3842_v0  ;;  %v2933_v29 = vadd.f32 %v6435_v1, %v2836_v50  ;;  %v3774_v6 = vmul.f32 %v4328_v54, %v3677_v61  ;;  %v876_v59 = vand.u32 15, %v654_v46 }
 0x211   : > { %v4102_v23 = vadd.f32 %v4101_v49, %v4071_v18  ;;  %v3846_v5 = vadd.f32 %v6659_v39, %v3807_v36  ;;  %v3844_v3 = vadd.f32 %v6659_v39, %v3805_v25  ;;  %v3808_v52 = vadd.f32 %v3776_v31, %v2935_v21 }
 0x212   : > { %v4073_v20 = vmul.f32 %v3843_v43, %v3843_v43  ;;  %v4034_v55 = vadd.f32 %v4033_v16, %v3843_v43  ;;  %v3806_v19 = vadd.f32 %v3774_v6, %v2933_v29  ;;  %v5278_v9 = vpop.f32.mrb[56].mxu1  ;;  %v4330_v1 = vsel %vm6818_vm13, 1.0, %v6787_v10  ;;  %v6988_v29 = vld [vmem:[#allocation5_spill] sm:$0xff] }
 0x213   : > { %v4103_v41 = vadd.f32 %v4102_v23, %v4072_v53  ;;  %v4074_v42 = vmul.f32 %v3844_v3, %v3844_v3  ;;  %v3847_v17 = vadd.f32 %v6659_v39, %v3808_v52  ;;  %v862_v51 = vand.u32 15, %v6827_v40  ;;  %v5422_v14 = vpop.f32.mrb[56].mxu0  ;;  %v2849_v2 = vpop.f32.mrb[57].mxu1 }
 0x214   : > { %v4035_v54 = vadd.f32 %v4034_v55, %v3844_v3  ;;  %v3845_v56 = vadd.f32 %v6659_v39, %v3806_v19  ;;  %v2938_v27 = vadd.f32 %v5278_v9, %v6633_v34  ;;  %v4076_v60 = vmul.f32 %v3846_v5, %v3846_v5  ;;  %v3690_v43 = vpop.f32.mrb[57].mxu0  ;;  %v5279_v62 = vpop.f32.mrb[58].mxu1 }
 0x215   : > { %v4104_v0 = vadd.f32 %v4103_v41, %v4073_v20  ;;  %v4728_v4 = vpack.c.bf16 %v3847_v17, %v3846_v5  ;;  %v2936_v12 = vadd.f32 %v2849_v2, %v6639_v58  ;;  %vm6851_vm14 = vcmp.ne.s32.totalorder %v876_v59, 15  ;;  %v5423_v37 = vpop.f32.mrb[58].mxu0  ;;  %v2852_v7 = vpop.f32.mrb[59].mxu1 }
 0x216   : > { %v4723_v44 = vpack.c.bf16 %v3845_v56, %v3844_v3  ;;  %v4036_v15 = vadd.f32 %v4035_v54, %v3845_v56  ;;  %v4075_v48 = vmul.f32 %v3845_v56, %v3845_v56  ;;  %v3811_v34 = vadd.f32 %v5422_v14, %v2938_v27  ;;  %v3693_v30 = vpop.f32.mrb[59].mxu0  ;;  %v6989_v54 = vld [vmem:[#allocation3_spill] sm:$0xff] }
 0x217   : > { %v4105_v46 = vadd.f32 %v4104_v0, %v4074_v42  ;;  %4775 = vst [vmem:[%s6712_s13 + $0x58] sm:$0xff] %v4728_v4   ;;  %v3809_v8 = vadd.f32 %v3690_v43, %v2936_v12  ;;  %v2939_v53 = vadd.f32 %v6441_v22, %v5279_v62  ;;  %v3780_v58 = vmul.f32 %v5423_v37, %v4331_v35 }
 0x218   : > { %4774 = vst [vmem:[%s6712_s13 + $0x50] sm:$0xff] %v4723_v44   ;;  %v4037_v63 = vadd.f32 %v4036_v15, %v3846_v5  ;;  %v2937_v11 = vadd.f32 %v6443_v26, %v2852_v7  ;;  %v3778_v40 = vmul.f32 %v4330_v1, %v3693_v30  ;;  %v3850_v49 = vadd.f32 %v6659_v39, %v3811_v34 }
 0x219   : > { %v4106_v57 = vadd.f32 %v4105_v46, %v4075_v48  ;;  %v3848_v38 = vadd.f32 %v6659_v39, %v3809_v8  ;;  %v3812_v28 = vadd.f32 %v3780_v58, %v2939_v53  ;;  %vm6865_vm0 = vcmp.ne.s32.totalorder %v862_v51, 15 }
 0x21a   : > { %v4077_v22 = vmul.f32 %v3847_v17, %v3847_v17  ;;  %v4038_v13 = vadd.f32 %v4037_v63, %v3847_v17  ;;  %v3810_v35 = vadd.f32 %v3778_v40, %v2937_v11  ;;  %v5282_v25 = vpop.f32.mrb[60].mxu1  ;;  %v6987_v26 = vsel %vm6547_vm15, 1.0, %v6260_v47 }
 0x21b   : > { %v4107_v24 = vadd.f32 %v4106_v57, %v4076_v60  ;;  %v4078_v50 = vmul.f32 %v3848_v38, %v3848_v38  ;;  %v3851_v36 = vadd.f32 %v6659_v39, %v3812_v28  ;;  %v2067_v21 = vmul.f32 %v6447_v45, %v6987_v26  ;;  %v5426_v5 = vpop.f32.mrb[60].mxu0  ;;  %v2865_v3 = vpop.f32.mrb[61].mxu1  ;;  %v6990_v60 = vld [vmem:[#allocation4_spill] sm:$0xff] }
 0x21c   : > { %v4333_v31 = vsel %vm6851_vm14, 1.0, %v6787_v10  ;;  %v4039_v61 = vadd.f32 %v4038_v13, %v3848_v38  ;;  %v3849_v16 = vadd.f32 %v6659_v39, %v3810_v35  ;;  %v2942_v6 = vadd.f32 %v5282_v25, %v6988_v29  ;;  %v3706_v47 = vpop.f32.mrb[61].mxu0  ;;  %v5283_v20 = vpop.f32.mrb[62].mxu1 }
 0x21d   : > { %v4108_v23 = vadd.f32 %v4107_v24, %v4077_v22  ;;  %v4080_v52 = vmul.f32 %v3850_v49, %v3850_v49  ;;  %v4738_v59 = vpack.c.bf16 %v3851_v36, %v3850_v49  ;;  %v2940_v33 = vadd.f32 %v2865_v3, %v2067_v21  ;;  %v5427_v17 = vpop.f32.mrb[62].mxu0  ;;  %v2868_v9 = vpop.f32.mrb[63].mxu1 }
 0x21e   : > { %v4332_v45 = vsel %vm6865_vm0, 1.0, %v6787_v10  ;;  %v4733_v41 = vpack.c.bf16 %v3849_v16, %v3848_v38  ;;  %v4040_v19 = vadd.f32 %v4039_v61, %v3849_v16  ;;  %v4079_v42 = vmul.f32 %v3849_v16, %v3849_v16  ;;  %v3709_v27 = vpop.f32.mrb[63].mxu0 }
 0x21f   : > { %v4109_v55 = vadd.f32 %v4108_v23, %v4078_v50  ;;  %4777 = vst [vmem:[%s6712_s13 + $0x68] sm:$0xff] %v4738_v59   ;;  %v3815_v1 = vadd.f32 %v5426_v5, %v2942_v6  ;;  %v3813_v51 = vadd.f32 %v3706_v47, %v2940_v33  ;;  %v2943_v0 = vadd.f32 %v6989_v54, %v5283_v20 }
 0x220   : > { %v3784_v56 = vmul.f32 %v5427_v17, %v4333_v31  ;;  %4776 = vst [vmem:[%s6712_s13 + $0x60] sm:$0xff] %v4733_v41   ;;  %v4041_v2 = vadd.f32 %v4040_v19, %v3850_v49  ;;  %v2941_v4 = vadd.f32 %v6990_v60, %v2868_v9  ;;  %v3782_v12 = vmul.f32 %v4332_v45, %v3709_v27 }
 0x221   : > { %v4110_v14 = vadd.f32 %v4109_v55, %v4079_v42  ;;  %v3852_v10 = vadd.f32 %v6659_v39, %v3813_v51  ;;  %v4081_v62 = vmul.f32 %v3851_v36, %v3851_v36  ;;  %v3854_v15 = vadd.f32 %v6659_v39, %v3815_v1 }
 0x222   : > { %v3816_v43 = vadd.f32 %v3784_v56, %v2943_v0  ;;  %v4042_v32 = vadd.f32 %v4041_v2, %v3851_v36  ;;  %v3814_v44 = vadd.f32 %v3782_v12, %v2941_v4 }
 0x223   : > { %v4111_v46 = vadd.f32 %v4110_v14, %v4080_v52  ;;  %v4082_v48 = vmul.f32 %v3852_v10, %v3852_v10  ;;  %v4084_v11 = vmul.f32 %v3854_v15, %v3854_v15 }
 0x224   : > { %v3855_v37 = vadd.f32 %v6659_v39, %v3816_v43  ;;  %v4043_v7 = vadd.f32 %v4042_v32, %v3852_v10  ;;  %v3853_v8 = vadd.f32 %v6659_v39, %v3814_v44 }
 0x225   : > { %v4112_v34 = vadd.f32 %v4111_v46, %v4081_v62 }
 0x226   : > { %v4748_v53 = vpack.c.bf16 %v3855_v37, %v3854_v15  ;;  %v4743_v30 = vpack.c.bf16 %v3853_v8, %v3852_v10  ;;  %v4044_v57 = vadd.f32 %v4043_v7, %v3853_v8  ;;  %v4083_v63 = vmul.f32 %v3853_v8, %v3853_v8 }
 0x227   : > { %v4113_v58 = vadd.f32 %v4112_v34, %v4082_v48  ;;  %v4085_v38 = vmul.f32 %v3855_v37, %v3855_v37 }
 0x228   : > { %4779 = vst [vmem:[%s6712_s13 + $0x78] sm:$0xff] %v4748_v53   ;;  %4778 = vst [vmem:[%s6712_s13 + $0x70] sm:$0xff] %v4743_v30   ;;  %v4045_v40 = vadd.f32 %v4044_v57, %v3854_v15 }
 0x229   : > { %v4114_v49 = vadd.f32 %v4113_v58, %v4083_v63 }
 0x22a   : > { %v4046_v28 = vadd.f32 %v4045_v40, %v3855_v37 }
 0x22b   : > { %v4115_v18 = vadd.f32 %v4114_v49, %v4084_v11 }
 0x22c   : > { %v4047_v22 = vrot.slane %v4046_v28, 4 }
 0x22d   : > { %v4116_v13 = vadd.f32 %v4115_v18, %v4085_v38 }
 0x22e   : > { %v4048_v24 = vadd.f32 %v4047_v22, %v4046_v28 }
 0x22f   : > { %v4117_v35 = vrot.slane %v4116_v13, 4 }
 0x230   : > { %v4049_v50 = vrot.slane %v4048_v24, 2 }
 0x231   : > { %v4118_v39 = vadd.f32 %v4117_v35, %v4116_v13 }
 0x232   : > { %v4050_v36 = vadd.f32 %v4049_v50, %v4048_v24 }
 0x233   : > { %v4119_v25 = vrot.slane %v4118_v39, 2 }
 0x234   : > { %v4051_v26 = vrot.slane %v4050_v36, 1 }
 0x235   : > { %v4120_v21 = vadd.f32 %v4119_v25, %v4118_v39 }
 0x236   : > { %v4052_v31 = vadd.f32 %v4051_v26, %v4050_v36 }
 0x237   : > { %v4121_v61 = vrot.slane %v4120_v21, 1 }
 0x238   : > { %4053 = vst [vmem:[%s491_s16] sm:$0x1] %v4052_v31 }
 0x239   : > { %v4122_v23 = vadd.f32 %v4121_v61, %v4120_v21 }
 0x23b   : > { %4123 = vst [vmem:[%s491_s16 + $0x1] sm:$0x1] %v4122_v23 }
 0x23c PF: > { %s19_s27 = sadd.s32 1, %s5773_s27   ;;  %s6991_s26 = smov %s5769_s2 }
 0x23d   : > { %p16_p5 = scmp.ge.s32.totalorder %s19_s27, 4   ;;  %s6992_s2 = smov %s6994_s5 }
 0x23f   :  { %18 = sbr.rel (!%p16_p5) target bundleno = 2 (0x2), region = 120 }

// kernel: nlff_up_forward.8
= control target key start
LH: loop header
LB: loop body
LE: loop exit
PB: predicated region body
PF: predicated region fallthrough
CT: control target
= control target key end

     0   :  { %s4679_s24 = smov 0   ;;  %s4681_s25 = smov 0   ;;  %s6202_s0 = inlined_call_operand.vmem [shape: bf16[2,256,128], index: 0, kind: input, shape index: {}]   ;;  %s6203_s1 = inlined_call_operand.vmem [shape: bf16[2,256,256], index: 1, kind: input, shape index: {}]   ;;  %s6204_s2 = inlined_call_operand.vmem [shape: bf16[128,128], index: 2, kind: input, shape index: {}]   ;;  %s6205_s3 = inlined_call_operand.vmem [shape: f32[1,128], index: 3, kind: input, shape index: {}]   ;;  %s6206_s4 = inlined_call_operand.vmem [shape: bf16[128,128], index: 4, kind: input, shape index: {}]   ;;  %s6207_s5 = inlined_call_operand.vmem [shape: f32[1,128], index: 5, kind: input, shape index: {}]   ;;  %s6208_s6 = inlined_call_operand.vmem [shape: f32[1,8,256], index: 6, kind: input, shape index: {}]   ;;  %s6209_s7 = inlined_call_operand.vmem [shape: bf16[2,256,128], index: 7, kind: output, shape index: {}]  }
   0x1   :  { %s4683_s26 = smov 0  }
   0x2 LB: > { %s36_s27 = sadd.s32 1, %s4630_s25  ;;  %p3627_p0 = scmp.ge.s32.totalorder %s4634_s26, 1  ;;  %s4634_s26 = sphi %s4683_s26, %s17_s26   ;;  %s4630_s25 = sphi %s4681_s25, %s6516_s25   ;;  %s4626_s24 = sphi %s4679_s24, %s6515_s24  }
   0x3   : > { %p38_p1 = scmp.ge.s32.totalorder %s36_s27, 2  ;;  %p293_p2 = scmp.lt.s32.totalorder %s4634_s26, 3 }
   0x5   : > { %s6518_s27 = smov (%p38_p1, %s36_s27), 0  ;;  %p294_p3 = pnand %p3627_p0, %p293_p2 }
   0x7   : > { %297 = sbr.rel (%p294_p3) target bundleno = 1522 (0x5f2), region = 48 }
   0xe   : > { %v4292_v0 = vld [vmem:[%s6204_s2] sm:$0xff]   ;;  %p349_p4 = scmp.lt.s32.totalorder %s4626_s24, 1  ;;  %v4293_v1 = vld [vmem:[%s6204_s2 + $0x8] sm:$0xff]   ;;  %v4294_v2 = vld [vmem:[%s6204_s2 + $0x10] sm:$0xff]   ;;  %vm781_vm0 = vcmask 7168  }
   0xf   : > { %4151 = vmatprep.subr.bf16.mxu0 %v4292_v0  ;;  %v4295_v3 = vld [vmem:[%s6204_s2 + $0x18] sm:$0xff]   ;;  %v4296_v5 = vld [vmem:[%s6204_s2 + $0x20] sm:$0xff]   ;;  %v4297_v6 = vld [vmem:[%s6204_s2 + $0x28] sm:$0xff]  }
  0x10   : > { %s6520_s24 = smov (!%p349_p4, %s4626_s24), 1  ;;  %4152 = vmatpush3.bf16.msra.mxu0 %v4292_v0  ;;  %v4298_v7 = vld [vmem:[%s6204_s2 + $0x30] sm:$0xff]   ;;  %v4299_v8 = vld [vmem:[%s6204_s2 + $0x38] sm:$0xff]   ;;  %v4772_v41 = vld [vmem:[%s6205_s3] ss:$0 sm:$0xff] }
  0x11   : > { %4153 = vmatprep.subr.bf16.mxu0 %v4293_v1  ;;  %s3734_s11 = sshll.u32 %s6520_s24, 7  ;;  %s3735_s21 = sshll.u32 %s6520_s24, 8 }
  0x12   : > { %s4714_s14 = scalar_lea.vmem %s6202_s0, %s3734_s11  ;;  %s4733_s30 = scalar_lea.vmem %s6203_s1, %s3735_s21 }
  0x13   : > { %v4300_v4 = vld [vmem:[%s4714_s14] sm:$0xff]   ;;  %v4318_v11 = vld [vmem:[%s4733_s30 + $0x90] ss:$8 sps:$4 sm:$0xff]   ;;  %v4301_v12 = vld [vmem:[%s4714_s14 + $0x8] sm:$0xff]   ;;  %s6133_s19 = scalar_lea.vmem %s6209_s7, %s3734_s11 }
  0x14   : > { %4154 = vmatpush3.bf16.msra.mxu0 %v4293_v1  ;;  %4167 = vmatprep.mubr.bf16.mxu0 %v4300_v4  ;;  %v4316_v9 = vld [vmem:[%s4733_s30 + $0x80] ss:$8 sps:$4 sm:$0xff]   ;;  %v4302_v13 = vld [vmem:[%s4714_s14 + $0x10] sm:$0xff]   ;;  %v4303_v16 = vld [vmem:[%s4714_s14 + $0x18] sm:$0xff]  }
  0x15   : > { %4155 = vmatprep.subr.bf16.mxu0 %v4294_v2  ;;  %v4317_v10 = vld [vmem:[%s4733_s30] ss:$8 sps:$4 sm:$0xff]   ;;  %3967 = vmatprep.subr.bf16.mxu1 %v4316_v9  ;;  %v4319_v14 = vld [vmem:[%s4733_s30 + $0x10] ss:$8 sps:$4 sm:$0xff]  }
  0x16   : > { %3968 = vmatpush3.bf16.xpose.msra.mxu1 %v4317_v10  ;;  %v4320_v15 = vld [vmem:[%s4733_s30 + $0xa0] ss:$8 sps:$4 sm:$0xff]   ;;  %v4322_v19 = vld [vmem:[%s4733_s30 + $0xb0] ss:$8 sps:$4 sm:$0xff]  }
  0x17   : > { %3969 = vmatprep.subr.bf16.mxu1 %v4318_v11  ;;  %v4304_v17 = vld [vmem:[%s4714_s14 + $0x20] sm:$0xff]   ;;  %v4305_v20 = vld [vmem:[%s4714_s14 + $0x28] sm:$0xff]   ;;  %v4306_v21 = vld [vmem:[%s4714_s14 + $0x30] sm:$0xff]  }
  0x18   : > { %4156 = vmatpush3.bf16.msra.mxu0 %v4294_v2  ;;  %v4321_v18 = vld [vmem:[%s4733_s30 + $0x20] ss:$8 sps:$4 sm:$0xff]   ;;  %v4323_v22 = vld [vmem:[%s4733_s30 + $0x30] ss:$8 sps:$4 sm:$0xff]  }
  0x19   : > { %4157 = vmatprep.subr.bf16.mxu0 %v4295_v3  ;;  %v4324_v23 = vld [vmem:[%s4733_s30 + $0xc0] ss:$8 sps:$4 sm:$0xff]   ;;  %v4307_v24 = vld [vmem:[%s4714_s14 + $0x38] sm:$0xff]   ;;  %v4310_v29 = vld [vmem:[%s4714_s14 + $0x50] sm:$0xff]  }
  0x1a   : > { %v4308_v25 = vld [vmem:[%s4714_s14 + $0x40] sm:$0xff]   ;;  %v4326_v27 = vld [vmem:[%s4733_s30 + $0xd0] ss:$8 sps:$4 sm:$0xff]   ;;  %v4309_v28 = vld [vmem:[%s4714_s14 + $0x48] sm:$0xff]  }
  0x1b   : > { %v4325_v26 = vld [vmem:[%s4733_s30 + $0x40] ss:$8 sps:$4 sm:$0xff]   ;;  %v4327_v30 = vld [vmem:[%s4733_s30 + $0x50] ss:$8 sps:$4 sm:$0xff]  }
  0x1c   : > { %4158 = vmatpush3.bf16.msra.mxu0 %v4295_v3  ;;  %v4328_v31 = vld [vmem:[%s4733_s30 + $0xe0] ss:$8 sps:$4 sm:$0xff]   ;;  %v4311_v32 = vld [vmem:[%s4714_s14 + $0x58] sm:$0xff]   ;;  %v4314_v36 = vld [vmem:[%s4714_s14 + $0x70] sm:$0xff]  }
  0x1d   : > { %4159 = vmatprep.subr.bf16.mxu0 %v4296_v5  ;;  %v4312_v33 = vld [vmem:[%s4714_s14 + $0x60] sm:$0xff]   ;;  %v4313_v35 = vld [vmem:[%s4714_s14 + $0x68] sm:$0xff]   ;;  %v4315_v37 = vld [vmem:[%s4714_s14 + $0x78] sm:$0xff]  }
  0x1e   : > { %3970 = vmatpush3.bf16.xpose.msra.mxu1 %v4319_v14  ;;  %v4329_v34 = vld [vmem:[%s4733_s30 + $0x60] ss:$8 sps:$4 sm:$0xff]   ;;  %v4330_v38 = vld [vmem:[%s4733_s30 + $0xf0] ss:$8 sps:$4 sm:$0xff]  }
  0x1f   : > { %3971 = vmatprep.subr.bf16.mxu1 %v4320_v15  ;;  %v4331_v39 = vld [vmem:[%s4733_s30 + $0x70] ss:$8 sps:$4 sm:$0xff]  }
  0x20   : > { %4160 = vmatpush3.bf16.msra.mxu0 %v4296_v5 }
  0x21   : > { %4161 = vmatprep.subr.bf16.mxu0 %v4297_v6 }
  0x24   : > { %4162 = vmatpush3.bf16.msra.mxu0 %v4297_v6 }
  0x25   : > { %4163 = vmatprep.subr.bf16.mxu0 %v4298_v7 }
  0x26   : > { %3972 = vmatpush3.bf16.xpose.msra.mxu1 %v4321_v18 }
  0x27   : > { %3973 = vmatprep.subr.bf16.mxu1 %v4322_v19 }
  0x28   : > { %4164 = vmatpush3.bf16.msra.mxu0 %v4298_v7 }
  0x29   : > { %4165 = vmatprep.subr.bf16.mxu0 %v4299_v8 }
  0x2c   : > { %4166 = vmatpush3.bf16.msra.mxu0 %v4299_v8 }
  0x2e   : > { %3974 = vmatpush3.bf16.xpose.msra.mxu1 %v4323_v22 }
  0x2f   : > { %4168 = vmatmul.mubr.bf16.vlgmr.msra.gmra.mrb[0].mxu0 %v4301_v12  ;;  %3975 = vmatprep.subr.bf16.mxu1 %v4324_v23 }
  0x30   : > { %4171 = vmatprep.mubr.bf16.mxu0 %v4302_v13 }
  0x36   : > { %3976 = vmatpush3.bf16.xpose.msra.mxu1 %v4325_v26 }
  0x37   : > { %4172 = vmatmul.mubr.bf16.gmra.mrb[4].mxu0 %v4303_v16  ;;  %3977 = vmatprep.subr.bf16.mxu1 %v4326_v27 }
  0x38   : > { %4175 = vmatprep.mubr.bf16.mxu0 %v4304_v17 }
  0x3e   : > { %3978 = vmatpush3.bf16.xpose.msra.mxu1 %v4327_v30 }
  0x3f   : > { %4176 = vmatmul.mubr.bf16.gmra.mrb[8].mxu0 %v4305_v20  ;;  %3979 = vmatprep.subr.bf16.mxu1 %v4328_v31 }
  0x40   : > { %4179 = vmatprep.mubr.bf16.mxu0 %v4306_v21 }
  0x46   : > { %3980 = vmatpush3.bf16.xpose.msra.mxu1 %v4329_v34 }
  0x47   : > { %4180 = vmatmul.mubr.bf16.gmra.mrb[12].mxu0 %v4307_v24  ;;  %3981 = vmatprep.subr.bf16.mxu1 %v4330_v38 }
  0x48   : > { %4183 = vmatprep.mubr.bf16.mxu0 %v4308_v25 }
  0x4e   : > { %3982 = vmatpush3.bf16.xpose.msra.mxu1 %v4331_v39 }
  0x4f   : > { %4184 = vmatmul.mubr.bf16.gmra.mrb[16].mxu0 %v4309_v28 }
  0x50   : > { %4187 = vmatprep.mubr.bf16.mxu0 %v4310_v29 }
  0x57   : > { %4188 = vmatmul.mubr.bf16.gmra.mrb[20].mxu0 %v4311_v32 }
  0x58   : > { %4191 = vmatprep.mubr.bf16.mxu0 %v4312_v33 }
  0x5f   : > { %4192 = vmatmul.mubr.bf16.gmra.mrb[24].mxu0 %v4313_v35 }
  0x60   : > { %4195 = vmatprep.mubr.bf16.mxu0 %v4314_v36 }
  0x67   : > { %4196 = vmatmul.mubr.bf16.gmra.mrb[28].mxu0 %v4315_v37 }
 0x102   : > { %v4169_v40 = vpop.f32.mrb[0].mxu0 }
 0x103   : > { %v622_v42 = vpop.f32.mrb[1].mxu0  ;;  %v631_v44 = vadd.f32 %v4169_v40, %v4772_v41 }
 0x104   : > { %v4170_v43 = vpop.f32.mrb[2].mxu0  ;;  %v623_v47 = vadd.f32 %v4772_v41, %v622_v42 }
 0x105   : > { %v634_v45 = vadd.f32 %v4170_v43, %v4772_v41  ;;  %v625_v46 = vpop.f32.mrb[3].mxu0 }
 0x106   : > { %v626_v48 = vadd.f32 %v4772_v41, %v625_v46 }
 0x107   : > { %v750_v49 = vpack.c.bf16 %v634_v45, %v631_v44 }
 0x108   : > { %v749_v50 = vpack.c.bf16 %v626_v48, %v623_v47 }
 0x10a   : > { %3983 = vmatprep.mubr.bf16.mxu1 %v749_v50  ;;  %v4173_v51 = vpop.f32.mrb[4].mxu0 }
 0x10b   : > { %3984 = vmatmul.mubr.bf16.vlgmr.msra.gmra.mrb[0].mxu1 %v749_v50  ;;  %v647_v52 = vadd.f32 %v4173_v51, %v4772_v41  ;;  %v638_v53 = vpop.f32.mrb[5].mxu0 }
 0x10c   : > { %3985 = vmatprep.mubr.bf16.mxu1 %v750_v49  ;;  %v639_v54 = vadd.f32 %v4772_v41, %v638_v53  ;;  %v4174_v55 = vpop.f32.mrb[6].mxu0 }
 0x10d   : > { %v650_v56 = vadd.f32 %v4174_v55, %v4772_v41  ;;  %v641_v57 = vpop.f32.mrb[7].mxu0 }
 0x10e   : > { %v642_v58 = vadd.f32 %v4772_v41, %v641_v57 }
 0x10f   : > { %v752_v59 = vpack.c.bf16 %v650_v56, %v647_v52 }
 0x110   : > { %v751_v60 = vpack.c.bf16 %v642_v58, %v639_v54 }
 0x112   : > { %v4177_v61 = vpop.f32.mrb[8].mxu0 }
 0x113   : > { %3986 = vmatmul.mubr.bf16.gmra.mrb[4].mxu1 %v750_v49  ;;  %v663_v62 = vadd.f32 %v4177_v61, %v4772_v41  ;;  %v654_v63 = vpop.f32.mrb[9].mxu0 }
 0x114   : > { %3987 = vmatprep.mubr.bf16.mxu1 %v751_v60  ;;  %v655_v0 = vadd.f32 %v4772_v41, %v654_v63  ;;  %v4178_v1 = vpop.f32.mrb[10].mxu0  ;;  %v4636_v63 = vmov -1e+30  }
 0x115   : > { %v666_v2 = vadd.f32 %v4178_v1, %v4772_v41  ;;  %v657_v3 = vpop.f32.mrb[11].mxu0  ;;  %782 = vst.msk [vmem:[#allocation3] sm:$0xff] %vm781_vm0, %v4636_v63  ;;  %783 = vst.msk [vmem:[#allocation3 + $0x8] sm:$0xff] %vm781_vm0, %v4636_v63 }
 0x116   : > { %v658_v4 = vadd.f32 %v4772_v41, %v657_v3  ;;  %784 = vst.msk [vmem:[#allocation3 + $0x10] sm:$0xff] %vm781_vm0, %v4636_v63  ;;  %785 = vst.msk [vmem:[#allocation3 + $0x18] sm:$0xff] %vm781_vm0, %v4636_v63 }
 0x117   : > { %v754_v5 = vpack.c.bf16 %v666_v2, %v663_v62  ;;  %786 = vst.msk [vmem:[#allocation3 + $0x20] sm:$0xff] %vm781_vm0, %v4636_v63  ;;  %787 = vst.msk [vmem:[#allocation3 + $0x28] sm:$0xff] %vm781_vm0, %v4636_v63 }
 0x118   : > { %v753_v6 = vpack.c.bf16 %v658_v4, %v655_v0  ;;  %788 = vst.msk [vmem:[#allocation3 + $0x30] sm:$0xff] %vm781_vm0, %v4636_v63  ;;  %789 = vst.msk [vmem:[#allocation3 + $0x38] sm:$0xff] %vm781_vm0, %v4636_v63 }
 0x119   : > { %790 = vst.msk [vmem:[#allocation3 + $0x40] sm:$0xff] %vm781_vm0, %v4636_v63  ;;  %791 = vst.msk [vmem:[#allocation3 + $0x48] sm:$0xff] %vm781_vm0, %v4636_v63 }
 0x11a   : > { %v4181_v7 = vpop.f32.mrb[12].mxu0  ;;  %792 = vst.msk [vmem:[#allocation3 + $0x50] sm:$0xff] %vm781_vm0, %v4636_v63  ;;  %793 = vst.msk [vmem:[#allocation3 + $0x58] sm:$0xff] %vm781_vm0, %v4636_v63 }
 0x11b   : > { %3988 = vmatmul.mubr.bf16.gmra.mrb[8].mxu1 %v751_v60  ;;  %v679_v8 = vadd.f32 %v4181_v7, %v4772_v41  ;;  %v670_v9 = vpop.f32.mrb[13].mxu0  ;;  %v958_v60 = vld [vmem:[%s6208_s6] ss:$8 sm:$0x3]  ;;  %794 = vst.msk [vmem:[#allocation3 + $0x60] sm:$0xff] %vm781_vm0, %v4636_v63  ;;  %795 = vst.msk [vmem:[#allocation3 + $0x68] sm:$0xff] %vm781_vm0, %v4636_v63 }
 0x11c   : > { %3989 = vmatprep.mubr.bf16.mxu1 %v752_v59  ;;  %v671_v10 = vadd.f32 %v4772_v41, %v670_v9  ;;  %v4182_v11 = vpop.f32.mrb[14].mxu0  ;;  %796 = vst.msk [vmem:[#allocation3 + $0x70] sm:$0xff] %vm781_vm0, %v4636_v63  ;;  %797 = vst.msk [vmem:[#allocation3 + $0x78] sm:$0xff] %vm781_vm0, %v4636_v63 }
 0x11d   : > { %v682_v12 = vadd.f32 %v4182_v11, %v4772_v41  ;;  %v673_v13 = vpop.f32.mrb[15].mxu0  ;;  %798 = vst.msk [vmem:[#allocation3 + $0x80] sm:$0xff] %vm781_vm0, %v4636_v63  ;;  %799 = vst.msk [vmem:[#allocation3 + $0x88] sm:$0xff] %vm781_vm0, %v4636_v63 }
 0x11e   : > { %v674_v14 = vadd.f32 %v4772_v41, %v673_v13  ;;  %800 = vst.msk [vmem:[#allocation3 + $0x90] sm:$0xff] %vm781_vm0, %v4636_v63  ;;  %801 = vst.msk [vmem:[#allocation3 + $0x98] sm:$0xff] %vm781_vm0, %v4636_v63 }
 0x11f   : > { %v756_v15 = vpack.c.bf16 %v682_v12, %v679_v8  ;;  %802 = vst.msk [vmem:[#allocation3 + $0xa0] sm:$0xff] %vm781_vm0, %v4636_v63  ;;  %803 = vst.msk [vmem:[#allocation3 + $0xa8] sm:$0xff] %vm781_vm0, %v4636_v63 }
 0x120   : > { %v755_v16 = vpack.c.bf16 %v674_v14, %v671_v10  ;;  %804 = vst.msk [vmem:[#allocation3 + $0xb0] sm:$0xff] %vm781_vm0, %v4636_v63  ;;  %805 = vst.msk [vmem:[#allocation3 + $0xb8] sm:$0xff] %vm781_vm0, %v4636_v63 }
 0x121   : > { %806 = vst.msk [vmem:[#allocation3 + $0xc0] sm:$0xff] %vm781_vm0, %v4636_v63  ;;  %807 = vst.msk [vmem:[#allocation3 + $0xc8] sm:$0xff] %vm781_vm0, %v4636_v63 }
 0x122   : > { %v4185_v17 = vpop.f32.mrb[16].mxu0  ;;  %808 = vst.msk [vmem:[#allocation3 + $0xd0] sm:$0xff] %vm781_vm0, %v4636_v63  ;;  %809 = vst.msk [vmem:[#allocation3 + $0xd8] sm:$0xff] %vm781_vm0, %v4636_v63 }
 0x123   : > { %3990 = vmatmul.mubr.bf16.gmra.mrb[12].mxu1 %v752_v59  ;;  %v695_v18 = vadd.f32 %v4185_v17, %v4772_v41  ;;  %v686_v19 = vpop.f32.mrb[17].mxu0  ;;  %810 = vst.msk [vmem:[#allocation3 + $0xe0] sm:$0xff] %vm781_vm0, %v4636_v63  ;;  %811 = vst.msk [vmem:[#allocation3 + $0xe8] sm:$0xff] %vm781_vm0, %v4636_v63 }
 0x124   : > { %3991 = vmatprep.mubr.bf16.mxu1 %v753_v6  ;;  %v687_v20 = vadd.f32 %v4772_v41, %v686_v19  ;;  %v4186_v21 = vpop.f32.mrb[18].mxu0  ;;  %812 = vst.msk [vmem:[#allocation3 + $0xf0] sm:$0xff] %vm781_vm0, %v4636_v63  ;;  %813 = vst.msk [vmem:[#allocation3 + $0xf8] sm:$0xff] %vm781_vm0, %v4636_v63 }
 0x125   : > { %v698_v22 = vadd.f32 %v4186_v21, %v4772_v41  ;;  %v689_v23 = vpop.f32.mrb[19].mxu0 }
 0x126   : > { %v690_v24 = vadd.f32 %v4772_v41, %v689_v23 }
 0x127   : > { %v758_v25 = vpack.c.bf16 %v698_v22, %v695_v18 }
 0x128   : > { %v757_v26 = vpack.c.bf16 %v690_v24, %v687_v20 }
 0x12a   : > { %v4189_v27 = vpop.f32.mrb[20].mxu0 }
 0x12b   : > { %3992 = vmatmul.mubr.bf16.gmra.mrb[16].mxu1 %v753_v6  ;;  %v711_v28 = vadd.f32 %v4189_v27, %v4772_v41  ;;  %v702_v29 = vpop.f32.mrb[21].mxu0 }
 0x12c   : > { %3993 = vmatprep.mubr.bf16.mxu1 %v754_v5  ;;  %v703_v30 = vadd.f32 %v4772_v41, %v702_v29  ;;  %v4190_v31 = vpop.f32.mrb[22].mxu0 }
 0x12d   : > { %v714_v32 = vadd.f32 %v4190_v31, %v4772_v41  ;;  %v705_v33 = vpop.f32.mrb[23].mxu0 }
 0x12e   : > { %v706_v34 = vadd.f32 %v4772_v41, %v705_v33 }
 0x12f   : > { %v760_v35 = vpack.c.bf16 %v714_v32, %v711_v28 }
 0x130   : > { %v759_v36 = vpack.c.bf16 %v706_v34, %v703_v30  ;;  %v4637_v30 = vmov 0  }
 0x131   : > { %4290 = vset.pattern.permute.xlu0 %v4637_v30  ;;  %4291 = vset.pattern.permute.xlu1 %v4637_v30 }
 0x132   : > { %v4193_v37 = vpop.f32.mrb[24].mxu0 }
 0x133   : > { %3994 = vmatmul.mubr.bf16.gmra.mrb[20].mxu1 %v754_v5  ;;  %v727_v38 = vadd.f32 %v4193_v37, %v4772_v41  ;;  %v718_v39 = vpop.f32.mrb[25].mxu0 }
 0x134   : > { %3995 = vmatprep.mubr.bf16.mxu1 %v755_v16  ;;  %v719_v40 = vadd.f32 %v4772_v41, %v718_v39  ;;  %v4194_v42 = vpop.f32.mrb[26].mxu0 }
 0x135   : > { %v730_v43 = vadd.f32 %v4194_v42, %v4772_v41  ;;  %v721_v44 = vpop.f32.mrb[27].mxu0 }
 0x136   : > { %v722_v45 = vadd.f32 %v4772_v41, %v721_v44 }
 0x137   : > { %v762_v46 = vpack.c.bf16 %v730_v43, %v727_v38  ;;  %v4638_v43 = vmov 0.0  }
 0x138   : > { %v761_v47 = vpack.c.bf16 %v722_v45, %v719_v40  ;;  %814 = vst.msk [vmem:[#allocation4] sm:$0xff] %vm781_vm0, %v4638_v43  ;;  %815 = vst.msk [vmem:[#allocation4 + $0x8] sm:$0xff] %vm781_vm0, %v4638_v43 }
 0x139   : > { %816 = vst.msk [vmem:[#allocation4 + $0x10] sm:$0xff] %vm781_vm0, %v4638_v43  ;;  %817 = vst.msk [vmem:[#allocation4 + $0x18] sm:$0xff] %vm781_vm0, %v4638_v43 }
 0x13a   : > { %v4197_v48 = vpop.f32.mrb[28].mxu0  ;;  %818 = vst.msk [vmem:[#allocation4 + $0x20] sm:$0xff] %vm781_vm0, %v4638_v43  ;;  %819 = vst.msk [vmem:[#allocation4 + $0x28] sm:$0xff] %vm781_vm0, %v4638_v43 }
 0x13b   : > { %3996 = vmatmul.mubr.bf16.gmra.mrb[24].mxu1 %v755_v16  ;;  %v743_v49 = vadd.f32 %v4197_v48, %v4772_v41  ;;  %v734_v50 = vpop.f32.mrb[29].mxu0  ;;  %820 = vst.msk [vmem:[#allocation4 + $0x30] sm:$0xff] %vm781_vm0, %v4638_v43  ;;  %821 = vst.msk [vmem:[#allocation4 + $0x38] sm:$0xff] %vm781_vm0, %v4638_v43 }
 0x13c   : > { %3997 = vmatprep.mubr.bf16.mxu1 %v756_v15  ;;  %v735_v51 = vadd.f32 %v4772_v41, %v734_v50  ;;  %v4198_v52 = vpop.f32.mrb[30].mxu0  ;;  %822 = vst.msk [vmem:[#allocation4 + $0x40] sm:$0xff] %vm781_vm0, %v4638_v43  ;;  %823 = vst.msk [vmem:[#allocation4 + $0x48] sm:$0xff] %vm781_vm0, %v4638_v43 }
 0x13d   : > { %v746_v53 = vadd.f32 %v4198_v52, %v4772_v41  ;;  %v737_v54 = vpop.f32.mrb[31].mxu0  ;;  %824 = vst.msk [vmem:[#allocation4 + $0x50] sm:$0xff] %vm781_vm0, %v4638_v43  ;;  %825 = vst.msk [vmem:[#allocation4 + $0x58] sm:$0xff] %vm781_vm0, %v4638_v43 }
 0x13e   : > { %v738_v55 = vadd.f32 %v4772_v41, %v737_v54  ;;  %v960_v41 = vlaneseq  ;;  %826 = vst.msk [vmem:[#allocation4 + $0x60] sm:$0xff] %vm781_vm0, %v4638_v43  ;;  %827 = vst.msk [vmem:[#allocation4 + $0x68] sm:$0xff] %vm781_vm0, %v4638_v43 }
 0x13f   : > { %v764_v56 = vpack.c.bf16 %v746_v53, %v743_v49  ;;  %828 = vst.msk [vmem:[#allocation4 + $0x70] sm:$0xff] %vm781_vm0, %v4638_v43  ;;  %829 = vst.msk [vmem:[#allocation4 + $0x78] sm:$0xff] %vm781_vm0, %v4638_v43 }
 0x140   : > { %v763_v57 = vpack.c.bf16 %v738_v55, %v735_v51  ;;  %v961_v58 = vshrl.u32 %v960_v41, 7  ;;  %830 = vst.msk [vmem:[#allocation4 + $0x80] sm:$0xff] %vm781_vm0, %v4638_v43  ;;  %831 = vst.msk [vmem:[#allocation4 + $0x88] sm:$0xff] %vm781_vm0, %v4638_v43 }
 0x141   : > { %832 = vst.msk [vmem:[#allocation4 + $0x90] sm:$0xff] %vm781_vm0, %v4638_v43  ;;  %833 = vst.msk [vmem:[#allocation4 + $0x98] sm:$0xff] %vm781_vm0, %v4638_v43 }
 0x142   : > { %v962_v59 = vsub.s32 0, %v961_v58  ;;  %v966_v61 = vsub.s32 1, %v961_v58  ;;  %834 = vst.msk [vmem:[#allocation4 + $0xa0] sm:$0xff] %vm781_vm0, %v4638_v43  ;;  %835 = vst.msk [vmem:[#allocation4 + $0xa8] sm:$0xff] %vm781_vm0, %v4638_v43 }
 0x143   : > { %3998 = vmatmul.mubr.bf16.gmra.mrb[28].mxu1 %v756_v15  ;;  %836 = vst.msk [vmem:[#allocation4 + $0xb0] sm:$0xff] %vm781_vm0, %v4638_v43  ;;  %837 = vst.msk [vmem:[#allocation4 + $0xb8] sm:$0xff] %vm781_vm0, %v4638_v43 }
 0x144   : > { %3999 = vmatprep.mubr.bf16.mxu1 %v757_v26  ;;  %v4809_v62 = vrot.slane %v958_v60, %v962_v59  ;;  %v4843_v0 = vrot.slane %v958_v60, %v966_v61  ;;  %838 = vst.msk [vmem:[#allocation4 + $0xc0] sm:$0xff] %vm781_vm0, %v4638_v43  ;;  %839 = vst.msk [vmem:[#allocation4 + $0xc8] sm:$0xff] %vm781_vm0, %v4638_v43 }
 0x145   : > { %840 = vst.msk [vmem:[#allocation4 + $0xd0] sm:$0xff] %vm781_vm0, %v4638_v43  ;;  %841 = vst.msk [vmem:[#allocation4 + $0xd8] sm:$0xff] %vm781_vm0, %v4638_v43 }
 0x146   : > { %842 = vst.msk [vmem:[#allocation4 + $0xe0] sm:$0xff] %vm781_vm0, %v4638_v43  ;;  %843 = vst.msk [vmem:[#allocation4 + $0xe8] sm:$0xff] %vm781_vm0, %v4638_v43 }
 0x147   : > { %844 = vst.msk [vmem:[#allocation4 + $0xf0] sm:$0xff] %vm781_vm0, %v4638_v43  ;;  %845 = vst.msk [vmem:[#allocation4 + $0xf8] sm:$0xff] %vm781_vm0, %v4638_v43 }
 0x14b   : > { %4000 = vmatmul.mubr.bf16.gmra.mrb[32].mxu1 %v757_v26 }
 0x14c   : > { %4001 = vmatprep.mubr.bf16.mxu1 %v758_v25 }
 0x153   : > { %4002 = vmatmul.mubr.bf16.gmra.mrb[36].mxu1 %v758_v25 }
 0x154   : > { %4003 = vmatprep.mubr.bf16.mxu1 %v759_v36 }
 0x15b   : > { %4004 = vmatmul.mubr.bf16.gmra.mrb[40].mxu1 %v759_v36 }
 0x15c   : > { %4005 = vmatprep.mubr.bf16.mxu1 %v760_v35 }
 0x163   : > { %4006 = vmatmul.mubr.bf16.gmra.mrb[44].mxu1 %v760_v35 }
 0x164   : > { %4007 = vmatprep.mubr.bf16.mxu1 %v761_v47 }
 0x16b   : > { %4008 = vmatmul.mubr.bf16.gmra.mrb[48].mxu1 %v761_v47 }
 0x16c   : > { %4009 = vmatprep.mubr.bf16.mxu1 %v762_v46 }
 0x173   : > { %4010 = vmatmul.mubr.bf16.gmra.mrb[52].mxu1 %v762_v46 }
 0x174   : > { %4011 = vmatprep.mubr.bf16.mxu1 %v763_v57 }
 0x17b   : > { %4012 = vmatmul.mubr.bf16.gmra.mrb[56].mxu1 %v763_v57 }
 0x17c   : > { %4013 = vmatprep.mubr.bf16.mxu1 %v764_v56 }
 0x183   : > { %4014 = vmatmul.mubr.bf16.gmra.mrb[60].mxu1 %v764_v56 }
 0x1de   : > { %v1100_v1 = vpop.f32.mrb[0].mxu1 }
 0x1df   : > { %v4846_v2 = vadd.f32 %v1100_v1, %v4809_v62  ;;  %v1102_v3 = vpop.f32.mrb[1].mxu1 }
 0x1e0   : > { %v4849_v4 = vadd.f32 %v1102_v3, %v4843_v0  ;;  %v1104_v5 = vpop.f32.mrb[2].mxu1 }
 0x1e1   : > { %v1106_v6 = vpop.f32.mrb[3].mxu1  ;;  %v4852_v7 = vadd.f32 %v1104_v5, %v4809_v62 }
 0x1e2   : > { %v4855_v8 = vadd.f32 %v1106_v6, %v4843_v0  ;;  %v1291_v9 = vmax.f32 %v4846_v2, %v4849_v4 }
 0x1e4   : > { %1292 = vmax.xlane.f32.xlu0 %v1291_v9  ;;  %v1294_v11 = vmax.f32 %v4852_v7, %v4855_v8 }
 0x1e6   : > { %v1110_v10 = vpop.f32.mrb[4].mxu1 }
 0x1e7   : > { %v4862_v12 = vadd.f32 %v1110_v10, %v4809_v62  ;;  %v1112_v13 = vpop.f32.mrb[5].mxu1 }
 0x1e8   : > { %v4865_v14 = vadd.f32 %v1112_v13, %v4843_v0  ;;  %v1114_v15 = vpop.f32.mrb[6].mxu1  ;;  %1295 = vmax.xlane.f32.xlu0 %v1294_v11 }
 0x1e9   : > { %v1116_v16 = vpop.f32.mrb[7].mxu1  ;;  %v4868_v17 = vadd.f32 %v1114_v15, %v4809_v62 }
 0x1ea   : > { %v4871_v18 = vadd.f32 %v1116_v16, %v4843_v0  ;;  %v1297_v19 = vmax.f32 %v4862_v12, %v4865_v14 }
 0x1ec   : > { %1298 = vmax.xlane.f32.xlu1 %v1297_v19  ;;  %v1300_v21 = vmax.f32 %v4868_v17, %v4871_v18 }
 0x1ee   : > { %v1120_v20 = vpop.f32.mrb[8].mxu1 }
 0x1ef   : > { %v4878_v22 = vadd.f32 %v1120_v20, %v4809_v62  ;;  %v1122_v23 = vpop.f32.mrb[9].mxu1 }
 0x1f0   : > { %v4881_v24 = vadd.f32 %v1122_v23, %v4843_v0  ;;  %v1124_v25 = vpop.f32.mrb[10].mxu1  ;;  %1301 = vmax.xlane.f32.xlu1 %v1300_v21 }
 0x1f1   : > { %v4884_v26 = vadd.f32 %v1124_v25, %v4809_v62  ;;  %v1126_v27 = vpop.f32.mrb[11].mxu1 }
 0x1f2   : > { %v4887_v28 = vadd.f32 %v1126_v27, %v4843_v0  ;;  %v1303_v29 = vmax.f32 %v4878_v22, %v4881_v24 }
 0x1f4   : > { %1304 = vmax.xlane.f32.xlu0 %v1303_v29  ;;  %v1306_v31 = vmax.f32 %v4884_v26, %v4887_v28 }
 0x1f6   : > { %v1130_v32 = vpop.f32.mrb[12].mxu1  ;;  %1307 = vmax.xlane.f32.xlu1 %v1306_v31 }
 0x1f7   : > { %v4894_v33 = vadd.f32 %v1130_v32, %v4809_v62  ;;  %v1132_v34 = vpop.f32.mrb[13].mxu1 }
 0x1f8   : > { %v4897_v35 = vadd.f32 %v1132_v34, %v4843_v0  ;;  %v1134_v36 = vpop.f32.mrb[14].mxu1 }
 0x1f9   : > { %v4900_v37 = vadd.f32 %v1134_v36, %v4809_v62  ;;  %v1136_v38 = vpop.f32.mrb[15].mxu1 }
 0x1fa   : > { %v4903_v39 = vadd.f32 %v1136_v38, %v4843_v0  ;;  %v1309_v40 = vmax.f32 %v4894_v33, %v4897_v35 }
 0x1fc   : > { %1310 = vmax.xlane.f32.xlu0 %v1309_v40  ;;  %v1312_v42 = vmax.f32 %v4900_v37, %v4903_v39 }
 0x1fe   : > { %v1140_v44 = vpop.f32.mrb[16].mxu1  ;;  %1313 = vmax.xlane.f32.xlu1 %v1312_v42 }
 0x1ff   : > { %v4942_v45 = vadd.f32 %v1140_v44, %v4809_v62  ;;  %v1142_v46 = vpop.f32.mrb[17].mxu1 }
 0x200   : > { %v4945_v47 = vadd.f32 %v1142_v46, %v4843_v0  ;;  %v1144_v48 = vpop.f32.mrb[18].mxu1 }
 0x201   : > { %v4948_v49 = vadd.f32 %v1144_v48, %v4809_v62  ;;  %v1146_v50 = vpop.f32.mrb[19].mxu1 }
 0x202   : > { %v4951_v51 = vadd.f32 %v1146_v50, %v4843_v0  ;;  %v1315_v52 = vmax.f32 %v4942_v45, %v4945_v47 }
 0x204   : > { %1316 = vmax.xlane.f32.xlu0 %v1315_v52  ;;  %v1318_v53 = vmax.f32 %v4948_v49, %v4951_v51 }
 0x206   : > { %v1150_v54 = vpop.f32.mrb[20].mxu1  ;;  %1319 = vmax.xlane.f32.xlu1 %v1318_v53 }
 0x207   : > { %v4958_v55 = vadd.f32 %v1150_v54, %v4809_v62  ;;  %v1152_v56 = vpop.f32.mrb[21].mxu1 }
 0x208   : > { %v4961_v57 = vadd.f32 %v1152_v56, %v4843_v0  ;;  %v1154_v41 = vpop.f32.mrb[22].mxu1 }
 0x209   : > { %v4964_v58 = vadd.f32 %v1154_v41, %v4809_v62  ;;  %v1156_v59 = vpop.f32.mrb[23].mxu1 }
 0x20a   : > { %v4967_v60 = vadd.f32 %v1156_v59, %v4843_v0  ;;  %v1321_v61 = vmax.f32 %v4958_v55, %v4961_v57 }
 0x20c   : > { %1322 = vmax.xlane.f32.xlu0 %v1321_v61  ;;  %v1324_v63 = vmax.f32 %v4964_v58, %v4967_v60 }
 0x20e   : > { %1325 = vmax.xlane.f32.xlu1 %v1324_v63  ;;  %v1160_v1 = vpop.f32.mrb[24].mxu1 }
 0x20f   : > { %v4974_v3 = vadd.f32 %v1160_v1, %v4809_v62  ;;  %v1162_v5 = vpop.f32.mrb[25].mxu1 }
 0x210   : > { %v4977_v6 = vadd.f32 %v1162_v5, %v4843_v0  ;;  %v1164_v9 = vpop.f32.mrb[26].mxu1 }
 0x211   : > { %6301 = vst [vmem:[#allocation6_spill] sm:$0xff] %v4974_v3  ;;  %v4980_v10 = vadd.f32 %v1164_v9, %v4809_v62  ;;  %v1166_v11 = vpop.f32.mrb[27].mxu1 }
 0x212   : > { %6302 = vst [vmem:[#allocation7_spill] sm:$0xff] %v4977_v6  ;;  %v4983_v13 = vadd.f32 %v1166_v11, %v4843_v0  ;;  %v1327_v15 = vmax.f32 %v4974_v3, %v4977_v6  ;;  %v5297_v6 = vld [vmem:[#allocation3 + $0x80] sm:$0xff] }
 0x213   : > { %6303 = vst [vmem:[#allocation8_spill] sm:$0xff] %v4980_v10  ;;  %6346 = vst [vmem:[#allocation51_spill] sm:$0xff] %v5297_v6 }
 0x214   : > { %6304 = vst [vmem:[#allocation9_spill] sm:$0xff] %v4983_v13  ;;  %v1330_v16 = vmax.f32 %v4980_v10, %v4983_v13  ;;  %1328 = vmax.xlane.f32.xlu0 %v1327_v15  ;;  %v5307_v10 = vld [vmem:[#allocation3 + $0x88] sm:$0xff] }
 0x215   : > { %6349 = vst [vmem:[#allocation54_spill] sm:$0xff] %v5307_v10 }
 0x216   : > { %v1170_v19 = vpop.f32.mrb[28].mxu1  ;;  %1331 = vmax.xlane.f32.xlu1 %v1330_v16 }
 0x217   : > { %v4990_v20 = vadd.f32 %v1170_v19, %v4809_v62  ;;  %v1172_v21 = vpop.f32.mrb[29].mxu1 }
 0x218   : > { %v4993_v23 = vadd.f32 %v1172_v21, %v4843_v0  ;;  %v1174_v25 = vpop.f32.mrb[30].mxu1 }
 0x219   : > { %6305 = vst [vmem:[#allocation10_spill] sm:$0xff] %v4990_v20  ;;  %v4996_v27 = vadd.f32 %v1174_v25, %v4809_v62  ;;  %v1176_v29 = vpop.f32.mrb[31].mxu1 }
 0x21a   : > { %6306 = vst [vmem:[#allocation11_spill] sm:$0xff] %v4993_v23  ;;  %v4999_v30 = vadd.f32 %v1176_v29, %v4843_v0  ;;  %v1333_v31 = vmax.f32 %v4990_v20, %v4993_v23  ;;  %v5279_v23 = vld [vmem:[#allocation3 + $0x70] sm:$0xff] }
 0x21b   : > { %6307 = vst [vmem:[#allocation12_spill] sm:$0xff] %v4996_v27  ;;  %6344 = vst [vmem:[#allocation49_spill] sm:$0xff] %v5279_v23 }
 0x21c   : > { %6308 = vst [vmem:[#allocation13_spill] sm:$0xff] %v4999_v30  ;;  %v1336_v32 = vmax.f32 %v4996_v27, %v4999_v30  ;;  %1334 = vmax.xlane.f32.xlu0 %v1333_v31  ;;  %v5263_v30 = vld [vmem:[#allocation3 + $0x68] sm:$0xff] }
 0x21d   : > { %6343 = vst [vmem:[#allocation48_spill] sm:$0xff] %v5263_v30 }
 0x21e   : > { %1337 = vmax.xlane.f32.xlu1 %v1336_v32  ;;  %v1180_v34 = vpop.f32.mrb[32].mxu1 }
 0x21f   : > { %v5006_v36 = vadd.f32 %v1180_v34, %v4809_v62  ;;  %v1182_v38 = vpop.f32.mrb[33].mxu1 }
 0x220   : > { %v5009_v40 = vadd.f32 %v1182_v38, %v4843_v0  ;;  %v1184_v42 = vpop.f32.mrb[34].mxu1 }
 0x221   : > { %6309 = vst [vmem:[#allocation14_spill] sm:$0xff] %v5006_v36  ;;  %v5012_v43 = vadd.f32 %v1184_v42, %v4809_v62  ;;  %v1186_v44 = vpop.f32.mrb[35].mxu1 }
 0x222   : > { %6310 = vst [vmem:[#allocation15_spill] sm:$0xff] %v5009_v40  ;;  %v5015_v46 = vadd.f32 %v1186_v44, %v4843_v0  ;;  %v1339_v48 = vmax.f32 %v5006_v36, %v5009_v40 }
 0x223   : > { %6311 = vst [vmem:[#allocation16_spill] sm:$0xff] %v5012_v43 }
 0x224   : > { %6312 = vst [vmem:[#allocation17_spill] sm:$0xff] %v5015_v46  ;;  %v1342_v50 = vmax.f32 %v5012_v43, %v5015_v46  ;;  %1340 = vmax.xlane.f32.xlu0 %v1339_v48 }
 0x226   : > { %v1190_v52 = vpop.f32.mrb[36].mxu1  ;;  %1343 = vmax.xlane.f32.xlu1 %v1342_v50 }
 0x227   : > { %v5022_v53 = vadd.f32 %v1190_v52, %v4809_v62  ;;  %v1192_v54 = vpop.f32.mrb[37].mxu1 }
 0x228   : > { %v5025_v56 = vadd.f32 %v1192_v54, %v4843_v0  ;;  %v1194_v41 = vpop.f32.mrb[38].mxu1 }
 0x229   : > { %6313 = vst [vmem:[#allocation18_spill] sm:$0xff] %v5022_v53  ;;  %v5028_v59 = vadd.f32 %v1194_v41, %v4809_v62  ;;  %v1196_v61 = vpop.f32.mrb[39].mxu1 }
 0x22a   : > { %6314 = vst [vmem:[#allocation19_spill] sm:$0xff] %v5025_v56  ;;  %v5031_v63 = vadd.f32 %v1196_v61, %v4843_v0  ;;  %v1345_v1 = vmax.f32 %v5022_v53, %v5025_v56  ;;  %v4345_v56 = vld [vmem:[%s4733_s30 + $0x64] ss:$8 sps:$4 sm:$0xff]  }
 0x22b   : > { %6315 = vst [vmem:[#allocation20_spill] sm:$0xff] %v5028_v59 }
 0x22c   : > { %6316 = vst [vmem:[#allocation21_spill] sm:$0xff] %v5031_v63  ;;  %v1348_v5 = vmax.f32 %v5028_v59, %v5031_v63  ;;  %1346 = vmax.xlane.f32.xlu0 %v1345_v1  ;;  %v5160_v63 = vld [vmem:[#allocation3 + $0x18] sm:$0xff] }
 0x22d   : > { %v4343_v59 = vld [vmem:[%s4733_s30 + $0x54] ss:$8 sps:$4 sm:$0xff]  }
 0x22e   : > { %1349 = vmax.xlane.f32.xlu1 %v1348_v5  ;;  %v1200_v9 = vpop.f32.mrb[40].mxu1 }
 0x22f   : > { %v5038_v11 = vadd.f32 %v1200_v9, %v4809_v62  ;;  %v1202_v15 = vpop.f32.mrb[41].mxu1 }
 0x230   : > { %v5041_v16 = vadd.f32 %v1202_v15, %v4843_v0  ;;  %v1204_v19 = vpop.f32.mrb[42].mxu1 }
 0x231   : > { %6317 = vst [vmem:[#allocation22_spill] sm:$0xff] %v5038_v11  ;;  %v5044_v21 = vadd.f32 %v1204_v19, %v4809_v62  ;;  %v1206_v25 = vpop.f32.mrb[43].mxu1 }
 0x232   : > { %6318 = vst [vmem:[#allocation23_spill] sm:$0xff] %v5041_v16  ;;  %v5047_v29 = vadd.f32 %v1206_v25, %v4843_v0  ;;  %v1351_v31 = vmax.f32 %v5038_v11, %v5041_v16  ;;  %v5136_v11 = vld [vmem:[#allocation3 + $0x8] sm:$0xff] }
 0x233   : > { %6319 = vst [vmem:[#allocation24_spill] sm:$0xff] %v5044_v21 }
 0x234   : > { %6320 = vst [vmem:[#allocation25_spill] sm:$0xff] %v5047_v29  ;;  %1352 = vmax.xlane.f32.xlu1 %v1351_v31  ;;  %v1354_v32 = vmax.f32 %v5044_v21, %v5047_v29 }
 0x236   : > { %v1210_v34 = vpop.f32.mrb[44].mxu1  ;;  %1355 = vmax.xlane.f32.xlu0 %v1354_v32 }
 0x237   : > { %v5054_v38 = vadd.f32 %v1210_v34, %v4809_v62  ;;  %v1212_v42 = vpop.f32.mrb[45].mxu1 }
 0x238   : > { %v5057_v44 = vadd.f32 %v1212_v42, %v4843_v0  ;;  %v1214_v48 = vpop.f32.mrb[46].mxu1 }
 0x239   : > { %6321 = vst [vmem:[#allocation26_spill] sm:$0xff] %v5054_v38  ;;  %v5060_v50 = vadd.f32 %v1214_v48, %v4809_v62  ;;  %v1216_v52 = vpop.f32.mrb[47].mxu1 }
 0x23a   : > { %6322 = vst [vmem:[#allocation27_spill] sm:$0xff] %v5057_v44  ;;  %v5063_v54 = vadd.f32 %v1216_v52, %v4843_v0  ;;  %v1357_v41 = vmax.f32 %v5054_v38, %v5057_v44  ;;  %v4333_v38 = vld [vmem:[%s4733_s30 + $0x4] ss:$8 sps:$4 sm:$0xff]  }
 0x23b   : > { %6323 = vst [vmem:[#allocation28_spill] sm:$0xff] %v5060_v50 }
 0x23c   : > { %6324 = vst [vmem:[#allocation29_spill] sm:$0xff] %v5063_v54  ;;  %1358 = vmax.xlane.f32.xlu1 %v1357_v41  ;;  %v1360_v61 = vmax.f32 %v5060_v50, %v5063_v54  ;;  %v5200_v54 = vld [vmem:[#allocation3 + $0x30] sm:$0xff] }
 0x23d   : > { %6337 = vst [vmem:[#allocation42_spill] sm:$0xff] %v5200_v54 }
 0x23e   : > { %v1220_v1 = vpop.f32.mrb[48].mxu1  ;;  %1361 = vmax.xlane.f32.xlu0 %v1360_v61 }
 0x23f   : > { %v5070_v5 = vadd.f32 %v1220_v1, %v4809_v62  ;;  %v1222_v9 = vpop.f32.mrb[49].mxu1 }
 0x240   : > { %v5073_v15 = vadd.f32 %v1222_v9, %v4843_v0  ;;  %v1224_v19 = vpop.f32.mrb[50].mxu1 }
 0x241   : > { %6325 = vst [vmem:[#allocation30_spill] sm:$0xff] %v5070_v5  ;;  %v5076_v25 = vadd.f32 %v1224_v19, %v4809_v62  ;;  %v1226_v31 = vpop.f32.mrb[51].mxu1 }
 0x242   : > { %6326 = vst [vmem:[#allocation31_spill] sm:$0xff] %v5073_v15  ;;  %v5079_v32 = vadd.f32 %v1226_v31, %v4843_v0  ;;  %v1363_v34 = vmax.f32 %v5070_v5, %v5073_v15 }
 0x243   : > { %6327 = vst [vmem:[#allocation32_spill] sm:$0xff] %v5076_v25 }
 0x244   : > { %6328 = vst [vmem:[#allocation33_spill] sm:$0xff] %v5079_v32  ;;  %v1366_v42 = vmax.f32 %v5076_v25, %v5079_v32  ;;  %1364 = vmax.xlane.f32.xlu0 %v1363_v34  ;;  %v5172_v32 = vld [vmem:[#allocation3 + $0x20] sm:$0xff] }
 0x246   : > { %v1230_v48 = vpop.f32.mrb[52].mxu1  ;;  %1367 = vmax.xlane.f32.xlu1 %v1366_v42 }
 0x247   : > { %v5086_v52 = vadd.f32 %v1230_v48, %v4809_v62  ;;  %v1232_v41 = vpop.f32.mrb[53].mxu1 }
 0x248   : > { %v5089_v61 = vadd.f32 %v1232_v41, %v4843_v0  ;;  %v1234_v1 = vpop.f32.mrb[54].mxu1 }
 0x249   : > { %6329 = vst [vmem:[#allocation34_spill] sm:$0xff] %v5086_v52  ;;  %v5092_v9 = vadd.f32 %v1234_v1, %v4809_v62  ;;  %v1236_v19 = vpop.f32.mrb[55].mxu1 }
 0x24a   : > { %6330 = vst [vmem:[#allocation35_spill] sm:$0xff] %v5089_v61  ;;  %v5095_v31 = vadd.f32 %v1236_v19, %v4843_v0  ;;  %v1369_v34 = vmax.f32 %v5086_v52, %v5089_v61 }
 0x24b   : > { %6331 = vst [vmem:[#allocation36_spill] sm:$0xff] %v5092_v9 }
 0x24c   : > { %6332 = vst [vmem:[#allocation37_spill] sm:$0xff] %v5095_v31  ;;  %1370 = vmax.xlane.f32.xlu1 %v1369_v34  ;;  %v1372_v42 = vmax.f32 %v5092_v9, %v5095_v31  ;;  %v4340_v31 = vld [vmem:[%s4733_s30 + $0xc4] ss:$8 sps:$4 sm:$0xff]  }
 0x24d   : > { %v4341_v9 = vld [vmem:[%s4733_s30 + $0x44] ss:$8 sps:$4 sm:$0xff]  }
 0x24e   : > { %v1240_v48 = vpop.f32.mrb[56].mxu1  ;;  %1373 = vmax.xlane.f32.xlu0 %v1372_v42 }
 0x24f   : > { %v5102_v41 = vadd.f32 %v1240_v48, %v4809_v62  ;;  %v1242_v1 = vpop.f32.mrb[57].mxu1 }
 0x250   : > { %v5105_v15 = vadd.f32 %v1242_v1, %v4843_v0  ;;  %v1244_v19 = vpop.f32.mrb[58].mxu1 }
 0x251   : > { %6333 = vst [vmem:[#allocation38_spill] sm:$0xff] %v5102_v41  ;;  %v5108_v5 = vadd.f32 %v1244_v19, %v4809_v62  ;;  %v1246_v34 = vpop.f32.mrb[59].mxu1 }
 0x252   : > { %6334 = vst [vmem:[#allocation39_spill] sm:$0xff] %v5105_v15  ;;  %v5111_v61 = vadd.f32 %v1246_v34, %v4843_v0  ;;  %v1375_v42 = vmax.f32 %v5102_v41, %v5105_v15  ;;  %v4332_v34 = vld [vmem:[%s4733_s30 + $0x84] ss:$8 sps:$4 sm:$0xff]   ;;  %v4334_v15 = vld [vmem:[%s4733_s30 + $0x94] ss:$8 sps:$4 sm:$0xff]  }
 0x253   : > { %6335 = vst [vmem:[#allocation40_spill] sm:$0xff] %v5108_v5  ;;  %4015 = vmatprep.subr.bf16.mxu0 %v4332_v34  ;;  %v4335_v41 = vld [vmem:[%s4733_s30 + $0x14] ss:$8 sps:$4 sm:$0xff]  }
 0x254   : > { %6336 = vst [vmem:[#allocation41_spill] sm:$0xff] %v5111_v61  ;;  %v1378_v48 = vmax.f32 %v5108_v5, %v5111_v61  ;;  %1376 = vmax.xlane.f32.xlu0 %v1375_v42  ;;  %4016 = vmatpush3.bf16.msra.mxu0 %v4333_v38  ;;  %v5129_v42 = vld [vmem:[#allocation3] sm:$0xff] }
 0x255   : > { %4017 = vmatprep.subr.bf16.mxu0 %v4334_v15  ;;  %v4337_v5 = vld [vmem:[%s4733_s30 + $0x24] ss:$8 sps:$4 sm:$0xff]  }
 0x256   : > { %1379 = vmax.xlane.f32.xlu1 %v1378_v48  ;;  %v5117_v1 = vpop.f32.mrb[60].mxu1  ;;  %v4336_v48 = vld [vmem:[%s4733_s30 + $0xa4] ss:$8 sps:$4 sm:$0xff]  }
 0x257   : > { %v5119_v52 = vpop.f32.mrb[61].mxu1 }
 0x258   : > { %v5121_v19 = vpop.f32.mrb[62].mxu1  ;;  %4018 = vmatpush3.bf16.msra.mxu0 %v4335_v41  ;;  %v4338_v41 = vld [vmem:[%s4733_s30 + $0xb4] ss:$8 sps:$4 sm:$0xff]  }
 0x259   : > { %v5123_v44 = vpop.f32.mrb[63].mxu1  ;;  %4019 = vmatprep.subr.bf16.mxu0 %v4336_v48  ;;  %v5148_v48 = vld [vmem:[#allocation3 + $0x10] sm:$0xff] }
 0x25c   : > { %4020 = vmatpush3.bf16.msra.mxu0 %v4337_v5  ;;  %v4342_v5 = vld [vmem:[%s4733_s30 + $0xd4] ss:$8 sps:$4 sm:$0xff]  }
 0x25d   : > { %4021 = vmatprep.subr.bf16.mxu0 %v4338_v41  ;;  %v5179_v41 = vld [vmem:[#allocation3 + $0x28] sm:$0xff] }
 0x271   : > { %v1293_v61 = vpop.xlane.xlu0 %1292 }
 0x272   : > { %v5134_v16 = vmax.f32 %v5129_v42, %v1293_v61  ;;  %v4339_v61 = vld [vmem:[%s4733_s30 + $0x34] ss:$8 sps:$4 sm:$0xff]  }
 0x273   : > { %4022 = vmatpush3.bf16.msra.mxu0 %v4339_v61 }
 0x274   : > { %2669 = vst.msk [vmem:[#allocation3] sm:$0xff] %vm781_vm0, %v5134_v16  ;;  %1517 = vperm.xlu0 %4290, %v5134_v16   ;;  %4023 = vmatprep.subr.bf16.mxu0 %v4340_v31 }
 0x275   : > { %v1296_v15 = vpop.xlane.xlu0 %1295 }
 0x276   : > { %v5145_v34 = vmax.f32 %v5136_v11, %v1296_v15 }
 0x277   : > { %4024 = vmatpush3.bf16.msra.mxu0 %v4341_v9 }
 0x278   : > { %2670 = vst.msk [vmem:[#allocation3 + $0x8] sm:$0xff] %vm781_vm0, %v5145_v34  ;;  %1522 = vperm.xlu1 %4291, %v5145_v34   ;;  %4025 = vmatprep.subr.bf16.mxu0 %v4342_v5 }
 0x279   : > { %v1299_v38 = vpop.xlane.xlu1 %1298 }
 0x27a   : > { %v5157_v15 = vmax.f32 %v5148_v48, %v1299_v38 }
 0x27b   : > { %4026 = vmatpush3.bf16.msra.mxu0 %v4343_v59  ;;  %v4346_v59 = vld [vmem:[%s4733_s30 + $0xf4] ss:$8 sps:$4 sm:$0xff]  }
 0x27c   : > { %2671 = vst.msk [vmem:[#allocation3 + $0x10] sm:$0xff] %vm781_vm0, %v5157_v15  ;;  %1527 = vperm.xlu1 %4291, %v5157_v15  }
 0x27d   : > { %v1302_v61 = vpop.xlane.xlu1 %1301 }
 0x27e   : > { %v5169_v38 = vmax.f32 %v5160_v63, %v1302_v61  ;;  %v4344_v61 = vld [vmem:[%s4733_s30 + $0xe4] ss:$8 sps:$4 sm:$0xff]  }
 0x27f   : > { %4027 = vmatprep.subr.bf16.mxu0 %v4344_v61  ;;  %v4347_v61 = vld [vmem:[%s4733_s30 + $0x74] ss:$8 sps:$4 sm:$0xff]  }
 0x280   : > { %2672 = vst.msk [vmem:[#allocation3 + $0x18] sm:$0xff] %vm781_vm0, %v5169_v38  ;;  %1532 = vperm.xlu1 %4291, %v5169_v38   ;;  %4028 = vmatpush3.bf16.msra.mxu0 %v4345_v56 }
 0x281   : > { %v1305_v9 = vpop.xlane.xlu0 %1304  ;;  %4029 = vmatprep.subr.bf16.mxu0 %v4346_v59 }
 0x282   : > { %v5183_v25 = vmax.f32 %v5172_v32, %v1305_v9  ;;  %v5223_v9 = vld [vmem:[#allocation3 + $0x48] sm:$0xff] }
 0x283   : > { %v1308_v5 = vpop.xlane.xlu1 %1307 }
 0x284   : > { %2673 = vst.msk [vmem:[#allocation3 + $0x20] sm:$0xff] %vm781_vm0, %v5183_v25  ;;  %v5191_v53 = vmax.f32 %v5179_v41, %v1308_v5  ;;  %1537 = vperm.xlu0 %4290, %v5183_v25   ;;  %4030 = vmatpush3.bf16.msra.mxu0 %v4347_v61  ;;  %v5203_v5 = vld [vmem:[#allocation3 + $0x38] sm:$0xff] }
 0x285   : > { %6338 = vst [vmem:[#allocation43_spill] sm:$0xff] %v5203_v5 }
 0x286   : > { %2674 = vst.msk [vmem:[#allocation3 + $0x28] sm:$0xff] %vm781_vm0, %v5191_v53 }
 0x288   : > { %1542 = vperm.xlu0 %4290, %v5191_v53  }
 0x289   : > { %v1311_v31 = vpop.xlane.xlu0 %1310 }
 0x28a   : > { %v5206_v50 = vmax.f32 %v5200_v54, %v1311_v31  ;;  %v5220_v31 = vld [vmem:[#allocation3 + $0x40] sm:$0xff] }
 0x28b   : > { %v1314_v56 = vpop.xlane.xlu1 %1313 }
 0x28c   : > { %6339 = vst [vmem:[#allocation44_spill] sm:$0xff] %v5206_v50  ;;  %2675 = vst.msk [vmem:[#allocation3 + $0x30] sm:$0xff] %vm781_vm0, %v5206_v50  ;;  %v5213_v46 = vmax.f32 %v5203_v5, %v1314_v56  ;;  %1547 = vperm.xlu1 %4291, %v5206_v50   ;;  %v5243_v50 = vld [vmem:[#allocation3 + $0x58] sm:$0xff] }
 0x28e   : > { %6340 = vst [vmem:[#allocation45_spill] sm:$0xff] %v5213_v46  ;;  %2676 = vst.msk [vmem:[#allocation3 + $0x38] sm:$0xff] %vm781_vm0, %v5213_v46 }
 0x290   : > { %1552 = vperm.xlu1 %4291, %v5213_v46  }
 0x291   : > { %v1317_v61 = vpop.xlane.xlu0 %1316 }
 0x292   : > { %v5226_v54 = vmax.f32 %v5220_v31, %v1317_v61  ;;  %v5240_v61 = vld [vmem:[#allocation3 + $0x50] sm:$0xff] }
 0x293   : > { %v1320_v56 = vpop.xlane.xlu1 %1319 }
 0x294   : > { %2677 = vst.msk [vmem:[#allocation3 + $0x40] sm:$0xff] %vm781_vm0, %v5226_v54  ;;  %v5233_v59 = vmax.f32 %v5223_v9, %v1320_v56  ;;  %1557 = vperm.xlu0 %4290, %v5226_v54  }
 0x296   : > { %2678 = vst.msk [vmem:[#allocation3 + $0x48] sm:$0xff] %vm781_vm0, %v5233_v59 }
 0x298   : > { %1562 = vperm.xlu0 %4290, %v5233_v59  }
 0x299   : > { %v1323_v5 = vpop.xlane.xlu0 %1322 }
 0x29a   : > { %v5246_v43 = vmax.f32 %v5240_v61, %v1323_v5  ;;  %v5260_v5 = vld [vmem:[#allocation3 + $0x60] sm:$0xff] }
 0x29b   : > { %v1326_v56 = vpop.xlane.xlu1 %1325  ;;  %6342 = vst [vmem:[#allocation47_spill] sm:$0xff] %v5260_v5 }
 0x29c   : > { %2679 = vst.msk [vmem:[#allocation3 + $0x50] sm:$0xff] %vm781_vm0, %v5246_v43  ;;  %v5253_v46 = vmax.f32 %v5243_v50, %v1326_v56  ;;  %1567 = vperm.xlu1 %4291, %v5246_v43  }
 0x29e   : > { %6341 = vst [vmem:[#allocation46_spill] sm:$0xff] %v5253_v46  ;;  %2680 = vst.msk [vmem:[#allocation3 + $0x58] sm:$0xff] %vm781_vm0, %v5253_v46 }
 0x2a0   : > { %1572 = vperm.xlu1 %4291, %v5253_v46  }
 0x2a1   : > { %v1329_v29 = vpop.xlane.xlu0 %1328 }
 0x2a2   : > { %v5266_v27 = vmax.f32 %v5260_v5, %v1329_v29  ;;  %v5281_v29 = vld [vmem:[#allocation3 + $0x78] sm:$0xff] }
 0x2a3   : > { %v1332_v56 = vpop.xlane.xlu1 %1331  ;;  %6345 = vst [vmem:[#allocation50_spill] sm:$0xff] %v5281_v29 }
 0x2a4   : > { %v5269_v40 = vmax.f32 %v5263_v30, %v1332_v56  ;;  %2681 = vst.msk [vmem:[#allocation3 + $0x60] sm:$0xff] %vm781_vm0, %v5266_v27 }
 0x2a6   : > { %2682 = vst.msk [vmem:[#allocation3 + $0x68] sm:$0xff] %vm781_vm0, %v5269_v40 }
 0x2a9   : > { %v1335_v20 = vpop.xlane.xlu0 %1334 }
 0x2aa   : > { %v5284_v56 = vmax.f32 %v5279_v23, %v1335_v20  ;;  %v5301_v20 = vadd.f32 %v5121_v19, %v4809_v62  ;;  %v5345_v19 = vadd.f32 %v5119_v52, %v4843_v0 }
 0x2ab   : > { %v1338_v13 = vpop.xlane.xlu1 %1337 }
 0x2ac   : > { %v5287_v21 = vmax.f32 %v5281_v29, %v1338_v13  ;;  %2683 = vst.msk [vmem:[#allocation3 + $0x70] sm:$0xff] %vm781_vm0, %v5284_v56  ;;  %6347 = vst [vmem:[#allocation52_spill] sm:$0xff] %v5301_v20  ;;  %v5305_v13 = vadd.f32 %v5123_v44, %v4843_v0 }
 0x2ad   : > { %6354 = vst [vmem:[#allocation59_spill] sm:$0xff] %v5345_v19 }
 0x2ae   : > { %2684 = vst.msk [vmem:[#allocation3 + $0x78] sm:$0xff] %vm781_vm0, %v5287_v21  ;;  %6348 = vst [vmem:[#allocation53_spill] sm:$0xff] %v5305_v13  ;;  %v1384_v44 = vmax.f32 %v5301_v20, %v5305_v13  ;;  %v5353_v20 = vld [vmem:[#allocation3 + $0xa8] sm:$0xff] }
 0x2af   : > { %6356 = vst [vmem:[#allocation61_spill] sm:$0xff] %v5353_v20 }
 0x2b1   : > { %v1341_v3 = vpop.xlane.xlu0 %1340 }
 0x2b2   : > { %v5310_v23 = vmax.f32 %v5297_v6, %v1341_v3  ;;  %v5325_v3 = vld [vmem:[#allocation3 + $0x90] sm:$0xff] }
 0x2b3   : > { %v1344_v36 = vpop.xlane.xlu1 %1343  ;;  %6351 = vst [vmem:[#allocation56_spill] sm:$0xff] %v5325_v3 }
 0x2b4   : > { %6350 = vst [vmem:[#allocation55_spill] sm:$0xff] %v5310_v23  ;;  %v5313_v29 = vmax.f32 %v5307_v10, %v1344_v36  ;;  %2685 = vst.msk [vmem:[#allocation3 + $0x80] sm:$0xff] %vm781_vm0, %v5310_v23  ;;  %v5327_v36 = vld [vmem:[#allocation3 + $0x98] sm:$0xff] }
 0x2b5   : > { %6352 = vst [vmem:[#allocation57_spill] sm:$0xff] %v5327_v36 }
 0x2b6   : > { %2686 = vst.msk [vmem:[#allocation3 + $0x88] sm:$0xff] %vm781_vm0, %v5313_v29 }
 0x2b7   : > { %1385 = vmax.xlane.f32.xlu0 %v1384_v44  ;;  %v5341_v44 = vadd.f32 %v5117_v1, %v4809_v62 }
 0x2b9   : > { %v1347_v5 = vpop.xlane.xlu0 %1346  ;;  %6353 = vst [vmem:[#allocation58_spill] sm:$0xff] %v5341_v44 }
 0x2ba   : > { %v5330_v30 = vmax.f32 %v5325_v3, %v1347_v5  ;;  %v1381_v3 = vmax.f32 %v5341_v44, %v5345_v19  ;;  %v5371_v19 = vld [vmem:[#allocation3 + $0xb0] sm:$0xff]  ;;  %v5373_v44 = vld [vmem:[#allocation3 + $0xb8] sm:$0xff] }
 0x2bb   : > { %v1350_v6 = vpop.xlane.xlu1 %1349  ;;  %6358 = vst [vmem:[#allocation63_spill] sm:$0xff] %v5371_v19  ;;  %6359 = vst [vmem:[#allocation64_spill] sm:$0xff] %v5373_v44  ;;  %v5415_v5 = vld [vmem:[#allocation3 + $0xd8] sm:$0xff] }
 0x2bc   : > { %v5333_v46 = vmax.f32 %v5327_v36, %v1350_v6  ;;  %2687 = vst.msk [vmem:[#allocation3 + $0x90] sm:$0xff] %vm781_vm0, %v5330_v30  ;;  %v5351_v6 = vld [vmem:[#allocation3 + $0xa0] sm:$0xff]  ;;  %6367 = vst [vmem:[#allocation72_spill] sm:$0xff] %v5415_v5 }
 0x2bd   : > { %6355 = vst [vmem:[#allocation60_spill] sm:$0xff] %v5351_v6 }
 0x2be   : > { %2688 = vst.msk [vmem:[#allocation3 + $0x98] sm:$0xff] %vm781_vm0, %v5333_v46 }
 0x2c1   : > { %v1353_v13 = vpop.xlane.xlu1 %1352 }
 0x2c2   : > { %v5358_v62 = vmax.f32 %v5351_v6, %v1353_v13 }
 0x2c3   : > { %v1356_v1 = vpop.xlane.xlu0 %1355 }
 0x2c4   : > { %1382 = vmax.xlane.f32.xlu1 %v1381_v3  ;;  %2689 = vst.msk [vmem:[#allocation3 + $0xa0] sm:$0xff] %vm781_vm0, %v5358_v62  ;;  %v5365_v52 = vmax.f32 %v5353_v20, %v1356_v1  ;;  %v5393_v20 = vld [vmem:[#allocation3 + $0xc8] sm:$0xff] }
 0x2c5   : > { %6363 = vst [vmem:[#allocation68_spill] sm:$0xff] %v5393_v20 }
 0x2c6   : > { %6357 = vst [vmem:[#allocation62_spill] sm:$0xff] %v5365_v52  ;;  %2690 = vst.msk [vmem:[#allocation3 + $0xa8] sm:$0xff] %vm781_vm0, %v5365_v52 }
 0x2c9   : > { %v1359_v13 = vpop.xlane.xlu1 %1358 }
 0x2ca   : > { %v5376_v3 = vmax.f32 %v5371_v19, %v1359_v13  ;;  %v5390_v13 = vld [vmem:[#allocation3 + $0xc0] sm:$0xff] }
 0x2cb   : > { %v1362_v0 = vpop.xlane.xlu0 %1361  ;;  %6362 = vst [vmem:[#allocation67_spill] sm:$0xff] %v5390_v13 }
 0x2cc   : > { %6360 = vst [vmem:[#allocation65_spill] sm:$0xff] %v5376_v3  ;;  %2691 = vst.msk [vmem:[#allocation3 + $0xb0] sm:$0xff] %vm781_vm0, %v5376_v3  ;;  %v5383_v1 = vmax.f32 %v5373_v44, %v1362_v0 }
 0x2cd   : > { %1577 = vperm.xlu0 %4290, %v5266_v27  }
 0x2ce   : > { %6361 = vst [vmem:[#allocation66_spill] sm:$0xff] %v5383_v1  ;;  %2692 = vst.msk [vmem:[#allocation3 + $0xb8] sm:$0xff] %vm781_vm0, %v5383_v1 }
 0x2d1   : > { %1582 = vperm.xlu0 %4290, %v5269_v40   ;;  %v1365_v6 = vpop.xlane.xlu0 %1364 }
 0x2d2   : > { %v5396_v19 = vmax.f32 %v5390_v13, %v1365_v6  ;;  %v5411_v6 = vld [vmem:[#allocation3 + $0xd0] sm:$0xff] }
 0x2d3   : > { %v1368_v0 = vpop.xlane.xlu1 %1367  ;;  %6366 = vst [vmem:[#allocation71_spill] sm:$0xff] %v5411_v6 }
 0x2d4   : > { %6364 = vst [vmem:[#allocation69_spill] sm:$0xff] %v5396_v19  ;;  %v5399_v36 = vmax.f32 %v5393_v20, %v1368_v0  ;;  %2693 = vst.msk [vmem:[#allocation3 + $0xc0] sm:$0xff] %vm781_vm0, %v5396_v19 }
 0x2d5   : > { %1587 = vperm.xlu0 %4290, %v5284_v56   ;;  %1597 = vperm.xlu1 %4291, %v5310_v23   ;;  %v5437_v23 = vld [vmem:[#allocation3 + $0xe8] sm:$0xff] }
 0x2d6   : > { %6365 = vst [vmem:[#allocation70_spill] sm:$0xff] %v5399_v36  ;;  %2694 = vst.msk [vmem:[#allocation3 + $0xc8] sm:$0xff] %vm781_vm0, %v5399_v36 }
 0x2d7   : > { %6370 = vst [vmem:[#allocation75_spill] sm:$0xff] %v5437_v23 }
 0x2d9   : > { %1592 = vperm.xlu0 %4290, %v5287_v21   ;;  %1622 = vperm.xlu1 %4291, %v5365_v52   ;;  %v1371_v0 = vpop.xlane.xlu1 %1370 }
 0x2da   : > { %v5418_v13 = vmax.f32 %v5411_v6, %v1371_v0  ;;  %v5433_v0 = vld [vmem:[#allocation3 + $0xe0] sm:$0xff] }
 0x2db   : > { %v1374_v10 = vpop.xlane.xlu0 %1373  ;;  %6369 = vst [vmem:[#allocation74_spill] sm:$0xff] %v5433_v0 }
 0x2dc   : > { %2695 = vst.msk [vmem:[#allocation3 + $0xd0] sm:$0xff] %vm781_vm0, %v5418_v13  ;;  %v5425_v44 = vmax.f32 %v5415_v5, %v1374_v10 }
 0x2dd   : > { %1602 = vperm.xlu0 %4290, %v5313_v29   ;;  %1632 = vperm.xlu1 %4291, %v5383_v1  }
 0x2de   : > { %6368 = vst [vmem:[#allocation73_spill] sm:$0xff] %v5425_v44  ;;  %2696 = vst.msk [vmem:[#allocation3 + $0xd8] sm:$0xff] %vm781_vm0, %v5425_v44 }
 0x2e1   : > { %1607 = vperm.xlu0 %4290, %v5330_v30   ;;  %1642 = vperm.xlu1 %4291, %v5399_v36   ;;  %v1377_v10 = vpop.xlane.xlu0 %1376 }
 0x2e2   : > { %v5440_v6 = vmax.f32 %v5433_v0, %v1377_v10 }
 0x2e3   : > { %v1380_v52 = vpop.xlane.xlu1 %1379 }
 0x2e4   : > { %v5443_v1 = vmax.f32 %v5437_v23, %v1380_v52  ;;  %2697 = vst.msk [vmem:[#allocation3 + $0xe0] sm:$0xff] %vm781_vm0, %v5440_v6 }
 0x2e5   : > { %1612 = vperm.xlu0 %4290, %v5333_v46   ;;  %1652 = vperm.xlu1 %4291, %v5425_v44  }
 0x2e6   : > { %6371 = vst [vmem:[#allocation76_spill] sm:$0xff] %v5443_v1  ;;  %2698 = vst.msk [vmem:[#allocation3 + $0xe8] sm:$0xff] %vm781_vm0, %v5443_v1 }
 0x2e9   : > { %1617 = vperm.xlu0 %4290, %v5358_v62   ;;  %1662 = vperm.xlu1 %4291, %v5443_v1  }
 0x2ed   : > { %1627 = vperm.xlu0 %4290, %v5376_v3  }
 0x2f1   : > { %1637 = vperm.xlu0 %4290, %v5396_v19  }
 0x2f3   : > { %v1518_v52 = vpop.permute.xlu0 %1517 }
 0x2f4   : > { %v1675_v10 = vsub.f32 %v4846_v2, %v1518_v52  ;;  %v1676_v20 = vsub.f32 %v4849_v4, %v1518_v52 }
 0x2f5   : > { %1647 = vperm.xlu0 %4290, %v5418_v13  }
 0x2f6   : > { %v1739_v0 = vmul.f32 1.442695, %v1675_v10  ;;  %v1741_v5 = vmul.f32 1.442695, %v1676_v20 }
 0x2f7   : > { %v1523_v23 = vpop.permute.xlu1 %1522 }
 0x2f8   : > { %4356 = vpow2.f32 %v1739_v0  ;;  %v1677_v44 = vsub.f32 %v4852_v7, %v1523_v23  ;;  %v1678_v36 = vsub.f32 %v4855_v8, %v1523_v23 }
 0x2f9   : > { %4358 = vpow2.f32 %v1741_v5  ;;  %1657 = vperm.xlu0 %4290, %v5440_v6  }
 0x2fa   : > { %v1743_v1 = vmul.f32 1.442695, %v1677_v44  ;;  %v1745_v19 = vmul.f32 1.442695, %v1678_v36 }
 0x2fb   : > { %v1528_v3 = vpop.permute.xlu1 %1527 }
 0x2fc   : > { %4360 = vpow2.f32 %v1743_v1  ;;  %v1679_v2 = vsub.f32 %v4862_v12, %v1528_v3  ;;  %v1680_v4 = vsub.f32 %v4865_v14, %v1528_v3 }
 0x2fd   : > { %4362 = vpow2.f32 %v1745_v19 }
 0x2fe   : > { %v1747_v52 = vmul.f32 1.442695, %v1679_v2  ;;  %v1749_v20 = vmul.f32 1.442695, %v1680_v4 }
 0x2ff   : > { %v1533_v10 = vpop.permute.xlu1 %1532 }
 0x300   : > { %4364 = vpow2.f32 %v1747_v52  ;;  %v1681_v7 = vsub.f32 %v4868_v17, %v1533_v10  ;;  %v1682_v8 = vsub.f32 %v4871_v18, %v1533_v10 }
 0x301   : > { %4366 = vpow2.f32 %v1749_v20 }
 0x302   : > { %v4357_v23 = vpop.eup %4356  ;;  %v1751_v5 = vmul.f32 1.442695, %v1681_v7  ;;  %v1753_v44 = vmul.f32 1.442695, %v1682_v8 }
 0x303   : > { %v4359_v36 = vpop.eup %4358  ;;  %v1538_v0 = vpop.permute.xlu0 %1537 }
 0x304   : > { %4368 = vpow2.f32 %v1751_v5  ;;  %v1683_v12 = vsub.f32 %v4878_v22, %v1538_v0  ;;  %v1684_v14 = vsub.f32 %v4881_v24, %v1538_v0  ;;  %v5471_v19 = vadd.f32 %v4359_v36, %v4357_v23 }
 0x305   : > { %4370 = vpow2.f32 %v1753_v44 }
 0x306   : > { %v4361_v3 = vpop.eup %4360  ;;  %v1755_v1 = vmul.f32 1.442695, %v1683_v12  ;;  %v1757_v2 = vmul.f32 1.442695, %v1684_v14 }
 0x307   : > { %v4363_v17 = vpop.eup %4362  ;;  %v1543_v4 = vpop.permute.xlu0 %1542  ;;  %v2316_v18 = vpack.c.bf16 %v4361_v3, %v4357_v23 }
 0x308   : > { %4372 = vpow2.f32 %v1755_v1  ;;  %v1685_v52 = vsub.f32 %v4884_v26, %v1543_v4  ;;  %v1686_v20 = vsub.f32 %v4887_v28, %v1543_v4  ;;  %v2317_v10 = vpack.c.bf16 %v4363_v17, %v4359_v36 }
 0x309   : > { %4374 = vpow2.f32 %v1757_v2  ;;  %v5475_v7 = vadd.f32 %v4363_v17, %v4361_v3 }
 0x30a   : > { %v4365_v22 = vpop.eup %4364  ;;  %v1759_v24 = vmul.f32 1.442695, %v1685_v52  ;;  %v1761_v8 = vmul.f32 1.442695, %v1686_v20  ;;  %2476 = vmatprep.mubr.bf16.mxu0 %v2317_v10 }
 0x30b   : > { %v4367_v5 = vpop.eup %4366  ;;  %2477 = vmatmul.mubr.bf16.vlgmr.msra.gmra.mrb[32].mxu0 %v2316_v18  ;;  %v1548_v44 = vpop.permute.xlu1 %1547 }
 0x30c   : > { %4376 = vpow2.f32 %v1759_v24  ;;  %v1687_v0 = vsub.f32 %v4894_v33, %v1548_v44  ;;  %v1688_v23 = vsub.f32 %v4897_v35, %v1548_v44  ;;  %v5479_v12 = vadd.f32 %v4367_v5, %v4365_v22 }
 0x30d   : > { %4378 = vpow2.f32 %v1761_v8 }
 0x30e   : > { %v4369_v26 = vpop.eup %4368  ;;  %v1763_v28 = vmul.f32 1.442695, %v1687_v0  ;;  %v1765_v36 = vmul.f32 1.442695, %v1688_v23 }
 0x30f   : > { %v4371_v14 = vpop.eup %4370  ;;  %v1553_v3 = vpop.permute.xlu1 %1552  ;;  %v2318_v1 = vpack.c.bf16 %v4369_v26, %v4365_v22 }
 0x310   : > { %4380 = vpow2.f32 %v1763_v28  ;;  %v1689_v2 = vsub.f32 %v4900_v37, %v1553_v3  ;;  %v1690_v17 = vsub.f32 %v4903_v39, %v1553_v3  ;;  %v2319_v4 = vpack.c.bf16 %v4371_v14, %v4367_v5 }
 0x311   : > { %4382 = vpow2.f32 %v1765_v36  ;;  %v5483_v18 = vadd.f32 %v4371_v14, %v4369_v26 }
 0x312   : > { %v4373_v33 = vpop.eup %4372  ;;  %v1767_v35 = vmul.f32 1.442695, %v1689_v2  ;;  %v1769_v52 = vmul.f32 1.442695, %v1690_v17  ;;  %2484 = vmatprep.mubr.bf16.mxu0 %v2319_v4 }
 0x313   : > { %v4375_v20 = vpop.eup %4374  ;;  %2485 = vmatmul.mubr.bf16.gmra.mrb[36].mxu0 %v2318_v1  ;;  %v1558_v10 = vpop.permute.xlu0 %1557 }
 0x314   : > { %4384 = vpow2.f32 %v1767_v35  ;;  %v1691_v24 = vsub.f32 %v4942_v45, %v1558_v10  ;;  %v1692_v22 = vsub.f32 %v4945_v47, %v1558_v10  ;;  %v5487_v8 = vadd.f32 %v4375_v20, %v4373_v33 }
 0x315   : > { %4386 = vpow2.f32 %v1769_v52 }
 0x316   : > { %v4377_v37 = vpop.eup %4376  ;;  %v1771_v39 = vmul.f32 1.442695, %v1691_v24  ;;  %v1773_v5 = vmul.f32 1.442695, %v1692_v22 }
 0x317   : > { %v4379_v44 = vpop.eup %4378  ;;  %v1563_v0 = vpop.permute.xlu0 %1562  ;;  %v2320_v23 = vpack.c.bf16 %v4377_v37, %v4373_v33 }
 0x318   : > { %4388 = vpow2.f32 %v1771_v39  ;;  %v1693_v26 = vsub.f32 %v4948_v49, %v1563_v0  ;;  %v1694_v28 = vsub.f32 %v4951_v51, %v1563_v0  ;;  %v2321_v36 = vpack.c.bf16 %v4379_v44, %v4375_v20 }
 0x319   : > { %4390 = vpow2.f32 %v1773_v5  ;;  %v5491_v14 = vadd.f32 %v4379_v44, %v4377_v37 }
 0x31a   : > { %v4381_v45 = vpop.eup %4380  ;;  %v1775_v47 = vmul.f32 1.442695, %v1693_v26  ;;  %v1777_v3 = vmul.f32 1.442695, %v1694_v28  ;;  %2492 = vmatprep.mubr.bf16.mxu0 %v2321_v36 }
 0x31b   : > { %v4383_v1 = vpop.eup %4382  ;;  %2493 = vmatmul.mubr.bf16.gmra.mrb[40].mxu0 %v2320_v23  ;;  %v1568_v2 = vpop.permute.xlu1 %1567 }
 0x31c   : > { %4392 = vpow2.f32 %v1775_v47  ;;  %v1695_v17 = vsub.f32 %v4958_v55, %v1568_v2  ;;  %v1696_v4 = vsub.f32 %v4961_v57, %v1568_v2  ;;  %v5495_v33 = vadd.f32 %v4383_v1, %v4381_v45 }
 0x31d   : > { %4394 = vpow2.f32 %v1777_v3 }
 0x31e   : > { %v4385_v49 = vpop.eup %4384  ;;  %v1779_v51 = vmul.f32 1.442695, %v1695_v17  ;;  %v1781_v35 = vmul.f32 1.442695, %v1696_v4 }
 0x31f   : > { %v4387_v52 = vpop.eup %4386  ;;  %v1573_v20 = vpop.permute.xlu1 %1572  ;;  %v2322_v10 = vpack.c.bf16 %v4385_v49, %v4381_v45 }
 0x320   : > { %4396 = vpow2.f32 %v1779_v51  ;;  %v1697_v24 = vsub.f32 %v4964_v58, %v1573_v20  ;;  %v1698_v22 = vsub.f32 %v4967_v60, %v1573_v20  ;;  %v2323_v37 = vpack.c.bf16 %v4387_v52, %v4383_v1 }
 0x321   : > { %4398 = vpow2.f32 %v1781_v35  ;;  %v5499_v39 = vadd.f32 %v4387_v52, %v4385_v49  ;;  %v6372_v49 = vsub.f32 %v5129_v42, %v5134_v16  ;;  %v6373_v35 = vsub.f32 %v5136_v11, %v5145_v34 }
 0x322   : > { %v4389_v55 = vpop.eup %4388  ;;  %v1783_v57 = vmul.f32 1.442695, %v1697_v24  ;;  %v1785_v5 = vmul.f32 1.442695, %v1698_v22  ;;  %2500 = vmatprep.mubr.bf16.mxu0 %v2323_v37  ;;  %v6374_v20 = vsub.f32 %v5148_v48, %v5157_v15  ;;  %v6375_v24 = vsub.f32 %v5160_v63, %v5169_v38  ;;  %v6381_v38 = vld [vmem:[#allocation46_spill] sm:$0xff] }
 0x323   : > { %v4391_v44 = vpop.eup %4390  ;;  %2501 = vmatmul.mubr.bf16.gmra.mrb[44].mxu0 %v2322_v10  ;;  %v1451_v51 = vmul.f32 1.442695, %v6372_v49  ;;  %v1453_v52 = vmul.f32 1.442695, %v6373_v35  ;;  %v6376_v37 = vsub.f32 %v5220_v31, %v5226_v54  ;;  %v6377_v16 = vsub.f32 %v5172_v32, %v5183_v25  ;;  %v6383_v31 = vld [vmem:[#allocation47_spill] sm:$0xff] }
 0x324   : > { %4400 = vpow2.f32 %v1783_v57  ;;  %v5501_v0 = vadd.f32 %v4391_v44, %v4389_v55  ;;  %v1455_v10 = vmul.f32 1.442695, %v6374_v20  ;;  %v1457_v22 = vmul.f32 1.442695, %v6375_v24  ;;  %v5542_v57 = vld [vmem:[#allocation3 + $0xf8] sm:$0xff] }
 0x325   : > { %4402 = vpow2.f32 %v1785_v5  ;;  %v1459_v42 = vmul.f32 1.442695, %v6377_v16  ;;  %v6378_v11 = vsub.f32 %v5179_v41, %v5191_v53  ;;  %v6379_v63 = vsub.f32 %v5223_v9, %v5233_v59  ;;  %v6385_v9 = vld [vmem:[#allocation48_spill] sm:$0xff] }
 0x326   : > { %v4393_v23 = vpop.eup %4392  ;;  %4404 = vpow2.f32 %v1451_v51  ;;  %v6380_v54 = vsub.f32 %v5240_v61, %v5246_v43  ;;  %v6382_v25 = vsub.f32 %v5243_v50, %v6381_v38  ;;  %v6384_v53 = vsub.f32 %v6383_v31, %v5266_v27  ;;  %v6387_v43 = vld [vmem:[#allocation49_spill] sm:$0xff]  ;;  %v6389_v50 = vld [vmem:[#allocation50_spill] sm:$0xff]  ;;  %v6398_v51 = vld [vmem:[#allocation56_spill] sm:$0xff] }
 0x327   : > { %v4395_v26 = vpop.eup %4394  ;;  %v2324_v28 = vpack.c.bf16 %v4393_v23, %v4389_v55  ;;  %v1467_v55 = vmul.f32 1.442695, %v6376_v37  ;;  %4406 = vpow2.f32 %v1453_v52  ;;  %v1461_v34 = vmul.f32 1.442695, %v6378_v11  ;;  %v6404_v37 = vld [vmem:[#allocation60_spill] sm:$0xff]  ;;  %v6406_v11 = vld [vmem:[#allocation61_spill] sm:$0xff] }
 0x328   : > { %v2325_v58 = vpack.c.bf16 %v4395_v26, %v4391_v44  ;;  %v5503_v36 = vadd.f32 %v4395_v26, %v4393_v23  ;;  %4408 = vpow2.f32 %v1455_v10  ;;  %v1469_v48 = vmul.f32 1.442695, %v6379_v63 }
 0x329   : > { %4410 = vpow2.f32 %v1457_v22  ;;  %v1471_v15 = vmul.f32 1.442695, %v6380_v54  ;;  %v1473_v32 = vmul.f32 1.442695, %v6382_v25  ;;  %v1475_v41 = vmul.f32 1.442695, %v6384_v53 }
 0x32a   : > { %v4397_v60 = vpop.eup %4396  ;;  %2508 = vmatprep.mubr.bf16.mxu0 %v2325_v58  ;;  %4412 = vpow2.f32 %v1467_v55  ;;  %v6386_v59 = vsub.f32 %v6385_v9, %v5269_v40  ;;  %v6388_v61 = vsub.f32 %v6387_v43, %v5284_v56  ;;  %v6390_v26 = vsub.f32 %v6389_v50, %v5287_v21  ;;  %v6393_v40 = vld [vmem:[#allocation55_spill] sm:$0xff]  ;;  %v6396_v56 = vld [vmem:[#allocation54_spill] sm:$0xff]  ;;  %v6410_v54 = vld [vmem:[#allocation65_spill] sm:$0xff] }
 0x32b   : > { %v4399_v45 = vpop.eup %4398  ;;  %2509 = vmatmul.mubr.bf16.gmra.mrb[48].mxu0 %v2324_v28  ;;  %4414 = vpow2.f32 %v1459_v42  ;;  %v6399_v35 = vsub.f32 %v6398_v51, %v5330_v30  ;;  %v6405_v55 = vsub.f32 %v6404_v37, %v5358_v62  ;;  %v6407_v30 = vld [vmem:[#allocation62_spill] sm:$0xff]  ;;  %v6414_v53 = vld [vmem:[#allocation7_spill] sm:$0xff]  ;;  %v6458_v21 = vld [vmem:[#allocation32_spill] sm:$0xff] }
 0x32c   : > { %v5505_v47 = vadd.f32 %v4399_v45, %v4397_v60  ;;  %4416 = vpow2.f32 %v1461_v34  ;;  %v1477_v5 = vmul.f32 1.442695, %v6386_v59  ;;  %v1479_v44 = vmul.f32 1.442695, %v6388_v61  ;;  %v6413_v62 = vld [vmem:[#allocation6_spill] sm:$0xff]  ;;  %v6416_v59 = vld [vmem:[#allocation64_spill] sm:$0xff] }
 0x32d   : > { %4418 = vpow2.f32 %v1469_v48  ;;  %v1481_v28 = vmul.f32 1.442695, %v6390_v26  ;;  %v1487_v52 = vmul.f32 1.442695, %v6399_v35  ;;  %v1491_v16 = vmul.f32 1.442695, %v6405_v55 }
 0x32e   : > { %v4401_v3 = vpop.eup %4400  ;;  %4420 = vpow2.f32 %v1471_v15  ;;  %v6408_v34 = vsub.f32 %v6406_v11, %v6407_v30  ;;  %v5609_v26 = vld [vmem:[#allocation3 + $0xf0] sm:$0xff]  ;;  %v6426_v35 = vld [vmem:[#allocation9_spill] sm:$0xff] }
 0x32f   : > { %v4403_v1 = vpop.eup %4402  ;;  %v2326_v2 = vpack.c.bf16 %v4401_v3, %v4397_v60  ;;  %4422 = vpow2.f32 %v1473_v32  ;;  %v6392_v60 = vld [vmem:[#allocation51_spill] sm:$0xff]  ;;  %v6429_v55 = vld [vmem:[#allocation68_spill] sm:$0xff] }
 0x330   : > { %v2327_v17 = vpack.c.bf16 %v4403_v1, %v4399_v45  ;;  %v5507_v4 = vadd.f32 %v4403_v1, %v4401_v3  ;;  %v5556_v58 = vpop.eup %4404  ;;  %4424 = vpow2.f32 %v1475_v41  ;;  %v6394_v45 = vsub.f32 %v6392_v60, %v6393_v40  ;;  %v6421_v60 = vld [vmem:[#allocation67_spill] sm:$0xff]  ;;  %v6422_v40 = vld [vmem:[#allocation69_spill] sm:$0xff] }
 0x331   : > { %6391 = vst [vmem:[#allocation46_spill] sm:$0xff] %v5556_v58  ;;  %v5561_v1 = vpop.eup %4406  ;;  %4426 = vpow2.f32 %v1477_v5  ;;  %v1493_v63 = vmul.f32 1.442695, %v6408_v34  ;;  %v6417_v5 = vld [vmem:[#allocation66_spill] sm:$0xff] }
 0x332   : > { %2516 = vmatprep.mubr.bf16.mxu0 %v2327_v17  ;;  %v1483_v3 = vmul.f32 1.442695, %v6394_v45  ;;  %6395 = vst [vmem:[#allocation47_spill] sm:$0xff] %v5561_v1  ;;  %v5571_v49 = vpop.eup %4408  ;;  %4428 = vpow2.f32 %v1479_v44  ;;  %v6418_v43 = vsub.f32 %v6416_v59, %v6417_v5  ;;  %v6423_v45 = vsub.f32 %v6421_v60, %v6422_v40  ;;  %v6438_v5 = vld [vmem:[#allocation11_spill] sm:$0xff] }
 0x333   : > { %2517 = vmatmul.mubr.bf16.gmra.mrb[52].mxu0 %v2326_v2  ;;  %v6397_v2 = vsub.f32 %v6396_v56, %v5313_v29  ;;  %v5576_v20 = vpop.eup %4410  ;;  %4430 = vpow2.f32 %v1481_v28  ;;  %v6401_v29 = vld [vmem:[#allocation57_spill] sm:$0xff]  ;;  %v6441_v40 = vld [vmem:[#allocation15_spill] sm:$0xff] }
 0x334   : > { %6400 = vst [vmem:[#allocation48_spill] sm:$0xff] %v5576_v20  ;;  %v6402_v10 = vsub.f32 %v6401_v29, %v5333_v46  ;;  %v5581_v22 = vpop.eup %4412  ;;  %4432 = vpow2.f32 %v1483_v3  ;;  %v6409_v46 = vld [vmem:[#allocation63_spill] sm:$0xff]  ;;  %v1497_v61 = vmul.f32 1.442695, %v6418_v43  ;;  %v1499_v3 = vmul.f32 1.442695, %v6423_v45 }
 0x335   : > { %v1485_v17 = vmul.f32 1.442695, %v6397_v2  ;;  %6403 = vst [vmem:[#allocation49_spill] sm:$0xff] %v5581_v22  ;;  %v5586_v42 = vpop.eup %4414  ;;  %v6411_v15 = vsub.f32 %v6409_v46, %v6410_v54  ;;  %v6433_v54 = vld [vmem:[#allocation72_spill] sm:$0xff] }
 0x336   : > { %v1489_v24 = vmul.f32 1.442695, %v6402_v10  ;;  %v5592_v48 = vpop.eup %4416 }
 0x337   : > { %4434 = vpow2.f32 %v1485_v17  ;;  %v1495_v38 = vmul.f32 1.442695, %v6411_v15  ;;  %v5597_v32 = vpop.eup %4418  ;;  %v6425_v17 = vld [vmem:[#allocation8_spill] sm:$0xff]  ;;  %v6434_v15 = vld [vmem:[#allocation73_spill] sm:$0xff] }
 0x338   : > { %4436 = vpow2.f32 %v1487_v52  ;;  %6412 = vst [vmem:[#allocation50_spill] sm:$0xff] %v5597_v32  ;;  %v5601_v9 = vpop.eup %4420 }
 0x339   : > { %4438 = vpow2.f32 %v1489_v24  ;;  %6415 = vst [vmem:[#allocation51_spill] sm:$0xff] %v5601_v9  ;;  %v5606_v44 = vpop.eup %4422 }
 0x33a   : > { %4440 = vpow2.f32 %v1491_v16  ;;  %6419 = vst [vmem:[#allocation55_spill] sm:$0xff] %v5606_v44  ;;  %v5611_v28 = vpop.eup %4424  ;;  %v6430_v16 = vld [vmem:[#allocation70_spill] sm:$0xff] }
 0x33b   : > { %4442 = vpow2.f32 %v1493_v63  ;;  %6420 = vst [vmem:[#allocation54_spill] sm:$0xff] %v5611_v28  ;;  %v5616_v2 = vpop.eup %4426  ;;  %v6431_v11 = vsub.f32 %v6429_v55, %v6430_v16  ;;  %v6445_v16 = vld [vmem:[#allocation12_spill] sm:$0xff] }
 0x33c   : > { %4444 = vpow2.f32 %v1495_v38  ;;  %6424 = vst [vmem:[#allocation56_spill] sm:$0xff] %v5616_v2  ;;  %v5620_v10 = vpop.eup %4428  ;;  %v6435_v38 = vsub.f32 %v6433_v54, %v6434_v15  ;;  %v6448_v15 = vld [vmem:[#allocation24_spill] sm:$0xff] }
 0x33d   : > { %6427 = vst [vmem:[#allocation57_spill] sm:$0xff] %v5620_v10  ;;  %v5625_v37 = vpop.eup %4430  ;;  %v1501_v30 = vmul.f32 1.442695, %v6431_v11 }
 0x33e   : > { %6428 = vst [vmem:[#allocation60_spill] sm:$0xff] %v5625_v37  ;;  %v5631_v46 = vpop.eup %4432 }
 0x33f   : > { %6432 = vst [vmem:[#allocation61_spill] sm:$0xff] %v5631_v46 }
 0x344   : > { %v1386_v23 = vpop.xlane.xlu0 %1385 }
 0x345   : > { %v5554_v27 = vmax.f32 %v5542_v57, %v1386_v23 }
 0x347   : > { %2700 = vst.msk [vmem:[#allocation3 + $0xf8] sm:$0xff] %vm781_vm0, %v5554_v27  ;;  %1672 = vperm.xlu1 %4291, %v5554_v27  }
 0x34b   : > { %2166 = vperm.xlu1 %4291, %v5581_v22  }
 0x34c   : > { %v1578_v25 = vpop.permute.xlu0 %1577 }
 0x34d   : > { %v1699_v31 = vsub.f32 %v6413_v62, %v1578_v25  ;;  %v1700_v41 = vsub.f32 %v6414_v53, %v1578_v25  ;;  %v1505_v25 = vmul.f32 1.442695, %v6435_v38  ;;  %v5641_v53 = vpop.eup %4434 }
 0x34e   : > { %6436 = vst [vmem:[#allocation62_spill] sm:$0xff] %v5641_v53 }
 0x34f   : > { %v1787_v23 = vmul.f32 1.442695, %v1699_v31  ;;  %v1789_v50 = vmul.f32 1.442695, %v1700_v41  ;;  %2176 = vperm.xlu1 %4291, %v5601_v9   ;;  %v6437_v41 = vld [vmem:[#allocation10_spill] sm:$0xff] }
 0x350   : > { %v1583_v56 = vpop.permute.xlu0 %1582 }
 0x351   : > { %4446 = vpow2.f32 %v1787_v23  ;;  %v1701_v51 = vsub.f32 %v6425_v17, %v1583_v56  ;;  %v1702_v52 = vsub.f32 %v6426_v35, %v1583_v56  ;;  %v1383_v29 = vpop.xlane.xlu1 %1382  ;;  %v5645_v23 = vpop.eup %4436 }
 0x352   : > { %4448 = vpow2.f32 %v1789_v50  ;;  %v5623_v24 = vmax.f32 %v5609_v26, %v1383_v29  ;;  %6439 = vst [vmem:[#allocation63_spill] sm:$0xff] %v5645_v23  ;;  %v6440_v50 = vld [vmem:[#allocation14_spill] sm:$0xff] }
 0x353   : > { %4450 = vpow2.f32 %v1497_v61  ;;  %v1791_v34 = vmul.f32 1.442695, %v1701_v51  ;;  %v1793_v63 = vmul.f32 1.442695, %v1702_v52  ;;  %2181 = vperm.xlu1 %4291, %v5606_v44   ;;  %v6466_v44 = vld [vmem:[#allocation40_spill] sm:$0xff] }
 0x354   : > { %4452 = vpow2.f32 %v1499_v3  ;;  %2699 = vst.msk [vmem:[#allocation3 + $0xf0] sm:$0xff] %vm781_vm0, %v5623_v24  ;;  %1667 = vperm.xlu0 %4290, %v5623_v24   ;;  %v1588_v31 = vpop.permute.xlu0 %1587  ;;  %v5649_v3 = vpop.eup %4438 }
 0x355   : > { %4454 = vpow2.f32 %v1791_v34  ;;  %v1703_v59 = vsub.f32 %v6437_v41, %v1588_v31  ;;  %v1704_v43 = vsub.f32 %v6438_v5, %v1588_v31  ;;  %v1598_v61 = vpop.permute.xlu1 %1597  ;;  %6442 = vst [vmem:[#allocation65_spill] sm:$0xff] %v5649_v3  ;;  %v5652_v51 = vpop.eup %4440  ;;  %v6446_v34 = vld [vmem:[#allocation13_spill] sm:$0xff] }
 0x356   : > { %4456 = vpow2.f32 %v1793_v63  ;;  %v1707_v60 = vsub.f32 %v6440_v50, %v1598_v61  ;;  %v1708_v45 = vsub.f32 %v6441_v40, %v1598_v61  ;;  %6443 = vst [vmem:[#allocation6_spill] sm:$0xff] %v5652_v51  ;;  %v5655_v55 = vpop.eup %4442  ;;  %v6449_v31 = vld [vmem:[#allocation25_spill] sm:$0xff] }
 0x357   : > { %4458 = vpow2.f32 %v1501_v30  ;;  %v1795_v56 = vmul.f32 1.442695, %v1703_v59  ;;  %v1797_v17 = vmul.f32 1.442695, %v1704_v43  ;;  %2191 = vperm.xlu1 %4291, %v5616_v2   ;;  %6444 = vst [vmem:[#allocation7_spill] sm:$0xff] %v5655_v55  ;;  %v5659_v54 = vpop.eup %4444 }
 0x358   : > { %4460 = vpow2.f32 %v1505_v25  ;;  %v1803_v35 = vmul.f32 1.442695, %v1707_v60  ;;  %v1805_v52 = vmul.f32 1.442695, %v1708_v45  ;;  %2171 = vperm.xlu0 %4290, %v5597_v32   ;;  %v1593_v29 = vpop.permute.xlu0 %1592  ;;  %6447 = vst [vmem:[#allocation64_spill] sm:$0xff] %v5659_v54  ;;  %v6451_v45 = vld [vmem:[#allocation16_spill] sm:$0xff] }
 0x359   : > { %4462 = vpow2.f32 %v1795_v56  ;;  %v1705_v11 = vsub.f32 %v6445_v16, %v1593_v29  ;;  %v1706_v63 = vsub.f32 %v6446_v34, %v1593_v29  ;;  %v1623_v30 = vpop.permute.xlu1 %1622  ;;  %v6453_v34 = vld [vmem:[#allocation28_spill] sm:$0xff] }
 0x35a   : > { %4464 = vpow2.f32 %v1797_v17  ;;  %v1717_v38 = vsub.f32 %v6448_v15, %v1623_v30  ;;  %v1718_v25 = vsub.f32 %v6449_v31, %v1623_v30  ;;  %v6452_v17 = vld [vmem:[#allocation17_spill] sm:$0xff] }
 0x35b   : > { %v4447_v41 = vpop.eup %4446  ;;  %4466 = vpow2.f32 %v1803_v35  ;;  %v1799_v59 = vmul.f32 1.442695, %v1705_v11  ;;  %v1801_v5 = vmul.f32 1.442695, %v1706_v63  ;;  %2201 = vperm.xlu1 %4291, %v5625_v37   ;;  %v6454_v63 = vld [vmem:[#allocation29_spill] sm:$0xff] }
 0x35c   : > { %v4449_v43 = vpop.eup %4448  ;;  %4468 = vpow2.f32 %v1805_v52  ;;  %v1823_v61 = vmul.f32 1.442695, %v1717_v38  ;;  %v1825_v50 = vmul.f32 1.442695, %v1718_v25  ;;  %2186 = vperm.xlu0 %4290, %v5611_v28   ;;  %v1603_v60 = vpop.permute.xlu0 %1602 }
 0x35d   : > { %v5665_v40 = vpop.eup %4450  ;;  %4470 = vpow2.f32 %v1799_v59  ;;  %v1709_v56 = vsub.f32 %v6451_v45, %v1603_v60  ;;  %v1710_v29 = vsub.f32 %v6452_v17, %v1603_v60  ;;  %v1633_v16 = vpop.permute.xlu1 %1632  ;;  %v5669_v35 = vadd.f32 %v4449_v43, %v4447_v41 }
 0x35e   : > { %6450 = vst [vmem:[#allocation66_spill] sm:$0xff] %v5665_v40  ;;  %v5671_v11 = vpop.eup %4452  ;;  %4472 = vpow2.f32 %v1801_v5  ;;  %v1721_v52 = vsub.f32 %v6453_v34, %v1633_v16  ;;  %v1722_v30 = vsub.f32 %v6454_v63, %v1633_v16  ;;  %v6456_v5 = vld [vmem:[#allocation18_spill] sm:$0xff]  ;;  %v6457_v16 = vld [vmem:[#allocation19_spill] sm:$0xff] }
 0x35f   : > { %v4455_v15 = vpop.eup %4454  ;;  %4474 = vpow2.f32 %v1823_v61  ;;  %v1807_v38 = vmul.f32 1.442695, %v1709_v56  ;;  %v1809_v31 = vmul.f32 1.442695, %v1710_v29  ;;  %2211 = vperm.xlu1 %4291, %v5641_v53  }
 0x360   : > { %v4457_v25 = vpop.eup %4456  ;;  %4476 = vpow2.f32 %v1825_v50  ;;  %v1831_v59 = vmul.f32 1.442695, %v1721_v52  ;;  %v1833_v60 = vmul.f32 1.442695, %v1722_v30  ;;  %2196 = vperm.xlu0 %4290, %v5620_v10   ;;  %v1608_v45 = vpop.permute.xlu0 %1607  ;;  %v2328_v17 = vpack.c.bf16 %v4455_v15, %v4447_v41  ;;  %v6459_v52 = vld [vmem:[#allocation33_spill] sm:$0xff] }
 0x361   : > { %v5677_v62 = vpop.eup %4458  ;;  %4478 = vpow2.f32 %v1807_v38  ;;  %v1711_v34 = vsub.f32 %v6456_v5, %v1608_v45  ;;  %v1712_v63 = vsub.f32 %v6457_v16, %v1608_v45  ;;  %v1643_v61 = vpop.permute.xlu1 %1642  ;;  %v2329_v56 = vpack.c.bf16 %v4457_v25, %v4449_v43  ;;  %v6461_v5 = vld [vmem:[#allocation21_spill] sm:$0xff] }
 0x362   : > { %6455 = vst [vmem:[#allocation67_spill] sm:$0xff] %v5677_v62  ;;  %v5681_v29 = vpop.eup %4460  ;;  %4480 = vpow2.f32 %v1809_v31  ;;  %v1725_v50 = vsub.f32 %v6458_v21, %v1643_v61  ;;  %v1726_v30 = vsub.f32 %v6459_v52, %v1643_v61  ;;  %v5685_v53 = vadd.f32 %v4457_v25, %v4455_v15  ;;  %v6460_v15 = vld [vmem:[#allocation20_spill] sm:$0xff] }
 0x363   : > { %v4463_v37 = vpop.eup %4462  ;;  %4482 = vpow2.f32 %v1831_v59  ;;  %v1811_v41 = vmul.f32 1.442695, %v1711_v34  ;;  %v1813_v2 = vmul.f32 1.442695, %v1712_v63  ;;  %2524 = vmatprep.mubr.bf16.mxu0 %v2329_v56  ;;  %2221 = vperm.xlu1 %4291, %v5649_v3   ;;  %v6462_v61 = vld [vmem:[#allocation36_spill] sm:$0xff]  ;;  %v6463_v56 = vld [vmem:[#allocation37_spill] sm:$0xff] }
 0x364   : > { %v4465_v38 = vpop.eup %4464  ;;  %4484 = vpow2.f32 %v1833_v60  ;;  %v1839_v45 = vmul.f32 1.442695, %v1725_v50  ;;  %v1841_v43 = vmul.f32 1.442695, %v1726_v30  ;;  %2525 = vmatmul.mubr.bf16.gmra.mrb[56].mxu0 %v2328_v17  ;;  %2206 = vperm.xlu0 %4290, %v5631_v46   ;;  %v1613_v31 = vpop.permute.xlu0 %1612 }
 0x365   : > { %v5689_v21 = vpop.eup %4466  ;;  %4486 = vpow2.f32 %v1811_v41  ;;  %v1713_v25 = vsub.f32 %v6460_v15, %v1613_v31  ;;  %v1714_v59 = vsub.f32 %v6461_v5, %v1613_v31  ;;  %v1653_v34 = vpop.permute.xlu1 %1652  ;;  %v5693_v16 = vadd.f32 %v4465_v38, %v4463_v37 }
 0x366   : > { %v4469_v63 = vpop.eup %4468  ;;  %4488 = vpow2.f32 %v1813_v2  ;;  %v1729_v60 = vsub.f32 %v6462_v61, %v1653_v34  ;;  %v1730_v50 = vsub.f32 %v6463_v56, %v1653_v34  ;;  %v6464_v34 = vld [vmem:[#allocation22_spill] sm:$0xff] }
 0x367   : > { %v4471_v17 = vpop.eup %4470  ;;  %4490 = vpow2.f32 %v1839_v45  ;;  %v1815_v52 = vmul.f32 1.442695, %v1713_v25  ;;  %v1817_v30 = vmul.f32 1.442695, %v1714_v59  ;;  %2231 = vperm.xlu1 %4291, %v5655_v55   ;;  %v5699_v41 = vadd.f32 %v4469_v63, %v5689_v21  ;;  %v6465_v25 = vld [vmem:[#allocation23_spill] sm:$0xff] }
 0x368   : > { %v4473_v15 = vpop.eup %4472  ;;  %4492 = vpow2.f32 %v1841_v43  ;;  %v1847_v31 = vmul.f32 1.442695, %v1729_v60  ;;  %v1849_v5 = vmul.f32 1.442695, %v1730_v50  ;;  %2216 = vperm.xlu0 %4290, %v5645_v23   ;;  %v1618_v2 = vpop.permute.xlu0 %1617  ;;  %v2330_v3 = vpack.c.bf16 %v4471_v17, %v4463_v37  ;;  %v6467_v60 = vld [vmem:[#allocation41_spill] sm:$0xff] }
 0x369   : > { %v5702_v61 = vpop.eup %4474  ;;  %4494 = vpow2.f32 %v1815_v52  ;;  %v1715_v45 = vsub.f32 %v6464_v34, %v1618_v2  ;;  %v1716_v59 = vsub.f32 %v6465_v25, %v1618_v2  ;;  %v1663_v56 = vpop.permute.xlu1 %1662  ;;  %v2331_v55 = vpack.c.bf16 %v4473_v15, %v4465_v38 }
 0x36a   : > { %v5706_v46 = vpop.eup %4476  ;;  %4496 = vpow2.f32 %v1817_v30  ;;  %v1733_v43 = vsub.f32 %v6466_v44, %v1663_v56  ;;  %v1734_v50 = vsub.f32 %v6467_v60, %v1663_v56  ;;  %v5710_v10 = vadd.f32 %v4473_v15, %v4471_v17  ;;  %v6468_v15 = vld [vmem:[#allocation26_spill] sm:$0xff] }
 0x36b   : > { %v4479_v23 = vpop.eup %4478  ;;  %4498 = vpow2.f32 %v1847_v31  ;;  %v1819_v37 = vmul.f32 1.442695, %v1715_v45  ;;  %v1821_v9 = vmul.f32 1.442695, %v1716_v59  ;;  %2532 = vmatprep.mubr.bf16.mxu0 %v2331_v55  ;;  %2241 = vperm.xlu1 %4291, %v5665_v40   ;;  %v5715_v52 = vadd.f32 %v5706_v46, %v5702_v61  ;;  %v6469_v55 = vld [vmem:[#allocation27_spill] sm:$0xff] }
 0x36c   : > { %v4481_v38 = vpop.eup %4480  ;;  %4500 = vpow2.f32 %v1849_v5  ;;  %v1855_v30 = vmul.f32 1.442695, %v1733_v43  ;;  %v1857_v2 = vmul.f32 1.442695, %v1734_v50  ;;  %2533 = vmatmul.mubr.bf16.gmra.mrb[60].mxu0 %v2330_v3  ;;  %2226 = vperm.xlu0 %4290, %v5652_v51   ;;  %v1628_v44 = vpop.permute.xlu0 %1627  ;;  %v6470_v50 = vld [vmem:[#allocation71_spill] sm:$0xff] }
 0x36d   : > { %v5718_v17 = vpop.eup %4482  ;;  %4502 = vpow2.f32 %v1819_v37  ;;  %v1719_v31 = vsub.f32 %v6468_v15, %v1628_v44  ;;  %v1720_v34 = vsub.f32 %v6469_v55, %v1628_v44  ;;  %v2333_v45 = vpack.c.bf16 %v4481_v38, %v4469_v63  ;;  %v6473_v15 = vld [vmem:[#allocation31_spill] sm:$0xff] }
 0x36e   : > { %v5722_v25 = vpop.eup %4484  ;;  %4504 = vpow2.f32 %v1821_v9  ;;  %v5724_v59 = vadd.f32 %v4481_v38, %v4479_v23  ;;  %v6471_v63 = vsub.f32 %v6470_v50, %v5418_v13  ;;  %v2332_v13 = vpack.c.bf16 %v4479_v23, %v5689_v21  ;;  %v6475_v50 = vld [vmem:[#allocation44_spill] sm:$0xff] }
 0x36f   : > { %v5726_v5 = vpop.eup %4486  ;;  %4506 = vpow2.f32 %v1855_v30  ;;  %v1827_v3 = vmul.f32 1.442695, %v1719_v31  ;;  %v1829_v56 = vmul.f32 1.442695, %v1720_v34  ;;  %2540 = vmatprep.mubr.bf16.mxu0 %v2333_v45  ;;  %2131 = vperm.xlu1 %4291, %v5561_v1   ;;  %v5731_v43 = vadd.f32 %v5722_v25, %v5718_v17  ;;  %v6472_v30 = vld [vmem:[#allocation30_spill] sm:$0xff] }
 0x370   : > { %v4489_v60 = vpop.eup %4488  ;;  %v1503_v37 = vmul.f32 1.442695, %v6471_v63  ;;  %4508 = vpow2.f32 %v1857_v2  ;;  %2236 = vperm.xlu0 %4290, %v5659_v54   ;;  %v1638_v9 = vpop.permute.xlu0 %1637  ;;  %v6474_v2 = vld [vmem:[#allocation42_spill] sm:$0xff] }
 0x371   : > { %v5737_v38 = vpop.eup %4490  ;;  %4510 = vpow2.f32 %v1827_v3  ;;  %v1723_v44 = vsub.f32 %v6472_v30, %v1638_v9  ;;  %v1724_v31 = vsub.f32 %v6473_v15, %v1638_v9  ;;  %v5742_v55 = vadd.f32 %v4489_v60, %v5726_v5  ;;  %v6477_v30 = vld [vmem:[#allocation43_spill] sm:$0xff]  ;;  %v6478_v15 = vld [vmem:[#allocation45_spill] sm:$0xff] }
 0x372   : > { %v5744_v34 = vpop.eup %4492  ;;  %4512 = vpow2.f32 %v1829_v56  ;;  %v6476_v63 = vsub.f32 %v6474_v2, %v6475_v50  ;;  %v6479_v28 = vsub.f32 %v6477_v30, %v6478_v15  ;;  %v6481_v2 = vld [vmem:[#allocation35_spill] sm:$0xff] }
 0x373   : > { %v4495_v45 = vpop.eup %4494  ;;  %v1835_v54 = vmul.f32 1.442695, %v1723_v44  ;;  %v1837_v51 = vmul.f32 1.442695, %v1724_v31  ;;  %2251 = vperm.xlu1 %4291, %v5677_v62   ;;  %v5753_v3 = vadd.f32 %v5744_v34, %v5737_v38  ;;  %4514 = vpow2.f32 %v1503_v37  ;;  %v6480_v44 = vld [vmem:[#allocation34_spill] sm:$0xff]  ;;  %v6482_v15 = vld [vmem:[#allocation75_spill] sm:$0xff] }
 0x374   : > { %v1463_v40 = vmul.f32 1.442695, %v6476_v63  ;;  %v4497_v9 = vpop.eup %4496  ;;  %v1465_v56 = vmul.f32 1.442695, %v6479_v28  ;;  %2541 = vmatmul.mubr.bf16.gmra.mrb[64].mxu0 %v2332_v13  ;;  %2126 = vperm.xlu0 %4290, %v5556_v58   ;;  %v1648_v23 = vpop.permute.xlu0 %1647  ;;  %v2334_v32 = vpack.c.bf16 %v4495_v45, %v5726_v5 }
 0x375   : > { %v5759_v21 = vpop.eup %4498  ;;  %4516 = vpow2.f32 %v1835_v54  ;;  %v1727_v31 = vsub.f32 %v6480_v44, %v1648_v23  ;;  %v1728_v50 = vsub.f32 %v6481_v2, %v1648_v23  ;;  %v2335_v63 = vpack.c.bf16 %v4497_v9, %v4489_v60  ;;  %v6483_v60 = vld [vmem:[#allocation76_spill] sm:$0xff]  ;;  %v6486_v2 = vld [vmem:[#allocation39_spill] sm:$0xff] }
 0x376   : > { %v5763_v62 = vpop.eup %4500  ;;  %4518 = vpow2.f32 %v1837_v51  ;;  %v5765_v22 = vadd.f32 %v4497_v9, %v4495_v45  ;;  %v6484_v23 = vsub.f32 %v6482_v15, %v6483_v60 }
 0x377   : > { %v4503_v30 = vpop.eup %4502  ;;  %4520 = vpow2.f32 %v1463_v40  ;;  %v1843_v28 = vmul.f32 1.442695, %v1727_v31  ;;  %v1845_v37 = vmul.f32 1.442695, %v1728_v50  ;;  %2548 = vmatprep.mubr.bf16.mxu0 %v2335_v63  ;;  %2141 = vperm.xlu1 %4291, %v5576_v20   ;;  %v5770_v54 = vadd.f32 %v5763_v62, %v5759_v21  ;;  %v6485_v40 = vld [vmem:[#allocation38_spill] sm:$0xff] }
 0x378   : > { %v4505_v13 = vpop.eup %4504  ;;  %4522 = vpow2.f32 %v1465_v56  ;;  %v1509_v44 = vmul.f32 1.442695, %v6484_v23  ;;  %2246 = vperm.xlu0 %4290, %v5671_v11   ;;  %v1658_v51 = vpop.permute.xlu0 %1657  ;;  %v6487_v23 = vld [vmem:[#allocation74_spill] sm:$0xff] }
 0x379   : > { %v4507_v9 = vpop.eup %4506  ;;  %4524 = vpow2.f32 %v1843_v28  ;;  %v1731_v31 = vsub.f32 %v6485_v40, %v1658_v51  ;;  %v1732_v50 = vsub.f32 %v6486_v2, %v1658_v51  ;;  %v5779_v20 = vadd.f32 %v4505_v13, %v4503_v30 }
 0x37a   : > { %v4509_v63 = vpop.eup %4508  ;;  %4526 = vpow2.f32 %v1845_v37  ;;  %v2337_v15 = vpack.c.bf16 %v5706_v46, %v4505_v13  ;;  %v6488_v37 = vsub.f32 %v6487_v23, %v5440_v6 }
 0x37b   : > { %v4511_v56 = vpop.eup %4510  ;;  %v1851_v1 = vmul.f32 1.442695, %v1731_v31  ;;  %v1853_v58 = vmul.f32 1.442695, %v1732_v50  ;;  %2261 = vperm.xlu1 %4291, %v5681_v29   ;;  %v5783_v60 = vadd.f32 %v4509_v63, %v4507_v9  ;;  %4528 = vpow2.f32 %v1509_v44 }
 0x37c   : > { %v4513_v28 = vpop.eup %4512  ;;  %2549 = vmatmul.mubr.bf16.gmra.mrb[68].mxu0 %v2334_v32  ;;  %2136 = vperm.xlu0 %4290, %v5571_v49   ;;  %v1507_v5 = vmul.f32 1.442695, %v6488_v37 }
 0x37d   : > { %4530 = vpow2.f32 %v1851_v1  ;;  %2556 = vmatprep.mubr.bf16.mxu0 %v2337_v15  ;;  %v5789_v45 = vadd.f32 %v4513_v28, %v4511_v56  ;;  %v5791_v51 = vpop.eup %4514  ;;  %v2336_v1 = vpack.c.bf16 %v5702_v61, %v4503_v30  ;;  %v2338_v30 = vpack.c.bf16 %v5718_v17, %v4511_v56 }
 0x37e   : > { %4532 = vpow2.f32 %v1853_v58  ;;  %v2339_v58 = vpack.c.bf16 %v5722_v25, %v4513_v28 }
 0x37f   : > { %v4517_v40 = vpop.eup %4516  ;;  %2151 = vperm.xlu1 %4291, %v5592_v48   ;;  %4534 = vpow2.f32 %v1507_v5 }
 0x380   : > { %v4519_v46 = vpop.eup %4518  ;;  %2256 = vperm.xlu0 %4290, %v5791_v51   ;;  %v2340_v37 = vpack.c.bf16 %v5737_v38, %v4517_v40 }
 0x381   : > { %v5795_v32 = vpop.eup %4520  ;;  %v5797_v13 = vadd.f32 %v4519_v46, %v4517_v40  ;;  %v2341_v28 = vpack.c.bf16 %v5744_v34, %v4519_v46 }
 0x382   : > { %v5799_v6 = vpop.eup %4522 }
 0x383   : > { %v4525_v44 = vpop.eup %4524  ;;  %2161 = vperm.xlu1 %4291, %v5799_v6  }
 0x384   : > { %v4527_v31 = vpop.eup %4526  ;;  %2557 = vmatmul.mubr.bf16.gmra.mrb[72].mxu0 %v2336_v1  ;;  %2146 = vperm.xlu0 %4290, %v5586_v42   ;;  %v2342_v1 = vpack.c.bf16 %v5759_v21, %v4525_v44 }
 0x385   : > { %2564 = vmatprep.mubr.bf16.mxu0 %v2339_v58  ;;  %v5805_v2 = vadd.f32 %v4527_v31, %v4525_v44  ;;  %v5807_v50 = vpop.eup %4528  ;;  %v2343_v5 = vpack.c.bf16 %v5763_v62, %v4527_v31  ;;  %v6492_v62 = vld [vmem:[#allocation59_spill] sm:$0xff] }
 0x387   : > { %v4531_v15 = vpop.eup %4530  ;;  %2271 = vperm.xlu1 %4291, %v5807_v50  }
 0x388   : > { %v4533_v23 = vpop.eup %4532  ;;  %2156 = vperm.xlu0 %4290, %v5795_v32   ;;  %v2344_v17 = vpack.c.bf16 %v4507_v9, %v4531_v15 }
 0x389   : > { %v5811_v61 = vadd.f32 %v4533_v23, %v4531_v15  ;;  %v5814_v25 = vpop.eup %4534  ;;  %v2345_v58 = vpack.c.bf16 %v4509_v63, %v4533_v23 }
 0x38c   : > { %2565 = vmatmul.mubr.bf16.gmra.mrb[76].mxu0 %v2338_v30  ;;  %2266 = vperm.xlu0 %4290, %v5814_v25  }
 0x38d   : > { %2572 = vmatprep.mubr.bf16.mxu0 %v2341_v28  ;;  %v6493_v28 = vsub.f32 %v5542_v57, %v5554_v27 }
 0x394   : > { %2573 = vmatmul.mubr.bf16.gmra.mrb[80].mxu0 %v2340_v37 }
 0x395   : > { %2580 = vmatprep.mubr.bf16.mxu0 %v2343_v5 }
 0x39c   : > { %2581 = vmatmul.mubr.bf16.gmra.mrb[84].mxu0 %v2342_v1 }
 0x39d   : > { %2588 = vmatprep.mubr.bf16.mxu0 %v2345_v58 }
 0x3a4   : > { %2589 = vmatmul.mubr.bf16.gmra.mrb[88].mxu0 %v2344_v17 }
 0x3ab   : > { %1935 = vadd.xlane.f32.xlu0 %v5475_v7  ;;  %1932 = vadd.xlane.f32.xlu1 %v5471_v19 }
 0x3af   : > { %1941 = vadd.xlane.f32.xlu0 %v5483_v18  ;;  %1938 = vadd.xlane.f32.xlu1 %v5479_v12  ;;  %v6489_v12 = vld [vmem:[#allocation52_spill] sm:$0xff] }
 0x3b3   : > { %1947 = vadd.xlane.f32.xlu0 %v5491_v14  ;;  %1944 = vadd.xlane.f32.xlu1 %v5487_v8  ;;  %v6490_v14 = vld [vmem:[#allocation53_spill] sm:$0xff] }
 0x3b7   : > { %1953 = vadd.xlane.f32.xlu0 %v5499_v39  ;;  %1950 = vadd.xlane.f32.xlu1 %v5495_v33 }
 0x3bb   : > { %1956 = vadd.xlane.f32.xlu0 %v5501_v0  ;;  %1959 = vadd.xlane.f32.xlu1 %v5503_v36 }
 0x3bf   : > { %1962 = vadd.xlane.f32.xlu0 %v5505_v47  ;;  %1968 = vadd.xlane.f32.xlu1 %v5669_v35 }
 0x3c3   : > { %1965 = vadd.xlane.f32.xlu0 %v5507_v4  ;;  %1974 = vadd.xlane.f32.xlu1 %v5693_v16  ;;  %v6491_v4 = vld [vmem:[#allocation58_spill] sm:$0xff] }
 0x3c6   : > { %v1673_v19 = vpop.permute.xlu1 %1672 }
 0x3c7   : > { %1971 = vadd.xlane.f32.xlu0 %v5685_v53  ;;  %1980 = vadd.xlane.f32.xlu1 %v5699_v41  ;;  %v1737_v18 = vsub.f32 %v6489_v12, %v1673_v19  ;;  %v1738_v33 = vsub.f32 %v6490_v14, %v1673_v19 }
 0x3c9   : > { %v1863_v39 = vmul.f32 1.442695, %v1737_v18  ;;  %v1865_v36 = vmul.f32 1.442695, %v1738_v33 }
 0x3ca   : > { %v5837_v7 = vpop.permute.xlu1 %2166 }
 0x3cb   : > { %1977 = vadd.xlane.f32.xlu0 %v5710_v10  ;;  %1986 = vadd.xlane.f32.xlu1 %v5742_v55  ;;  %4536 = vpow2.f32 %v1863_v39 }
 0x3cc   : > { %4538 = vpow2.f32 %v1865_v36 }
 0x3ce   : > { %v5842_v8 = vpop.permute.xlu1 %2176 }
 0x3cf   : > { %1983 = vadd.xlane.f32.xlu0 %v5724_v59  ;;  %1992 = vadd.xlane.f32.xlu1 %v5779_v20 }
 0x3d2   : > { %v5847_v0 = vpop.permute.xlu1 %2181 }
 0x3d3   : > { %1989 = vadd.xlane.f32.xlu0 %v5765_v22  ;;  %1998 = vadd.xlane.f32.xlu1 %v5789_v45  ;;  %v1668_v47 = vpop.permute.xlu0 %1667 }
 0x3d4   : > { %v1735_v10 = vsub.f32 %v6491_v4, %v1668_v47  ;;  %v1736_v53 = vsub.f32 %v6492_v62, %v1668_v47  ;;  %v6494_v4 = vsub.f32 %v5609_v26, %v5623_v24 }
 0x3d5   : > { %v4537_v21 = vpop.eup %4536 }
 0x3d6   : > { %v1859_v35 = vmul.f32 1.442695, %v1735_v10  ;;  %v1861_v16 = vmul.f32 1.442695, %v1736_v53  ;;  %v5853_v41 = vpop.permute.xlu1 %2191  ;;  %v4539_v56 = vpop.eup %4538  ;;  %v1511_v10 = vmul.f32 1.442695, %v6494_v4 }
 0x3d7   : > { %1995 = vadd.xlane.f32.xlu0 %v5715_v52  ;;  %2004 = vadd.xlane.f32.xlu1 %v5797_v13  ;;  %v5857_v20 = vpop.permute.xlu0 %2171  ;;  %v2024_v58 = vadd.f32 %v4539_v56, %v4537_v21 }
 0x3d8   : > { %4540 = vpow2.f32 %v1859_v35 }
 0x3d9   : > { %4542 = vpow2.f32 %v1861_v16 }
 0x3da   : > { %v5859_v22 = vpop.permute.xlu1 %2201 }
 0x3db   : > { %2001 = vadd.xlane.f32.xlu0 %v5731_v43  ;;  %2010 = vadd.xlane.f32.xlu1 %v5805_v2  ;;  %v5863_v59 = vpop.permute.xlu0 %2186 }
 0x3de   : > { %v4031_v38 = vpop.f32.mrb[32].mxu0  ;;  %v5865_v55 = vpop.permute.xlu1 %2211 }
 0x3df   : > { %v4032_v34 = vpop.f32.mrb[33].mxu0  ;;  %2007 = vadd.xlane.f32.xlu0 %v5753_v3  ;;  %2016 = vadd.xlane.f32.xlu1 %v5811_v61  ;;  %v5869_v52 = vpop.permute.xlu0 %2196 }
 0x3e0   : > { %v4033_v9 = vadd.f32 %v4032_v34, %v4031_v38  ;;  %v4034_v63 = vpop.f32.mrb[34].mxu0  ;;  %v4348_v38 = vld [vmem:[%s6206_s4] sm:$0xff]  }
 0x3e1   : > { %v4035_v45 = vpop.f32.mrb[35].mxu0  ;;  %4247 = vmatprep.subr.bf16.mxu1 %v4348_v38  ;;  %4199 = vmatprep.subr.bf16.mxu0 %v4348_v38 }
 0x3e2   : > { %v4541_v43 = vpop.eup %4540  ;;  %v4036_v40 = vadd.f32 %v4035_v45, %v4034_v63  ;;  %v5871_v46 = vpop.permute.xlu1 %2221  ;;  %4255 = vmatpush3.bf16.msra.mxu1 %v4348_v38  ;;  %4200 = vmatpush3.bf16.msra.mxu0 %v4348_v38 }
 0x3e3   : > { %v4543_v13 = vpop.eup %4542  ;;  %2013 = vadd.xlane.f32.xlu0 %v5770_v54  ;;  %v5874_v44 = vpop.permute.xlu0 %2206  ;;  %v2346_v31 = vpack.c.bf16 %v4537_v21, %v4541_v43  ;;  %v1513_v54 = vmul.f32 1.442695, %v6493_v28 }
 0x3e4   : > { %v2347_v3 = vpack.c.bf16 %v4539_v56, %v4543_v13  ;;  %v2021_v2 = vadd.f32 %v4543_v13, %v4541_v43 }
 0x3e5   : > { %4544 = vpow2.f32 %v1513_v54 }
 0x3e6   : > { %v4037_v15 = vpop.f32.mrb[36].mxu0  ;;  %2596 = vmatprep.mubr.bf16.mxu0 %v2347_v3  ;;  %2022 = vadd.xlane.f32.xlu1 %v2021_v2  ;;  %v5876_v23 = vpop.permute.xlu1 %2231  ;;  %4546 = vpow2.f32 %v1511_v10 }
 0x3e7   : > { %v4038_v61 = vpop.f32.mrb[37].mxu0  ;;  %2597 = vmatmul.mubr.bf16.gmra.mrb[92].mxu0 %v2346_v31  ;;  %2019 = vadd.xlane.f32.xlu0 %v5783_v60  ;;  %v5879_v30 = vpop.permute.xlu0 %2216 }
 0x3e8   : > { %v4039_v37 = vadd.f32 %v4038_v61, %v4037_v15  ;;  %v4040_v5 = vpop.f32.mrb[38].mxu0 }
 0x3e9   : > { %v4041_v1 = vpop.f32.mrb[39].mxu0 }
 0x3ea   : > { %v4042_v17 = vadd.f32 %v4041_v1, %v4040_v5  ;;  %v5884_v19 = vpop.permute.xlu1 %2241 }
 0x3eb   : > { %2025 = vadd.xlane.f32.xlu0 %v2024_v58  ;;  %v5886_v12 = vpop.permute.xlu0 %2226 }
 0x3ee   : > { %v4043_v18 = vpop.f32.mrb[40].mxu0  ;;  %v2132_v14 = vpop.permute.xlu1 %2131 }
 0x3ef   : > { %v4044_v60 = vpop.f32.mrb[41].mxu0  ;;  %v2285_v33 = vmul.f32 0.0, %v2132_v14  ;;  %v5888_v39 = vpop.permute.xlu0 %2236  ;;  %v2292_v14 = vmul.f32 0.0, %v5837_v7  ;;  %v4349_v7 = vld [vmem:[%s6206_s4 + $0x8] sm:$0xff]  }
 0x3f0   : > { %v4045_v36 = vadd.f32 %v4044_v60, %v4043_v18  ;;  %v4046_v57 = vpop.f32.mrb[42].mxu0  ;;  %v5900_v34 = vpop.eup %4544  ;;  %4248 = vmatprep.subr.bf16.mxu1 %v4349_v7  ;;  %4201 = vmatprep.subr.bf16.mxu0 %v4349_v7 }
 0x3f1   : > { %v4047_v27 = vpop.f32.mrb[43].mxu0  ;;  %v5890_v47 = vadd.f32 %v4036_v40, %v2285_v33  ;;  %v5915_v18 = vpop.eup %4546  ;;  %4256 = vmatpush3.bf16.msra.mxu1 %v4349_v7  ;;  %4202 = vmatpush3.bf16.msra.mxu0 %v4349_v7 }
 0x3f2   : > { %v4048_v62 = vadd.f32 %v4047_v27, %v4046_v57  ;;  %v5895_v53 = vpop.permute.xlu1 %2251  ;;  %v2293_v27 = vmul.f32 0.0, %v5857_v20 }
 0x3f3   : > { %v2127_v35 = vpop.permute.xlu0 %2126 }
 0x3f4   : > { %v2284_v16 = vmul.f32 0.0, %v2127_v35 }
 0x3f6   : > { %v4049_v21 = vpop.f32.mrb[44].mxu0  ;;  %v2142_v63 = vpop.permute.xlu1 %2141  ;;  %v5902_v56 = vadd.f32 %v4033_v9, %v2284_v16 }
 0x3f7   : > { %v4050_v26 = vpop.f32.mrb[45].mxu0  ;;  %v2287_v24 = vmul.f32 0.0, %v2142_v63  ;;  %2281 = vperm.xlu1 %4291, %v5900_v34   ;;  %v5905_v45 = vpop.permute.xlu0 %2246 }
 0x3f8   : > { %v4051_v43 = vadd.f32 %v4050_v26, %v4049_v21  ;;  %v4052_v40 = vpop.f32.mrb[46].mxu0 }
 0x3f9   : > { %v4053_v13 = vpop.f32.mrb[47].mxu0  ;;  %v5907_v31 = vadd.f32 %v4042_v17, %v2287_v24 }
 0x3fa   : > { %v4054_v3 = vadd.f32 %v4053_v13, %v4052_v40  ;;  %v5909_v2 = vpop.permute.xlu1 %2261  ;;  %v4350_v40 = vld [vmem:[%s6206_s4 + $0x10] sm:$0xff]   ;;  %v2294_v13 = vmul.f32 0.0, %v5842_v8  ;;  %v4351_v8 = vld [vmem:[%s6206_s4 + $0x18] sm:$0xff]  }
 0x3fb   : > { %v2137_v15 = vpop.permute.xlu0 %2136  ;;  %4249 = vmatprep.subr.bf16.mxu1 %v4350_v40  ;;  %4203 = vmatprep.subr.bf16.mxu0 %v4350_v40 }
 0x3fc   : > { %v2286_v61 = vmul.f32 0.0, %v2137_v15  ;;  %4257 = vmatpush3.bf16.msra.mxu1 %v4350_v40  ;;  %4204 = vmatpush3.bf16.msra.mxu0 %v4350_v40 }
 0x3fd   : > { %4250 = vmatprep.subr.bf16.mxu1 %v4351_v8  ;;  %4205 = vmatprep.subr.bf16.mxu0 %v4351_v8 }
 0x3fe   : > { %v4055_v9 = vpop.f32.mrb[48].mxu0  ;;  %v2152_v28 = vpop.permute.xlu1 %2151  ;;  %v5911_v54 = vadd.f32 %v4039_v37, %v2286_v61 }
 0x3ff   : > { %v4056_v5 = vpop.f32.mrb[49].mxu0  ;;  %v2289_v1 = vmul.f32 0.0, %v2152_v28  ;;  %v5913_v58 = vpop.permute.xlu0 %2256  ;;  %v2295_v28 = vmul.f32 0.0, %v5847_v0 }
 0x400   : > { %v4057_v60 = vadd.f32 %v4056_v5, %v4055_v9  ;;  %v4058_v17 = vpop.f32.mrb[50].mxu0  ;;  %4258 = vmatpush3.bf16.msra.mxu1 %v4351_v8  ;;  %4206 = vmatpush3.bf16.msra.mxu0 %v4351_v8 }
 0x401   : > { %v4059_v33 = vpop.f32.mrb[51].mxu0  ;;  %2276 = vperm.xlu0 %4290, %v5915_v18   ;;  %v5919_v57 = vadd.f32 %v4048_v62, %v2289_v1 }
 0x402   : > { %v4060_v4 = vadd.f32 %v4059_v33, %v4058_v17  ;;  %v2162_v37 = vpop.permute.xlu1 %2161  ;;  %v5922_v10 = vadd.f32 %v4057_v60, %v2292_v14  ;;  %v4352_v60 = vld [vmem:[%s6206_s4 + $0x20] sm:$0xff]   ;;  %v1868_v33 = vld [vmem:[#allocation4 + $0x8] sm:$0xff] }
 0x403   : > { %v2291_v35 = vmul.f32 0.0, %v2162_v37  ;;  %v2147_v16 = vpop.permute.xlu0 %2146  ;;  %4251 = vmatprep.subr.bf16.mxu1 %v4352_v60  ;;  %4207 = vmatprep.subr.bf16.mxu0 %v4352_v60 }
 0x404   : > { %v2288_v38 = vmul.f32 0.0, %v2147_v16  ;;  %v5927_v21 = vadd.f32 %v4060_v4, %v2293_v27  ;;  %4259 = vmatpush3.bf16.msra.mxu1 %v4352_v60  ;;  %4208 = vmatpush3.bf16.msra.mxu0 %v4352_v60  ;;  %v6495_v4 = vld [vmem:[#allocation46_spill] sm:$0xff] }
 0x405   : > { %v5929_v63 = vadd.f32 %v4054_v3, %v2291_v35 }
 0x406   : > { %v4061_v26 = vpop.f32.mrb[52].mxu0  ;;  %v5931_v62 = vadd.f32 %v4045_v36, %v2288_v38  ;;  %v5950_v0 = vpop.permute.xlu1 %2271  ;;  %v6496_v38 = vld [vmem:[#allocation47_spill] sm:$0xff] }
 0x407   : > { %v4062_v20 = vpop.f32.mrb[53].mxu0  ;;  %v2157_v24 = vpop.permute.xlu0 %2156  ;;  %v1900_v7 = vmul.f32 %v6496_v38, %v1868_v33  ;;  %v6497_v33 = vld [vmem:[#allocation48_spill] sm:$0xff] }
 0x408   : > { %v4063_v15 = vadd.f32 %v4062_v20, %v4061_v26  ;;  %v4064_v61 = vpop.f32.mrb[54].mxu0  ;;  %v2290_v9 = vmul.f32 0.0, %v2157_v24  ;;  %v1869_v26 = vld [vmem:[#allocation4 + $0x10] sm:$0xff]  ;;  %v2296_v20 = vmul.f32 0.0, %v5863_v59 }
 0x409   : > { %v4065_v3 = vpop.f32.mrb[55].mxu0  ;;  %v1901_v60 = vmul.f32 %v5571_v49, %v1869_v26  ;;  %v4354_v49 = vld [vmem:[%s6206_s4 + $0x30] sm:$0xff]  }
 0x40a   : > { %v4066_v36 = vadd.f32 %v4065_v3, %v4064_v61  ;;  %v5938_v5 = vadd.f32 %v4051_v43, %v2290_v9  ;;  %v5940_v1 = vadd.f32 %v4063_v15, %v2294_v13  ;;  %v1867_v43 = vld [vmem:[#allocation4] sm:$0xff]  ;;  %v1870_v61 = vld [vmem:[#allocation4 + $0x18] sm:$0xff] }
 0x40b   : > { %v5952_v17 = vpop.permute.xlu0 %2266  ;;  %v1899_v37 = vmul.f32 %v6495_v4, %v1867_v43  ;;  %v1871_v4 = vld [vmem:[#allocation4 + $0x20] sm:$0xff] }
 0x40c   : > { %v5942_v14 = vadd.f32 %v4066_v36, %v2295_v28  ;;  %v4353_v28 = vld [vmem:[%s6206_s4 + $0x28] sm:$0xff]   ;;  %v2297_v36 = vmul.f32 0.0, %v5853_v41  ;;  %v1903_v26 = vmul.f32 %v5586_v42, %v1871_v4 }
 0x40d   : > { %4252 = vmatprep.subr.bf16.mxu1 %v4353_v28  ;;  %4209 = vmatprep.subr.bf16.mxu0 %v4353_v28 }
 0x40e   : > { %4260 = vmatpush3.bf16.msra.mxu1 %v4353_v28  ;;  %4210 = vmatpush3.bf16.msra.mxu0 %v4353_v28 }
 0x40f   : > { %4253 = vmatprep.subr.bf16.mxu1 %v4354_v49  ;;  %4211 = vmatprep.subr.bf16.mxu0 %v4354_v49 }
 0x412   : > { %4261 = vmatpush3.bf16.msra.mxu1 %v4354_v49  ;;  %4212 = vmatpush3.bf16.msra.mxu0 %v4354_v49  ;;  %v1875_v49 = vld [vmem:[#allocation4 + $0x40] sm:$0xff] }
 0x437   : > { %v4067_v27 = vpop.f32.mrb[56].mxu0 }
 0x438   : > { %v4068_v35 = vpop.f32.mrb[57].mxu0  ;;  %v1933_v16 = vpop.xlane.xlu1 %1932 }
 0x439   : > { %v4069_v24 = vadd.f32 %v4068_v35, %v4067_v27  ;;  %v2027_v40 = vadd.f32 %v1933_v16, %v1899_v37  ;;  %v4070_v13 = vpop.f32.mrb[58].mxu0  ;;  %v1936_v15 = vpop.xlane.xlu0 %1935  ;;  %v1902_v27 = vmul.f32 %v6497_v33, %v1870_v61  ;;  %v1872_v16 = vld [vmem:[#allocation4 + $0x28] sm:$0xff]  ;;  %v2299_v33 = vmul.f32 0.0, %v5859_v22 }
 0x43a   : > { %v2028_v9 = vadd.f32 %v1936_v15, %v1900_v7  ;;  %v4071_v3 = vpop.f32.mrb[59].mxu0  ;;  %v2298_v15 = vmul.f32 0.0, %v5869_v52 }
 0x43b   : > { %2060 = vst.msk [vmem:[#allocation4] sm:$0xff] %vm781_vm0, %v2027_v40  ;;  %v4072_v8 = vadd.f32 %v4071_v3, %v4070_v13  ;;  %v5963_v43 = vadd.f32 %v4069_v24, %v2296_v20  ;;  %v1873_v20 = vld [vmem:[#allocation4 + $0x30] sm:$0xff]  ;;  %v1904_v13 = vmul.f32 %v5592_v48, %v1872_v16 }
 0x43c   : > { %2061 = vst.msk [vmem:[#allocation4 + $0x8] sm:$0xff] %vm781_vm0, %v2028_v9  ;;  %v1939_v59 = vpop.xlane.xlu1 %1938 }
 0x43d   : > { %v2029_v37 = vadd.f32 %v1939_v59, %v1901_v60  ;;  %v1942_v35 = vpop.xlane.xlu0 %1941  ;;  %v5967_v41 = vadd.f32 %v4072_v8, %v2297_v36  ;;  %v1874_v36 = vld [vmem:[#allocation4 + $0x38] sm:$0xff]  ;;  %v1905_v59 = vmul.f32 %v5795_v32, %v1873_v20 }
 0x43e   : > { %v2030_v38 = vadd.f32 %v1942_v35, %v1902_v27  ;;  %v1876_v35 = vld [vmem:[#allocation4 + $0x48] sm:$0xff] }
 0x43f   : > { %2062 = vst.msk [vmem:[#allocation4 + $0x10] sm:$0xff] %vm781_vm0, %v2029_v37  ;;  %v4073_v7 = vpop.f32.mrb[60].mxu0  ;;  %v1906_v37 = vmul.f32 %v5799_v6, %v1874_v36 }
 0x440   : > { %2063 = vst.msk [vmem:[#allocation4 + $0x18] sm:$0xff] %vm781_vm0, %v2030_v38  ;;  %v4074_v24 = vpop.f32.mrb[61].mxu0  ;;  %v1945_v40 = vpop.xlane.xlu1 %1944 }
 0x441   : > { %v4075_v61 = vadd.f32 %v4074_v24, %v4073_v7  ;;  %v2031_v9 = vadd.f32 %v1945_v40, %v1903_v26  ;;  %v4076_v3 = vpop.f32.mrb[62].mxu0  ;;  %v1948_v28 = vpop.xlane.xlu0 %1947  ;;  %v6498_v24 = vld [vmem:[#allocation50_spill] sm:$0xff] }
 0x442   : > { %v2736_v8 = vld [vmem:[#allocation4] sm:$0xff]  ;;  %v2032_v42 = vadd.f32 %v1948_v28, %v1904_v13  ;;  %v4077_v60 = vpop.f32.mrb[63].mxu0  ;;  %v1908_v40 = vmul.f32 %v6498_v24, %v1876_v35 }
 0x443   : > { %4548 = vrcp.f32 %v2736_v8  ;;  %v2737_v48 = vld [vmem:[#allocation4 + $0x8] sm:$0xff]  ;;  %2064 = vst.msk [vmem:[#allocation4 + $0x20] sm:$0xff] %vm781_vm0, %v2031_v9  ;;  %v4078_v27 = vadd.f32 %v4077_v60, %v4076_v3  ;;  %v5980_v52 = vadd.f32 %v4075_v61, %v2298_v15  ;;  %v1879_v13 = vld [vmem:[#allocation4 + $0x60] sm:$0xff]  ;;  %v6499_v61 = vld [vmem:[#allocation49_spill] sm:$0xff]  ;;  %v2300_v3 = vmul.f32 0.0, %v5874_v44 }
 0x444   : > { %4550 = vrcp.f32 %v2737_v48  ;;  %2065 = vst.msk [vmem:[#allocation4 + $0x28] sm:$0xff] %vm781_vm0, %v2032_v42  ;;  %v1951_v4 = vpop.xlane.xlu1 %1950  ;;  %v1907_v9 = vmul.f32 %v6499_v61, %v1875_v49  ;;  %v1877_v60 = vld [vmem:[#allocation4 + $0x50] sm:$0xff]  ;;  %v6501_v49 = vld [vmem:[#allocation51_spill] sm:$0xff] }
 0x445   : > { %v2033_v16 = vadd.f32 %v1951_v4, %v1905_v59  ;;  %v1954_v38 = vpop.xlane.xlu0 %1953  ;;  %v5984_v32 = vadd.f32 %v4078_v27, %v2299_v33  ;;  %v6500_v27 = vld [vmem:[#allocation54_spill] sm:$0xff] }
 0x446   : > { %v2738_v22 = vld [vmem:[#allocation4 + $0x10] sm:$0xff]  ;;  %v2034_v7 = vadd.f32 %v1954_v38, %v1906_v37  ;;  %v1911_v4 = vmul.f32 %v6500_v27, %v1879_v13  ;;  %v2301_v37 = vmul.f32 0.0, %v5865_v55 }
 0x447   : > { %4552 = vrcp.f32 %v2738_v22  ;;  %v2739_v26 = vld [vmem:[#allocation4 + $0x18] sm:$0xff]  ;;  %2066 = vst.msk [vmem:[#allocation4 + $0x30] sm:$0xff] %vm781_vm0, %v2033_v16  ;;  %v4079_v20 = vpop.f32.mrb[64].mxu0  ;;  %v1909_v22 = vmul.f32 %v6501_v49, %v1877_v60  ;;  %v6503_v60 = vld [vmem:[#allocation55_spill] sm:$0xff] }
 0x448   : > { %4554 = vrcp.f32 %v2739_v26  ;;  %2067 = vst.msk [vmem:[#allocation4 + $0x38] sm:$0xff] %vm781_vm0, %v2034_v7  ;;  %v4080_v6 = vpop.f32.mrb[65].mxu0  ;;  %v1960_v15 = vpop.xlane.xlu1 %1959  ;;  %v1881_v7 = vld [vmem:[#allocation4 + $0x70] sm:$0xff] }
 0x449   : > { %v4081_v28 = vadd.f32 %v4080_v6, %v4079_v20  ;;  %v2036_v36 = vadd.f32 %v1960_v15, %v1908_v40  ;;  %v4082_v8 = vpop.f32.mrb[66].mxu0  ;;  %v1957_v42 = vpop.xlane.xlu0 %1956  ;;  %v1878_v40 = vld [vmem:[#allocation4 + $0x58] sm:$0xff] }
 0x44a   : > { %v2740_v59 = vld [vmem:[#allocation4 + $0x20] sm:$0xff]  ;;  %v2035_v33 = vadd.f32 %v1957_v42, %v1907_v9  ;;  %v4083_v48 = vpop.f32.mrb[67].mxu0 }
 0x44b   : > { %4556 = vrcp.f32 %v2740_v59  ;;  %v2741_v35 = vld [vmem:[#allocation4 + $0x28] sm:$0xff]  ;;  %2069 = vst.msk [vmem:[#allocation4 + $0x48] sm:$0xff] %vm781_vm0, %v2036_v36  ;;  %v4084_v16 = vadd.f32 %v4083_v48, %v4082_v8  ;;  %v5994_v38 = vadd.f32 %v4081_v28, %v2300_v3  ;;  %v6502_v3 = vld [vmem:[#allocation57_spill] sm:$0xff]  ;;  %v1883_v36 = vld [vmem:[#allocation4 + $0x80] sm:$0xff]  ;;  %v1910_v59 = vmul.f32 %v6503_v60, %v1878_v40 }
 0x44c   : > { %4558 = vrcp.f32 %v2741_v35  ;;  %2068 = vst.msk [vmem:[#allocation4 + $0x40] sm:$0xff] %vm781_vm0, %v2035_v33  ;;  %v1969_v44 = vpop.xlane.xlu1 %1968  ;;  %v1913_v28 = vmul.f32 %v6502_v3, %v1881_v7  ;;  %v2302_v48 = vmul.f32 0.0, %v5879_v30  ;;  %v2303_v40 = vmul.f32 0.0, %v5871_v46  ;;  %v1885_v3 = vld [vmem:[#allocation4 + $0x90] sm:$0xff] }
 0x44d   : > { %v4549_v26 = vpop.eup %4548  ;;  %v2039_v20 = vadd.f32 %v1969_v44, %v1911_v4  ;;  %v1963_v24 = vpop.xlane.xlu0 %1962  ;;  %v5998_v13 = vadd.f32 %v4084_v16, %v2301_v37  ;;  %v1880_v16 = vld [vmem:[#allocation4 + $0x68] sm:$0xff] }
 0x44e   : > { %v4551_v55 = vpop.eup %4550  ;;  %v2742_v6 = vld [vmem:[#allocation4 + $0x30] sm:$0xff]  ;;  %v2037_v15 = vadd.f32 %v1963_v24, %v1909_v22  ;;  %2802 = vperm.xlu0 %4290, %v4549_v26   ;;  %v6504_v26 = vld [vmem:[#allocation61_spill] sm:$0xff] }
 0x44f   : > { %4560 = vrcp.f32 %v2742_v6  ;;  %v2743_v61 = vld [vmem:[#allocation4 + $0x38] sm:$0xff]  ;;  %2072 = vst.msk [vmem:[#allocation4 + $0x60] sm:$0xff] %vm781_vm0, %v2039_v20  ;;  %v4085_v9 = vpop.f32.mrb[68].mxu0  ;;  %2807 = vperm.xlu1 %4291, %v4551_v55   ;;  %v1915_v20 = vmul.f32 %v6504_v26, %v1883_v36  ;;  %v2304_v26 = vmul.f32 0.0, %v5886_v12 }
 0x450   : > { %4562 = vrcp.f32 %v2743_v61  ;;  %2070 = vst.msk [vmem:[#allocation4 + $0x50] sm:$0xff] %vm781_vm0, %v2037_v15  ;;  %v4086_v8 = vpop.f32.mrb[69].mxu0  ;;  %v1975_v42 = vpop.xlane.xlu1 %1974  ;;  %v4355_v24 = vld [vmem:[%s6206_s4 + $0x38] sm:$0xff]   ;;  %v6505_v61 = vld [vmem:[#allocation56_spill] sm:$0xff] }
 0x451   : > { %v4553_v33 = vpop.eup %4552  ;;  %v4087_v27 = vadd.f32 %v4086_v8, %v4085_v9  ;;  %v2041_v4 = vadd.f32 %v1975_v42, %v1913_v28  ;;  %v4088_v37 = vpop.f32.mrb[70].mxu0  ;;  %v1912_v9 = vmul.f32 %v6505_v61, %v1880_v16  ;;  %4213 = vmatprep.subr.bf16.mxu0 %v4355_v24  ;;  %4254 = vmatprep.subr.bf16.mxu1 %v4355_v24  ;;  %v1882_v8 = vld [vmem:[#allocation4 + $0x78] sm:$0xff] }
 0x452   : > { %v1966_v35 = vpop.xlane.xlu0 %1965  ;;  %v4555_v44 = vpop.eup %4554  ;;  %v2745_v49 = vld [vmem:[#allocation4 + $0x48] sm:$0xff]  ;;  %2812 = vperm.xlu0 %4290, %v4553_v33   ;;  %4214 = vmatpush3.bf16.msra.mxu0 %v4355_v24 }
 0x453   : > { %v2038_v22 = vadd.f32 %v1966_v35, %v1910_v59  ;;  %v4089_v7 = vpop.f32.mrb[71].mxu0  ;;  %4564 = vrcp.f32 %v2745_v49  ;;  %v2744_v30 = vld [vmem:[#allocation4 + $0x40] sm:$0xff]  ;;  %2074 = vst.msk [vmem:[#allocation4 + $0x70] sm:$0xff] %vm781_vm0, %v2041_v4  ;;  %2817 = vperm.xlu1 %4291, %v4555_v44   ;;  %v6011_v6 = vadd.f32 %v4087_v27, %v2302_v48  ;;  %4262 = vmatpush3.bf16.msra.mxu1 %v4355_v24  ;;  %v6506_v27 = vld [vmem:[#allocation63_spill] sm:$0xff]  ;;  %v6507_v49 = vld [vmem:[#allocation60_spill] sm:$0xff] }
 0x454   : > { %v4090_v55 = vadd.f32 %v4089_v7, %v4088_v37  ;;  %4566 = vrcp.f32 %v2744_v30  ;;  %v1981_v15 = vpop.xlane.xlu1 %1980  ;;  %v1917_v4 = vmul.f32 %v6506_v27, %v1885_v3  ;;  %v1887_v37 = vld [vmem:[#allocation4 + $0xa0] sm:$0xff]  ;;  %v1889_v27 = vld [vmem:[#allocation4 + $0xb0] sm:$0xff] }
 0x455   : > { %2071 = vst.msk [vmem:[#allocation4 + $0x58] sm:$0xff] %vm781_vm0, %v2038_v22  ;;  %v4557_v28 = vpop.eup %4556  ;;  %v2043_v36 = vadd.f32 %v1981_v15, %v1915_v20  ;;  %v1914_v22 = vmul.f32 %v6507_v49, %v1882_v8  ;;  %v6508_v3 = vld [vmem:[#allocation6_spill] sm:$0xff] }
 0x456   : > { %v1972_v46 = vpop.xlane.xlu0 %1971  ;;  %v6015_v42 = vadd.f32 %v4090_v55, %v2303_v40  ;;  %v4559_v60 = vpop.eup %4558  ;;  %2822 = vperm.xlu0 %4290, %v4557_v28   ;;  %v2748_v35 = vld [vmem:[#allocation4 + $0x60] sm:$0xff]  ;;  %v1884_v55 = vld [vmem:[#allocation4 + $0x88] sm:$0xff]  ;;  %v1919_v28 = vmul.f32 %v6508_v3, %v1887_v37 }
 0x457   : > { %v2040_v59 = vadd.f32 %v1972_v46, %v1912_v9  ;;  %v2746_v33 = vld [vmem:[#allocation4 + $0x50] sm:$0xff]  ;;  %2076 = vst.msk [vmem:[#allocation4 + $0x80] sm:$0xff] %vm781_vm0, %v2043_v36  ;;  %v4091_v48 = vpop.f32.mrb[72].mxu0  ;;  %2827 = vperm.xlu1 %4291, %v4559_v60   ;;  %v2305_v36 = vmul.f32 0.0, %v5876_v23  ;;  %v1886_v23 = vld [vmem:[#allocation4 + $0x98] sm:$0xff] }
 0x458   : > { %4568 = vrcp.f32 %v2746_v33  ;;  %v4092_v16 = vpop.f32.mrb[73].mxu0  ;;  %v1987_v44 = vpop.xlane.xlu1 %1986  ;;  %v6509_v33 = vld [vmem:[#allocation62_spill] sm:$0xff] }
 0x459   : > { %2073 = vst.msk [vmem:[#allocation4 + $0x68] sm:$0xff] %vm781_vm0, %v2040_v59  ;;  %v4561_v7 = vpop.eup %4560  ;;  %v4093_v20 = vadd.f32 %v4092_v16, %v4091_v48  ;;  %v2045_v24 = vadd.f32 %v1987_v44, %v1917_v4  ;;  %v4094_v40 = vpop.f32.mrb[74].mxu0  ;;  %4570 = vrcp.f32 %v2748_v35  ;;  %v1916_v48 = vmul.f32 %v6509_v33, %v1884_v55 }
 0x45a   : > { %v1978_v30 = vpop.xlane.xlu0 %1977  ;;  %v4563_v15 = vpop.eup %4562  ;;  %2832 = vperm.xlu0 %4290, %v4561_v7   ;;  %v2750_v60 = vld [vmem:[#allocation4 + $0x70] sm:$0xff] }
 0x45b   : > { %v2042_v61 = vadd.f32 %v1978_v30, %v1914_v22  ;;  %v4095_v9 = vpop.f32.mrb[75].mxu0  ;;  %2078 = vst.msk [vmem:[#allocation4 + $0x90] sm:$0xff] %vm781_vm0, %v2045_v24  ;;  %2837 = vperm.xlu1 %4291, %v4563_v15   ;;  %v6025_v12 = vadd.f32 %v4093_v20, %v2304_v26  ;;  %v6510_v26 = vld [vmem:[#allocation64_spill] sm:$0xff]  ;;  %v1891_v24 = vld [vmem:[#allocation4 + $0xc0] sm:$0xff]  ;;  %v6511_v15 = vld [vmem:[#allocation65_spill] sm:$0xff] }
 0x45c   : > { %v2747_v46 = vld [vmem:[#allocation4 + $0x58] sm:$0xff]  ;;  %v4096_v8 = vadd.f32 %v4095_v9, %v4094_v40  ;;  %v1993_v59 = vpop.xlane.xlu1 %1992  ;;  %v1921_v20 = vmul.f32 %v6510_v26, %v1889_v27  ;;  %v2306_v9 = vmul.f32 0.0, %v5888_v39  ;;  %v2307_v27 = vmul.f32 0.0, %v5884_v19 }
 0x45d   : > { %4572 = vrcp.f32 %v2747_v46  ;;  %2075 = vst.msk [vmem:[#allocation4 + $0x78] sm:$0xff] %vm781_vm0, %v2042_v61  ;;  %v4565_v4 = vpop.eup %4564  ;;  %v2047_v37 = vadd.f32 %v1993_v59, %v1919_v28  ;;  %v1918_v61 = vmul.f32 %v6511_v15, %v1886_v23  ;;  %v1890_v19 = vld [vmem:[#allocation4 + $0xb8] sm:$0xff] }
 0x45e   : > { %v1984_v16 = vpop.xlane.xlu0 %1983  ;;  %v6029_v35 = vadd.f32 %v4096_v8, %v2305_v36  ;;  %v4567_v44 = vpop.eup %4566  ;;  %4574 = vrcp.f32 %v2750_v60  ;;  %v2752_v40 = vld [vmem:[#allocation4 + $0x80] sm:$0xff]  ;;  %v1888_v8 = vld [vmem:[#allocation4 + $0xa8] sm:$0xff] }
 0x45f   : > { %v2044_v49 = vadd.f32 %v1984_v16, %v1916_v48  ;;  %2080 = vst.msk [vmem:[#allocation4 + $0xa0] sm:$0xff] %vm781_vm0, %v2047_v37  ;;  %v4097_v7 = vpop.f32.mrb[76].mxu0  ;;  %2847 = vperm.xlu1 %4291, %v4565_v4   ;;  %2842 = vperm.xlu0 %4290, %v4567_v44   ;;  %v1923_v48 = vmul.f32 %v5671_v11, %v1891_v24  ;;  %v6512_v44 = vld [vmem:[#allocation7_spill] sm:$0xff] }
 0x460   : > { %v2749_v22 = vld [vmem:[#allocation4 + $0x68] sm:$0xff]  ;;  %v4098_v30 = vpop.f32.mrb[77].mxu0  ;;  %v1999_v55 = vpop.xlane.xlu1 %1998 }
 0x461   : > { %4576 = vrcp.f32 %v2749_v22  ;;  %2077 = vst.msk [vmem:[#allocation4 + $0x88] sm:$0xff] %vm781_vm0, %v2044_v49  ;;  %v4099_v3 = vadd.f32 %v4098_v30, %v4097_v7  ;;  %v4100_v28 = vpop.f32.mrb[78].mxu0  ;;  %v2049_v36 = vadd.f32 %v1999_v55, %v1921_v20  ;;  %v1920_v49 = vmul.f32 %v6512_v44, %v1888_v8  ;;  %v1893_v22 = vld [vmem:[#allocation4 + $0xd0] sm:$0xff] }
 0x462   : > { %v1990_v46 = vpop.xlane.xlu0 %1989  ;;  %v4569_v60 = vpop.eup %4568  ;;  %4578 = vrcp.f32 %v2752_v40  ;;  %v2754_v39 = vld [vmem:[#allocation4 + $0x90] sm:$0xff]  ;;  %v1925_v15 = vmul.f32 %v5791_v51, %v1893_v22  ;;  %v2309_v44 = vmul.f32 0.0, %v5895_v53  ;;  %v1894_v53 = vld [vmem:[#allocation4 + $0xd8] sm:$0xff] }
 0x463   : > { %v2046_v59 = vadd.f32 %v1990_v46, %v1918_v61  ;;  %v4101_v33 = vpop.f32.mrb[79].mxu0  ;;  %2082 = vst.msk [vmem:[#allocation4 + $0xb0] sm:$0xff] %vm781_vm0, %v2049_v36  ;;  %2852 = vperm.xlu0 %4290, %v4569_v60   ;;  %v6039_v16 = vadd.f32 %v4099_v3, %v2306_v9  ;;  %v4571_v7 = vpop.eup %4570  ;;  %v1895_v61 = vld [vmem:[#allocation4 + $0xe0] sm:$0xff]  ;;  %v2308_v60 = vmul.f32 0.0, %v5905_v45 }
 0x464   : > { %v2751_v4 = vld [vmem:[#allocation4 + $0x78] sm:$0xff]  ;;  %v4102_v37 = vadd.f32 %v4101_v33, %v4100_v28  ;;  %v2005_v23 = vpop.xlane.xlu1 %2004  ;;  %v6513_v36 = vld [vmem:[#allocation66_spill] sm:$0xff] }
 0x465   : > { %4580 = vrcp.f32 %v2751_v4  ;;  %2079 = vst.msk [vmem:[#allocation4 + $0x98] sm:$0xff] %vm781_vm0, %v2046_v59  ;;  %v2051_v11 = vadd.f32 %v2005_v23, %v1923_v48  ;;  %v1922_v46 = vmul.f32 %v6513_v36, %v1890_v19  ;;  %v1892_v4 = vld [vmem:[#allocation4 + $0xc8] sm:$0xff]  ;;  %v1927_v23 = vmul.f32 %v5814_v25, %v1895_v61 }
 0x466   : > { %v1996_v26 = vpop.xlane.xlu0 %1995  ;;  %v6043_v20 = vadd.f32 %v4102_v37, %v2307_v27  ;;  %4582 = vrcp.f32 %v2754_v39  ;;  %v2756_v9 = vld [vmem:[#allocation4 + $0xa0] sm:$0xff] }
 0x467   : > { %v4573_v24 = vpop.eup %4572  ;;  %v2048_v40 = vadd.f32 %v1996_v26, %v1920_v49  ;;  %2084 = vst.msk [vmem:[#allocation4 + $0xc0] sm:$0xff] %vm781_vm0, %v2051_v11  ;;  %v4103_v55 = vpop.f32.mrb[80].mxu0  ;;  %2862 = vperm.xlu0 %4290, %v4571_v7   ;;  %v6514_v26 = vld [vmem:[#allocation67_spill] sm:$0xff] }
 0x468   : > { %v2753_v30 = vld [vmem:[#allocation4 + $0x88] sm:$0xff]  ;;  %2857 = vperm.xlu1 %4291, %v4573_v24   ;;  %v4104_v3 = vpop.f32.mrb[81].mxu0  ;;  %v2011_v28 = vpop.xlane.xlu1 %2010  ;;  %v1924_v19 = vmul.f32 %v6514_v26, %v1892_v4 }
 0x469   : > { %4584 = vrcp.f32 %v2753_v30  ;;  %2081 = vst.msk [vmem:[#allocation4 + $0xa8] sm:$0xff] %vm781_vm0, %v2048_v40  ;;  %v4575_v8 = vpop.eup %4574  ;;  %v4105_v59 = vadd.f32 %v4104_v3, %v4103_v55  ;;  %v4106_v33 = vpop.f32.mrb[82].mxu0  ;;  %v2053_v48 = vadd.f32 %v2011_v28, %v1925_v15  ;;  %v1897_v3 = vld [vmem:[#allocation4 + $0xf0] sm:$0xff] }
 0x46a   : > { %v2002_v27 = vpop.xlane.xlu0 %2001  ;;  %v4107_v51 = vpop.f32.mrb[83].mxu0  ;;  %4586 = vrcp.f32 %v2756_v9  ;;  %v2758_v7 = vld [vmem:[#allocation4 + $0xb0] sm:$0xff] }
 0x46b   : > { %v4577_v37 = vpop.eup %4576  ;;  %v2050_v39 = vadd.f32 %v2002_v27, %v1922_v46  ;;  %2086 = vst.msk [vmem:[#allocation4 + $0xd0] sm:$0xff] %vm781_vm0, %v2053_v48  ;;  %v4108_v22 = vadd.f32 %v4107_v51, %v4106_v33  ;;  %2872 = vperm.xlu0 %4290, %v4575_v8   ;;  %v6053_v45 = vadd.f32 %v4105_v59, %v2308_v60  ;;  %v2310_v60 = vmul.f32 0.0, %v5913_v58  ;;  %v1896_v27 = vld [vmem:[#allocation4 + $0xe8] sm:$0xff] }
 0x46c   : > { %v2755_v49 = vld [vmem:[#allocation4 + $0x98] sm:$0xff]  ;;  %2867 = vperm.xlu1 %4291, %v4577_v37   ;;  %v2017_v11 = vpop.xlane.xlu1 %2016  ;;  %v4579_v24 = vpop.eup %4578  ;;  %v1926_v46 = vmul.f32 %v5681_v29, %v1894_v53  ;;  %v1929_v51 = vmul.f32 %v5915_v18, %v1897_v3 }
 0x46d   : > { %4588 = vrcp.f32 %v2755_v49  ;;  %2083 = vst.msk [vmem:[#allocation4 + $0xb8] sm:$0xff] %vm781_vm0, %v2050_v39  ;;  %v2055_v25 = vadd.f32 %v2017_v11, %v1927_v23  ;;  %v6057_v30 = vadd.f32 %v4108_v22, %v2309_v44  ;;  %v2311_v23 = vmul.f32 0.0, %v5909_v2  ;;  %v1898_v18 = vld [vmem:[#allocation4 + $0xf8] sm:$0xff] }
 0x46e   : > { %v2008_v40 = vpop.xlane.xlu0 %2007  ;;  %4590 = vrcp.f32 %v2758_v7  ;;  %v2760_v28 = vld [vmem:[#allocation4 + $0xc0] sm:$0xff]  ;;  %v1928_v11 = vmul.f32 %v5807_v50, %v1896_v27  ;;  %v1930_v50 = vmul.f32 %v5900_v34, %v1898_v18 }
 0x46f   : > { %v4581_v55 = vpop.eup %4580  ;;  %v2052_v15 = vadd.f32 %v2008_v40, %v1924_v19  ;;  %2088 = vst.msk [vmem:[#allocation4 + $0xe0] sm:$0xff] %vm781_vm0, %v2055_v25  ;;  %v4109_v9 = vpop.f32.mrb[84].mxu0  ;;  %2882 = vperm.xlu0 %4290, %v4579_v24  }
 0x470   : > { %v2757_v61 = vld [vmem:[#allocation4 + $0xa8] sm:$0xff]  ;;  %2877 = vperm.xlu1 %4291, %v4581_v55   ;;  %v4110_v36 = vpop.f32.mrb[85].mxu0  ;;  %v4583_v8 = vpop.eup %4582 }
 0x471   : > { %4592 = vrcp.f32 %v2757_v61  ;;  %2085 = vst.msk [vmem:[#allocation4 + $0xc8] sm:$0xff] %vm781_vm0, %v2052_v15  ;;  %v4111_v59 = vadd.f32 %v4110_v36, %v4109_v9  ;;  %v4112_v33 = vpop.f32.mrb[86].mxu0  ;;  %v2312_v9 = vmul.f32 0.0, %v5952_v17 }
 0x472   : > { %v2014_v48 = vpop.xlane.xlu0 %2013  ;;  %v4113_v39 = vpop.f32.mrb[87].mxu0  ;;  %4594 = vrcp.f32 %v2760_v28  ;;  %v2762_v58 = vld [vmem:[#allocation4 + $0xd0] sm:$0xff] }
 0x473   : > { %v4585_v4 = vpop.eup %4584  ;;  %v2054_v37 = vadd.f32 %v2014_v48, %v1926_v46  ;;  %v4114_v49 = vadd.f32 %v4113_v39, %v4112_v33  ;;  %v2023_v22 = vpop.xlane.xlu1 %2022  ;;  %2892 = vperm.xlu0 %4290, %v4583_v8   ;;  %v6065_v29 = vadd.f32 %v4111_v59, %v2310_v60  ;;  %v2313_v59 = vmul.f32 0.0, %v5950_v0 }
 0x474   : > { %v2759_v44 = vld [vmem:[#allocation4 + $0xb8] sm:$0xff]  ;;  %2887 = vperm.xlu1 %4291, %v4585_v4   ;;  %v2057_v7 = vadd.f32 %v2023_v22, %v1929_v51  ;;  %v4587_v26 = vpop.eup %4586 }
 0x475   : > { %4596 = vrcp.f32 %v2759_v44  ;;  %2087 = vst.msk [vmem:[#allocation4 + $0xd8] sm:$0xff] %vm781_vm0, %v2054_v37  ;;  %v6069_v24 = vadd.f32 %v4114_v49, %v2311_v23 }
 0x476   : > { %v2020_v19 = vpop.xlane.xlu0 %2019  ;;  %2090 = vst.msk [vmem:[#allocation4 + $0xf0] sm:$0xff] %vm781_vm0, %v2057_v7  ;;  %4598 = vrcp.f32 %v2762_v58  ;;  %v2764_v55 = vld [vmem:[#allocation4 + $0xe0] sm:$0xff] }
 0x477   : > { %v4589_v2 = vpop.eup %4588  ;;  %v2056_v25 = vadd.f32 %v2020_v19, %v1928_v11  ;;  %v4115_v53 = vpop.f32.mrb[88].mxu0  ;;  %2902 = vperm.xlu0 %4290, %v4587_v26  }
 0x478   : > { %v2761_v40 = vld [vmem:[#allocation4 + $0xc8] sm:$0xff]  ;;  %2897 = vperm.xlu1 %4291, %v4589_v2   ;;  %v4116_v15 = vpop.f32.mrb[89].mxu0  ;;  %v4591_v61 = vpop.eup %4590 }
 0x479   : > { %4600 = vrcp.f32 %v2761_v40  ;;  %2089 = vst.msk [vmem:[#allocation4 + $0xe8] sm:$0xff] %vm781_vm0, %v2056_v25  ;;  %v4117_v3 = vadd.f32 %v4116_v15, %v4115_v53  ;;  %v4118_v28 = vpop.f32.mrb[90].mxu0  ;;  %v2282_v19 = vpop.permute.xlu1 %2281 }
 0x47a   : > { %v2026_v36 = vpop.xlane.xlu0 %2025  ;;  %v4119_v60 = vpop.f32.mrb[91].mxu0  ;;  %4602 = vrcp.f32 %v2764_v55  ;;  %v2315_v55 = vmul.f32 0.0, %v2282_v19 }
 0x47b   : > { %v4593_v46 = vpop.eup %4592  ;;  %v2058_v8 = vadd.f32 %v2026_v36, %v1930_v50  ;;  %v4120_v48 = vadd.f32 %v4119_v60, %v4118_v28  ;;  %2912 = vperm.xlu0 %4290, %v4591_v61   ;;  %v6076_v27 = vadd.f32 %v4117_v3, %v2312_v9 }
 0x47c   : > { %v2763_v33 = vld [vmem:[#allocation4 + $0xd8] sm:$0xff]  ;;  %2907 = vperm.xlu1 %4291, %v4593_v46   ;;  %v4595_v34 = vpop.eup %4594 }
 0x47d   : > { %4604 = vrcp.f32 %v2763_v33  ;;  %2091 = vst.msk [vmem:[#allocation4 + $0xf8] sm:$0xff] %vm781_vm0, %v2058_v8  ;;  %v2766_v17 = vld [vmem:[#allocation4 + $0xf0] sm:$0xff]  ;;  %v6079_v4 = vadd.f32 %v4120_v48, %v2313_v59 }
 0x47e   : > { %4606 = vrcp.f32 %v2766_v17 }
 0x47f   : > { %v4597_v37 = vpop.eup %4596  ;;  %2922 = vperm.xlu0 %4290, %v4595_v34  }
 0x480   : > { %v2765_v39 = vld [vmem:[#allocation4 + $0xe8] sm:$0xff]  ;;  %2917 = vperm.xlu1 %4291, %v4597_v37   ;;  %v4599_v0 = vpop.eup %4598  ;;  %v2277_v11 = vpop.permute.xlu0 %2276 }
 0x481   : > { %4608 = vrcp.f32 %v2765_v39  ;;  %v2314_v2 = vmul.f32 0.0, %v2277_v11 }
 0x483   : > { %v4601_v51 = vpop.eup %4600  ;;  %2932 = vperm.xlu0 %4290, %v4599_v0  }
 0x484   : > { %v2767_v23 = vld [vmem:[#allocation4 + $0xf8] sm:$0xff]  ;;  %2927 = vperm.xlu1 %4291, %v4601_v51   ;;  %v4603_v44 = vpop.eup %4602 }
 0x485   : > { %4610 = vrcp.f32 %v2767_v23 }
 0x487   : > { %v4605_v49 = vpop.eup %4604  ;;  %2942 = vperm.xlu0 %4290, %v4603_v44  }
 0x488   : > { %2937 = vperm.xlu1 %4291, %v4605_v49   ;;  %v4607_v22 = vpop.eup %4606 }
 0x48b   : > { %v4609_v58 = vpop.eup %4608  ;;  %2952 = vperm.xlu0 %4290, %v4607_v22  }
 0x48c   : > { %2947 = vperm.xlu1 %4291, %v4609_v58  }
 0x48f   : > { %v4611_v7 = vpop.eup %4610 }
 0x490   : > { %2957 = vperm.xlu1 %4291, %v4611_v7  }
 0x4ba   : > { %v4121_v26 = vpop.f32.mrb[92].mxu0 }
 0x4bb   : > { %v4122_v18 = vpop.f32.mrb[93].mxu0 }
 0x4bc   : > { %v4123_v25 = vadd.f32 %v4122_v18, %v4121_v26  ;;  %v4124_v40 = vpop.f32.mrb[94].mxu0 }
 0x4bd   : > { %v4125_v53 = vpop.f32.mrb[95].mxu0 }
 0x4be   : > { %v4126_v15 = vadd.f32 %v4125_v53, %v4124_v40  ;;  %v6081_v50 = vadd.f32 %v4123_v25, %v2314_v2 }
 0x4c0   : > { %v6083_v61 = vadd.f32 %v4126_v15, %v2315_v55 }
 0x4cd   : > { %v2803_v9 = vpop.permute.xlu0 %2802 }
 0x4ce   : > { %v2808_v3 = vpop.permute.xlu1 %2807  ;;  %v2960_v28 = vmul.f32 %v2803_v9, %v5902_v56 }
 0x4cf   : > { %v2961_v36 = vmul.f32 %v2808_v3, %v5890_v47 }
 0x4d1   : > { %v2992_v46 = vpack.c.bf16 %v2961_v36, %v2960_v28  ;;  %v2813_v8 = vpop.permute.xlu0 %2812 }
 0x4d2   : > { %v2818_v60 = vpop.permute.xlu1 %2817  ;;  %v2962_v59 = vmul.f32 %v2813_v8, %v5911_v54 }
 0x4d3   : > { %v2963_v33 = vmul.f32 %v2818_v60, %v5907_v31  ;;  %4215 = vmatprep.mubr.bf16.mxu0 %v2992_v46 }
 0x4d5   : > { %v2993_v48 = vpack.c.bf16 %v2963_v33, %v2962_v59  ;;  %v2823_v34 = vpop.permute.xlu0 %2822 }
 0x4d6   : > { %v2828_v17 = vpop.permute.xlu1 %2827  ;;  %v2964_v37 = vmul.f32 %v2823_v34, %v5931_v62 }
 0x4d7   : > { %v2965_v39 = vmul.f32 %v2828_v17, %v5919_v57  ;;  %4216 = vmatmul.mubr.bf16.vlgmr.msra.gmra.mrb[96].mxu0 %v2993_v48 }
 0x4d9   : > { %v2994_v0 = vpack.c.bf16 %v2965_v39, %v2964_v37  ;;  %v2833_v56 = vpop.permute.xlu0 %2832 }
 0x4da   : > { %v2838_v51 = vpop.permute.xlu1 %2837  ;;  %v2966_v47 = vmul.f32 %v2833_v56, %v5938_v5 }
 0x4db   : > { %v2967_v23 = vmul.f32 %v2838_v51, %v5929_v63  ;;  %4219 = vmatprep.mubr.bf16.mxu0 %v2994_v0 }
 0x4dd   : > { %v2995_v54 = vpack.c.bf16 %v2967_v23, %v2966_v47 }
 0x4de   : > { %v2848_v44 = vpop.permute.xlu1 %2847  ;;  %v2843_v31 = vpop.permute.xlu0 %2842 }
 0x4df   : > { %v2969_v49 = vmul.f32 %v2848_v44, %v5927_v21  ;;  %v2968_v22 = vmul.f32 %v2843_v31, %v5922_v10  ;;  %4220 = vmatmul.mubr.bf16.gmra.mrb[100].mxu0 %v2995_v54  ;;  %v3913_v31 = vld [vmem:[%s4714_s14 + $0x8] sm:$0xff]  }
 0x4e1   : > { %v2996_v62 = vpack.c.bf16 %v2969_v49, %v2968_v22  ;;  %v3775_v22 = vunpack.c.l.bf16 %v3913_v31 }
 0x4e2   : > { %v2853_v58 = vpop.permute.xlu0 %2852 }
 0x4e3   : > { %4223 = vmatprep.mubr.bf16.mxu1 %v2996_v62  ;;  %v2970_v11 = vmul.f32 %v2853_v58, %v5940_v1 }
 0x4e6   : > { %v2863_v7 = vpop.permute.xlu0 %2862 }
 0x4e7   : > { %v2858_v57 = vpop.permute.xlu1 %2857  ;;  %v2972_v18 = vmul.f32 %v2863_v7, %v5963_v43 }
 0x4e8   : > { %v2971_v5 = vmul.f32 %v2858_v57, %v5942_v14 }
 0x4ea   : > { %v2997_v26 = vpack.c.bf16 %v2971_v5, %v2970_v11  ;;  %v2873_v19 = vpop.permute.xlu0 %2872 }
 0x4eb   : > { %v2868_v63 = vpop.permute.xlu1 %2867  ;;  %v2974_v40 = vmul.f32 %v2873_v19, %v5980_v52 }
 0x4ec   : > { %v2973_v2 = vmul.f32 %v2868_v63, %v5967_v41  ;;  %4224 = vmatmul.mubr.bf16.vlgmr.msra.gmra.mrb[64].mxu1 %v2997_v26 }
 0x4ee   : > { %v2998_v21 = vpack.c.bf16 %v2973_v2, %v2972_v18  ;;  %v2883_v25 = vpop.permute.xlu0 %2882 }
 0x4ef   : > { %v2878_v10 = vpop.permute.xlu1 %2877  ;;  %v2976_v14 = vmul.f32 %v2883_v25, %v5994_v38  ;;  %v3914_v25 = vld [vmem:[%s4714_s14 + $0x10] sm:$0xff]  }
 0x4f0   : > { %v2975_v53 = vmul.f32 %v2878_v10, %v5984_v32  ;;  %4227 = vmatprep.mubr.bf16.mxu1 %v2998_v21  ;;  %v3915_v21 = vld [vmem:[%s4714_s14 + $0x18] sm:$0xff]  }
 0x4f2   : > { %v2999_v55 = vpack.c.bf16 %v2975_v53, %v2974_v40  ;;  %v2893_v15 = vpop.permute.xlu0 %2892 }
 0x4f3   : > { %v2888_v1 = vpop.permute.xlu1 %2887  ;;  %v2978_v28 = vmul.f32 %v2893_v15, %v6011_v6 }
 0x4f4   : > { %v2977_v9 = vmul.f32 %v2888_v1, %v5998_v13  ;;  %4228 = vmatmul.mubr.bf16.gmra.mrb[68].mxu1 %v2999_v55  ;;  %v3783_v1 = vunpack.c.l.bf16 %v3915_v21 }
 0x4f6   : > { %v3000_v43 = vpack.c.bf16 %v2977_v9, %v2976_v14  ;;  %v2903_v41 = vpop.permute.xlu0 %2902  ;;  %v3784_v14 = vunpack.c.h.bf16 %v3915_v21 }
 0x4f7   : > { %v2898_v3 = vpop.permute.xlu1 %2897  ;;  %v2980_v8 = vmul.f32 %v2903_v41, %v6025_v12  ;;  %v3780_v41 = vunpack.c.h.bf16 %v3914_v25 }
 0x4f8   : > { %v2979_v36 = vmul.f32 %v2898_v3, %v6015_v42  ;;  %4231 = vmatprep.mubr.bf16.mxu1 %v3000_v43  ;;  %v3779_v43 = vunpack.c.l.bf16 %v3914_v25 }
 0x4fa   : > { %v3001_v52 = vpack.c.bf16 %v2979_v36, %v2978_v28  ;;  %v2913_v32 = vpop.permute.xlu0 %2912 }
 0x4fb   : > { %v2908_v46 = vpop.permute.xlu1 %2907  ;;  %v2982_v33 = vmul.f32 %v2913_v32, %v6039_v16 }
 0x4fc   : > { %v2981_v60 = vmul.f32 %v2908_v46, %v6029_v35  ;;  %4232 = vmatmul.mubr.bf16.gmra.mrb[72].mxu1 %v3001_v52 }
 0x4fe   : > { %v3002_v38 = vpack.c.bf16 %v2981_v60, %v2980_v8  ;;  %v2923_v13 = vpop.permute.xlu0 %2922 }
 0x4ff   : > { %v2918_v59 = vpop.permute.xlu1 %2917  ;;  %v2984_v17 = vmul.f32 %v2923_v13, %v6053_v45  ;;  %v3917_v13 = vld [vmem:[%s4714_s14 + $0x28] sm:$0xff]  }
 0x500   : > { %v2983_v48 = vmul.f32 %v2918_v59, %v6043_v20  ;;  %4235 = vmatprep.mubr.bf16.mxu1 %v3002_v38 }
 0x502   : > { %v3003_v6 = vpack.c.bf16 %v2983_v48, %v2982_v33  ;;  %v2933_v42 = vpop.permute.xlu0 %2932  ;;  %v3916_v33 = vld [vmem:[%s4714_s14 + $0x20] sm:$0xff]  }
 0x503   : > { %v2928_v34 = vpop.permute.xlu1 %2927  ;;  %v2986_v0 = vmul.f32 %v2933_v42, %v6065_v29 }
 0x504   : > { %v2985_v37 = vmul.f32 %v2928_v34, %v6057_v30  ;;  %4236 = vmatmul.mubr.bf16.gmra.mrb[76].mxu1 %v3003_v6  ;;  %v3791_v34 = vunpack.c.l.bf16 %v3917_v13 }
 0x506   : > { %v3004_v12 = vpack.c.bf16 %v2985_v37, %v2984_v17  ;;  %v2943_v35 = vpop.permute.xlu0 %2942  ;;  %v3792_v17 = vunpack.c.h.bf16 %v3917_v13 }
 0x507   : > { %v2938_v39 = vpop.permute.xlu1 %2937  ;;  %v2988_v51 = vmul.f32 %v2943_v35, %v6076_v27  ;;  %v3770_v27 = vld [vmem:[%s4714_s14] sm:$0xff]   ;;  %v3788_v35 = vunpack.c.h.bf16 %v3916_v33 }
 0x508   : > { %v2987_v56 = vmul.f32 %v2938_v39, %v6069_v24  ;;  %4239 = vmatprep.mubr.bf16.mxu1 %v3004_v12  ;;  %v6120_v24 = vld [vmem:[%s6207_s5] ss:$0 sm:$0xff]  ;;  %v3771_v58 = vunpack.c.l.bf16 %v3770_v27  ;;  %v3772_v7 = vunpack.c.h.bf16 %v3770_v27  ;;  %v3787_v12 = vunpack.c.l.bf16 %v3916_v33 }
 0x50a   : > { %v3005_v16 = vpack.c.bf16 %v2987_v56, %v2986_v0  ;;  %v2953_v45 = vpop.permute.xlu0 %2952 }
 0x50b   : > { %v2948_v20 = vpop.permute.xlu1 %2947  ;;  %v2990_v54 = vmul.f32 %v2953_v45, %v6081_v50  ;;  %v3776_v50 = vunpack.c.h.bf16 %v3913_v31 }
 0x50c   : > { %v2989_v47 = vmul.f32 %v2948_v20, %v6079_v4  ;;  %4240 = vmatmul.mubr.bf16.gmra.mrb[80].mxu1 %v3005_v16 }
 0x50e   : > { %v3006_v30 = vpack.c.bf16 %v2989_v47, %v2988_v51 }
 0x50f   : > { %v2958_v23 = vpop.permute.xlu1 %2957 }
 0x510   : > { %v2991_v44 = vmul.f32 %v2958_v23, %v6083_v61  ;;  %4243 = vmatprep.mubr.bf16.mxu1 %v3006_v30  ;;  %v3919_v30 = vld [vmem:[%s4714_s14 + $0x38] sm:$0xff]  }
 0x511   : > { %v3799_v27 = vunpack.c.l.bf16 %v3919_v30 }
 0x512   : > { %v3007_v29 = vpack.c.bf16 %v2991_v44, %v2990_v54  ;;  %v3918_v54 = vld [vmem:[%s4714_s14 + $0x30] sm:$0xff]  }
 0x514   : > { %4244 = vmatmul.mubr.bf16.gmra.mrb[84].mxu1 %v3007_v29 }
 0x5aa   : > { %v4217_v4 = vpop.f32.mrb[96].mxu0 }
 0x5ab   : > { %v3122_v49 = vadd.f32 %v4217_v4, %v6120_v24  ;;  %v3113_v62 = vpop.f32.mrb[97].mxu0 }
 0x5ac   : > { %v3114_v61 = vadd.f32 %v6120_v24, %v3113_v62  ;;  %v4218_v57 = vpop.f32.mrb[98].mxu0  ;;  %v3795_v62 = vunpack.c.l.bf16 %v3918_v54 }
 0x5ad   : > { %v3125_v11 = vadd.f32 %v4218_v57, %v6120_v24  ;;  %v3116_v5 = vpop.f32.mrb[99].mxu0  ;;  %v3306_v63 = vadd.f32 %v3775_v22, %v3122_v49  ;;  %v3800_v49 = vunpack.c.h.bf16 %v3919_v30 }
 0x5ae   : > { %v3117_v26 = vadd.f32 %v6120_v24, %v3116_v5  ;;  %v3304_v18 = vadd.f32 %v3771_v58, %v3114_v61  ;;  %v3796_v61 = vunpack.c.h.bf16 %v3918_v54 }
 0x5af   : > { %v3307_v19 = vadd.f32 %v3776_v50, %v3125_v11 }
 0x5b0   : > { %v3305_v2 = vadd.f32 %v3772_v7, %v3117_v26 }
 0x5b1   : > { %v3841_v10 = vpack.c.bf16 %v3307_v19, %v3306_v63  ;;  %v3921_v19 = vld [vmem:[%s4714_s14 + $0x48] sm:$0xff]  }
 0x5b2   : > { %v3836_v40 = vpack.c.bf16 %v3305_v2, %v3304_v18  ;;  %v4221_v53 = vpop.f32.mrb[100].mxu0  ;;  %v3920_v2 = vld [vmem:[%s4714_s14 + $0x40] sm:$0xff]  }
 0x5b3   : > { %3928 = vst [vmem:[%s6133_s19 + $0x8] sm:$0xff] %v3841_v10   ;;  %v3138_v55 = vadd.f32 %v4221_v53, %v6120_v24  ;;  %v3129_v15 = vpop.f32.mrb[101].mxu0 }
 0x5b4   : > { %3837 = vst [vmem:[%s6133_s19] sm:$0xff] %v3836_v40   ;;  %v3130_v9 = vadd.f32 %v6120_v24, %v3129_v15  ;;  %v4222_v3 = vpop.f32.mrb[102].mxu0  ;;  %v3807_v40 = vunpack.c.l.bf16 %v3921_v19  ;;  %v3803_v15 = vunpack.c.l.bf16 %v3920_v2 }
 0x5b5   : > { %v3141_v28 = vadd.f32 %v4222_v3, %v6120_v24  ;;  %v3132_v36 = vpop.f32.mrb[103].mxu0  ;;  %v3310_v46 = vadd.f32 %v3783_v1, %v3138_v55  ;;  %v3808_v55 = vunpack.c.h.bf16 %v3921_v19 }
 0x5b6   : > { %v3133_v52 = vadd.f32 %v6120_v24, %v3132_v36  ;;  %v3308_v8 = vadd.f32 %v3779_v43, %v3130_v9  ;;  %v3804_v9 = vunpack.c.h.bf16 %v3920_v2 }
 0x5b7   : > { %v3311_v32 = vadd.f32 %v3784_v14, %v3141_v28 }
 0x5b8   : > { %v3309_v60 = vadd.f32 %v3780_v41, %v3133_v52 }
 0x5b9   : > { %v3851_v38 = vpack.c.bf16 %v3311_v32, %v3310_v46  ;;  %v3923_v32 = vld [vmem:[%s4714_s14 + $0x58] sm:$0xff]  }
 0x5ba   : > { %v3846_v59 = vpack.c.bf16 %v3309_v60, %v3308_v8  ;;  %v3922_v60 = vld [vmem:[%s4714_s14 + $0x50] sm:$0xff]   ;;  %v3815_v33 = vunpack.c.l.bf16 %v3923_v32 }
 0x5bb   : > { %3930 = vst [vmem:[%s6133_s19 + $0x18] sm:$0xff] %v3851_v38  }
 0x5bc   : > { %3929 = vst [vmem:[%s6133_s19 + $0x10] sm:$0xff] %v3846_v59  }
 0x5bf   : > { %v4225_v48 = vpop.f32.mrb[64].mxu1 }
 0x5c0   : > { %v3154_v6 = vadd.f32 %v4225_v48, %v6120_v24  ;;  %v3145_v42 = vpop.f32.mrb[65].mxu1 }
 0x5c1   : > { %v3146_v37 = vadd.f32 %v6120_v24, %v3145_v42  ;;  %v4226_v39 = vpop.f32.mrb[66].mxu1  ;;  %v3811_v42 = vunpack.c.l.bf16 %v3922_v60 }
 0x5c2   : > { %v3157_v0 = vadd.f32 %v4226_v39, %v6120_v24  ;;  %v3148_v56 = vpop.f32.mrb[67].mxu1  ;;  %v3314_v20 = vadd.f32 %v3791_v34, %v3154_v6  ;;  %v3816_v6 = vunpack.c.h.bf16 %v3923_v32 }
 0x5c3   : > { %v3149_v16 = vadd.f32 %v6120_v24, %v3148_v56  ;;  %v3312_v47 = vadd.f32 %v3787_v12, %v3146_v37  ;;  %v3812_v37 = vunpack.c.h.bf16 %v3922_v60 }
 0x5c4   : > { %v3315_v51 = vadd.f32 %v3792_v17, %v3157_v0 }
 0x5c5   : > { %v3313_v45 = vadd.f32 %v3788_v35, %v3149_v16 }
 0x5c6   : > { %v3861_v23 = vpack.c.bf16 %v3315_v51, %v3314_v20  ;;  %v3925_v51 = vld [vmem:[%s4714_s14 + $0x68] sm:$0xff]  }
 0x5c7   : > { %v3856_v44 = vpack.c.bf16 %v3313_v45, %v3312_v47  ;;  %v4229_v29 = vpop.f32.mrb[68].mxu1  ;;  %v3924_v45 = vld [vmem:[%s4714_s14 + $0x60] sm:$0xff]  }
 0x5c8   : > { %3932 = vst [vmem:[%s6133_s19 + $0x28] sm:$0xff] %v3861_v23   ;;  %v3170_v31 = vadd.f32 %v4229_v29, %v6120_v24  ;;  %v3161_v4 = vpop.f32.mrb[69].mxu1 }
 0x5c9   : > { %3931 = vst [vmem:[%s6133_s19 + $0x20] sm:$0xff] %v3856_v44   ;;  %v3162_v22 = vadd.f32 %v6120_v24, %v3161_v4  ;;  %v4230_v50 = vpop.f32.mrb[70].mxu1  ;;  %v3823_v44 = vunpack.c.l.bf16 %v3925_v51  ;;  %v3819_v4 = vunpack.c.l.bf16 %v3924_v45 }
 0x5ca   : > { %v3173_v58 = vadd.f32 %v4230_v50, %v6120_v24  ;;  %v3164_v57 = vpop.f32.mrb[71].mxu1  ;;  %v3318_v11 = vadd.f32 %v3799_v27, %v3170_v31  ;;  %v3824_v31 = vunpack.c.h.bf16 %v3925_v51 }
 0x5cb   : > { %v3165_v7 = vadd.f32 %v6120_v24, %v3164_v57  ;;  %v3316_v26 = vadd.f32 %v3795_v62, %v3162_v22  ;;  %v3820_v22 = vunpack.c.h.bf16 %v3924_v45 }
 0x5cc   : > { %v3319_v5 = vadd.f32 %v3800_v49, %v3173_v58 }
 0x5cd   : > { %v3317_v63 = vadd.f32 %v3796_v61, %v3165_v7 }
 0x5ce   : > { %v3871_v18 = vpack.c.bf16 %v3319_v5, %v3318_v11  ;;  %v3927_v5 = vld [vmem:[%s4714_s14 + $0x78] sm:$0xff]  }
 0x5cf   : > { %v3866_v21 = vpack.c.bf16 %v3317_v63, %v3316_v26  ;;  %v4233_v10 = vpop.f32.mrb[72].mxu1  ;;  %v3926_v63 = vld [vmem:[%s4714_s14 + $0x70] sm:$0xff]  }
 0x5d0   : > { %3934 = vst [vmem:[%s6133_s19 + $0x38] sm:$0xff] %v3871_v18   ;;  %v3186_v25 = vadd.f32 %v4233_v10, %v6120_v24  ;;  %v3177_v53 = vpop.f32.mrb[73].mxu1 }
 0x5d1   : > { %3933 = vst [vmem:[%s6133_s19 + $0x30] sm:$0xff] %v3866_v21   ;;  %v3178_v1 = vadd.f32 %v6120_v24, %v3177_v53  ;;  %v4234_v14 = vpop.f32.mrb[74].mxu1  ;;  %v3831_v21 = vunpack.c.l.bf16 %v3927_v5  ;;  %v3827_v53 = vunpack.c.l.bf16 %v3926_v63 }
 0x5d2   : > { %v3189_v43 = vadd.f32 %v4234_v14, %v6120_v24  ;;  %v3180_v3 = vpop.f32.mrb[75].mxu1  ;;  %v3322_v28 = vadd.f32 %v3807_v40, %v3186_v25  ;;  %v3832_v25 = vunpack.c.h.bf16 %v3927_v5 }
 0x5d3   : > { %v3181_v41 = vadd.f32 %v6120_v24, %v3180_v3  ;;  %v3320_v52 = vadd.f32 %v3803_v15, %v3178_v1  ;;  %v3828_v1 = vunpack.c.h.bf16 %v3926_v63 }
 0x5d4   : > { %v3323_v36 = vadd.f32 %v3808_v55, %v3189_v43 }
 0x5d5   : > { %v3321_v46 = vadd.f32 %v3804_v9, %v3181_v41 }
 0x5d6   : > { %v3881_v8 = vpack.c.bf16 %v3323_v36, %v3322_v28 }
 0x5d7   : > { %v3876_v38 = vpack.c.bf16 %v3321_v46, %v3320_v52  ;;  %v4237_v59 = vpop.f32.mrb[76].mxu1 }
 0x5d8   : > { %3936 = vst [vmem:[%s6133_s19 + $0x48] sm:$0xff] %v3881_v8   ;;  %v3202_v13 = vadd.f32 %v4237_v59, %v6120_v24  ;;  %v3193_v48 = vpop.f32.mrb[77].mxu1 }
 0x5d9   : > { %3935 = vst [vmem:[%s6133_s19 + $0x40] sm:$0xff] %v3876_v38   ;;  %v3194_v34 = vadd.f32 %v6120_v24, %v3193_v48  ;;  %v4238_v17 = vpop.f32.mrb[78].mxu1 }
 0x5da   : > { %v3205_v12 = vadd.f32 %v4238_v17, %v6120_v24  ;;  %v3196_v39 = vpop.f32.mrb[79].mxu1  ;;  %v3326_v0 = vadd.f32 %v3815_v33, %v3202_v13 }
 0x5db   : > { %v3197_v35 = vadd.f32 %v6120_v24, %v3196_v39  ;;  %v3324_v16 = vadd.f32 %v3811_v42, %v3194_v34 }
 0x5dc   : > { %v3327_v56 = vadd.f32 %v3816_v6, %v3205_v12 }
 0x5dd   : > { %v3325_v20 = vadd.f32 %v3812_v37, %v3197_v35 }
 0x5de   : > { %v3891_v47 = vpack.c.bf16 %v3327_v56, %v3326_v0 }
 0x5df   : > { %v3886_v30 = vpack.c.bf16 %v3325_v20, %v3324_v16  ;;  %v4241_v23 = vpop.f32.mrb[80].mxu1 }
 0x5e0   : > { %3938 = vst [vmem:[%s6133_s19 + $0x58] sm:$0xff] %v3891_v47   ;;  %v3218_v54 = vadd.f32 %v4241_v23, %v6120_v24  ;;  %v3209_v29 = vpop.f32.mrb[81].mxu1 }
 0x5e1   : > { %3937 = vst [vmem:[%s6133_s19 + $0x50] sm:$0xff] %v3886_v30   ;;  %v3210_v27 = vadd.f32 %v6120_v24, %v3209_v29  ;;  %v4242_v49 = vpop.f32.mrb[82].mxu1 }
 0x5e2   : > { %v3221_v62 = vadd.f32 %v4242_v49, %v6120_v24  ;;  %v3212_v50 = vpop.f32.mrb[83].mxu1  ;;  %v3330_v58 = vadd.f32 %v3823_v44, %v3218_v54 }
 0x5e3   : > { %v3213_v61 = vadd.f32 %v6120_v24, %v3212_v50  ;;  %v3328_v7 = vadd.f32 %v3819_v4, %v3210_v27 }
 0x5e4   : > { %v3331_v57 = vadd.f32 %v3824_v31, %v3221_v62 }
 0x5e5   : > { %v3329_v11 = vadd.f32 %v3820_v22, %v3213_v61 }
 0x5e6   : > { %v3901_v26 = vpack.c.bf16 %v3331_v57, %v3330_v58 }
 0x5e7   : > { %v3896_v19 = vpack.c.bf16 %v3329_v11, %v3328_v7  ;;  %v4245_v18 = vpop.f32.mrb[84].mxu1 }
 0x5e8   : > { %3940 = vst [vmem:[%s6133_s19 + $0x68] sm:$0xff] %v3901_v26   ;;  %v3234_v2 = vadd.f32 %v4245_v18, %v6120_v24  ;;  %v3225_v10 = vpop.f32.mrb[85].mxu1 }
 0x5e9   : > { %3939 = vst [vmem:[%s6133_s19 + $0x60] sm:$0xff] %v3896_v19   ;;  %v3226_v40 = vadd.f32 %v6120_v24, %v3225_v10  ;;  %v4246_v55 = vpop.f32.mrb[86].mxu1 }
 0x5ea   : > { %v3237_v15 = vadd.f32 %v4246_v55, %v6120_v24  ;;  %v3228_v14 = vpop.f32.mrb[87].mxu1  ;;  %v3334_v43 = vadd.f32 %v3831_v21, %v3234_v2 }
 0x5eb   : > { %v3229_v9 = vadd.f32 %v6120_v24, %v3228_v14  ;;  %v3332_v41 = vadd.f32 %v3827_v53, %v3226_v40 }
 0x5ec   : > { %v3335_v3 = vadd.f32 %v3832_v25, %v3237_v15 }
 0x5ed   : > { %v3333_v28 = vadd.f32 %v3828_v1, %v3229_v9 }
 0x5ee   : > { %v3911_v36 = vpack.c.bf16 %v3335_v3, %v3334_v43 }
 0x5ef   : > { %v3906_v52 = vpack.c.bf16 %v3333_v28, %v3332_v41 }
 0x5f0   : > { %3942 = vst [vmem:[%s6133_s19 + $0x78] sm:$0xff] %v3911_v36  }
 0x5f1   : > { %3941 = vst [vmem:[%s6133_s19 + $0x70] sm:$0xff] %v3906_v52  }
 0x5f2 PF: > { %s17_s26 = sadd.s32 1, %s4634_s26   ;;  %s6515_s24 = smov %s4630_s25 }
 0x5f3   : > { %p14_p5 = scmp.ge.s32.totalorder %s17_s26, 4   ;;  %s6516_s25 = smov %s6518_s27 }
 0x5f5   :  { %16 = sbr.rel (!%p14_p5) target bundleno = 2 (0x2), region = 92 }

// kernel: nlff_up_forward.10
= control target key start
LH: loop header
LB: loop body
LE: loop exit
PB: predicated region body
PF: predicated region fallthrough
CT: control target
= control target key end

     0   :  { %s5961_s26 = smov 0   ;;  %s5963_s2 = smov 0   ;;  %s7294_s0 = inlined_call_operand.vmem [shape: bf16[2,256,128], index: 0, kind: input, shape index: {}, may-alias: {0,1,2}]   ;;  %s7295_s1 = inlined_call_operand.vmem [shape: bf16[2,256,128], index: 1, kind: input, shape index: {}, may-alias: {0,1,2}]   ;;  %s7296_s2 = inlined_call_operand.vmem [shape: bf16[2,256,128], index: 2, kind: input, shape index: {}, may-alias: {0,1,2}]   ;;  %s7297_s3 = inlined_call_operand.vmem [shape: bf16[9,128,128], index: 3, kind: input, shape index: {}]   ;;  %s7298_s4 = inlined_call_operand.vmem [shape: f32[1,128], index: 4, kind: input, shape index: {}]   ;;  %s7299_s5 = inlined_call_operand.vmem [shape: f32[1,128], index: 5, kind: input, shape index: {}]   ;;  %s7300_s6 = inlined_call_operand.vmem [shape: f32[1,128], index: 6, kind: input, shape index: {}]   ;;  %s7301_s7 = inlined_call_operand.vmem [shape: bf16[2,256,128], index: 7, kind: output, shape index: {0}]   ;;  %s7302_s8 = inlined_call_operand.vmem [shape: f32[2,1,2,128], index: 8, kind: output, shape index: {1}]  }
   0x1   :  { %s5965_s27 = smov 0  }
   0x2 LB: > { %s31_s28 = sadd.s32 1, %s5909_s2  ;;  %p4442_p0 = scmp.ge.s32.totalorder %s5913_s27, 1  ;;  %s5913_s27 = sphi %s5965_s27, %s19_s27   ;;  %s5909_s2 = sphi %s5963_s2, %s7414_s2   ;;  %s5905_s26 = sphi %s5961_s26, %s7413_s26  }
   0x3   : > { %p33_p1 = scmp.ge.s32.totalorder %s31_s28, 2  ;;  %p354_p2 = scmp.lt.s32.totalorder %s5913_s27, 3 }
   0x5   : > { %s7416_s28 = smov (%p33_p1, %s31_s28), 0  ;;  %p355_p3 = pnand %p4442_p0, %p354_p2 }
   0x7   : > { %358 = sbr.rel (%p355_p3) target bundleno = 571 (0x23b), region = 48 }
   0xe   : > { %v5817_v0 = vld [vmem:[%s7297_s3 + $0xc0] sm:$0xff]   ;;  %v5819_v2 = vld [vmem:[%s7297_s3 + $0xc8] sm:$0xff]   ;;  %p430_p4 = scmp.lt.s32.totalorder %s5905_s26, 1  ;;  %v5915_v3 = vmov 0.0   ;;  %v5821_v5 = vld [vmem:[%s7297_s3 + $0xd0] sm:$0xff]  }
   0xf   : > { %v5987_v1 = vld [vmem:[%s7297_s3] sm:$0xff]   ;;  %5152 = vmatprep.subr.bf16.mxu1 %v5817_v0  ;;  %706 = vst [vmem:[#allocation2 + $0x10] sm:$0xff] %v5915_v3  ;;  %493 = vst [vmem:[#allocation2] sm:$0xff] %v5915_v3  ;;  %v5997_v4 = vld [vmem:[%s7297_s3 + $0x8] sm:$0xff]  }
  0x10   : > { %494 = vst [vmem:[#allocation2 + $0x128] sm:$0xff] %v5915_v3  ;;  %705 = vst [vmem:[#allocation2 + $0x8] sm:$0xff] %v5915_v3  ;;  %5200 = vmatprep.subr.bf16.mxu0 %v5987_v1  ;;  %5153 = vmatpush3.bf16.msra.mxu1 %v5817_v0  ;;  %v6007_v6 = vld [vmem:[%s7297_s3 + $0x10] sm:$0xff]   ;;  %s7418_s26 = smov (!%p430_p4, %s5905_s26), 1  ;;  %v5823_v7 = vld [vmem:[%s7297_s3 + $0xd8] sm:$0xff]  }
  0x11   : > { %740 = vst [vmem:[#allocation2 + $0x118] sm:$0xff] %v5915_v3  ;;  %741 = vst [vmem:[#allocation2 + $0x120] sm:$0xff] %v5915_v3  ;;  %5201 = vmatpush3.bf16.msra.mxu0 %v5987_v1  ;;  %5154 = vmatprep.subr.bf16.mxu1 %v5819_v2  ;;  %v6022_v8 = vld [vmem:[%s7297_s3 + $0x18] sm:$0xff]   ;;  %s4725_s23 = sshll.u32 %s7418_s26, 7  ;;  %v5825_v9 = vld [vmem:[%s7297_s3 + $0xe0] sm:$0xff]  }
  0x12   : > { %5202 = vmatprep.subr.bf16.mxu0 %v5997_v4  ;;  %v6033_v10 = vld [vmem:[%s7297_s3 + $0x20] sm:$0xff]   ;;  %s6040_s10 = scalar_lea.vmem %s7294_s0, %s4725_s23  ;;  %v5827_v11 = vld [vmem:[%s7297_s3 + $0xe8] sm:$0xff]   ;;  %v5829_v24 = vld [vmem:[%s7297_s3 + $0xf0] sm:$0xff]   ;;  %s7091_s11 = scalar_lea.vmem %s7301_s7, %s4725_s23 }
  0x13   : > { %v6049_v12 = vld [vmem:[%s7297_s3 + $0x28] sm:$0xff]   ;;  %v4763_v13 = vld [vmem:[%s6040_s10] sm:$0xff]   ;;  %v4907_v29 = vld [vmem:[%s6040_s10 + $0x10] sm:$0xff]   ;;  %s4451_s23 = sshll.u32 %s7418_s26, 1 }
  0x14   : > { %5155 = vmatpush3.bf16.msra.mxu1 %v5819_v2  ;;  %v6055_v14 = vld [vmem:[%s7299_s5] ss:$0 sm:$0xff]  ;;  %v4764_v15 = vunpack.c.l.bf16 %v4763_v13  ;;  %v4765_v16 = vunpack.c.h.bf16 %v4763_v13  ;;  %v4906_v19 = vld [vmem:[%s6040_s10 + $0x8] sm:$0xff]   ;;  %v4908_v30 = vld [vmem:[%s6040_s10 + $0x18] sm:$0xff]   ;;  %v4772_v34 = vunpack.c.l.bf16 %v4907_v29  ;;  %v4773_v35 = vunpack.c.h.bf16 %v4907_v29  ;;  %s491_s14 = scalar_lea.vmem %s7302_s8, %s4451_s23 }
  0x15   : > { %5203 = vmatpush3.bf16.msra.mxu0 %v5997_v4  ;;  %5156 = vmatprep.subr.bf16.mxu1 %v5821_v5  ;;  %v6062_v20 = vld [vmem:[%s7300_s6] ss:$0 sm:$0xff]  ;;  %v4768_v22 = vunpack.c.l.bf16 %v4906_v19  ;;  %v4769_v23 = vunpack.c.h.bf16 %v4906_v19  ;;  %v6078_v31 = vld [vmem:[%s7297_s3 + $0x30] sm:$0xff]   ;;  %v4776_v38 = vunpack.c.l.bf16 %v4908_v30  ;;  %v4777_v39 = vunpack.c.h.bf16 %v4908_v30  ;;  %v5831_v41 = vld [vmem:[%s7297_s3 + $0xf8] sm:$0xff]  }
  0x16   : > { %5204 = vmatprep.subr.bf16.mxu0 %v6007_v6  ;;  %v566_v25 = vmul.f32 %v4764_v15, %v6055_v14  ;;  %v567_v26 = vmul.f32 %v4765_v16, %v6055_v14  ;;  %v4909_v40 = vld [vmem:[%s6040_s10 + $0x20] sm:$0xff]   ;;  %v570_v44 = vmul.f32 %v4772_v34, %v6055_v14  ;;  %v571_v45 = vmul.f32 %v4773_v35, %v6055_v14  ;;  %v4910_v46 = vld [vmem:[%s6040_s10 + $0x28] sm:$0xff]   ;;  %v6110_v51 = vld [vmem:[%s7297_s3 + $0x38] sm:$0xff]  }
  0x17   : > { %v1381_v17 = vld [vmem:[#allocation2 + $0x7] sm:$0xff]  ;;  %v1382_v18 = vld [vmem:[#allocation2 + $0xf] sm:$0xff]  ;;  %v568_v27 = vmul.f32 %v4768_v22, %v6055_v14  ;;  %v569_v28 = vmul.f32 %v4769_v23, %v6055_v14  ;;  %v572_v49 = vmul.f32 %v4776_v38, %v6055_v14  ;;  %v573_v50 = vmul.f32 %v4777_v39, %v6055_v14  ;;  %v4912_v2 = vld [vmem:[%s6040_s10 + $0x38] sm:$0xff]  }
  0x18   : > { %5157 = vmatpush3.bf16.msra.mxu1 %v5821_v5  ;;  %v1413_v21 = vpack.c.bf16 %v1382_v18, %v1381_v17  ;;  %v6081_v32 = vadd.f32 %v6062_v20, %v566_v25  ;;  %v6084_v33 = vadd.f32 %v6062_v20, %v567_v26  ;;  %v6117_v52 = vadd.f32 %v6062_v20, %v570_v44  ;;  %v4911_v60 = vld [vmem:[%s6040_s10 + $0x30] sm:$0xff]   ;;  %v4913_v23 = vld [vmem:[%s6040_s10 + $0x40] sm:$0xff]  }
  0x19   : > { %5205 = vmatpush3.bf16.msra.mxu0 %v6007_v6  ;;  %5158 = vmatprep.subr.bf16.mxu1 %v5823_v7  ;;  %v6087_v36 = vadd.f32 %v6062_v20, %v568_v27  ;;  %v6090_v37 = vadd.f32 %v6062_v20, %v569_v28  ;;  %v6120_v53 = vadd.f32 %v6062_v20, %v571_v45  ;;  %v4780_v54 = vunpack.c.l.bf16 %v4909_v40 }
  0x1a   : > { %5206 = vmatprep.subr.bf16.mxu0 %v6022_v8  ;;  %5216 = vmatprep.mubr.bf16.mxu0 %v1413_v21  ;;  %v637_v42 = vmax.f32 %v6081_v32, 0.0  ;;  %v638_v43 = vmax.f32 %v6084_v33, 0.0  ;;  %v4781_v55 = vunpack.c.h.bf16 %v4909_v40  ;;  %v6127_v56 = vadd.f32 %v6062_v20, %v572_v49  ;;  %v4914_v40 = vld [vmem:[%s6040_s10 + $0x48] sm:$0xff]  }
  0x1b   : > { %v639_v47 = vmax.f32 %v6087_v36, 0.0  ;;  %v640_v48 = vmax.f32 %v6090_v37, 0.0  ;;  %v6130_v57 = vadd.f32 %v6062_v20, %v573_v50  ;;  %v4784_v58 = vunpack.c.l.bf16 %v4910_v46 }
  0x1c   : > { %5159 = vmatpush3.bf16.msra.mxu1 %v5823_v7  ;;  %669 = vst [vmem:[#allocation2 + $0x18] sm:$0xff] %v637_v42  ;;  %670 = vst [vmem:[#allocation2 + $0x20] sm:$0xff] %v638_v43  ;;  %v4785_v59 = vunpack.c.h.bf16 %v4910_v46  ;;  %v641_v61 = vmax.f32 %v6117_v52, 0.0  ;;  %v642_v62 = vmax.f32 %v6120_v53, 0.0  ;;  %v574_v63 = vmul.f32 %v4780_v54, %v6055_v14 }
  0x1d   : > { %5207 = vmatpush3.bf16.msra.mxu0 %v6022_v8  ;;  %5160 = vmatprep.subr.bf16.mxu1 %v5825_v9  ;;  %671 = vst [vmem:[#allocation2 + $0x28] sm:$0xff] %v639_v47  ;;  %672 = vst [vmem:[#allocation2 + $0x30] sm:$0xff] %v640_v48  ;;  %v575_v0 = vmul.f32 %v4781_v55, %v6055_v14  ;;  %v643_v3 = vmax.f32 %v6127_v56, 0.0  ;;  %v644_v5 = vmax.f32 %v6130_v57, 0.0  ;;  %v4788_v16 = vunpack.c.l.bf16 %v4911_v60 }
  0x1e   : > { %5208 = vmatprep.subr.bf16.mxu0 %v6033_v10  ;;  %v576_v7 = vmul.f32 %v4784_v58, %v6055_v14  ;;  %673 = vst [vmem:[#allocation2 + $0x38] sm:$0xff] %v641_v61  ;;  %674 = vst [vmem:[#allocation2 + $0x40] sm:$0xff] %v642_v62  ;;  %v6152_v13 = vadd.f32 %v6062_v20, %v574_v63  ;;  %v4789_v17 = vunpack.c.h.bf16 %v4911_v60  ;;  %v4792_v21 = vunpack.c.l.bf16 %v4912_v2  ;;  %v4915_v60 = vld [vmem:[%s6040_s10 + $0x50] sm:$0xff]  }
  0x1f   : > { %v6155_v15 = vadd.f32 %v6062_v20, %v575_v0  ;;  %675 = vst [vmem:[#allocation2 + $0x48] sm:$0xff] %v643_v3  ;;  %676 = vst [vmem:[#allocation2 + $0x50] sm:$0xff] %v644_v5  ;;  %v4793_v22 = vunpack.c.h.bf16 %v4912_v2  ;;  %v578_v27 = vmul.f32 %v4788_v16, %v6055_v14  ;;  %v4796_v50 = vunpack.c.l.bf16 %v4913_v23  ;;  %v6210_v63 = vld [vmem:[%s7297_s3 + $0x190] sm:$0xff]   ;;  %v4916_v16 = vld [vmem:[%s6040_s10 + $0x58] sm:$0xff]  }
  0x20   : > { %5161 = vmatpush3.bf16.msra.mxu1 %v5825_v9  ;;  %v577_v9 = vmul.f32 %v4785_v59, %v6055_v14  ;;  %v6162_v18 = vadd.f32 %v6062_v20, %v576_v7  ;;  %v645_v25 = vmax.f32 %v6152_v13, 0.0  ;;  %v579_v28 = vmul.f32 %v4789_v17, %v6055_v14 }
  0x21   : > { %5209 = vmatpush3.bf16.msra.mxu0 %v6033_v10  ;;  %5162 = vmatprep.subr.bf16.mxu1 %v5827_v11  ;;  %v7313_v26 = vmax.f32 %v6155_v15, 0.0  ;;  %v580_v38 = vmul.f32 %v4792_v21, %v6055_v14  ;;  %v581_v39 = vmul.f32 %v4793_v22, %v6055_v14  ;;  %v6189_v46 = vadd.f32 %v6062_v20, %v578_v27 }
  0x22   : > { %5210 = vmatprep.subr.bf16.mxu0 %v6049_v12  ;;  %v6165_v19 = vadd.f32 %v6062_v20, %v577_v9  ;;  %v7312_v34 = vmax.f32 %v6162_v18, 0.0  ;;  %677 = vst [vmem:[#allocation2 + $0x58] sm:$0xff] %v645_v25  ;;  %v6192_v49 = vadd.f32 %v6062_v20, %v579_v28  ;;  %v4797_v59 = vunpack.c.h.bf16 %v4913_v23 }
  0x23   : > { %v1383_v29 = vld [vmem:[#allocation2 + $0x17] sm:$0xff]  ;;  %v1384_v30 = vld [vmem:[#allocation2 + $0x1f] sm:$0xff]  ;;  %678 = vst [vmem:[#allocation2 + $0x60] sm:$0xff] %v7313_v26  ;;  %v6201_v55 = vadd.f32 %v6062_v20, %v580_v38  ;;  %v6204_v58 = vadd.f32 %v6062_v20, %v581_v39  ;;  %v7309_v0 = vmax.f32 %v6189_v46, 0.0  ;;  %v582_v7 = vmul.f32 %v4796_v50, %v6055_v14 }
  0x24   : > { %5163 = vmatpush3.bf16.msra.mxu1 %v5827_v11  ;;  %v5833_v11 = vld [vmem:[%s7297_s3 + $0x180] sm:$0xff]   ;;  %v7310_v35 = vmax.f32 %v6165_v19, 0.0  ;;  %v1386_v45 = vld [vmem:[#allocation2 + $0x2f] sm:$0xff]  ;;  %679 = vst [vmem:[#allocation2 + $0x68] sm:$0xff] %v7312_v34  ;;  %v7306_v2 = vmax.f32 %v6192_v49, 0.0  ;;  %v4800_v9 = vunpack.c.l.bf16 %v4914_v40  ;;  %v583_v27 = vmul.f32 %v4797_v59, %v6055_v14  ;;  %v4920_v26 = vld [vmem:[%s6040_s10 + $0x78] sm:$0xff]  }
  0x25   : > { %5211 = vmatpush3.bf16.msra.mxu0 %v6049_v12  ;;  %5164 = vmatprep.subr.bf16.mxu1 %v5829_v24  ;;  %v1385_v44 = vld [vmem:[#allocation2 + $0x27] sm:$0xff]  ;;  %v1387_v17 = vld [vmem:[#allocation2 + $0x37] sm:$0xff]  ;;  %v1388_v21 = vld [vmem:[#allocation2 + $0x3f] sm:$0xff]  ;;  %v7305_v22 = vmax.f32 %v6201_v55, 0.0  ;;  %v7303_v23 = vmax.f32 %v6204_v58, 0.0  ;;  %v4801_v28 = vunpack.c.h.bf16 %v4914_v40  ;;  %681 = vst [vmem:[#allocation2 + $0x78] sm:$0xff] %v7309_v0  ;;  %v4804_v40 = vunpack.c.l.bf16 %v4915_v60 }
  0x26   : > { %5212 = vmatprep.subr.bf16.mxu0 %v6078_v31  ;;  %v6194_v54 = vpack.c.bf16 %v1386_v45, %v1385_v44  ;;  %680 = vst [vmem:[#allocation2 + $0x70] sm:$0xff] %v7310_v35  ;;  %v1390_v38 = vld [vmem:[#allocation2 + $0x4f] sm:$0xff]  ;;  %682 = vst [vmem:[#allocation2 + $0x80] sm:$0xff] %v7306_v2  ;;  %v584_v39 = vmul.f32 %v4800_v9, %v6055_v14  ;;  %v4805_v45 = vunpack.c.h.bf16 %v4915_v60  ;;  %v4808_v9 = vunpack.c.l.bf16 %v4916_v16 }
  0x27   : > { %683 = vst [vmem:[#allocation2 + $0x88] sm:$0xff] %v7305_v22  ;;  %684 = vst [vmem:[#allocation2 + $0x90] sm:$0xff] %v7303_v23  ;;  %v585_v44 = vmul.f32 %v4801_v28, %v6055_v14  ;;  %v4918_v23 = vld [vmem:[%s6040_s10 + $0x68] sm:$0xff]   ;;  %v6375_v33 = vpack.c.bf16 %v642_v62, %v641_v61  ;;  %v7323_v52 = vmax.f32 %v6192_v49, 0.0  ;;  %v7324_v61 = vmax.f32 %v6201_v55, 0.0 }
  0x28   : > { %5165 = vmatpush3.bf16.msra.mxu1 %v5829_v24  ;;  %v6171_v24 = vld [vmem:[%s7297_s3 + $0x188] sm:$0xff]   ;;  %v6247_v59 = vadd.f32 %v6062_v20, %v584_v39  ;;  %v587_v28 = vmul.f32 %v4805_v45, %v6055_v14  ;;  %v5836_v39 = vld [vmem:[%s7297_s3 + $0x198] sm:$0xff]   ;;  %v4817_v35 = vunpack.c.h.bf16 %v4918_v23  ;;  %v7325_v62 = vmax.f32 %v6204_v58, 0.0 }
  0x29   : > { %5213 = vmatpush3.bf16.msra.mxu0 %v6078_v31  ;;  %5166 = vmatprep.subr.bf16.mxu1 %v5831_v41  ;;  %v6254_v60 = vadd.f32 %v6062_v20, %v585_v44 }
  0x2a   : > { %5214 = vmatprep.subr.bf16.mxu0 %v6110_v51  ;;  %v7308_v44 = vmax.f32 %v6247_v59, 0.0 }
  0x2c   : > { %5167 = vmatpush3.bf16.msra.mxu1 %v5831_v41  ;;  %v1414_v41 = vpack.c.bf16 %v1384_v30, %v1383_v29  ;;  %v6222_v29 = vpack.c.bf16 %v1388_v21, %v1387_v17  ;;  %v1389_v30 = vld [vmem:[#allocation2 + $0x47] sm:$0xff]  ;;  %v1391_v21 = vld [vmem:[#allocation2 + $0x57] sm:$0xff]  ;;  %687 = vst [vmem:[#allocation2 + $0xa8] sm:$0xff] %v7308_v44 }
  0x2d   : > { %5215 = vmatpush3.bf16.msra.mxu0 %v6110_v51  ;;  %5584 = vmatprep.subr.bf16.mxu1 %v5987_v1  ;;  %v4917_v17 = vld [vmem:[%s6040_s10 + $0x60] sm:$0xff]  }
  0x2e   : > { %5248 = vmatprep.subr.bf16.mxu0 %v5833_v11  ;;  %5168 = vmatprep.mubr.bf16.mxu1 %v1414_v41  ;;  %v4812_v22 = vunpack.c.l.bf16 %v4917_v17  ;;  %v4813_v2 = vunpack.c.h.bf16 %v4917_v17 }
  0x2f   : > { %5169 = vmatmul.mubr.bf16.vlgmr.msra.gmra.mrb[0].mxu1 %v6194_v54 }
  0x30   : > { %5217 = vmatmul.mubr.bf16.vlgmr.msra.gmra.mrb[0].mxu0 %v1414_v41  ;;  %5592 = vmatpush3.bf16.msra.mxu1 %v5987_v1  ;;  %v6233_v1 = vpack.c.bf16 %v1390_v38, %v1389_v30  ;;  %v6241_v41 = vadd.f32 %v6062_v20, %v583_v27  ;;  %v1392_v27 = vld [vmem:[#allocation2 + $0x5f] sm:$0xff]  ;;  %v4809_v38 = vunpack.c.h.bf16 %v4916_v16  ;;  %v588_v16 = vmul.f32 %v4808_v9, %v6055_v14 }
  0x31   : > { %5249 = vmatpush3.bf16.msra.mxu0 %v5833_v11  ;;  %v6229_v11 = vadd.f32 %v6062_v20, %v582_v7  ;;  %5220 = vmatprep.mubr.bf16.mxu0 %v6194_v54  ;;  %v586_v7 = vmul.f32 %v4804_v40, %v6055_v14  ;;  %v1393_v40 = vld [vmem:[#allocation2 + $0x67] sm:$0xff]  ;;  %v590_v34 = vmul.f32 %v4812_v22, %v6055_v14 }
  0x32   : > { %5250 = vmatprep.subr.bf16.mxu0 %v6171_v24  ;;  %5585 = vmatprep.subr.bf16.mxu1 %v5997_v4  ;;  %v7307_v30 = vmax.f32 %v6241_v41, 0.0  ;;  %v6285_v9 = vadd.f32 %v6062_v20, %v588_v16  ;;  %v4816_v16 = vunpack.c.l.bf16 %v4918_v23  ;;  %v7327_v13 = vmax.f32 %v6241_v41, 0.0 }
  0x33   : > { %5172 = vmatprep.mubr.bf16.mxu1 %v6222_v29  ;;  %v7304_v50 = vmax.f32 %v6229_v11, 0.0  ;;  %v6268_v45 = vadd.f32 %v6062_v20, %v586_v7 }
  0x34   : > { %5593 = vmatpush3.bf16.msra.mxu1 %v5997_v4  ;;  %v1394_v4 = vld [vmem:[#allocation2 + $0x6f] sm:$0xff]  ;;  %686 = vst [vmem:[#allocation2 + $0xa0] sm:$0xff] %v7307_v30 }
  0x35   : > { %5251 = vmatpush3.bf16.msra.mxu0 %v6171_v24  ;;  %v6262_v24 = vpack.c.bf16 %v1392_v27, %v1391_v21  ;;  %685 = vst [vmem:[#allocation2 + $0x98] sm:$0xff] %v7304_v50  ;;  %5586 = vmatprep.subr.bf16.mxu1 %v6007_v6  ;;  %v7311_v21 = vmax.f32 %v6254_v60, 0.0  ;;  %v6277_v27 = vadd.f32 %v6062_v20, %v587_v28  ;;  %v7314_v7 = vmax.f32 %v6268_v45, 0.0  ;;  %v4919_v30 = vld [vmem:[%s6040_s10 + $0x70] sm:$0xff]  }
  0x36   : > { %5252 = vmatprep.subr.bf16.mxu0 %v6210_v63  ;;  %v589_v50 = vmul.f32 %v4809_v38, %v6055_v14  ;;  %v1395_v28 = vld [vmem:[#allocation2 + $0x77] sm:$0xff]  ;;  %v1396_v38 = vld [vmem:[#allocation2 + $0x7f] sm:$0xff]  ;;  %v6297_v17 = vpack.c.bf16 %v1394_v4, %v1393_v40  ;;  %v592_v4 = vmul.f32 %v4816_v16, %v6055_v14  ;;  %v4820_v22 = vunpack.c.l.bf16 %v4919_v30 }
  0x37   : > { %5173 = vmatmul.mubr.bf16.gmra.mrb[4].mxu1 %v6233_v1  ;;  %688 = vst [vmem:[#allocation2 + $0xb0] sm:$0xff] %v7311_v21  ;;  %v7317_v44 = vmax.f32 %v6277_v27, 0.0  ;;  %689 = vst [vmem:[#allocation2 + $0xb8] sm:$0xff] %v7314_v7  ;;  %v7315_v21 = vmax.f32 %v6285_v9, 0.0  ;;  %v6310_v23 = vpack.c.bf16 %v1396_v38, %v1395_v28  ;;  %v593_v7 = vmul.f32 %v4817_v35, %v6055_v14 }
  0x38   : > { %5221 = vmatmul.mubr.bf16.gmra.mrb[4].mxu0 %v6222_v29  ;;  %v6294_v0 = vadd.f32 %v6062_v20, %v589_v50  ;;  %5176 = vmatprep.mubr.bf16.mxu1 %v6262_v24  ;;  %v591_v50 = vmul.f32 %v4813_v2, %v6055_v14  ;;  %v6321_v2 = vadd.f32 %v6062_v20, %v590_v34  ;;  %v4821_v28 = vunpack.c.h.bf16 %v4919_v30  ;;  %v5838_v34 = vld [vmem:[%s7297_s3 + $0x1a8] sm:$0xff]  }
  0x39   : > { %5253 = vmatpush3.bf16.msra.mxu0 %v6210_v63  ;;  %v5837_v63 = vld [vmem:[%s7297_s3 + $0x1a0] sm:$0xff]   ;;  %5224 = vmatprep.mubr.bf16.mxu0 %v6233_v1  ;;  %690 = vst [vmem:[#allocation2 + $0xc0] sm:$0xff] %v7317_v44  ;;  %691 = vst [vmem:[#allocation2 + $0xc8] sm:$0xff] %v7315_v21  ;;  %v6329_v38 = vadd.f32 %v6062_v20, %v592_v4  ;;  %v6332_v35 = vadd.f32 %v6062_v20, %v593_v7  ;;  %v4824_v16 = vunpack.c.l.bf16 %v4920_v26 }
  0x3a   : > { %5254 = vmatprep.subr.bf16.mxu0 %v5836_v39  ;;  %5594 = vmatpush3.bf16.msra.mxu1 %v6007_v6  ;;  %v7316_v40 = vmax.f32 %v6294_v0, 0.0  ;;  %v6324_v6 = vadd.f32 %v6062_v20, %v591_v50  ;;  %v4825_v21 = vunpack.c.h.bf16 %v4920_v26  ;;  %v661_v50 = vmax.f32 %v6321_v2, 0.0  ;;  %v1397_v44 = vld [vmem:[#allocation2 + $0x87] sm:$0xff]  ;;  %v5839_v2 = vld [vmem:[%s7297_s3 + $0x1b0] sm:$0xff]  }
  0x3b   : > { %5587 = vmatprep.subr.bf16.mxu1 %v6022_v8  ;;  %v663_v7 = vmax.f32 %v6329_v38, 0.0  ;;  %v664_v4 = vmax.f32 %v6332_v35, 0.0  ;;  %v596_v26 = vmul.f32 %v4824_v16, %v6055_v14  ;;  %v6359_v35 = vpack.c.bf16 %v638_v43, %v637_v42 }
  0x3c   : > { %692 = vst [vmem:[#allocation2 + $0xd0] sm:$0xff] %v7316_v40  ;;  %v662_v30 = vmax.f32 %v6324_v6, 0.0  ;;  %v595_v40 = vmul.f32 %v4821_v28, %v6055_v14  ;;  %693 = vst [vmem:[#allocation2 + $0xd8] sm:$0xff] %v661_v50  ;;  %v1398_v28 = vld [vmem:[#allocation2 + $0x8f] sm:$0xff]  ;;  %v1400_v16 = vld [vmem:[#allocation2 + $0x9f] sm:$0xff]  ;;  %v7320_v42 = vmax.f32 %v6162_v18, 0.0 }
  0x3d   : > { %5255 = vmatpush3.bf16.msra.mxu0 %v5836_v39  ;;  %v594_v39 = vmul.f32 %v4820_v22, %v6055_v14  ;;  %v597_v22 = vmul.f32 %v4825_v21, %v6055_v14  ;;  %695 = vst [vmem:[#allocation2 + $0xe8] sm:$0xff] %v663_v7  ;;  %696 = vst [vmem:[#allocation2 + $0xf0] sm:$0xff] %v664_v4  ;;  %v635_v38 = vadd.f32 %v6062_v20, %v596_v26  ;;  %v5840_v18 = vld [vmem:[%s7297_s3 + $0x1b8] sm:$0xff]  }
  0x3e   : > { %5256 = vmatprep.subr.bf16.mxu0 %v5837_v63  ;;  %5595 = vmatpush3.bf16.msra.mxu1 %v6022_v8  ;;  %694 = vst [vmem:[#allocation2 + $0xe0] sm:$0xff] %v662_v30  ;;  %v634_v8 = vadd.f32 %v6062_v20, %v595_v40  ;;  %v1399_v40 = vld [vmem:[#allocation2 + $0x97] sm:$0xff]  ;;  %v7321_v43 = vmax.f32 %v6165_v19, 0.0  ;;  %v6402_v56 = vpack.c.bf16 %v1398_v28, %v1397_v44  ;;  %v7328_v19 = vmax.f32 %v6247_v59, 0.0 }
  0x3f   : > { %5588 = vmatprep.subr.bf16.mxu1 %v6033_v10  ;;  %v633_v6 = vadd.f32 %v6062_v20, %v594_v39  ;;  %5177 = vmatmul.mubr.bf16.gmra.mrb[8].mxu1 %v6297_v17  ;;  %v6367_v39 = vpack.c.bf16 %v640_v48, %v639_v47  ;;  %v667_v32 = vmax.f32 %v635_v38, 0.0  ;;  %v7322_v48 = vmax.f32 %v6189_v46, 0.0 }
  0x40   : > { %5225 = vmatmul.mubr.bf16.gmra.mrb[8].mxu0 %v6262_v24  ;;  %5180 = vmatprep.mubr.bf16.mxu1 %v6310_v23  ;;  %v666_v21 = vmax.f32 %v634_v8, 0.0  ;;  %v6394_v47 = vpack.c.bf16 %v7321_v43, %v7320_v42  ;;  %v6404_v57 = vpack.c.bf16 %v1400_v16, %v1399_v40  ;;  %v7330_v49 = vmax.f32 %v6268_v45, 0.0  ;;  %v1402_v45 = vld [vmem:[#allocation2 + $0xaf] sm:$0xff]  ;;  %v5846_v16 = vld [vmem:[%s7297_s3 + $0x160] sm:$0xff]  }
  0x41   : > { %5257 = vmatpush3.bf16.msra.mxu0 %v5837_v63  ;;  %v665_v14 = vmax.f32 %v633_v6, 0.0  ;;  %v636_v63 = vadd.f32 %v6062_v20, %v597_v22  ;;  %5228 = vmatprep.mubr.bf16.mxu0 %v6297_v17  ;;  %v6381_v20 = vpack.c.bf16 %v644_v5, %v643_v3  ;;  %v6400_v53 = vpack.c.bf16 %v7323_v52, %v7322_v48  ;;  %v5844_v22 = vld [vmem:[%s7297_s3 + $0x158] sm:$0xff]   ;;  %v5847_v42 = vld [vmem:[%s7297_s3 + $0x108] sm:$0xff]   ;;  %v5848_v43 = vld [vmem:[%s7297_s3 + $0x110] sm:$0xff]  }
  0x42   : > { %5258 = vmatprep.subr.bf16.mxu0 %v5838_v34  ;;  %5596 = vmatpush3.bf16.msra.mxu1 %v6033_v10  ;;  %698 = vst [vmem:[#allocation2 + $0x100] sm:$0xff] %v666_v21  ;;  %v7319_v10 = vmax.f32 %v6155_v15, 0.0  ;;  %699 = vst [vmem:[#allocation2 + $0x108] sm:$0xff] %v667_v32  ;;  %v6410_v3 = vpack.c.bf16 %v7325_v62, %v7324_v61  ;;  %v7326_v5 = vmax.f32 %v6229_v11, 0.0  ;;  %v7331_v55 = vmax.f32 %v6277_v27, 0.0  ;;  %v1403_v27 = vld [vmem:[#allocation2 + $0xb7] sm:$0xff] }
  0x43   : > { %5589 = vmatprep.subr.bf16.mxu1 %v6049_v12  ;;  %697 = vst [vmem:[#allocation2 + $0xf8] sm:$0xff] %v665_v14  ;;  %v668_v36 = vmax.f32 %v636_v63, 0.0  ;;  %v7332_v11 = vmax.f32 %v6285_v9, 0.0  ;;  %v7333_v41 = vmax.f32 %v6294_v0, 0.0  ;;  %v6442_v59 = vpack.c.bf16 %v664_v4, %v663_v7  ;;  %v5841_v0 = vld [vmem:[%s7297_s3 + $0x140] sm:$0xff]   ;;  %v5843_v4 = vld [vmem:[%s7297_s3 + $0x150] sm:$0xff]  }
  0x44   : > { %v6388_v37 = vpack.c.bf16 %v7319_v10, %v645_v25  ;;  %v6416_v15 = vpack.c.bf16 %v7327_v13, %v7326_v5  ;;  %v7329_v25 = vmax.f32 %v6254_v60, 0.0  ;;  %v6431_v58 = vpack.c.bf16 %v7331_v55, %v7330_v49  ;;  %v1404_v9 = vld [vmem:[#allocation2 + $0xbf] sm:$0xff]  ;;  %v1407_v6 = vld [vmem:[#allocation2 + $0xd7] sm:$0xff]  ;;  %v3098_v49 = vld [vmem:[#allocation2 + $0x29] sm:$0xff] }
  0x45   : > { %5259 = vmatpush3.bf16.msra.mxu0 %v5838_v34  ;;  %700 = vst [vmem:[#allocation2 + $0x110] sm:$0xff] %v668_v36  ;;  %v6437_v44 = vpack.c.bf16 %v7333_v41, %v7332_v11  ;;  %v6439_v34 = vpack.c.bf16 %v662_v30, %v661_v50  ;;  %v6444_v60 = vpack.c.bf16 %v666_v21, %v665_v14  ;;  %v6461_v50 = vld [vmem:[%s7297_s3 + $0x100] sm:$0xff]   ;;  %v5850_v48 = vld [vmem:[%s7297_s3 + $0x118] sm:$0xff]   ;;  %v5854_v13 = vld [vmem:[%s7297_s3 + $0x130] sm:$0xff]  }
  0x46   : > { %5260 = vmatprep.subr.bf16.mxu0 %v5839_v2  ;;  %v6425_v46 = vpack.c.bf16 %v7329_v25, %v7328_v19  ;;  %5597 = vmatpush3.bf16.msra.mxu1 %v6049_v12  ;;  %v6446_v26 = vpack.c.bf16 %v668_v36, %v667_v32  ;;  %v1401_v12 = vld [vmem:[#allocation2 + $0xa7] sm:$0xff]  ;;  %v6465_v7 = vpack.c.bf16 %v1404_v9, %v1403_v27  ;;  %v5852_v32 = vld [vmem:[%s7297_s3 + $0x170] sm:$0xff]   ;;  %v1914_v61 = vld [vmem:[#allocation2 + $0x11f] sm:$0xff] }
  0x47   : > { %5590 = vmatprep.subr.bf16.mxu1 %v6078_v31  ;;  %5181 = vmatmul.mubr.bf16.gmra.mrb[12].mxu1 %v6402_v56  ;;  %v6463_v30 = vpack.c.bf16 %v1402_v45, %v1401_v12  ;;  %v1409_v28 = vld [vmem:[#allocation2 + $0xe7] sm:$0xff]  ;;  %v3096_v62 = vld [vmem:[#allocation2 + $0x19] sm:$0xff]  ;;  %v3099_v55 = vld [vmem:[#allocation2 + $0x31] sm:$0xff] }
  0x48   : > { %5229 = vmatmul.mubr.bf16.gmra.mrb[12].mxu0 %v6310_v23  ;;  %5184 = vmatprep.mubr.bf16.mxu1 %v6404_v57  ;;  %v5858_v10 = vld [vmem:[%s7297_s3 + $0x80] sm:$0xff]   ;;  %v5856_v25 = vld [vmem:[%s7297_s3 + $0x138] sm:$0xff]   ;;  %v6542_v41 = vpack.c.bf16 %v3099_v55, %v3098_v49  ;;  %v5859_v27 = vld [vmem:[%s7297_s3 + $0x48] sm:$0xff]  }
  0x49   : > { %5261 = vmatpush3.bf16.msra.mxu0 %v5839_v2  ;;  %5264 = vmatprep.mubr.bf16.mxu0 %v6194_v54  ;;  %v5842_v54 = vld [vmem:[%s7297_s3 + $0x148] sm:$0xff]   ;;  %v5851_v52 = vld [vmem:[%s7297_s3 + $0x120] sm:$0xff]   ;;  %v3119_v55 = vld [vmem:[#allocation2 + $0xd1] sm:$0xff] }
  0x4a   : > { %5262 = vmatprep.subr.bf16.mxu0 %v5840_v18  ;;  %5598 = vmatpush3.bf16.msra.mxu1 %v6078_v31  ;;  %v1405_v31 = vld [vmem:[#allocation2 + $0xc7] sm:$0xff]  ;;  %v1406_v2 = vld [vmem:[#allocation2 + $0xcf] sm:$0xff]  ;;  %v1411_v38 = vld [vmem:[#allocation2 + $0xf7] sm:$0xff] }
  0x4b   : > { %5591 = vmatprep.subr.bf16.mxu1 %v6110_v51  ;;  %v1425_v8 = vpack.c.bf16 %v1406_v2, %v1405_v31  ;;  %v1412_v40 = vld [vmem:[#allocation2 + $0xff] sm:$0xff]  ;;  %v5860_v9 = vld [vmem:[%s7297_s3 + $0x88] sm:$0xff]   ;;  %v5862_v31 = vld [vmem:[%s7297_s3 + $0x90] sm:$0xff]  }
  0x4c   : > { %v6487_v21 = vpack.c.bf16 %v1412_v40, %v1411_v38  ;;  %v1446_v63 = vld [vmem:[#allocation2 + $0x10f] sm:$0xff]  ;;  %v3097_v5 = vld [vmem:[#allocation2 + $0x21] sm:$0xff] }
  0x4d   : > { %5263 = vmatpush3.bf16.msra.mxu0 %v5840_v18  ;;  %v6531_v19 = vpack.c.bf16 %v3097_v5, %v3096_v62  ;;  %v5857_v11 = vld [vmem:[%s7297_s3 + $0x40] sm:$0xff]   ;;  %v3118_v49 = vld [vmem:[#allocation2 + $0xc9] sm:$0xff] }
  0x4e   : > { %5440 = vmatprep.subr.bf16.mxu0 %v5841_v0  ;;  %5599 = vmatpush3.bf16.msra.mxu1 %v6110_v51  ;;  %v1408_v51 = vld [vmem:[#allocation2 + $0xdf] sm:$0xff] }
  0x4f   : > { %5296 = vmatprep.subr.bf16.mxu1 %v6461_v50  ;;  %5185 = vmatmul.mubr.bf16.gmra.mrb[16].mxu1 %v6463_v30  ;;  %v3101_v12 = vld [vmem:[#allocation2 + $0x41] sm:$0xff] }
  0x50   : > { %5265 = vmatmul.mubr.bf16.vlgmr.msra.gmra.mrb[0].mxu0 %v6222_v29  ;;  %5188 = vmatprep.mubr.bf16.mxu1 %v6465_v7  ;;  %v1426_v29 = vpack.c.bf16 %v1408_v51, %v1407_v6  ;;  %v5863_v51 = vld [vmem:[%s7297_s3 + $0x58] sm:$0xff]   ;;  %v5865_v38 = vld [vmem:[%s7297_s3 + $0x60] sm:$0xff]  }
  0x51   : > { %5441 = vmatpush3.bf16.msra.mxu0 %v5841_v0  ;;  %5268 = vmatprep.mubr.bf16.mxu0 %v6233_v1  ;;  %v1410_v1 = vld [vmem:[#allocation2 + $0xef] sm:$0xff]  ;;  %v3100_v0 = vld [vmem:[#allocation2 + $0x39] sm:$0xff]  ;;  %v3117_v62 = vld [vmem:[#allocation2 + $0xc1] sm:$0xff] }
  0x52   : > { %5442 = vmatprep.subr.bf16.mxu0 %v5842_v54  ;;  %v1427_v14 = vpack.c.bf16 %v1410_v1, %v1409_v28  ;;  %v6544_v45 = vpack.c.bf16 %v3101_v12, %v3100_v0  ;;  %v3108_v28 = vld [vmem:[#allocation2 + $0x79] sm:$0xff]  ;;  %v3109_v1 = vld [vmem:[#allocation2 + $0x81] sm:$0xff]  ;;  %v6630_v12 = vpack.c.bf16 %v3119_v55, %v3118_v49 }
  0x53   : > { %v5873_v5 = vld [vmem:[%s7297_s3 + $0x1c0] sm:$0xff]  }
  0x54   : > { %v3121_v0 = vld [vmem:[#allocation2 + $0xe1] sm:$0xff] }
  0x55   : > { %5443 = vmatpush3.bf16.msra.mxu0 %v5842_v54  ;;  %v3105_v54 = vld [vmem:[#allocation2 + $0x61] sm:$0xff] }
  0x56   : > { %5444 = vmatprep.subr.bf16.mxu0 %v5843_v4 }
  0x57   : > { %5189 = vmatmul.mubr.bf16.gmra.mrb[20].mxu1 %v1425_v8 }
  0x58   : > { %5269 = vmatmul.mubr.bf16.gmra.mrb[4].mxu0 %v6262_v24  ;;  %5192 = vmatprep.mubr.bf16.mxu1 %v1426_v29  ;;  %v5849_v24 = vld [vmem:[%s7297_s3 + $0x168] sm:$0xff]  }
  0x59   : > { %5272 = vmatprep.mubr.bf16.mxu0 %v6297_v17  ;;  %5445 = vmatpush3.bf16.msra.mxu0 %v5843_v4  ;;  %v1445_v17 = vld [vmem:[#allocation2 + $0x107] sm:$0xff]  ;;  %v5861_v4 = vld [vmem:[%s7297_s3 + $0x50] sm:$0xff]  }
  0x5a   : > { %5446 = vmatprep.subr.bf16.mxu0 %v5844_v22  ;;  %v1447_v36 = vpack.c.bf16 %v1446_v63, %v1445_v17  ;;  %v3110_v17 = vld [vmem:[#allocation2 + $0x89] sm:$0xff]  ;;  %v3111_v63 = vld [vmem:[#allocation2 + $0x91] sm:$0xff] }
  0x5d   : > { %5447 = vmatpush3.bf16.msra.mxu0 %v5844_v22  ;;  %v3107_v22 = vld [vmem:[#allocation2 + $0x71] sm:$0xff] }
  0x5e   : > { %5448 = vmatprep.subr.bf16.mxu0 %v5846_v16 }
  0x5f   : > { %5193 = vmatmul.mubr.bf16.gmra.mrb[24].mxu1 %v1427_v14 }
  0x60   : > { %5273 = vmatmul.mubr.bf16.gmra.mrb[8].mxu0 %v6310_v23  ;;  %5196 = vmatprep.mubr.bf16.mxu1 %v6487_v21  ;;  %v5855_v23 = vld [vmem:[%s7297_s3 + $0x178] sm:$0xff]  }
  0x61   : > { %5276 = vmatprep.mubr.bf16.mxu0 %v6402_v56  ;;  %5449 = vmatpush3.bf16.msra.mxu0 %v5846_v16  ;;  %v5866_v16 = vld [vmem:[%s7297_s3 + $0xa0] sm:$0xff]  }
  0x62   : > { %5450 = vmatprep.subr.bf16.mxu0 %v5849_v24 }
  0x65   : > { %5451 = vmatpush3.bf16.msra.mxu0 %v5849_v24  ;;  %v5868_v24 = vld [vmem:[%s7297_s3 + $0xa8] sm:$0xff]  }
  0x66   : > { %5452 = vmatprep.subr.bf16.mxu0 %v5852_v32 }
  0x67   : > { %5197 = vmatmul.mubr.bf16.gmra.mrb[28].mxu1 %v1447_v36 }
  0x68   : > { %5277 = vmatmul.mubr.bf16.gmra.mrb[12].mxu0 %v6404_v57  ;;  %5232 = vmatprep.mubr.bf16.mxu1 %v6402_v56  ;;  %v5853_v56 = vld [vmem:[%s7297_s3 + $0x128] sm:$0xff]  }
  0x69   : > { %5280 = vmatprep.mubr.bf16.mxu0 %v6463_v30  ;;  %5453 = vmatpush3.bf16.msra.mxu0 %v5852_v32  ;;  %v3112_v32 = vld [vmem:[#allocation2 + $0x99] sm:$0xff] }
  0x6a   : > { %5454 = vmatprep.subr.bf16.mxu0 %v5855_v23 }
  0x6d   : > { %5455 = vmatpush3.bf16.msra.mxu0 %v5855_v23  ;;  %v5869_v23 = vld [vmem:[%s7297_s3 + $0x70] sm:$0xff]  }
  0x6e   : > { %5488 = vmatprep.subr.bf16.mxu0 %v5858_v10 }
  0x6f   : > { %5233 = vmatmul.mubr.bf16.vlgmr.msra.gmra.mrb[16].mxu1 %v6404_v57  ;;  %v1913_v57 = vld [vmem:[#allocation2 + $0x117] sm:$0xff] }
  0x70   : > { %5281 = vmatmul.mubr.bf16.gmra.mrb[16].mxu0 %v6465_v7  ;;  %5297 = vmatpush3.bf16.msra.mxu1 %v6461_v50  ;;  %v1930_v18 = vpack.c.bf16 %v1914_v61, %v1913_v57  ;;  %v3102_v50 = vld [vmem:[#allocation2 + $0x49] sm:$0xff]  ;;  %v3115_v57 = vld [vmem:[#allocation2 + $0xb1] sm:$0xff]  ;;  %v3116_v61 = vld [vmem:[#allocation2 + $0xb9] sm:$0xff] }
  0x71   : > { %5284 = vmatprep.mubr.bf16.mxu0 %v1425_v8  ;;  %5236 = vmatprep.mubr.bf16.mxu1 %v6463_v30  ;;  %v3103_v30 = vld [vmem:[#allocation2 + $0x51] sm:$0xff] }
  0x72   : > { %5298 = vmatprep.subr.bf16.mxu1 %v5847_v42  ;;  %v6562_v2 = vpack.c.bf16 %v3103_v30, %v3102_v50  ;;  %v3123_v50 = vld [vmem:[#allocation2 + $0xf1] sm:$0xff]  ;;  %v3124_v30 = vld [vmem:[#allocation2 + $0xf9] sm:$0xff] }
  0x74   : > { %5299 = vmatpush3.bf16.msra.mxu1 %v5847_v42  ;;  %v5870_v42 = vld [vmem:[%s7297_s3 + $0xb0] sm:$0xff]  }
  0x75   : > { %5300 = vmatprep.subr.bf16.mxu1 %v5848_v43 }
  0x77   : > { %5237 = vmatmul.mubr.bf16.gmra.mrb[20].mxu1 %v6465_v7  ;;  %v3104_v7 = vld [vmem:[#allocation2 + $0x59] sm:$0xff] }
  0x78   : > { %5285 = vmatmul.mubr.bf16.gmra.mrb[20].mxu0 %v1426_v29  ;;  %5301 = vmatpush3.bf16.msra.mxu1 %v5848_v43  ;;  %v6564_v6 = vpack.c.bf16 %v3105_v54, %v3104_v7  ;;  %v3125_v7 = vld [vmem:[#allocation2 + $0x101] sm:$0xff] }
  0x79   : > { %5288 = vmatprep.mubr.bf16.mxu0 %v1427_v14  ;;  %5240 = vmatprep.mubr.bf16.mxu1 %v1425_v8  ;;  %v5864_v8 = vld [vmem:[%s7297_s3 + $0x98] sm:$0xff]  }
  0x7a   : > { %5302 = vmatprep.subr.bf16.mxu1 %v5850_v48 }
  0x7c   : > { %5303 = vmatpush3.bf16.msra.mxu1 %v5850_v48  ;;  %v5871_v48 = vld [vmem:[%s7297_s3 + $0x78] sm:$0xff]  }
  0x7d   : > { %5304 = vmatprep.subr.bf16.mxu1 %v5851_v52 }
  0x7f   : > { %5241 = vmatmul.mubr.bf16.gmra.mrb[24].mxu1 %v1426_v29  ;;  %v3106_v29 = vld [vmem:[#allocation2 + $0x69] sm:$0xff] }
  0x80   : > { %5289 = vmatmul.mubr.bf16.gmra.mrb[24].mxu0 %v6487_v21  ;;  %5305 = vmatpush3.bf16.msra.mxu1 %v5851_v52  ;;  %v6579_v40 = vpack.c.bf16 %v3107_v22, %v3106_v29  ;;  %v5872_v52 = vld [vmem:[%s7297_s3 + $0xb8] sm:$0xff]  }
  0x81   : > { %5292 = vmatprep.mubr.bf16.mxu0 %v1447_v36  ;;  %5244 = vmatprep.mubr.bf16.mxu1 %v1427_v14  ;;  %v6584_v14 = vpack.c.bf16 %v3109_v1, %v3108_v28  ;;  %v3113_v36 = vld [vmem:[#allocation2 + $0xa1] sm:$0xff]  ;;  %v3095_v29 = vld [vmem:[#allocation2 + $0x11] sm:$0xff] }
  0x82   : > { %5306 = vmatprep.subr.bf16.mxu1 %v5853_v56  ;;  %v6604_v43 = vpack.c.bf16 %v3113_v36, %v3112_v32  ;;  %v6648_v1 = vld [vmem:[#allocation2 + $0x10] sm:$0xff] }
  0x83   : > { %v5886_v32 = vld [vmem:[%s7297_s3 + $0x230] sm:$0xff]  }
  0x84   : > { %5307 = vmatpush3.bf16.msra.mxu1 %v5853_v56  ;;  %v3114_v56 = vld [vmem:[#allocation2 + $0xa9] sm:$0xff] }
  0x85   : > { %5308 = vmatprep.subr.bf16.mxu1 %v5854_v13 }
  0x87   : > { %5245 = vmatmul.mubr.bf16.gmra.mrb[28].mxu1 %v6487_v21  ;;  %v5867_v21 = vld [vmem:[%s7297_s3 + $0x68] sm:$0xff]  }
  0x88   : > { %5293 = vmatmul.mubr.bf16.gmra.mrb[28].mxu0 %v1930_v18  ;;  %5309 = vmatpush3.bf16.msra.mxu1 %v5854_v13  ;;  %v6619_v13 = vpack.c.bf16 %v3115_v57, %v3114_v56  ;;  %v5874_v18 = vld [vmem:[%s7297_s3 + $0x200] sm:$0xff]  }
  0x89   : > { %5456 = vmatprep.mubr.bf16.mxu0 %v6531_v19  ;;  %5312 = vmatprep.mubr.bf16.mxu1 %v6359_v35 }
  0x8a   : > { %5310 = vmatprep.subr.bf16.mxu1 %v5856_v25 }
  0x8c   : > { %5311 = vmatpush3.bf16.msra.mxu1 %v5856_v25  ;;  %v6624_v25 = vpack.c.bf16 %v3117_v62, %v3116_v61 }
  0x8d   : > { %5344 = vmatprep.subr.bf16.mxu1 %v5857_v11 }
  0x8f   : > { %5313 = vmatmul.mubr.bf16.vlgmr.msra.gmra.mrb[32].mxu1 %v6367_v39 }
  0x90   : > { %5457 = vmatmul.mubr.bf16.vlgmr.msra.gmra.mrb[32].mxu0 %v6542_v41  ;;  %5345 = vmatpush3.bf16.msra.mxu1 %v5857_v11  ;;  %v3120_v11 = vld [vmem:[#allocation2 + $0xd9] sm:$0xff] }
  0x91   : > { %5489 = vmatpush3.bf16.msra.mxu0 %v5858_v10  ;;  %5316 = vmatprep.mubr.bf16.mxu1 %v6375_v33  ;;  %v6599_v10 = vpack.c.bf16 %v3111_v63, %v3110_v17  ;;  %v5882_v17 = vld [vmem:[%s7297_s3 + $0x220] sm:$0xff]   ;;  %v5885_v63 = vld [vmem:[%s7297_s3 + $0x1f0] sm:$0xff]  }
  0x92   : > { %5460 = vmatprep.mubr.bf16.mxu0 %v6544_v45  ;;  %5346 = vmatprep.subr.bf16.mxu1 %v5859_v27 }
  0x93   : > { %5490 = vmatprep.subr.bf16.mxu0 %v5860_v9 }
  0x94   : > { %5347 = vmatpush3.bf16.msra.mxu1 %v5859_v27  ;;  %v6632_v27 = vpack.c.bf16 %v3121_v0, %v3120_v11 }
  0x95   : > { %5491 = vmatpush3.bf16.msra.mxu0 %v5860_v9  ;;  %5348 = vmatprep.subr.bf16.mxu1 %v5861_v4  ;;  %v3122_v9 = vld [vmem:[#allocation2 + $0xe9] sm:$0xff] }
  0x96   : > { %5492 = vmatprep.subr.bf16.mxu0 %v5862_v31  ;;  %v6638_v54 = vpack.c.bf16 %v3123_v50, %v3122_v9 }
  0x97   : > { %5317 = vmatmul.mubr.bf16.gmra.mrb[36].mxu1 %v6381_v20 }
  0x98   : > { %5461 = vmatmul.mubr.bf16.gmra.mrb[36].mxu0 %v6562_v2  ;;  %5320 = vmatprep.mubr.bf16.mxu1 %v6388_v37 }
  0x99   : > { %5464 = vmatprep.mubr.bf16.mxu0 %v6564_v6  ;;  %5349 = vmatpush3.bf16.msra.mxu1 %v5861_v4  ;;  %v3159_v4 = vld [vmem:[#allocation2 + $0x109] sm:$0xff] }
  0x9a   : > { %5493 = vmatpush3.bf16.msra.mxu0 %v5862_v31  ;;  %5350 = vmatprep.subr.bf16.mxu1 %v5863_v51  ;;  %v6640_v31 = vpack.c.bf16 %v3125_v7, %v3124_v30  ;;  %v2768_v30 = vld [vmem:[#allocation2 + $0x88] sm:$0xff]  ;;  %v2769_v7 = vld [vmem:[#allocation2 + $0x90] sm:$0xff] }
  0x9b   : > { %5494 = vmatprep.subr.bf16.mxu0 %v5864_v8 }
  0x9d   : > { %5351 = vmatpush3.bf16.msra.mxu1 %v5863_v51  ;;  %v3160_v51 = vld [vmem:[#allocation2 + $0x111] sm:$0xff] }
  0x9e   : > { %5495 = vmatpush3.bf16.msra.mxu0 %v5864_v8  ;;  %5352 = vmatprep.subr.bf16.mxu1 %v5865_v38  ;;  %v3094_v8 = vld [vmem:[#allocation2 + $0x9] sm:$0xff]  ;;  %v6646_v22 = vpack.c.bf16 %v3160_v51, %v3159_v4 }
  0x9f   : > { %5496 = vmatprep.subr.bf16.mxu0 %v5866_v16  ;;  %5321 = vmatmul.mubr.bf16.gmra.mrb[40].mxu1 %v6394_v47  ;;  %v3126_v28 = vpack.c.bf16 %v3095_v29, %v3094_v8 }
  0xa0   : > { %5465 = vmatmul.mubr.bf16.gmra.mrb[40].mxu0 %v6579_v40  ;;  %5324 = vmatprep.mubr.bf16.mxu1 %v6400_v53 }
  0xa1   : > { %5468 = vmatprep.mubr.bf16.mxu0 %v6584_v14  ;;  %5353 = vmatpush3.bf16.msra.mxu1 %v5865_v38  ;;  %v6652_v38 = vpack.c.bf16 %v6648_v1, %v6648_v1 }
  0xa2   : > { %5497 = vmatpush3.bf16.msra.mxu0 %v5866_v16  ;;  %5354 = vmatprep.subr.bf16.mxu1 %v5867_v21  ;;  %v5875_v16 = vld [vmem:[%s7297_s3 + $0x1c8] sm:$0xff]  }
  0xa3   : > { %5498 = vmatprep.subr.bf16.mxu0 %v5868_v24 }
  0xa5   : > { %5355 = vmatpush3.bf16.msra.mxu1 %v5867_v21  ;;  %v5876_v21 = vld [vmem:[%s7297_s3 + $0x208] sm:$0xff]  }
  0xa6   : > { %5499 = vmatpush3.bf16.msra.mxu0 %v5868_v24  ;;  %5356 = vmatprep.subr.bf16.mxu1 %v5869_v23  ;;  %v5881_v24 = vld [vmem:[%s7297_s3 + $0x1e0] sm:$0xff]  }
  0xa7   : > { %5500 = vmatprep.subr.bf16.mxu0 %v5870_v42  ;;  %5325 = vmatmul.mubr.bf16.gmra.mrb[44].mxu1 %v6410_v3 }
  0xa8   : > { %5469 = vmatmul.mubr.bf16.gmra.mrb[44].mxu0 %v6599_v10  ;;  %5328 = vmatprep.mubr.bf16.mxu1 %v6416_v15 }
  0xa9   : > { %5472 = vmatprep.mubr.bf16.mxu0 %v6604_v43  ;;  %5357 = vmatpush3.bf16.msra.mxu1 %v5869_v23 }
  0xaa   : > { %5501 = vmatpush3.bf16.msra.mxu0 %v5870_v42  ;;  %5358 = vmatprep.subr.bf16.mxu1 %v5871_v48 }
  0xab   : > { %5502 = vmatprep.subr.bf16.mxu0 %v5872_v52 }
  0xad   : > { %5359 = vmatpush3.bf16.msra.mxu1 %v5871_v48  ;;  %v2761_v48 = vld [vmem:[#allocation2 + $0x50] sm:$0xff] }
  0xae   : > { %5503 = vmatpush3.bf16.msra.mxu0 %v5872_v52  ;;  %5392 = vmatprep.subr.bf16.mxu1 %v5873_v5 }
  0xaf   : > { %5536 = vmatprep.subr.bf16.mxu0 %v5874_v18  ;;  %5329 = vmatmul.mubr.bf16.gmra.mrb[48].mxu1 %v6425_v46 }
  0xb0   : > { %5473 = vmatmul.mubr.bf16.gmra.mrb[48].mxu0 %v6619_v13  ;;  %5332 = vmatprep.mubr.bf16.mxu1 %v6431_v58 }
  0xb1   : > { %5476 = vmatprep.mubr.bf16.mxu0 %v6624_v25 }
  0xb7   : > { %5333 = vmatmul.mubr.bf16.gmra.mrb[52].mxu1 %v6437_v44 }
  0xb8   : > { %5477 = vmatmul.mubr.bf16.gmra.mrb[52].mxu0 %v6630_v12  ;;  %5336 = vmatprep.mubr.bf16.mxu1 %v6439_v34 }
  0xb9   : > { %5480 = vmatprep.mubr.bf16.mxu0 %v6632_v27 }
  0xbf   : > { %5337 = vmatmul.mubr.bf16.gmra.mrb[56].mxu1 %v6442_v59 }
  0xc0   : > { %5481 = vmatmul.mubr.bf16.gmra.mrb[56].mxu0 %v6638_v54  ;;  %5340 = vmatprep.mubr.bf16.mxu1 %v6444_v60 }
  0xc1   : > { %5484 = vmatprep.mubr.bf16.mxu0 %v6640_v31 }
  0xc7   : > { %5341 = vmatmul.mubr.bf16.gmra.mrb[60].mxu1 %v6446_v26  ;;  %v5878_v26 = vld [vmem:[%s7297_s3 + $0x210] sm:$0xff]  }
  0xc8   : > { %5485 = vmatmul.mubr.bf16.gmra.mrb[60].mxu0 %v6646_v22  ;;  %5360 = vmatprep.mubr.bf16.mxu1 %v6652_v38 }
  0xc9   : > { %5504 = vmatprep.mubr.bf16.mxu0 %v3126_v28  ;;  %v2794_v28 = vpack.c.bf16 %v2769_v7, %v2768_v30 }
  0xcf   : > { %5361 = vmatmul.mubr.bf16.vlgmr.msra.gmra.mrb[32].mxu1 %v6359_v35  ;;  %v5879_v35 = vld [vmem:[%s7297_s3 + $0x1d8] sm:$0xff]  }
  0xd0   : > { %5505 = vmatmul.mubr.bf16.vlgmr.msra.gmra.mrb[32].mxu0 %v6531_v19  ;;  %5393 = vmatpush3.bf16.msra.mxu1 %v5873_v5  ;;  %v5877_v19 = vld [vmem:[%s7297_s3 + $0x1d0] sm:$0xff]   ;;  %v2764_v5 = vld [vmem:[#allocation2 + $0x68] sm:$0xff] }
  0xd1   : > { %5537 = vmatpush3.bf16.msra.mxu0 %v5874_v18  ;;  %5364 = vmatprep.mubr.bf16.mxu1 %v6367_v39  ;;  %v5880_v39 = vld [vmem:[%s7297_s3 + $0x218] sm:$0xff]   ;;  %v2765_v18 = vld [vmem:[#allocation2 + $0x70] sm:$0xff] }
  0xd2   : > { %5508 = vmatprep.mubr.bf16.mxu0 %v6542_v41  ;;  %5394 = vmatprep.subr.bf16.mxu1 %v5875_v16  ;;  %v2792_v9 = vpack.c.bf16 %v2765_v18, %v2764_v5 }
  0xd3   : > { %5538 = vmatprep.subr.bf16.mxu0 %v5876_v21 }
  0xd4   : > { %5395 = vmatpush3.bf16.msra.mxu1 %v5875_v16 }
  0xd5   : > { %5539 = vmatpush3.bf16.msra.mxu0 %v5876_v21  ;;  %5396 = vmatprep.subr.bf16.mxu1 %v5877_v19 }
  0xd6   : > { %5540 = vmatprep.subr.bf16.mxu0 %v5878_v26 }
  0xd7   : > { %5365 = vmatmul.mubr.bf16.gmra.mrb[36].mxu1 %v6375_v33  ;;  %v5883_v33 = vld [vmem:[%s7297_s3 + $0x1e8] sm:$0xff]  }
  0xd8   : > { %5509 = vmatmul.mubr.bf16.gmra.mrb[36].mxu0 %v6544_v45  ;;  %5368 = vmatprep.mubr.bf16.mxu1 %v6381_v20  ;;  %v5884_v20 = vld [vmem:[%s7297_s3 + $0x228] sm:$0xff]  }
  0xd9   : > { %5512 = vmatprep.mubr.bf16.mxu0 %v6562_v2  ;;  %5397 = vmatpush3.bf16.msra.mxu1 %v5877_v19  ;;  %v2773_v19 = vld [vmem:[#allocation2 + $0xb0] sm:$0xff] }
  0xda   : > { %5541 = vmatpush3.bf16.msra.mxu0 %v5878_v26  ;;  %5398 = vmatprep.subr.bf16.mxu1 %v5879_v35  ;;  %v2772_v26 = vld [vmem:[#allocation2 + $0xa8] sm:$0xff] }
  0xdb   : > { %5542 = vmatprep.subr.bf16.mxu0 %v5880_v39 }
  0xdd   : > { %5399 = vmatpush3.bf16.msra.mxu1 %v5879_v35 }
  0xde   : > { %5543 = vmatpush3.bf16.msra.mxu0 %v5880_v39  ;;  %5400 = vmatprep.subr.bf16.mxu1 %v5881_v24 }
  0xdf   : > { %5544 = vmatprep.subr.bf16.mxu0 %v5882_v17  ;;  %5369 = vmatmul.mubr.bf16.gmra.mrb[40].mxu1 %v6388_v37  ;;  %v5887_v37 = vld [vmem:[%s7297_s3 + $0x1f8] sm:$0xff]  }
  0xe0   : > { %5513 = vmatmul.mubr.bf16.gmra.mrb[40].mxu0 %v6564_v6  ;;  %5372 = vmatprep.mubr.bf16.mxu1 %v6394_v47  ;;  %v5888_v47 = vld [vmem:[%s7297_s3 + $0x238] sm:$0xff]  }
  0xe1   : > { %5516 = vmatprep.mubr.bf16.mxu0 %v6579_v40  ;;  %5401 = vmatpush3.bf16.msra.mxu1 %v5881_v24 }
  0xe2   : > { %5545 = vmatpush3.bf16.msra.mxu0 %v5882_v17  ;;  %5402 = vmatprep.subr.bf16.mxu1 %v5883_v33 }
  0xe3   : > { %5546 = vmatprep.subr.bf16.mxu0 %v5884_v20 }
  0xe5   : > { %5403 = vmatpush3.bf16.msra.mxu1 %v5883_v33 }
  0xe6   : > { %5547 = vmatpush3.bf16.msra.mxu0 %v5884_v20  ;;  %5404 = vmatprep.subr.bf16.mxu1 %v5885_v63 }
  0xe7   : > { %5548 = vmatprep.subr.bf16.mxu0 %v5886_v32  ;;  %5373 = vmatmul.mubr.bf16.gmra.mrb[44].mxu1 %v6400_v53  ;;  %v2756_v53 = vld [vmem:[#allocation2 + $0x28] sm:$0xff] }
  0xe8   : > { %5517 = vmatmul.mubr.bf16.gmra.mrb[44].mxu0 %v6584_v14  ;;  %5376 = vmatprep.mubr.bf16.mxu1 %v6410_v3  ;;  %v2757_v3 = vld [vmem:[#allocation2 + $0x30] sm:$0xff] }
  0xe9   : > { %5520 = vmatprep.mubr.bf16.mxu0 %v6599_v10  ;;  %5405 = vmatpush3.bf16.msra.mxu1 %v5885_v63  ;;  %v2788_v23 = vpack.c.bf16 %v2757_v3, %v2756_v53  ;;  %v2776_v53 = vld [vmem:[#allocation2 + $0xc8] sm:$0xff]  ;;  %v2777_v3 = vld [vmem:[#allocation2 + $0xd0] sm:$0xff] }
  0xea   : > { %5549 = vmatpush3.bf16.msra.mxu0 %v5886_v32  ;;  %5406 = vmatprep.subr.bf16.mxu1 %v5887_v37 }
  0xeb   : > { %5550 = vmatprep.subr.bf16.mxu0 %v5888_v47 }
  0xed   : > { %5407 = vmatpush3.bf16.msra.mxu1 %v5887_v37  ;;  %v2775_v37 = vld [vmem:[#allocation2 + $0xc0] sm:$0xff] }
  0xee   : > { %5551 = vmatpush3.bf16.msra.mxu0 %v5888_v47 }
  0xef   : > { %5377 = vmatmul.mubr.bf16.gmra.mrb[48].mxu1 %v6416_v15 }
  0xf0   : > { %5521 = vmatmul.mubr.bf16.gmra.mrb[48].mxu0 %v6604_v43  ;;  %5380 = vmatprep.mubr.bf16.mxu1 %v6425_v46 }
  0xf1   : > { %5524 = vmatprep.mubr.bf16.mxu0 %v6619_v13 }
  0xf7   : > { %5381 = vmatmul.mubr.bf16.gmra.mrb[52].mxu1 %v6431_v58  ;;  %v2758_v58 = vld [vmem:[#allocation2 + $0x38] sm:$0xff] }
  0xf8   : > { %5525 = vmatmul.mubr.bf16.gmra.mrb[52].mxu0 %v6624_v25  ;;  %5384 = vmatprep.mubr.bf16.mxu1 %v6437_v44  ;;  %v2759_v44 = vld [vmem:[#allocation2 + $0x40] sm:$0xff] }
  0xf9   : > { %5528 = vmatprep.mubr.bf16.mxu0 %v6630_v12  ;;  %v2789_v56 = vpack.c.bf16 %v2759_v44, %v2758_v58  ;;  %v2798_v44 = vpack.c.bf16 %v2777_v3, %v2776_v53 }
  0xff   : > { %5385 = vmatmul.mubr.bf16.gmra.mrb[56].mxu1 %v6439_v34  ;;  %v2760_v34 = vld [vmem:[#allocation2 + $0x48] sm:$0xff] }
 0x100   : > { %5529 = vmatmul.mubr.bf16.gmra.mrb[56].mxu0 %v6632_v27  ;;  %5388 = vmatprep.mubr.bf16.mxu1 %v6442_v59  ;;  %v2790_v61 = vpack.c.bf16 %v2761_v48, %v2760_v34  ;;  %v2778_v34 = vld [vmem:[#allocation2 + $0xd8] sm:$0xff]  ;;  %v2779_v48 = vld [vmem:[#allocation2 + $0xe0] sm:$0xff] }
 0x101   : > { %5532 = vmatprep.mubr.bf16.mxu0 %v6638_v54 }
 0x102   : > { %v5170_v15 = vpop.f32.mrb[0].mxu1 }
 0x103   : > { %v1547_v46 = vpop.f32.mrb[1].mxu1 }
 0x104   : > { %v5171_v36 = vpop.f32.mrb[2].mxu1 }
 0x105   : > { %v1550_v42 = vpop.f32.mrb[3].mxu1 }
 0x107   : > { %5389 = vmatmul.mubr.bf16.gmra.mrb[60].mxu1 %v6444_v60  ;;  %v2762_v60 = vld [vmem:[#allocation2 + $0x58] sm:$0xff] }
 0x108   : > { %5533 = vmatmul.mubr.bf16.gmra.mrb[60].mxu0 %v6640_v31  ;;  %5408 = vmatprep.mubr.bf16.mxu1 %v2788_v23 }
 0x109   : > { %5552 = vmatprep.mubr.bf16.mxu0 %v6542_v41  ;;  %v2763_v41 = vld [vmem:[#allocation2 + $0x60] sm:$0xff] }
 0x10a   : > { %v5174_v52 = vpop.f32.mrb[4].mxu1  ;;  %v2791_v11 = vpack.c.bf16 %v2763_v41, %v2762_v60  ;;  %v2799_v41 = vpack.c.bf16 %v2779_v48, %v2778_v34 }
 0x10b   : > { %v1563_v59 = vpop.f32.mrb[5].mxu1 }
 0x10c   : > { %v6730_v57 = vpop.f32.mrb[6].mxu1 }
 0x10d   : > { %v6732_v62 = vpop.f32.mrb[7].mxu1 }
 0x10f   : > { %5409 = vmatmul.mubr.bf16.vlgmr.msra.gmra.mrb[32].mxu1 %v2789_v56  ;;  %v2781_v56 = vld [vmem:[#allocation2 + $0xf0] sm:$0xff] }
 0x110   : > { %5553 = vmatmul.mubr.bf16.vlgmr.msra.gmra.mrb[32].mxu0 %v6544_v45  ;;  %5412 = vmatprep.mubr.bf16.mxu1 %v2790_v61  ;;  %v2766_v45 = vld [vmem:[#allocation2 + $0x78] sm:$0xff] }
 0x111   : > { %5556 = vmatprep.mubr.bf16.mxu0 %v6562_v2  ;;  %v2767_v2 = vld [vmem:[#allocation2 + $0x80] sm:$0xff] }
 0x112   : > { %v6736_v49 = vpop.f32.mrb[8].mxu1  ;;  %v2793_v8 = vpack.c.bf16 %v2767_v2, %v2766_v45  ;;  %v2785_v45 = vld [vmem:[#allocation2 + $0x110] sm:$0xff] }
 0x113   : > { %v6738_v55 = vpop.f32.mrb[9].mxu1 }
 0x114   : > { %v6740_v0 = vpop.f32.mrb[10].mxu1 }
 0x115   : > { %v6742_v50 = vpop.f32.mrb[11].mxu1 }
 0x117   : > { %5413 = vmatmul.mubr.bf16.gmra.mrb[36].mxu1 %v2791_v11  ;;  %v2783_v11 = vld [vmem:[#allocation2 + $0x100] sm:$0xff] }
 0x118   : > { %5557 = vmatmul.mubr.bf16.gmra.mrb[36].mxu0 %v6564_v6  ;;  %5416 = vmatprep.mubr.bf16.mxu1 %v2792_v9  ;;  %v2770_v6 = vld [vmem:[#allocation2 + $0x98] sm:$0xff]  ;;  %v2784_v9 = vld [vmem:[#allocation2 + $0x108] sm:$0xff] }
 0x119   : > { %5560 = vmatprep.mubr.bf16.mxu0 %v6579_v40  ;;  %v2771_v40 = vld [vmem:[#allocation2 + $0xa0] sm:$0xff] }
 0x11a   : > { %v6746_v4 = vpop.f32.mrb[12].mxu1  ;;  %v2795_v33 = vpack.c.bf16 %v2771_v40, %v2770_v6  ;;  %v3628_v6 = vld [vmem:[#allocation2 + $0x121] sm:$0xff] }
 0x11b   : > { %v6748_v51 = vpop.f32.mrb[13].mxu1 }
 0x11c   : > { %v6750_v29 = vpop.f32.mrb[14].mxu1 }
 0x11d   : > { %v6752_v16 = vpop.f32.mrb[15].mxu1 }
 0x11f   : > { %5417 = vmatmul.mubr.bf16.gmra.mrb[40].mxu1 %v2793_v8 }
 0x120   : > { %5561 = vmatmul.mubr.bf16.gmra.mrb[40].mxu0 %v6584_v14  ;;  %5420 = vmatprep.mubr.bf16.mxu1 %v2794_v28  ;;  %v2796_v14 = vpack.c.bf16 %v2773_v19, %v2772_v26 }
 0x121   : > { %5564 = vmatprep.mubr.bf16.mxu0 %v6599_v10  ;;  %v2774_v10 = vld [vmem:[#allocation2 + $0xb8] sm:$0xff] }
 0x122   : > { %v2797_v58 = vpack.c.bf16 %v2775_v37, %v2774_v10 }
 0x123   : > { %v5266_v21 = vpop.f32.mrb[0].mxu0 }
 0x124   : > { %v6756_v35 = vadd.f32 %v5266_v21, %v5170_v15  ;;  %v2030_v39 = vpop.f32.mrb[1].mxu0 }
 0x125   : > { %v6758_v24 = vadd.f32 %v2030_v39, %v1547_v46  ;;  %v5267_v17 = vpop.f32.mrb[2].mxu0 }
 0x126   : > { %v6760_v20 = vadd.f32 %v5267_v17, %v5171_v36  ;;  %v2033_v63 = vpop.f32.mrb[3].mxu0 }
 0x127   : > { %v6762_v32 = vadd.f32 %v2033_v63, %v1550_v42  ;;  %5421 = vmatmul.mubr.bf16.gmra.mrb[44].mxu1 %v2795_v33 }
 0x128   : > { %5565 = vmatmul.mubr.bf16.gmra.mrb[44].mxu0 %v6604_v43  ;;  %5424 = vmatprep.mubr.bf16.mxu1 %v2796_v14 }
 0x129   : > { %5568 = vmatprep.mubr.bf16.mxu0 %v6619_v13 }
 0x12b   : > { %v5270_v47 = vpop.f32.mrb[4].mxu0 }
 0x12c   : > { %v6766_v15 = vadd.f32 %v5270_v47, %v5174_v52  ;;  %v2046_v46 = vpop.f32.mrb[5].mxu0 }
 0x12d   : > { %v6768_v36 = vadd.f32 %v2046_v46, %v1563_v59  ;;  %v5271_v23 = vpop.f32.mrb[6].mxu0  ;;  %v2780_v59 = vld [vmem:[#allocation2 + $0xe8] sm:$0xff] }
 0x12e   : > { %v6771_v42 = vadd.f32 %v5271_v23, %v6730_v57  ;;  %v2049_v43 = vpop.f32.mrb[7].mxu0 }
 0x12f   : > { %v6774_v13 = vadd.f32 %v2049_v43, %v6732_v62  ;;  %5425 = vmatmul.mubr.bf16.gmra.mrb[48].mxu1 %v2797_v58 }
 0x130   : > { %5569 = vmatmul.mubr.bf16.gmra.mrb[48].mxu0 %v6624_v25  ;;  %5428 = vmatprep.mubr.bf16.mxu1 %v2798_v44 }
 0x131   : > { %5572 = vmatprep.mubr.bf16.mxu0 %v6630_v12  ;;  %v2800_v12 = vpack.c.bf16 %v2781_v56, %v2780_v59 }
 0x133   : > { %v5274_v52 = vpop.f32.mrb[8].mxu0 }
 0x134   : > { %v6779_v61 = vadd.f32 %v5274_v52, %v6736_v49  ;;  %v2062_v57 = vpop.f32.mrb[9].mxu0  ;;  %v2782_v49 = vld [vmem:[#allocation2 + $0xf8] sm:$0xff] }
 0x135   : > { %v6782_v60 = vadd.f32 %v2062_v57, %v6738_v55  ;;  %v5275_v62 = vpop.f32.mrb[10].mxu0  ;;  %v2801_v7 = vpack.c.bf16 %v2783_v11, %v2782_v49 }
 0x136   : > { %v6785_v25 = vadd.f32 %v5275_v62, %v6740_v0  ;;  %v2065_v5 = vpop.f32.mrb[11].mxu0 }
 0x137   : > { %v6788_v18 = vadd.f32 %v2065_v5, %v6742_v50  ;;  %5429 = vmatmul.mubr.bf16.gmra.mrb[52].mxu1 %v2799_v41 }
 0x138   : > { %5573 = vmatmul.mubr.bf16.gmra.mrb[52].mxu0 %v6632_v27  ;;  %5432 = vmatprep.mubr.bf16.mxu1 %v2800_v12 }
 0x139   : > { %5576 = vmatprep.mubr.bf16.mxu0 %v6638_v54  ;;  %v2802_v54 = vpack.c.bf16 %v2785_v45, %v2784_v9 }
 0x13b   : > { %v5278_v55 = vpop.f32.mrb[12].mxu0 }
 0x13c   : > { %v6793_v2 = vadd.f32 %v5278_v55, %v6746_v4  ;;  %v2078_v0 = vpop.f32.mrb[13].mxu0  ;;  %v3627_v4 = vld [vmem:[#allocation2 + $0x119] sm:$0xff] }
 0x13d   : > { %v6796_v30 = vadd.f32 %v2078_v0, %v6748_v51  ;;  %v5279_v50 = vpop.f32.mrb[14].mxu0  ;;  %v3644_v26 = vpack.c.bf16 %v3628_v6, %v3627_v4 }
 0x13e   : > { %v6799_v27 = vadd.f32 %v5279_v50, %v6750_v29  ;;  %v2081_v8 = vpop.f32.mrb[15].mxu0 }
 0x13f   : > { %v6802_v28 = vadd.f32 %v2081_v8, %v6752_v16  ;;  %5433 = vmatmul.mubr.bf16.gmra.mrb[56].mxu1 %v2801_v7 }
 0x140   : > { %5577 = vmatmul.mubr.bf16.gmra.mrb[56].mxu0 %v6640_v31  ;;  %5436 = vmatprep.mubr.bf16.mxu1 %v2802_v54 }
 0x141   : > { %5580 = vmatprep.mubr.bf16.mxu0 %v6646_v22 }
 0x142   : > { %v5234_v40 = vpop.f32.mrb[16].mxu1 }
 0x143   : > { %v5282_v51 = vpop.f32.mrb[16].mxu0  ;;  %v1820_v29 = vpop.f32.mrb[17].mxu1 }
 0x144   : > { %v2094_v21 = vpop.f32.mrb[17].mxu0  ;;  %v6806_v19 = vadd.f32 %v5282_v51, %v5234_v40  ;;  %v5235_v16 = vpop.f32.mrb[18].mxu1 }
 0x145   : > { %v5283_v39 = vpop.f32.mrb[18].mxu0  ;;  %v6808_v17 = vadd.f32 %v2094_v21, %v1820_v29  ;;  %v1823_v31 = vpop.f32.mrb[19].mxu1  ;;  %v772_v21 = vlaneseq }
 0x146   : > { %v2097_v33 = vpop.f32.mrb[19].mxu0  ;;  %v6810_v63 = vadd.f32 %v5283_v39, %v5235_v16 }
 0x147   : > { %v6812_v14 = vadd.f32 %v2097_v33, %v1823_v31  ;;  %5437 = vmatmul.mubr.bf16.gmra.mrb[60].mxu1 %v6652_v38 }
 0x148   : > { %5581 = vmatmul.mubr.bf16.gmra.mrb[60].mxu0 %v3644_v26  ;;  %v6839_v26 = vshrl.u32 %v772_v21, 7 }
 0x14a   : > { %v5238_v10 = vpop.f32.mrb[20].mxu1  ;;  %v775_v29 = vadd.s32 16, %v6839_v26  ;;  %v779_v39 = vadd.s32 48, %v6839_v26  ;;  %v777_v16 = vadd.s32 32, %v6839_v26  ;;  %v783_v33 = vadd.s32 80, %v6839_v26 }
 0x14b   : > { %v5286_v22 = vpop.f32.mrb[20].mxu0  ;;  %v1836_v53 = vpop.f32.mrb[21].mxu1 }
 0x14c   : > { %v2110_v37 = vpop.f32.mrb[21].mxu0  ;;  %v6815_v47 = vadd.f32 %v5286_v22, %v5238_v10  ;;  %v5239_v23 = vpop.f32.mrb[22].mxu1  ;;  %v823_v31 = vand.u32 15, %v775_v29  ;;  %v809_v22 = vand.u32 15, %v6839_v26  ;;  %v851_v10 = vand.u32 15, %v779_v39 }
 0x14d   : > { %v5287_v3 = vpop.f32.mrb[22].mxu0  ;;  %v6817_v46 = vadd.f32 %v2110_v37, %v1836_v53  ;;  %v1839_v44 = vpop.f32.mrb[23].mxu1  ;;  %v837_v37 = vand.u32 15, %v777_v16  ;;  %v879_v53 = vand.u32 15, %v783_v33 }
 0x14e   : > { %v2113_v58 = vpop.f32.mrb[23].mxu0  ;;  %v6819_v43 = vadd.f32 %v5287_v3, %v5239_v23  ;;  %v781_v3 = vadd.s32 64, %v6839_v26  ;;  %v787_v23 = vadd.s32 112, %v6839_v26  ;;  %vm6851_vm0 = vcmp.ne.s32.totalorder %v823_v31, 0 }
 0x14f   : > { %v6821_v34 = vadd.f32 %v2113_v58, %v1839_v44  ;;  %v785_v58 = vadd.s32 96, %v6839_v26  ;;  %v791_v44 = vadd.s32 144, %v6839_v26  ;;  %vm6858_vm1 = vcmp.ne.s32.totalorder %v809_v22, 0 }
 0x150   : > { %vm6865_vm2 = vcmp.ne.s32.totalorder %v851_v10, 0  ;;  %vm6869_vm3 = vcmp.ne.s32.totalorder %v837_v37, 0  ;;  %vm6873_vm4 = vcmp.ne.s32.totalorder %v879_v53, 0  ;;  %v4459_v29 = vsel %vm6851_vm0, 1.0, %v6648_v1 }
 0x151   : > { %v4458_v31 = vsel %vm6858_vm1, 1.0, %v6648_v1  ;;  %v4461_v53 = vsel %vm6865_vm2, 1.0, %v6648_v1 }
 0x152   : > { %v5242_v52 = vpop.f32.mrb[24].mxu1 }
 0x153   : > { %v5290_v48 = vpop.f32.mrb[24].mxu0  ;;  %v1852_v56 = vpop.f32.mrb[25].mxu1 }
 0x154   : > { %v2126_v59 = vpop.f32.mrb[25].mxu0  ;;  %v6823_v38 = vadd.f32 %v5290_v48, %v5242_v52  ;;  %v5243_v41 = vpop.f32.mrb[26].mxu1  ;;  %v789_v48 = vadd.s32 128, %v6839_v26  ;;  %v784_v52 = vadd.s32 88, %v6839_v26 }
 0x155   : > { %v5291_v57 = vpop.f32.mrb[26].mxu0  ;;  %v6825_v62 = vadd.f32 %v2126_v59, %v1852_v56  ;;  %v1855_v49 = vpop.f32.mrb[27].mxu1  ;;  %v795_v59 = vadd.s32 176, %v6839_v26  ;;  %v793_v56 = vadd.s32 160, %v6839_v26 }
 0x156   : > { %v2129_v5 = vpop.f32.mrb[27].mxu0  ;;  %v6827_v12 = vadd.f32 %v5291_v57, %v5243_v41  ;;  %v799_v57 = vadd.s32 208, %v6839_v26  ;;  %v921_v21 = vand.u32 15, %v789_v48  ;;  %v778_v48 = vadd.s32 40, %v6839_v26 }
 0x157   : > { %v6829_v11 = vadd.f32 %v2129_v5, %v1855_v49  ;;  %v797_v5 = vadd.s32 192, %v6839_v26  ;;  %v803_v49 = vadd.s32 240, %v6839_v26  ;;  %v963_v39 = vand.u32 15, %v795_v59 }
 0x158   : > { %v949_v16 = vand.u32 15, %v793_v56  ;;  %v991_v33 = vand.u32 15, %v799_v57  ;;  %vm6908_vm9 = vcmp.ne.s32.totalorder %v921_v21, 0  ;;  %v776_v56 = vadd.s32 24, %v6839_v26 }
 0x159   : > { %v977_v22 = vand.u32 15, %v797_v5  ;;  %v1019_v10 = vand.u32 15, %v803_v49  ;;  %vm6913_vm10 = vcmp.ne.s32.totalorder %v963_v39, 0  ;;  %v774_v49 = vadd.s32 8, %v6839_v26 }
 0x15a   : > { %v5246_v9 = vpop.f32.mrb[28].mxu1  ;;  %vm6917_vm11 = vcmp.ne.s32.totalorder %v949_v16, 0  ;;  %vm6921_vm12 = vcmp.ne.s32.totalorder %v991_v33, 0  ;;  %v4469_v21 = vsel %vm6913_vm10, 1.0, %v6648_v1  ;;  %v830_v33 = vand.u32 15, %v776_v56 }
 0x15b   : > { %v5294_v55 = vpop.f32.mrb[28].mxu0  ;;  %v1868_v50 = vpop.f32.mrb[29].mxu1  ;;  %vm6926_vm13 = vcmp.ne.s32.totalorder %v977_v22, 0  ;;  %vm6930_vm14 = vcmp.ne.s32.totalorder %v1019_v10, 0  ;;  %v4468_v39 = vsel %vm6917_vm11, 1.0, %v6648_v1  ;;  %v4471_v16 = vsel %vm6921_vm12, 1.0, %v6648_v1 }
 0x15c   : > { %v2142_v45 = vpop.f32.mrb[29].mxu0  ;;  %v6831_v0 = vadd.f32 %v5294_v55, %v5246_v9  ;;  %v5247_v54 = vpop.f32.mrb[30].mxu1  ;;  %v801_v55 = vadd.s32 224, %v6839_v26  ;;  %v4470_v22 = vsel %vm6926_vm13, 1.0, %v6648_v1  ;;  %v4473_v10 = vsel %vm6930_vm14, 1.0, %v6648_v1 }
 0x15d   : > { %v5295_v7 = vpop.f32.mrb[30].mxu0  ;;  %v6833_v8 = vadd.f32 %v2142_v45, %v1868_v50  ;;  %v1871_v51 = vpop.f32.mrb[31].mxu1  ;;  %v7367_v45 = vmov 0  ;;  %v2191_v59 = vmul.f32 %v6756_v35, %v4459_v29  ;;  %v2189_v56 = vmul.f32 %v6758_v24, %v4458_v31 }
 0x15e   : > { %v2145_v4 = vpop.f32.mrb[31].mxu0  ;;  %v6835_v6 = vadd.f32 %v5295_v7, %v5247_v54  ;;  %v865_v7 = vand.u32 15, %v781_v3  ;;  %v907_v54 = vand.u32 15, %v787_v23  ;;  %v1005_v37 = vand.u32 15, %v801_v55 }
 0x15f   : > { %7334 = vst [vmem:[#allocation3_spill] sm:$0xff] %v6833_v8  ;;  %v6837_v40 = vadd.f32 %v2145_v4, %v1871_v51  ;;  %v893_v4 = vand.u32 15, %v785_v58  ;;  %v935_v51 = vand.u32 15, %v791_v44  ;;  %v4460_v3 = vsel %vm6869_vm3, 1.0, %v6648_v1 }
 0x160   : > { %7335 = vst [vmem:[#allocation4_spill] sm:$0xff] %v6835_v6  ;;  %v4463_v23 = vsel %vm6873_vm4, 1.0, %v6648_v1  ;;  %vm6892_vm5 = vcmp.ne.s32.totalorder %v865_v7, 0  ;;  %vm6896_vm6 = vcmp.ne.s32.totalorder %v907_v54, 0  ;;  %vm6934_vm15 = vcmp.ne.s32.totalorder %v1005_v37, 0 }
 0x161   : > { %7336 = vst [vmem:[#allocation5_spill] sm:$0xff] %v6837_v40  ;;  %vm6900_vm7 = vcmp.ne.s32.totalorder %v893_v4, 0  ;;  %vm6904_vm8 = vcmp.ne.s32.totalorder %v935_v51, 0  ;;  %v7368_v45 = vsel %vm6934_vm15, 4294967295, %v7367_v45  ;;  %v4462_v50 = vsel %vm6892_vm5, 1.0, %v6648_v1 }
 0x162   : > { %7369 = vst [vmem:[#allocation6_spill] sm:$0xff] %v7368_v45  ;;  %v4465_v7 = vsel %vm6896_vm6, 1.0, %v6648_v1  ;;  %v4464_v54 = vsel %vm6900_vm7, 1.0, %v6648_v1  ;;  %v4467_v4 = vsel %vm6904_vm8, 1.0, %v6648_v1  ;;  %v4466_v51 = vsel %vm6908_vm9, 1.0, %v6648_v1 }
 0x163   : > { %v816_v58 = vand.u32 15, %v774_v49  ;;  %v780_v44 = vadd.s32 56, %v6839_v26  ;;  %v782_v57 = vadd.s32 72, %v6839_v26  ;;  %v788_v41 = vadd.s32 120, %v6839_v26 }
 0x164   : > { %v6979_v5 = vmul.f32 %v6766_v15, %v4461_v53  ;;  %v6982_v55 = vmul.f32 %v6768_v36, %v4460_v3  ;;  %v6985_v49 = vmul.f32 %v6779_v61, %v4463_v23  ;;  %v6988_v9 = vmul.f32 %v6782_v60, %v4462_v50 }
 0x165   : > { %vm6990_vm0 = vcmp.ne.s32.totalorder %v830_v33, 15  ;;  %v6995_v24 = vmul.f32 %v6793_v2, %v4465_v7  ;;  %v6998_v29 = vmul.f32 %v6796_v30, %v4464_v54  ;;  %v786_v15 = vadd.s32 104, %v6839_v26 }
 0x166   : > { %vm7001_vm1 = vcmp.ne.s32.totalorder %v816_v58, 15  ;;  %v858_v61 = vand.u32 15, %v780_v44  ;;  %v844_v31 = vand.u32 15, %v778_v48  ;;  %v886_v60 = vand.u32 15, %v784_v52 }
 0x167   : > { %v872_v53 = vand.u32 15, %v782_v57  ;;  %v914_v3 = vand.u32 15, %v788_v41  ;;  %v7006_v23 = vmul.f32 %v6806_v19, %v4467_v4  ;;  %v7009_v2 = vmul.f32 %v6808_v17, %v4466_v51 }
 0x168   : > { %v4475_v30 = vsel %vm6990_vm0, 1.0, %v6648_v1  ;;  %v7015_v7 = vmul.f32 %v6815_v47, %v4469_v21  ;;  %v7018_v54 = vmul.f32 %v6817_v46, %v4468_v39  ;;  %v7021_v33 = vmul.f32 %v6823_v38, %v4471_v16 }
 0x169   : > { %v4474_v17 = vsel %vm7001_vm1, 1.0, %v6648_v1  ;;  %v900_v4 = vand.u32 15, %v786_v15  ;;  %v7027_v51 = vmul.f32 %v6825_v62, %v4470_v22  ;;  %v7030_v44 = vmul.f32 %v6831_v0, %v4473_v10  ;;  %v7047_v62 = vld [vmem:[%s7298_s4] ss:$0 sm:$0xff] }
 0x16a   : > { %vm7032_vm2 = vcmp.ne.s32.totalorder %v858_v61, 15  ;;  %vm7036_vm3 = vcmp.ne.s32.totalorder %v844_v31, 15  ;;  %vm7040_vm4 = vcmp.ne.s32.totalorder %v886_v60, 15  ;;  %vm7049_vm5 = vcmp.ne.s32.totalorder %v872_v53, 15 }
 0x16b   : > { %7374 = vst [vmem:[#allocation7_spill] sm:$0xff] %v7030_v44  ;;  %vm7053_vm6 = vcmp.ne.s32.totalorder %v914_v3, 15  ;;  %v792_v36 = vadd.s32 152, %v6839_v26  ;;  %vm7060_vm7 = vcmp.ne.s32.totalorder %v900_v4, 15  ;;  %v790_v60 = vadd.s32 136, %v6839_v26 }
 0x1e2   : > { %v5410_v58 = vpop.f32.mrb[32].mxu1 }
 0x1e3   : > { %v5554_v50 = vpop.f32.mrb[32].mxu0  ;;  %v3064_v47 = vadd.f32 %v5410_v58, %v2191_v59  ;;  %v2903_v21 = vpop.f32.mrb[33].mxu1 }
 0x1e4   : > { %v3744_v19 = vpop.f32.mrb[33].mxu0  ;;  %v3062_v0 = vadd.f32 %v2903_v21, %v2189_v56  ;;  %v5411_v22 = vpop.f32.mrb[34].mxu1 }
 0x1e5   : > { %v5555_v46 = vpop.f32.mrb[34].mxu0  ;;  %v3937_v57 = vadd.f32 %v5554_v50, %v3064_v47  ;;  %v3065_v41 = vadd.f32 %v6760_v20, %v5411_v22  ;;  %v2906_v35 = vpop.f32.mrb[35].mxu1  ;;  %v4477_v20 = vsel %vm7032_vm2, 1.0, %v6648_v1  ;;  %v4476_v50 = vsel %vm7036_vm3, 1.0, %v6648_v1 }
 0x1e6   : > { %v3906_v10 = vmul.f32 %v5555_v46, %v4475_v30  ;;  %v3747_v48 = vpop.f32.mrb[35].mxu0  ;;  %v3935_v61 = vadd.f32 %v3744_v19, %v3062_v0  ;;  %v3063_v56 = vadd.f32 %v6762_v32, %v2906_v35  ;;  %v942_v46 = vand.u32 15, %v792_v36 }
 0x1e7   : > { %v3904_v15 = vmul.f32 %v4474_v17, %v3747_v48  ;;  %v3976_v53 = vadd.f32 %v7047_v62, %v3937_v57  ;;  %v928_v22 = vand.u32 15, %v790_v60  ;;  %v7096_v48 = vadd.s32 168, %v6839_v26 }
 0x1e8   : > { %v3938_v3 = vadd.f32 %v3906_v10, %v3065_v41  ;;  %v3974_v32 = vadd.f32 %v7047_v62, %v3935_v61  ;;  %v796_v10 = vadd.s32 184, %v6839_v26  ;;  %vm7107_vm8 = vcmp.ne.s32.totalorder %v942_v46, 15 }
 0x1e9   : > { %v3936_v30 = vadd.f32 %v3904_v15, %v3063_v56  ;;  %v4206_v57 = vmul.f32 %v3976_v53, %v3976_v53  ;;  %vm7111_vm9 = vcmp.ne.s32.totalorder %v928_v22, 15 }
 0x1ea   : > { %v3977_v17 = vadd.f32 %v7047_v62, %v3938_v3  ;;  %v5414_v38 = vpop.f32.mrb[36].mxu1  ;;  %v4204_v41 = vmul.f32 %v3974_v32, %v3974_v32  ;;  %v4482_v16 = vsel %vm7111_vm9, 1.0, %v6648_v1 }
 0x1eb   : > { %v5558_v4 = vpop.f32.mrb[36].mxu0  ;;  %v3975_v39 = vadd.f32 %v7047_v62, %v3936_v30  ;;  %v3068_v15 = vadd.f32 %v5414_v38, %v6979_v5  ;;  %v2919_v36 = vpop.f32.mrb[37].mxu1 }
 0x1ec   : > { %v3760_v0 = vpop.f32.mrb[37].mxu0  ;;  %v4834_v35 = vpack.c.bf16 %v3977_v17, %v3976_v53  ;;  %v3066_v37 = vadd.f32 %v2919_v36, %v6982_v55  ;;  %v5415_v21 = vpop.f32.mrb[38].mxu1  ;;  %v4207_v45 = vmul.f32 %v3977_v17, %v3977_v17  ;;  %v970_v55 = vand.u32 15, %v796_v10 }
 0x1ed   : > { %v5559_v61 = vpop.f32.mrb[38].mxu0  ;;  %v4829_v56 = vpack.c.bf16 %v3975_v39, %v3974_v32  ;;  %v4166_v3 = vadd.f32 %v3975_v39, %v3974_v32  ;;  %v4205_v30 = vmul.f32 %v3975_v39, %v3975_v39  ;;  %v3941_v47 = vadd.f32 %v5558_v4, %v3068_v15  ;;  %v2922_v40 = vpop.f32.mrb[39].mxu1 }
 0x1ee   : > { %v3763_v60 = vpop.f32.mrb[39].mxu0  ;;  %4921 = vst [vmem:[%s7091_s11 + $0x8] sm:$0xff] %v4834_v35   ;;  %v3069_v19 = vadd.f32 %v6771_v42, %v5415_v21  ;;  %v3910_v58 = vmul.f32 %v5559_v61, %v4477_v20  ;;  %v3939_v8 = vadd.f32 %v3760_v0, %v3066_v37  ;;  %v3067_v38 = vadd.f32 %v6774_v13, %v2922_v40 }
 0x1ef   : > { %v3908_v6 = vmul.f32 %v4476_v50, %v3763_v60  ;;  %4830 = vst [vmem:[%s7091_s11] sm:$0xff] %v4829_v56   ;;  %v4236_v44 = vadd.f32 %v4205_v30, %v4204_v41  ;;  %v4167_v5 = vadd.f32 %v4166_v3, %v3976_v53  ;;  %v3980_v32 = vadd.f32 %v7047_v62, %v3941_v47 }
 0x1f0   : > { %v3942_v39 = vadd.f32 %v3910_v58, %v3069_v19  ;;  %v3978_v36 = vadd.f32 %v7047_v62, %v3939_v8  ;;  %v956_v13 = vand.u32 15, %v7096_v48  ;;  %vm7118_vm10 = vcmp.ne.s32.totalorder %v970_v55, 15 }
 0x1f1   : > { %v4168_v35 = vadd.f32 %v4167_v5, %v3977_v17  ;;  %v4237_v4 = vadd.f32 %v4236_v44, %v4206_v57  ;;  %v3940_v15 = vadd.f32 %v3908_v6, %v3067_v38  ;;  %v4210_v19 = vmul.f32 %v3980_v32, %v3980_v32 }
 0x1f2   : > { %v3981_v42 = vadd.f32 %v7047_v62, %v3942_v39  ;;  %v4208_v53 = vmul.f32 %v3978_v36, %v3978_v36  ;;  %v5418_v6 = vpop.f32.mrb[40].mxu1  ;;  %v7394_v55 = vsel %vm7049_vm5, 1.0, %v6648_v1  ;;  %vm7148_vm11 = vcmp.ne.s32.totalorder %v956_v13, 15 }
 0x1f3   : > { %v5562_v20 = vpop.f32.mrb[40].mxu0  ;;  %v4169_v40 = vadd.f32 %v4168_v35, %v3978_v36  ;;  %v4238_v58 = vadd.f32 %v4237_v4, %v4207_v45  ;;  %v3979_v8 = vadd.f32 %v7047_v62, %v3940_v15  ;;  %v3072_v47 = vadd.f32 %v5418_v6, %v6985_v49  ;;  %v2935_v21 = vpop.f32.mrb[41].mxu1 }
 0x1f4   : > { %v3776_v44 = vpop.f32.mrb[41].mxu0  ;;  %v4844_v17 = vpack.c.bf16 %v3981_v42, %v3980_v32  ;;  %v5419_v57 = vpop.f32.mrb[42].mxu1  ;;  %v3070_v56 = vadd.f32 %v2935_v21, %v6988_v9  ;;  %v7393_v49 = vsel %vm7040_vm4, 1.0, %v6648_v1  ;;  %v4211_v4 = vmul.f32 %v3981_v42, %v3981_v42 }
 0x1f5   : > { %v5563_v46 = vpop.f32.mrb[42].mxu0  ;;  %v4239_v22 = vadd.f32 %v4238_v58, %v4208_v53  ;;  %v4839_v10 = vpack.c.bf16 %v3979_v8, %v3978_v36  ;;  %v4170_v48 = vadd.f32 %v4169_v40, %v3979_v8  ;;  %v4209_v45 = vmul.f32 %v3979_v8, %v3979_v8  ;;  %v2938_v60 = vpop.f32.mrb[43].mxu1 }
 0x1f6   : > { %v3779_v41 = vpop.f32.mrb[43].mxu0  ;;  %4923 = vst [vmem:[%s7091_s11 + $0x18] sm:$0xff] %v4844_v17   ;;  %v3945_v61 = vadd.f32 %v5562_v20, %v3072_v47  ;;  %v3073_v3 = vadd.f32 %v6785_v25, %v5419_v57  ;;  %v3914_v30 = vmul.f32 %v5563_v46, %v7393_v49  ;;  %v3071_v39 = vadd.f32 %v6788_v18, %v2938_v60 }
 0x1f7   : > { %4922 = vst [vmem:[%s7091_s11 + $0x10] sm:$0xff] %v4839_v10   ;;  %v4240_v5 = vadd.f32 %v4239_v22, %v4209_v45  ;;  %v4171_v38 = vadd.f32 %v4170_v48, %v3980_v32  ;;  %v3912_v36 = vmul.f32 %v7394_v55, %v3779_v41  ;;  %v3943_v35 = vadd.f32 %v3776_v44, %v3070_v56 }
 0x1f8   : > { %v3946_v9 = vadd.f32 %v3914_v30, %v3073_v3  ;;  %v4483_v25 = vsel %vm7107_vm8, 1.0, %v6648_v1  ;;  %v3984_v18 = vadd.f32 %v7047_v62, %v3945_v61  ;;  %v4485_v58 = vsel %vm7118_vm10, 1.0, %v6648_v1 }
 0x1f9   : > { %v4172_v15 = vadd.f32 %v4171_v38, %v3981_v42  ;;  %v4241_v32 = vadd.f32 %v4240_v5, %v4210_v19  ;;  %v3944_v20 = vadd.f32 %v3912_v36, %v3071_v39  ;;  %v3982_v52 = vadd.f32 %v7047_v62, %v3943_v35 }
 0x1fa   : > { %v3985_v40 = vadd.f32 %v7047_v62, %v3946_v9  ;;  %v5422_v44 = vpop.f32.mrb[44].mxu1  ;;  %v7153_v19 = vadd.s32 216, %v6839_v26  ;;  %v7156_v48 = vadd.s32 200, %v6839_v26  ;;  %v7397_v60 = vsel %vm7053_vm6, 1.0, %v6648_v1 }
 0x1fb   : > { %v5566_v53 = vpop.f32.mrb[44].mxu0  ;;  %v4242_v8 = vadd.f32 %v4241_v32, %v4211_v4  ;;  %v3983_v6 = vadd.f32 %v7047_v62, %v3944_v20  ;;  %v4173_v47 = vadd.f32 %v4172_v15, %v3982_v52  ;;  %v4212_v21 = vmul.f32 %v3982_v52, %v3982_v52  ;;  %v2951_v22 = vpop.f32.mrb[45].mxu1  ;;  %v7173_v20 = vld [vmem:[#allocation2 + $0x10] sm:$0xff] }
 0x1fc   : > { %v3792_v17 = vpop.f32.mrb[45].mxu0  ;;  %v4854_v46 = vpack.c.bf16 %v3985_v40, %v3984_v18  ;;  %v3076_v41 = vadd.f32 %v5422_v44, %v6995_v24  ;;  %v3074_v13 = vadd.f32 %v2951_v22, %v6998_v29  ;;  %v5423_v61 = vpop.f32.mrb[46].mxu1  ;;  %v7398_v29 = vsel %vm7060_vm7, 1.0, %v6648_v1 }
 0x1fd   : > { %v5567_v10 = vpop.f32.mrb[46].mxu0  ;;  %v4849_v45 = vpack.c.bf16 %v3983_v6, %v3982_v52  ;;  %v4213_v57 = vmul.f32 %v3983_v6, %v3983_v6  ;;  %v4243_v3 = vadd.f32 %v4242_v8, %v4212_v21  ;;  %v4174_v49 = vadd.f32 %v4173_v47, %v3983_v6  ;;  %v2954_v38 = vpop.f32.mrb[47].mxu1 }
 0x1fe   : > { %v3795_v56 = vpop.f32.mrb[47].mxu0  ;;  %4925 = vst [vmem:[%s7091_s11 + $0x28] sm:$0xff] %v4854_v46   ;;  %v3077_v30 = vadd.f32 %v6799_v27, %v5423_v61  ;;  %v3918_v5 = vmul.f32 %v5567_v10, %v7397_v60  ;;  %v3949_v39 = vadd.f32 %v5566_v53, %v3076_v41  ;;  %v3947_v55 = vadd.f32 %v3792_v17, %v3074_v13 }
 0x1ff   : > { %4924 = vst [vmem:[%s7091_s11 + $0x20] sm:$0xff] %v4849_v45   ;;  %v3075_v24 = vadd.f32 %v6802_v28, %v2954_v38  ;;  %v3916_v36 = vmul.f32 %v7398_v29, %v3795_v56  ;;  %v4214_v35 = vmul.f32 %v3984_v18, %v3984_v18  ;;  %v4244_v9 = vadd.f32 %v4243_v3, %v4213_v57 }
 0x200   : > { %v4175_v4 = vadd.f32 %v4174_v49, %v3984_v18  ;;  %v3950_v27 = vadd.f32 %v3918_v5, %v3077_v30  ;;  %v4215_v15 = vmul.f32 %v3985_v40, %v3985_v40  ;;  %v3986_v59 = vadd.f32 %v7047_v62, %v3947_v55 }
 0x201   : > { %v3948_v32 = vadd.f32 %v3916_v36, %v3075_v24  ;;  %v4484_v52 = vsel %vm7148_vm11, 1.0, %v7173_v20  ;;  %v3988_v28 = vadd.f32 %v7047_v62, %v3949_v39  ;;  %v4245_v53 = vadd.f32 %v4244_v9, %v4214_v35 }
 0x202   : > { %v4176_v31 = vadd.f32 %v4175_v4, %v3985_v40  ;;  %v3989_v8 = vadd.f32 %v7047_v62, %v3950_v27  ;;  %v4216_v44 = vmul.f32 %v3986_v59, %v3986_v59  ;;  %v5426_v17 = vpop.f32.mrb[48].mxu1  ;;  %v998_v21 = vand.u32 15, %v7153_v19 }
 0x203   : > { %v5570_v6 = vpop.f32.mrb[48].mxu0  ;;  %v3987_v18 = vadd.f32 %v7047_v62, %v3948_v32  ;;  %v984_v46 = vand.u32 15, %v7156_v48  ;;  %v4246_v10 = vadd.f32 %v4245_v53, %v4215_v15  ;;  %v2967_v57 = vpop.f32.mrb[49].mxu1  ;;  %v7184_v41 = vadd.s32 248, %v6839_v26 }
 0x204   : > { %v3808_v47 = vpop.f32.mrb[49].mxu0  ;;  %v4177_v22 = vadd.f32 %v4176_v31, %v3986_v59  ;;  %v4864_v45 = vpack.c.bf16 %v3989_v8, %v3988_v28  ;;  %v3080_v56 = vadd.f32 %v5426_v17, %v7006_v23  ;;  %v3078_v3 = vadd.f32 %v2967_v57, %v7009_v2  ;;  %v5427_v49 = vpop.f32.mrb[50].mxu1 }
 0x205   : > { %v5571_v40 = vpop.f32.mrb[50].mxu0  ;;  %v4859_v13 = vpack.c.bf16 %v3987_v18, %v3986_v59  ;;  %v4217_v61 = vmul.f32 %v3987_v18, %v3987_v18  ;;  %v4247_v19 = vadd.f32 %v4246_v10, %v4216_v44  ;;  %v3081_v60 = vadd.f32 %v6810_v63, %v5427_v49  ;;  %v2970_v38 = vpop.f32.mrb[51].mxu1 }
 0x206   : > { %v3811_v30 = vpop.f32.mrb[51].mxu0  ;;  %4927 = vst [vmem:[%s7091_s11 + $0x38] sm:$0xff] %v4864_v45   ;;  %v4178_v48 = vadd.f32 %v4177_v22, %v3987_v18  ;;  %v3922_v5 = vmul.f32 %v5571_v40, %v4483_v25  ;;  %v3953_v39 = vadd.f32 %v5570_v6, %v3080_v56  ;;  %v3951_v55 = vadd.f32 %v3808_v47, %v3078_v3 }
 0x207   : > { %4926 = vst [vmem:[%s7091_s11 + $0x30] sm:$0xff] %v4859_v13   ;;  %v3079_v23 = vadd.f32 %v6812_v14, %v2970_v38  ;;  %v3920_v2 = vmul.f32 %v4482_v16, %v3811_v30  ;;  %v4218_v24 = vmul.f32 %v3988_v28, %v3988_v28  ;;  %v4248_v29 = vadd.f32 %v4247_v19, %v4217_v61 }
 0x208   : > { %v4179_v36 = vadd.f32 %v4178_v48, %v3988_v28  ;;  %v3954_v63 = vadd.f32 %v3922_v5, %v3081_v60  ;;  %v4219_v35 = vmul.f32 %v3989_v8, %v3989_v8  ;;  %v3990_v50 = vadd.f32 %v7047_v62, %v3951_v55 }
 0x209   : > { %v3952_v9 = vadd.f32 %v3920_v2, %v3079_v23  ;;  %vm7201_vm12 = vcmp.ne.s32.totalorder %v998_v21, 15  ;;  %v3992_v4 = vadd.f32 %v7047_v62, %v3953_v39  ;;  %v4249_v27 = vadd.f32 %v4248_v29, %v4218_v24 }
 0x20a   : > { %v4180_v14 = vadd.f32 %v4179_v36, %v3989_v8  ;;  %v3993_v37 = vadd.f32 %v7047_v62, %v3954_v63  ;;  %v4220_v16 = vmul.f32 %v3990_v50, %v3990_v50  ;;  %v5430_v32 = vpop.f32.mrb[52].mxu1  ;;  %vm7208_vm13 = vcmp.ne.s32.totalorder %v984_v46, 15 }
 0x20b   : > { %v5574_v15 = vpop.f32.mrb[52].mxu0  ;;  %v3991_v59 = vadd.f32 %v7047_v62, %v3952_v9  ;;  %v7213_v53 = vadd.s32 232, %v6839_v26  ;;  %v4250_v44 = vadd.f32 %v4249_v27, %v4219_v35  ;;  %v2983_v18 = vpop.f32.mrb[53].mxu1  ;;  %v1026_v47 = vand.u32 15, %v7184_v41 }
 0x20c   : > { %v3824_v28 = vpop.f32.mrb[53].mxu0  ;;  %v4181_v6 = vadd.f32 %v4180_v14, %v3990_v50  ;;  %v4874_v8 = vpack.c.bf16 %v3993_v37, %v3992_v4  ;;  %v3084_v10 = vadd.f32 %v5430_v32, %v7015_v7  ;;  %v3082_v46 = vadd.f32 %v2983_v18, %v7018_v54  ;;  %v5431_v45 = vpop.f32.mrb[54].mxu1 }
 0x20d   : > { %v5575_v17 = vpop.f32.mrb[54].mxu0  ;;  %v4869_v21 = vpack.c.bf16 %v3991_v59, %v3990_v50  ;;  %v4221_v22 = vmul.f32 %v3991_v59, %v3991_v59  ;;  %v4251_v40 = vadd.f32 %v4250_v44, %v4220_v16  ;;  %v3085_v13 = vadd.f32 %v6819_v43, %v5431_v45  ;;  %v2986_v56 = vpop.f32.mrb[55].mxu1 }
 0x20e   : > { %v3827_v57 = vpop.f32.mrb[55].mxu0  ;;  %4929 = vst [vmem:[%s7091_s11 + $0x48] sm:$0xff] %v4874_v8   ;;  %v4182_v26 = vadd.f32 %v4181_v6, %v3991_v59  ;;  %v3926_v61 = vmul.f32 %v5575_v17, %v4485_v58  ;;  %v3957_v41 = vadd.f32 %v5574_v15, %v3084_v10  ;;  %v3955_v3 = vadd.f32 %v3824_v28, %v3082_v46 }
 0x20f   : > { %4928 = vst [vmem:[%s7091_s11 + $0x40] sm:$0xff] %v4869_v21   ;;  %v3083_v7 = vadd.f32 %v6821_v34, %v2986_v56  ;;  %v3924_v54 = vmul.f32 %v4484_v52, %v3827_v57  ;;  %v4222_v49 = vmul.f32 %v3992_v4, %v3992_v4  ;;  %v4252_v30 = vadd.f32 %v4251_v40, %v4221_v22 }
 0x210   : > { %v4183_v19 = vadd.f32 %v4182_v26, %v3992_v4  ;;  %v3958_v43 = vadd.f32 %v3926_v61, %v3085_v13  ;;  %v4223_v48 = vmul.f32 %v3993_v37, %v3993_v37  ;;  %v3994_v0 = vadd.f32 %v7047_v62, %v3955_v3  ;;  %v7409_v3 = vld [vmem:[#allocation3_spill] sm:$0xff] }
 0x211   : > { %v3956_v60 = vadd.f32 %v3924_v54, %v3083_v7  ;;  %v4487_v58 = vsel %vm7201_vm12, 1.0, %v7173_v20  ;;  %v3996_v5 = vadd.f32 %v7047_v62, %v3957_v41  ;;  %v4253_v38 = vadd.f32 %v4252_v30, %v4222_v49 }
 0x212   : > { %v4184_v34 = vadd.f32 %v4183_v19, %v3993_v37  ;;  %v3997_v42 = vadd.f32 %v7047_v62, %v3958_v43  ;;  %v4224_v52 = vmul.f32 %v3994_v0, %v3994_v0  ;;  %v5434_v23 = vpop.f32.mrb[56].mxu1  ;;  %v4486_v24 = vsel %vm7208_vm13, 1.0, %v7173_v20 }
 0x213   : > { %v5578_v39 = vpop.f32.mrb[56].mxu0  ;;  %v3995_v55 = vadd.f32 %v7047_v62, %v3956_v60  ;;  %v1012_v29 = vand.u32 15, %v7213_v53  ;;  %v4254_v63 = vadd.f32 %v4253_v38, %v4223_v48  ;;  %v2999_v50 = vpop.f32.mrb[57].mxu1  ;;  %vm7241_vm14 = vcmp.ne.s32.totalorder %v1026_v47, 15 }
 0x214   : > { %v3840_v2 = vpop.f32.mrb[57].mxu0  ;;  %v4185_v36 = vadd.f32 %v4184_v34, %v3994_v0  ;;  %v4884_v35 = vpack.c.bf16 %v3997_v42, %v3996_v5  ;;  %v3088_v27 = vadd.f32 %v5434_v23, %v7021_v33  ;;  %v3086_v37 = vadd.f32 %v2999_v50, %v7027_v51  ;;  %v5435_v15 = vpop.f32.mrb[58].mxu1  ;;  %v7411_v23 = vld [vmem:[#allocation4_spill] sm:$0xff] }
 0x215   : > { %v5579_v9 = vpop.f32.mrb[58].mxu0  ;;  %v4879_v4 = vpack.c.bf16 %v3995_v55, %v3994_v0  ;;  %v4225_v14 = vmul.f32 %v3995_v55, %v3995_v55  ;;  %v4255_v59 = vadd.f32 %v4254_v63, %v4224_v52  ;;  %v3089_v28 = vadd.f32 %v6827_v12, %v5435_v15  ;;  %v3002_v53 = vpop.f32.mrb[59].mxu1 }
 0x216   : > { %v3843_v16 = vpop.f32.mrb[59].mxu0  ;;  %4931 = vst [vmem:[%s7091_s11 + $0x58] sm:$0xff] %v4884_v35   ;;  %v4186_v32 = vadd.f32 %v4185_v36, %v3995_v55  ;;  %v3930_v31 = vmul.f32 %v5579_v9, %v4487_v58  ;;  %v3961_v6 = vadd.f32 %v5578_v39, %v3088_v27  ;;  %v3959_v44 = vadd.f32 %v3840_v2, %v3086_v37  ;;  %v7412_v35 = vld [vmem:[#allocation5_spill] sm:$0xff] }
 0x217   : > { %4930 = vst [vmem:[%s7091_s11 + $0x50] sm:$0xff] %v4879_v4   ;;  %v3087_v8 = vadd.f32 %v6829_v11, %v3002_v53  ;;  %v3928_v18 = vmul.f32 %v4486_v24, %v3843_v16  ;;  %v4226_v17 = vmul.f32 %v3996_v5, %v3996_v5  ;;  %v4256_v47 = vadd.f32 %v4255_v59, %v4225_v14 }
 0x218   : > { %v4187_v33 = vadd.f32 %v4186_v32, %v3996_v5  ;;  %v3962_v21 = vadd.f32 %v3930_v31, %v3089_v28  ;;  %v4227_v51 = vmul.f32 %v3997_v42, %v3997_v42  ;;  %v3998_v22 = vadd.f32 %v7047_v62, %v3959_v44  ;;  %v7410_v5 = vld [vmem:[#allocation7_spill] sm:$0xff] }
 0x219   : > { %v3960_v10 = vadd.f32 %v3928_v18, %v3087_v8  ;;  %vm7252_vm0 = vcmp.ne.s32.totalorder %v1012_v29, 15  ;;  %v4000_v12 = vadd.f32 %v7047_v62, %v3961_v6  ;;  %v4257_v57 = vadd.f32 %v4256_v47, %v4226_v17 }
 0x21a   : > { %v4188_v45 = vadd.f32 %v4187_v33, %v3997_v42  ;;  %v4001_v40 = vadd.f32 %v7047_v62, %v3962_v21  ;;  %v4228_v26 = vmul.f32 %v3998_v22, %v3998_v22  ;;  %v5438_v61 = vpop.f32.mrb[60].mxu1  ;;  %v7408_v41 = vsel %vm6934_vm15, 1.0, %v6648_v1 }
 0x21b   : > { %v5582_v11 = vpop.f32.mrb[60].mxu0  ;;  %v3999_v13 = vadd.f32 %v7047_v62, %v3960_v10  ;;  %v2217_v7 = vmul.f32 %v7409_v3, %v7408_v41  ;;  %v4489_v49 = vsel %vm7241_vm14, 1.0, %v7173_v20  ;;  %v4258_v19 = vadd.f32 %v4257_v57, %v4227_v51  ;;  %v3015_v48 = vpop.f32.mrb[61].mxu1 }
 0x21c   : > { %v3856_v54 = vpop.f32.mrb[61].mxu0  ;;  %v4189_v30 = vadd.f32 %v4188_v45, %v3998_v22  ;;  %v4894_v43 = vpack.c.bf16 %v4001_v40, %v4000_v12  ;;  %v4488_v60 = vsel %vm7252_vm0, 1.0, %v7173_v20  ;;  %v3092_v34 = vadd.f32 %v5438_v61, %v7410_v5  ;;  %v5439_v42 = vpop.f32.mrb[62].mxu1 }
 0x21d   : > { %v5583_v0 = vpop.f32.mrb[62].mxu0  ;;  %v4889_v58 = vpack.c.bf16 %v3999_v13, %v3998_v22  ;;  %v4229_v1 = vmul.f32 %v3999_v13, %v3999_v13  ;;  %v3090_v38 = vadd.f32 %v3015_v48, %v2217_v7  ;;  %v4259_v52 = vadd.f32 %v4258_v19, %v4228_v26  ;;  %v3018_v29 = vpop.f32.mrb[63].mxu1 }
 0x21e   : > { %v3859_v39 = vpop.f32.mrb[63].mxu0  ;;  %4933 = vst [vmem:[%s7091_s11 + $0x68] sm:$0xff] %v4894_v43   ;;  %v4190_v55 = vadd.f32 %v4189_v30, %v3999_v13  ;;  %v3093_v2 = vadd.f32 %v7411_v23, %v5439_v42  ;;  %v3934_v24 = vmul.f32 %v5583_v0, %v4489_v49  ;;  %v3965_v36 = vadd.f32 %v5582_v11, %v3092_v34 }
 0x21f   : > { %4932 = vst [vmem:[%s7091_s11 + $0x60] sm:$0xff] %v4889_v58   ;;  %v3963_v63 = vadd.f32 %v3856_v54, %v3090_v38  ;;  %v3091_v50 = vadd.f32 %v7412_v35, %v3018_v29  ;;  %v3932_v20 = vmul.f32 %v4488_v60, %v3859_v39  ;;  %v4230_v9 = vmul.f32 %v4000_v12, %v4000_v12 }
 0x220   : > { %v4260_v25 = vadd.f32 %v4259_v52, %v4229_v1  ;;  %v4191_v4 = vadd.f32 %v4190_v55, %v4000_v12  ;;  %v3966_v14 = vadd.f32 %v3934_v24, %v3093_v2  ;;  %v4231_v27 = vmul.f32 %v4001_v40, %v4001_v40 }
 0x221   : > { %v4002_v37 = vadd.f32 %v7047_v62, %v3963_v63  ;;  %v3964_v15 = vadd.f32 %v3932_v20, %v3091_v50  ;;  %v4004_v16 = vadd.f32 %v7047_v62, %v3965_v36 }
 0x222   : > { %v4192_v59 = vadd.f32 %v4191_v4, %v4001_v40  ;;  %v4261_v32 = vadd.f32 %v4260_v25, %v4230_v9  ;;  %v4005_v28 = vadd.f32 %v7047_v62, %v3966_v14 }
 0x223   : > { %v4232_v31 = vmul.f32 %v4002_v37, %v4002_v37  ;;  %v4003_v53 = vadd.f32 %v7047_v62, %v3964_v15  ;;  %v4234_v21 = vmul.f32 %v4004_v16, %v4004_v16 }
 0x224   : > { %v4193_v6 = vadd.f32 %v4192_v59, %v4002_v37  ;;  %v4262_v44 = vadd.f32 %v4261_v32, %v4231_v27  ;;  %v4904_v8 = vpack.c.bf16 %v4005_v28, %v4004_v16  ;;  %v4235_v10 = vmul.f32 %v4005_v28, %v4005_v28 }
 0x225   : > { %v4899_v18 = vpack.c.bf16 %v4003_v53, %v4002_v37  ;;  %v4233_v17 = vmul.f32 %v4003_v53, %v4003_v53 }
 0x226   : > { %v4263_v47 = vadd.f32 %v4262_v44, %v4232_v31  ;;  %4935 = vst [vmem:[%s7091_s11 + $0x78] sm:$0xff] %v4904_v8   ;;  %v4194_v33 = vadd.f32 %v4193_v6, %v4003_v53 }
 0x227   : > { %4934 = vst [vmem:[%s7091_s11 + $0x70] sm:$0xff] %v4899_v18  }
 0x228   : > { %v4195_v51 = vadd.f32 %v4194_v33, %v4004_v16  ;;  %v4264_v22 = vadd.f32 %v4263_v47, %v4233_v17 }
 0x22a   : > { %v4196_v46 = vadd.f32 %v4195_v51, %v4005_v28  ;;  %v4265_v12 = vadd.f32 %v4264_v22, %v4234_v21 }
 0x22c   : > { %v4197_v45 = vrot.slane %v4196_v46, 4  ;;  %v4266_v57 = vadd.f32 %v4265_v12, %v4235_v10 }
 0x22e   : > { %v4198_v40 = vadd.f32 %v4197_v45, %v4196_v46  ;;  %v4267_v62 = vrot.slane %v4266_v57, 4 }
 0x230   : > { %v4199_v11 = vrot.slane %v4198_v40, 2  ;;  %v4268_v26 = vadd.f32 %v4267_v62, %v4266_v57 }
 0x232   : > { %v4200_v13 = vadd.f32 %v4199_v11, %v4198_v40  ;;  %v4269_v61 = vrot.slane %v4268_v26, 2 }
 0x234   : > { %v4201_v56 = vrot.slane %v4200_v13, 1  ;;  %v4270_v41 = vadd.f32 %v4269_v61, %v4268_v26 }
 0x236   : > { %v4202_v3 = vadd.f32 %v4201_v56, %v4200_v13  ;;  %v4271_v7 = vrot.slane %v4270_v41, 1 }
 0x238   : > { %4203 = vst [vmem:[%s491_s14] sm:$0x1] %v4202_v3  ;;  %v4272_v54 = vadd.f32 %v4271_v7, %v4270_v41 }
 0x23a   : > { %4273 = vst [vmem:[%s491_s14 + $0x1] sm:$0x1] %v4272_v54 }
 0x23b PF: > { %s19_s27 = sadd.s32 1, %s5913_s27   ;;  %s7413_s26 = smov %s5909_s2 }
 0x23c   : > { %p16_p5 = scmp.ge.s32.totalorder %s19_s27, 4   ;;  %s7414_s2 = smov %s7416_s28 }
 0x23e   :  { %18 = sbr.rel (!%p16_p5) target bundleno = 2 (0x2), region = 120 }

</bundles_post_ra>
